<compile_context>
chip_gen: v7x
topology: tpu7x:2x2x1
jax: 0.10.0
libtpu: 0.0.40
codegen_flags: <defaults>
</compile_context>

<pallas_src>
import numpy as np

import jax
import jax.numpy as jnp
from jax.experimental import pallas as pl
from jax.experimental.pallas import tpu as pltpu


# ----------------------------------------------------------------------------
# Model configuration (small shapes consistent with the module's forward pass)
# ----------------------------------------------------------------------------
IN_CHANNELS = 1
BASE_CHANNELS = 8          # C
NUM_RES_BLOCKS = 2
LATENT_DIM = 16            # L
IMAGE_SIZE = 16            # H = W
SCALE = 2
OUT_CHANNELS = 1
BATCH = 2

H = W = IMAGE_SIZE
C = BASE_CHANNELS
L = LATENT_DIM
WC = W * C                           # 128 -- lane-dense activation row width
UPC = OUT_CHANNELS * SCALE * SCALE   # 4   (conv_up output channels)
H2 = H * SCALE                       # 32
W2 = W * SCALE                       # 32
UW = SCALE * W2                      # 64  -- packed (pre-unshuffle) row width == W*UPC
FEAT = C * H * W                     # 2048

B_TILE = BATCH                       # images stacked along sublanes in one grid step
ROWS = B_TILE * (H + 2)              # 36 -- tall padded slab height
MR = ROWS - 2                        # 34 -- rows of every conv-output slab


# ----------------------------------------------------------------------------
# Fused Pallas kernel
# ----------------------------------------------------------------------------
def _hicvae_kernel(x_ref, eps_ref,
                   band_in_ref, bands8_ref, band_up_ref, band_out_ref,
                   w_head_ref, b_head_ref, w_dec_ref, b_dec_ref,
                   recon_ref, musig_ref,
                   pbuf_in, pbuf, pbuf_up):
    f32 = jnp.float32

    # Hoisted interior-row masks: slab output row r is a real image row iff
    # r in [b*(H+2), b*(H+2)+H) for some image b; the rest land on pad rows.
    def interior_mask(lanes):
        r = jax.lax.broadcasted_iota(jnp.int32, (MR, lanes), 0)
        m = None
        for b in range(B_TILE):
            lo = b * (H + 2)
            mb = jnp.logical_and(r >= lo, r < lo + H)
            m = mb if m is None else jnp.logical_or(m, mb)
        return m

    mask_act = interior_mask(WC)
    mask_up = interior_mask(UW)

    # Zero only the pad rows that are never rewritten by the masked stores below.
    zrow_c = jnp.zeros((1, WC), f32)
    zrow_u = jnp.zeros((1, UW), f32)
    zrow_i = jnp.zeros((1, W), f32)
    pbuf[pl.ds(0, 1), :] = zrow_c
    pbuf[pl.ds(ROWS - 1, 1), :] = zrow_c
    pbuf_up[pl.ds(0, 1), :] = zrow_u
    pbuf_up[pl.ds(ROWS - 1, 1), :] = zrow_u
    for b in range(B_TILE):
        pbuf_in[pl.ds(b * (H + 2), 1), :] = zrow_i
        pbuf_in[pl.ds(b * (H + 2) + H + 1, 1), :] = zrow_i

    def band_dot(src, band_of):
        # 3x3 'same' conv over the whole batch slab as 3 banded matmuls.
        # Chained accumulate kept so v7x can accumulate in the MRB.
        acc = jnp.dot(src[pl.ds(0, MR), :], band_of(0), preferred_element_type=f32)
        for dh in (1, 2):
            acc = acc + jnp.dot(src[pl.ds(dh, MR), :], band_of(dh),
                                preferred_element_type=f32)
        return acc

    def set_act(val):
        # One bulk store of the conv slab; garbage rows (conv centred on pad rows)
        # are zeroed so the vertical pad rows between images stay zero.
        pbuf[pl.ds(1, MR), :] = jnp.where(mask_act, val, 0.0)

    def conv8(idx, relu=False):                 # cin = cout = C convs
        acc = band_dot(pbuf, lambda dh: bands8_ref[idx, dh, :, :])
        if relu:
            acc = jnp.maximum(acc, 0.0)
        return acc

    def res_block(i1, i2):                      # x + 0.1 * conv2(relu(conv1(x)))
        res = pbuf[pl.ds(1, MR), :]
        set_act(conv8(i1, relu=True))
        set_act(res + 0.1 * conv8(i2))

    # ------------------------------- Encoder ---------------------------------
    for b in range(B_TILE):
        pbuf_in[pl.ds(b * (H + 2) + 1, H), :] = x_ref[b, :, :]
    set_act(band_dot(pbuf_in, lambda dh: band_in_ref[dh, :, :]))     # enc conv1

    for r in range(NUM_RES_BLOCKS):
        res_block(2 * r, 2 * r + 1)
    set_act(conv8(2 * NUM_RES_BLOCKS))                               # enc conv2

    # fc_mu / fc_sigma fused into ONE (B, H*WC) @ (H*WC, 2L) matmul.  The flatten
    # is a register relayout (sublane slices -> lane concat), not stores/loads.
    flat_rows = []
    for b in range(B_TILE):
        fb = pbuf[pl.ds(b * (H + 2) + 1, H), :]                      # (H, WC)
        flat_rows.append(
            jnp.concatenate([fb[h:h + 1, :] for h in range(H)], axis=1))
    feat = jnp.concatenate(flat_rows, axis=0)                        # (B, H*WC)
    musig = (jnp.dot(feat, w_head_ref[...], preferred_element_type=f32)
             + b_head_ref[...])                                      # (B, 2L)
    mu = musig[:, :L]
    sigma = jnp.exp(musig[:, L:])
    z = mu + sigma * eps_ref[...]                                    # reparameterization
    musig_ref[...] = jnp.concatenate([mu, sigma], axis=1).astype(musig_ref.dtype)

    # ------------------------------- Decoder ---------------------------------
    dec = (jnp.dot(z, w_dec_ref[...], preferred_element_type=f32)
           + b_dec_ref[...])                                         # (B, H*WC)
    for b in range(B_TILE):
        rows_b = jnp.concatenate(
            [dec[b:b + 1, h * WC:(h + 1) * WC] for h in range(H)], axis=0)   # (H, WC)
        pbuf[pl.ds(b * (H + 2) + 1, H), :] = rows_b                  # 1 bulk store/image

    base = 2 * NUM_RES_BLOCKS + 1
    for r in range(NUM_RES_BLOCKS):
        res_block(base + 2 * r, base + 2 * r + 1)
    set_act(conv8(base + 2 * NUM_RES_BLOCKS))                        # conv_pre_up

    # conv_up with the PixelShuffle column permutation pre-folded into its weights
    up = band_dot(pbuf, lambda dh: band_up_ref[dh, :, :])            # (MR, UW)
    pbuf_up[pl.ds(1, MR), :] = jnp.where(mask_up, up, 0.0)

    # conv_out with PixelShuffle folded into banded weights: runs directly on the
    # packed (h, [sub-row|column]) layout -> no 32-store scatter, no 66x32 conv.
    out_pk = band_dot(pbuf_up, lambda dh: band_out_ref[dh, :, :])    # (MR, UW)
    for b in range(B_TILE):
        recon_ref[b, :, :] = out_pk[b * (H + 2):b * (H + 2) + H, :].astype(recon_ref.dtype)


# ----------------------------------------------------------------------------
# Host-side weight packing (layout plumbing, done once)
# ----------------------------------------------------------------------------
def _conv_bands(w_oihw, width):
    """Banded matrices (3, width*cin, width*cout) for a 3x3 'same' conv.

    Row w*cin + ci is real input column w, channel ci (both all-zero pad columns
    are dropped -- they can only ever multiply zeros).  Column w*cout + co is the
    conv output at spatial column w, channel co.
    """
    k = np.transpose(np.asarray(w_oihw, np.float32), (2, 3, 1, 0))   # HWIO
    _, _, cin, cout = k.shape
    bands = np.zeros((3, (width + 2) * cin, width * cout), np.float32)
    for dh in range(3):
        for dw in range(3):
            for w in range(width):
                bands[dh, (w + dw) * cin:(w + dw + 1) * cin,
                      w * cout:(w + 1) * cout] = k[dh, dw]
    return bands[:, cin:(width + 1) * cin, :]


def _conv_out_bands_packed(w_out):
    """conv_out composed with PixelShuffle, as banded matrices acting on the
    packed (h, i*W2 + column) layout produced by the permuted conv_up weights."""
    k = np.asarray(w_out, np.float32)[0, 0]                          # (3, 3)
    bands = np.zeros((3, UW, UW), np.float32)
    for dh in range(3):
        for i in range(SCALE):               # source sub-row
            for ip in range(SCALE):          # destination sub-row
                a = SCALE * (dh - 1) + i - ip + 1
                if not 0 <= a < 3:
                    continue
                for yc in range(W2):         # source column
                    for ycp in range(W2):    # destination column
                        bcol = yc - ycp + 1
                        if 0 <= bcol < 3:
                            bands[dh, i * W2 + yc, ip * W2 + ycp] = k[a, bcol]
    return bands


def pack_params(p):
    assert OUT_CHANNELS == 1  # pixel-shuffle folds assume a single output channel
    ops = {}
    ops["band_in"] = _conv_bands(p["enc_conv1"], W)                  # (3, 16, 128)

    convs8 = []
    for (w1, w2) in p["enc_res"]:
        convs8 += [w1, w2]
    convs8.append(p["enc_conv2"])
    for (w1, w2) in p["dec_res"]:
        convs8 += [w1, w2]
    convs8.append(p["conv_pre_up"])
    ops["bands8"] = np.stack([_conv_bands(wt, W) for wt in convs8])  # (10, 3, 128, 128)

    # conv_up with torch PixelShuffle(SCALE) folded in as a column permutation:
    # new column i*W2 + SCALE*w + j  <-  old column w*UPC + (i*SCALE + j)
    raw = _conv_bands(p["conv_up"], W)                               # (3, 128, W*UPC)
    src = np.empty((W * UPC,), np.int64)
    for i in range(SCALE):
        for w in range(W):
            for j in range(SCALE):
                src[i * W2 + SCALE * w + j] = w * UPC + (i * SCALE + j)
    ops["band_up"] = raw[:, :, src]                                  # (3, 128, 64)

    ops["band_out"] = _conv_out_bands_packed(p["conv_out"])          # (3, 64, 64)

    # fc_mu / fc_sigma fused and permuted from torch's (c,h,w) flatten order to
    # the kernel's flat (h*WC + w*C + c) feature order.
    wcat = np.concatenate([np.asarray(p["fc_mu_w"], np.float32).T,
                           np.asarray(p["fc_sigma_w"], np.float32).T], axis=1)   # (F, 2L)
    ops["w_head"] = (wcat.reshape(C, H, W, 2 * L).transpose(1, 2, 0, 3)
                     .reshape(H * WC, 2 * L))                        # (2048, 32)
    ops["b_head"] = np.concatenate([np.asarray(p["fc_mu_b"], np.float32),
                                    np.asarray(p["fc_sigma_b"], np.float32)])[None, :]

    # decoder fc, columns permuted so column h*W*C + w*C + c == torch c*H*W + h*W + w
    wd = np.asarray(p["dec_fc_w"], np.float32).T                     # (L, F) torch order
    ops["w_dec"] = wd.reshape(L, C, H, W).transpose(0, 2, 3, 1).reshape(L, H * WC)
    bd = np.asarray(p["dec_fc_b"], np.float32)
    ops["b_dec"] = bd.reshape(C, H, W).transpose(1, 2, 0).reshape(1, H * WC)

    return {k: jnp.asarray(v) for k, v in ops.items()}


# ----------------------------------------------------------------------------
# Forward wrapper (single pallas_call, single grid step)
# ----------------------------------------------------------------------------
@jax.jit
def hicvae_forward(packed, x_nchw, eps):
    B = x_nchw.shape[0]
    assert B == B_TILE, "kernel is specialised to B_TILE images stacked along M"
    x_img = x_nchw[:, 0, :, :]                 # (B, H, W), in_channels == 1

    def full(nd):
        return lambda g: (0,) * nd

    out_shape = (
        jax.ShapeDtypeStruct((B, H, UW), jnp.float32),    # recon, packed layout
        jax.ShapeDtypeStruct((B, 2 * L), jnp.float32),    # [mu | sigma]
    )
    recon_pk, musig = pl.pallas_call(
        _hicvae_kernel,
        out_shape=out_shape,
        grid=(1,),
        in_specs=[
            pl.BlockSpec((B, H, W), full(3)),             # x
            pl.BlockSpec((B, L), full(2)),                # eps
            pl.BlockSpec(packed["band_in"].shape, full(3)),
            pl.BlockSpec(packed["bands8"].shape, full(4)),
            pl.BlockSpec(packed["band_up"].shape, full(3)),
            pl.BlockSpec(packed["band_out"].shape, full(3)),
            pl.BlockSpec(packed["w_head"].shape, full(2)),
            pl.BlockSpec(packed["b_head"].shape, full(2)),
            pl.BlockSpec(packed["w_dec"].shape, full(2)),
            pl.BlockSpec(packed["b_dec"].shape, full(2)),
        ],
        out_specs=[
            pl.BlockSpec((B, H, UW), full(3)),
            pl.BlockSpec((B, 2 * L), full(2)),
        ],
        scratch_shapes=[
            pltpu.VMEM((ROWS, W), jnp.float32),     # padded 1-channel input slab
            pltpu.VMEM((ROWS, WC), jnp.float32),    # padded (H, W*C) activation slab
            pltpu.VMEM((ROWS, UW), jnp.float32),    # padded packed upsampled slab
        ],
        compiler_params=pltpu.CompilerParams(
            dimension_semantics=("arbitrary",),
        ),
    )(x_img, eps,
      packed["band_in"], packed["bands8"], packed["band_up"], packed["band_out"],
      packed["w_head"], packed["b_head"], packed["w_dec"], packed["b_dec"])

    # Undo the packed (h, [sub-row | column]) recon layout on the host side (free).
    recon = recon_pk.reshape(B, H, SCALE, W2).reshape(B, H2, W2)[:, None, :, :]
    return recon, musig[:, :L], musig[:, L:]


# ----------------------------------------------------------------------------
# Parameters (torch-layout) and a pure-JAX reference of the PyTorch forward
# ----------------------------------------------------------------------------
def init_params(key):
    ks = jax.random.split(key, 24)
    it = iter(ks)

    def conv_w(k, cout, cin, scale=0.08):                 # torch OIHW layout
        return scale * jax.random.normal(k, (cout, cin, 3, 3), jnp.float32)

    p = {}
    p["enc_conv1"] = conv_w(next(it), C, IN_CHANNELS)
    p["enc_res"] = [(conv_w(next(it), C, C), conv_w(next(it), C, C))
                    for _ in range(NUM_RES_BLOCKS)]
    p["enc_conv2"] = conv_w(next(it), C, C)
    p["fc_mu_w"] = 0.01 * jax.random.normal(next(it), (L, FEAT), jnp.float32)
    p["fc_mu_b"] = 0.01 * jax.random.normal(next(it), (L,), jnp.float32)
    p["fc_sigma_w"] = 0.01 * jax.random.normal(next(it), (L, FEAT), jnp.float32)
    p["fc_sigma_b"] = 0.01 * jax.random.normal(next(it), (L,), jnp.float32)
    p["dec_fc_w"] = 0.02 * jax.random.normal(next(it), (FEAT, L), jnp.float32)
    p["dec_fc_b"] = 0.01 * jax.random.normal(next(it), (FEAT,), jnp.float32)
    p["dec_res"] = [(conv_w(next(it), C, C), conv_w(next(it), C, C))
                    for _ in range(NUM_RES_BLOCKS)]
    p["conv_pre_up"] = conv_w(next(it), C, C)
    p["conv_up"] = conv_w(next(it), UPC, C)
    p["conv_out"] = conv_w(next(it), OUT_CHANNELS, OUT_CHANNELS)
    return p


def _conv_ref(x, w):
    return jax.lax.conv_general_dilated(
        x, w, window_strides=(1, 1), padding=((1, 1), (1, 1)),
        dimension_numbers=("NCHW", "OIHW", "NCHW"),
        precision=jax.lax.Precision.HIGHEST)


def hicvae_reference(p, x, eps):
    hp = jax.lax.Precision.HIGHEST
    h = _conv_ref(x, p["enc_conv1"])
    for (w1, w2) in p["enc_res"]:
        h = h + 0.1 * _conv_ref(jax.nn.relu(_conv_ref(h, w1)), w2)
    h = _conv_ref(h, p["enc_conv2"])
    feat = h.reshape(h.shape[0], -1)
    mu = jnp.dot(feat, p["fc_mu_w"].T, precision=hp) + p["fc_mu_b"]
    sigma = jnp.exp(jnp.dot(feat, p["fc_sigma_w"].T, precision=hp) + p["fc_sigma_b"])
    z = mu + sigma * eps
    d = jnp.dot(z, p["dec_fc_w"].T, precision=hp) + p["dec_fc_b"]
    d = d.reshape(-1, C, H, W)
    for (w1, w2) in p["dec_res"]:
        d = d + 0.1 * _conv_ref(jax.nn.relu(_conv_ref(d, w1)), w2)
    d = _conv_ref(d, p["conv_pre_up"])
    d = _conv_ref(d, p["conv_up"])
    B = d.shape[0]
    d = d.reshape(B, OUT_CHANNELS, SCALE, SCALE, H, W)
    d = jnp.transpose(d, (0, 1, 4, 2, 5, 3)).reshape(B, OUT_CHANNELS, H2, W2)
    d = _conv_ref(d, p["conv_out"])
    return d, mu, sigma


# ----------------------------------------------------------------------------
# Main
# ----------------------------------------------------------------------------
if __name__ == "__main__":
    key = jax.random.PRNGKey(0)
    k_param, k_x, k_eps = jax.random.split(key, 3)

    params = init_params(k_param)
    x = jax.random.normal(k_x, (BATCH, IN_CHANNELS, IMAGE_SIZE, IMAGE_SIZE), jnp.float32)
    eps = jax.random.normal(k_eps, (BATCH, LATENT_DIM), jnp.float32)

    packed = pack_params(params)
    recon, mu_out, sigma_out = hicvae_forward(packed, x, eps)
    recon, mu_out, sigma_out = jax.block_until_ready((recon, mu_out, sigma_out))

    assert recon.shape == (BATCH, OUT_CHANNELS, H2, W2)
    assert mu_out.shape == (BATCH, LATENT_DIM) and sigma_out.shape == (BATCH, LATENT_DIM)
    assert bool(jnp.all(jnp.isfinite(recon))) and bool(jnp.all(sigma_out > 0))

    # Correctness check against a pure-JAX reference of the PyTorch forward.
    r_ref, mu_ref_val, sg_ref_val = hicvae_reference(params, x, eps)
    for got, ref in ((recon, r_ref), (mu_out, mu_ref_val), (sigma_out, sg_ref_val)):
        err = float(jnp.max(jnp.abs(got - ref)))
        assert jnp.allclose(got, ref, atol=1e-3, rtol=1e-3), err

    print("KERNEL_OK")
</pallas_src>

<mosaic_0001>
module attributes {stable_mosaic.version = 11 : i64} {
  func.func @_hicvae_kernel(%arg0: i32, %arg1: memref<2x16x16xf32, #tpu.memory_space<vmem>>, %arg2: memref<2x16xf32, #tpu.memory_space<vmem>>, %arg3: memref<3x16x128xf32, #tpu.memory_space<vmem>>, %arg4: memref<10x3x128x128xf32, #tpu.memory_space<vmem>>, %arg5: memref<3x128x64xf32, #tpu.memory_space<vmem>>, %arg6: memref<3x64x64xf32, #tpu.memory_space<vmem>>, %arg7: memref<2048x32xf32, #tpu.memory_space<vmem>>, %arg8: memref<1x32xf32, #tpu.memory_space<vmem>>, %arg9: memref<16x2048xf32, #tpu.memory_space<vmem>>, %arg10: memref<1x2048xf32, #tpu.memory_space<vmem>>, %arg11: memref<2x16x64xf32, #tpu.memory_space<vmem>>, %arg12: memref<2x32xf32, #tpu.memory_space<vmem>>, %arg13: memref<36x16xf32, #tpu.memory_space<vmem>>, %arg14: memref<36x128xf32, #tpu.memory_space<vmem>>, %arg15: memref<36x64xf32, #tpu.memory_space<vmem>>) attributes {dimension_semantics = [#tpu.dimension_semantics<arbitrary>], iteration_bounds = array<i64: 1>, scalar_prefetch = 0 : i64, scratch_operands = 3 : i64, tpu.core_type = #tpu.core_type<tc>, window_params = [{pipeline_mode = #tpu.pipeline_mode<synchronous>, transform_indices = @transform_0, window_bounds = array<i64: 2, 16, 16>}, {pipeline_mode = #tpu.pipeline_mode<synchronous>, transform_indices = @transform_1, window_bounds = array<i64: 2, 16>}, {pipeline_mode = #tpu.pipeline_mode<synchronous>, transform_indices = @transform_2, window_bounds = array<i64: 3, 16, 128>}, {pipeline_mode = #tpu.pipeline_mode<synchronous>, transform_indices = @transform_3, window_bounds = array<i64: 10, 3, 128, 128>}, {pipeline_mode = #tpu.pipeline_mode<synchronous>, transform_indices = @transform_4, window_bounds = array<i64: 3, 128, 64>}, {pipeline_mode = #tpu.pipeline_mode<synchronous>, transform_indices = @transform_5, window_bounds = array<i64: 3, 64, 64>}, {pipeline_mode = #tpu.pipeline_mode<synchronous>, transform_indices = @transform_6, window_bounds = array<i64: 2048, 32>}, {pipeline_mode = #tpu.pipeline_mode<synchronous>, transform_indices = @transform_7, window_bounds = array<i64: 1, 32>}, {pipeline_mode = #tpu.pipeline_mode<synchronous>, transform_indices = @transform_8, window_bounds = array<i64: 16, 2048>}, {pipeline_mode = #tpu.pipeline_mode<synchronous>, transform_indices = @transform_9, window_bounds = array<i64: 1, 2048>}, {pipeline_mode = #tpu.pipeline_mode<synchronous>, transform_indices = @transform_10, window_bounds = array<i64: 2, 16, 64>}, {pipeline_mode = #tpu.pipeline_mode<synchronous>, transform_indices = @transform_11, window_bounds = array<i64: 2, 32>}]} {
    %0 = tpu.iota {dimensions = array<i32: 0>} : vector<34x128xi32>
    %c0_i32 = arith.constant 0 : i32
    %1 = vector.broadcast %c0_i32 : i32 to vector<34x128xi32>
    %2 = arith.cmpi sge, %0, %1 : vector<34x128xi32>
    %c16_i32 = arith.constant 16 : i32
    %3 = vector.broadcast %c16_i32 : i32 to vector<34x128xi32>
    %4 = arith.cmpi slt, %0, %3 : vector<34x128xi32>
    %5 = arith.andi %2, %4 : vector<34x128xi1>
    %c18_i32 = arith.constant 18 : i32
    %6 = vector.broadcast %c18_i32 : i32 to vector<34x128xi32>
    %7 = arith.cmpi sge, %0, %6 : vector<34x128xi32>
    %c34_i32 = arith.constant 34 : i32
    %8 = vector.broadcast %c34_i32 : i32 to vector<34x128xi32>
    %9 = arith.cmpi slt, %0, %8 : vector<34x128xi32>
    %10 = arith.andi %7, %9 : vector<34x128xi1>
    %11 = arith.ori %5, %10 : vector<34x128xi1>
    %12 = tpu.iota {dimensions = array<i32: 0>} : vector<34x64xi32>
    %c0_i32_0 = arith.constant 0 : i32
    %13 = vector.broadcast %c0_i32_0 : i32 to vector<34x64xi32>
    %14 = arith.cmpi sge, %12, %13 : vector<34x64xi32>
    %c16_i32_1 = arith.constant 16 : i32
    %15 = vector.broadcast %c16_i32_1 : i32 to vector<34x64xi32>
    %16 = arith.cmpi slt, %12, %15 : vector<34x64xi32>
    %17 = arith.andi %14, %16 : vector<34x64xi1>
    %c18_i32_2 = arith.constant 18 : i32
    %18 = vector.broadcast %c18_i32_2 : i32 to vector<34x64xi32>
    %19 = arith.cmpi sge, %12, %18 : vector<34x64xi32>
    %c34_i32_3 = arith.constant 34 : i32
    %20 = vector.broadcast %c34_i32_3 : i32 to vector<34x64xi32>
    %21 = arith.cmpi slt, %12, %20 : vector<34x64xi32>
    %22 = arith.andi %19, %21 : vector<34x64xi1>
    %23 = arith.ori %17, %22 : vector<34x64xi1>
    %cst = arith.constant 0.000000e+00 : f32
    %24 = vector.broadcast %cst : f32 to vector<1x128xf32>
    %cst_4 = arith.constant 0.000000e+00 : f32
    %25 = vector.broadcast %cst_4 : f32 to vector<1x64xf32>
    %cst_5 = arith.constant 0.000000e+00 : f32
    %26 = vector.broadcast %cst_5 : f32 to vector<1x16xf32>
    %c0 = arith.constant 0 : index
    %c0_6 = arith.constant 0 : index
    %27 = vector.load %arg14[%c0, %c0_6] : memref<36x128xf32, #tpu.memory_space<vmem>>, vector<1x128xf32>
    tpu.vector_store %arg14[%c0, %c0_6], %24 {strides = array<i32>} : memref<36x128xf32, #tpu.memory_space<vmem>>, vector<1x128xf32>,
    %c35 = arith.constant 35 : index
    %c0_7 = arith.constant 0 : index
    %28 = vector.load %arg14[%c35, %c0_7] : memref<36x128xf32, #tpu.memory_space<vmem>>, vector<1x128xf32>
    tpu.vector_store %arg14[%c35, %c0_7], %24 {strides = array<i32>} : memref<36x128xf32, #tpu.memory_space<vmem>>, vector<1x128xf32>,
    %c0_8 = arith.constant 0 : index
    %c0_9 = arith.constant 0 : index
    %29 = vector.load %arg15[%c0_8, %c0_9] : memref<36x64xf32, #tpu.memory_space<vmem>>, vector<1x64xf32>
    tpu.vector_store %arg15[%c0_8, %c0_9], %25 {strides = array<i32>} : memref<36x64xf32, #tpu.memory_space<vmem>>, vector<1x64xf32>,
    %c35_10 = arith.constant 35 : index
    %c0_11 = arith.constant 0 : index
    %30 = vector.load %arg15[%c35_10, %c0_11] : memref<36x64xf32, #tpu.memory_space<vmem>>, vector<1x64xf32>
    tpu.vector_store %arg15[%c35_10, %c0_11], %25 {strides = array<i32>} : memref<36x64xf32, #tpu.memory_space<vmem>>, vector<1x64xf32>,
    %c0_12 = arith.constant 0 : index
    %c0_13 = arith.constant 0 : index
    %31 = vector.load %arg13[%c0_12, %c0_13] : memref<36x16xf32, #tpu.memory_space<vmem>>, vector<1x16xf32>
    tpu.vector_store %arg13[%c0_12, %c0_13], %26 {strides = array<i32>} : memref<36x16xf32, #tpu.memory_space<vmem>>, vector<1x16xf32>,
    %c17 = arith.constant 17 : index
    %c0_14 = arith.constant 0 : index
    %32 = vector.load %arg13[%c17, %c0_14] : memref<36x16xf32, #tpu.memory_space<vmem>>, vector<1x16xf32>
    tpu.vector_store %arg13[%c17, %c0_14], %26 {strides = array<i32>} : memref<36x16xf32, #tpu.memory_space<vmem>>, vector<1x16xf32>,
    %c18 = arith.constant 18 : index
    %c0_15 = arith.constant 0 : index
    %33 = vector.load %arg13[%c18, %c0_15] : memref<36x16xf32, #tpu.memory_space<vmem>>, vector<1x16xf32>
    tpu.vector_store %arg13[%c18, %c0_15], %26 {strides = array<i32>} : memref<36x16xf32, #tpu.memory_space<vmem>>, vector<1x16xf32>,
    %c35_16 = arith.constant 35 : index
    %c0_17 = arith.constant 0 : index
    %34 = vector.load %arg13[%c35_16, %c0_17] : memref<36x16xf32, #tpu.memory_space<vmem>>, vector<1x16xf32>
    tpu.vector_store %arg13[%c35_16, %c0_17], %26 {strides = array<i32>} : memref<36x16xf32, #tpu.memory_space<vmem>>, vector<1x16xf32>,
    %c0_18 = arith.constant 0 : index
    %c0_19 = arith.constant 0 : index
    %c0_20 = arith.constant 0 : index
    %35 = vector.load %arg1[%c0_18, %c0_19, %c0_20] : memref<2x16x16xf32, #tpu.memory_space<vmem>>, vector<1x16x16xf32>
    %36 = vector.shape_cast %35 : vector<1x16x16xf32> to vector<16x16xf32>
    %c1 = arith.constant 1 : index
    %c0_21 = arith.constant 0 : index
    %37 = vector.load %arg13[%c1, %c0_21] : memref<36x16xf32, #tpu.memory_space<vmem>>, vector<16x16xf32>
    tpu.vector_store %arg13[%c1, %c0_21], %36 {strides = array<i32>} : memref<36x16xf32, #tpu.memory_space<vmem>>, vector<16x16xf32>,
    %c1_22 = arith.constant 1 : index
    %c0_23 = arith.constant 0 : index
    %c0_24 = arith.constant 0 : index
    %38 = vector.load %arg1[%c1_22, %c0_23, %c0_24] : memref<2x16x16xf32, #tpu.memory_space<vmem>>, vector<1x16x16xf32>
    %39 = vector.shape_cast %38 : vector<1x16x16xf32> to vector<16x16xf32>
    %c19 = arith.constant 19 : index
    %c0_25 = arith.constant 0 : index
    %40 = vector.load %arg13[%c19, %c0_25] : memref<36x16xf32, #tpu.memory_space<vmem>>, vector<16x16xf32>
    tpu.vector_store %arg13[%c19, %c0_25], %39 {strides = array<i32>} : memref<36x16xf32, #tpu.memory_space<vmem>>, vector<16x16xf32>,
    %c0_26 = arith.constant 0 : index
    %c0_27 = arith.constant 0 : index
    %41 = vector.load %arg13[%c0_26, %c0_27] : memref<36x16xf32, #tpu.memory_space<vmem>>, vector<34x16xf32>
    %c0_28 = arith.constant 0 : index
    %c0_29 = arith.constant 0 : index
    %c0_30 = arith.constant 0 : index
    %42 = vector.load %arg3[%c0_28, %c0_29, %c0_30] : memref<3x16x128xf32, #tpu.memory_space<vmem>>, vector<1x16x128xf32>
    %43 = vector.shape_cast %42 : vector<1x16x128xf32> to vector<16x128xf32>
    %cst_31 = arith.constant dense<0.000000e+00> : vector<34x128xf32>
    %44 = tpu.matmul %41, %43, %cst_31 {dimension_numbers = #tpu.dot_dimension_numbers<[1], [0], [0], [1], [0, 0, 1, 1], [], []>} : vector<34x16xf32>, vector<16x128xf32>, vector<34x128xf32> -> vector<34x128xf32>
    %c1_32 = arith.constant 1 : index
    %c0_33 = arith.constant 0 : index
    %45 = vector.load %arg13[%c1_32, %c0_33] : memref<36x16xf32, #tpu.memory_space<vmem>>, vector<34x16xf32>
    %c1_34 = arith.constant 1 : index
    %c0_35 = arith.constant 0 : index
    %c0_36 = arith.constant 0 : index
    %46 = vector.load %arg3[%c1_34, %c0_35, %c0_36] : memref<3x16x128xf32, #tpu.memory_space<vmem>>, vector<1x16x128xf32>
    %47 = vector.shape_cast %46 : vector<1x16x128xf32> to vector<16x128xf32>
    %cst_37 = arith.constant dense<0.000000e+00> : vector<34x128xf32>
    %48 = tpu.matmul %45, %47, %cst_37 {dimension_numbers = #tpu.dot_dimension_numbers<[1], [0], [0], [1], [0, 0, 1, 1], [], []>} : vector<34x16xf32>, vector<16x128xf32>, vector<34x128xf32> -> vector<34x128xf32>
    %49 = arith.addf %44, %48 : vector<34x128xf32>
    %c2 = arith.constant 2 : index
    %c0_38 = arith.constant 0 : index
    %50 = vector.load %arg13[%c2, %c0_38] : memref<36x16xf32, #tpu.memory_space<vmem>>, vector<34x16xf32>
    %c2_39 = arith.constant 2 : index
    %c0_40 = arith.constant 0 : index
    %c0_41 = arith.constant 0 : index
    %51 = vector.load %arg3[%c2_39, %c0_40, %c0_41] : memref<3x16x128xf32, #tpu.memory_space<vmem>>, vector<1x16x128xf32>
    %52 = vector.shape_cast %51 : vector<1x16x128xf32> to vector<16x128xf32>
    %cst_42 = arith.constant dense<0.000000e+00> : vector<34x128xf32>
    %53 = tpu.matmul %50, %52, %cst_42 {dimension_numbers = #tpu.dot_dimension_numbers<[1], [0], [0], [1], [0, 0, 1, 1], [], []>} : vector<34x16xf32>, vector<16x128xf32>, vector<34x128xf32> -> vector<34x128xf32>
    %54 = arith.addf %49, %53 : vector<34x128xf32>
    %cst_43 = arith.constant 0.000000e+00 : f32
    %55 = vector.broadcast %cst_43 : f32 to vector<34x128xf32>
    %56 = arith.select %11, %54, %55 : vector<34x128xi1>, vector<34x128xf32>
    %c1_44 = arith.constant 1 : index
    %c0_45 = arith.constant 0 : index
    %57 = vector.load %arg14[%c1_44, %c0_45] : memref<36x128xf32, #tpu.memory_space<vmem>>, vector<34x128xf32>
    tpu.vector_store %arg14[%c1_44, %c0_45], %56 {strides = array<i32>} : memref<36x128xf32, #tpu.memory_space<vmem>>, vector<34x128xf32>,
    %c1_46 = arith.constant 1 : index
    %c0_47 = arith.constant 0 : index
    %58 = vector.load %arg14[%c1_46, %c0_47] : memref<36x128xf32, #tpu.memory_space<vmem>>, vector<34x128xf32>
    %c0_48 = arith.constant 0 : index
    %c0_49 = arith.constant 0 : index
    %59 = vector.load %arg14[%c0_48, %c0_49] : memref<36x128xf32, #tpu.memory_space<vmem>>, vector<34x128xf32>
    %c0_50 = arith.constant 0 : index
    %c0_51 = arith.constant 0 : index
    %c0_52 = arith.constant 0 : index
    %c0_53 = arith.constant 0 : index
    %60 = vector.load %arg4[%c0_50, %c0_51, %c0_52, %c0_53] : memref<10x3x128x128xf32, #tpu.memory_space<vmem>>, vector<1x1x128x128xf32>
    %61 = vector.shape_cast %60 : vector<1x1x128x128xf32> to vector<128x128xf32>
    %cst_54 = arith.constant dense<0.000000e+00> : vector<34x128xf32>
    %62 = tpu.matmul %59, %61, %cst_54 {dimension_numbers = #tpu.dot_dimension_numbers<[1], [0], [0], [1], [0, 0, 1, 1], [], []>} : vector<34x128xf32>, vector<128x128xf32>, vector<34x128xf32> -> vector<34x128xf32>
    %c1_55 = arith.constant 1 : index
    %c0_56 = arith.constant 0 : index
    %63 = vector.load %arg14[%c1_55, %c0_56] : memref<36x128xf32, #tpu.memory_space<vmem>>, vector<34x128xf32>
    %c0_57 = arith.constant 0 : index
    %c1_58 = arith.constant 1 : index
    %c0_59 = arith.constant 0 : index
    %c0_60 = arith.constant 0 : index
    %64 = vector.load %arg4[%c0_57, %c1_58, %c0_59, %c0_60] : memref<10x3x128x128xf32, #tpu.memory_space<vmem>>, vector<1x1x128x128xf32>
    %65 = vector.shape_cast %64 : vector<1x1x128x128xf32> to vector<128x128xf32>
    %cst_61 = arith.constant dense<0.000000e+00> : vector<34x128xf32>
    %66 = tpu.matmul %63, %65, %cst_61 {dimension_numbers = #tpu.dot_dimension_numbers<[1], [0], [0], [1], [0, 0, 1, 1], [], []>} : vector<34x128xf32>, vector<128x128xf32>, vector<34x128xf32> -> vector<34x128xf32>
    %67 = arith.addf %62, %66 : vector<34x128xf32>
    %c2_62 = arith.constant 2 : index
    %c0_63 = arith.constant 0 : index
    %68 = vector.load %arg14[%c2_62, %c0_63] : memref<36x128xf32, #tpu.memory_space<vmem>>, vector<34x128xf32>
    %c0_64 = arith.constant 0 : index
    %c2_65 = arith.constant 2 : index
    %c0_66 = arith.constant 0 : index
    %c0_67 = arith.constant 0 : index
    %69 = vector.load %arg4[%c0_64, %c2_65, %c0_66, %c0_67] : memref<10x3x128x128xf32, #tpu.memory_space<vmem>>, vector<1x1x128x128xf32>
    %70 = vector.shape_cast %69 : vector<1x1x128x128xf32> to vector<128x128xf32>
    %cst_68 = arith.constant dense<0.000000e+00> : vector<34x128xf32>
    %71 = tpu.matmul %68, %70, %cst_68 {dimension_numbers = #tpu.dot_dimension_numbers<[1], [0], [0], [1], [0, 0, 1, 1], [], []>} : vector<34x128xf32>, vector<128x128xf32>, vector<34x128xf32> -> vector<34x128xf32>
    %72 = arith.addf %67, %71 : vector<34x128xf32>
    %cst_69 = arith.constant 0.000000e+00 : f32
    %73 = vector.broadcast %cst_69 : f32 to vector<34x128xf32>
    %74 = arith.maximumf %72, %73 : vector<34x128xf32>
    %cst_70 = arith.constant 0.000000e+00 : f32
    %75 = vector.broadcast %cst_70 : f32 to vector<34x128xf32>
    %76 = arith.select %11, %74, %75 : vector<34x128xi1>, vector<34x128xf32>
    %c1_71 = arith.constant 1 : index
    %c0_72 = arith.constant 0 : index
    %77 = vector.load %arg14[%c1_71, %c0_72] : memref<36x128xf32, #tpu.memory_space<vmem>>, vector<34x128xf32>
    tpu.vector_store %arg14[%c1_71, %c0_72], %76 {strides = array<i32>} : memref<36x128xf32, #tpu.memory_space<vmem>>, vector<34x128xf32>,
    %c0_73 = arith.constant 0 : index
    %c0_74 = arith.constant 0 : index
    %78 = vector.load %arg14[%c0_73, %c0_74] : memref<36x128xf32, #tpu.memory_space<vmem>>, vector<34x128xf32>
    %c1_75 = arith.constant 1 : index
    %c0_76 = arith.constant 0 : index
    %c0_77 = arith.constant 0 : index
    %c0_78 = arith.constant 0 : index
    %79 = vector.load %arg4[%c1_75, %c0_76, %c0_77, %c0_78] : memref<10x3x128x128xf32, #tpu.memory_space<vmem>>, vector<1x1x128x128xf32>
    %80 = vector.shape_cast %79 : vector<1x1x128x128xf32> to vector<128x128xf32>
    %cst_79 = arith.constant dense<0.000000e+00> : vector<34x128xf32>
    %81 = tpu.matmul %78, %80, %cst_79 {dimension_numbers = #tpu.dot_dimension_numbers<[1], [0], [0], [1], [0, 0, 1, 1], [], []>} : vector<34x128xf32>, vector<128x128xf32>, vector<34x128xf32> -> vector<34x128xf32>
    %c1_80 = arith.constant 1 : index
    %c0_81 = arith.constant 0 : index
    %82 = vector.load %arg14[%c1_80, %c0_81] : memref<36x128xf32, #tpu.memory_space<vmem>>, vector<34x128xf32>
    %c1_82 = arith.constant 1 : index
    %c1_83 = arith.constant 1 : index
    %c0_84 = arith.constant 0 : index
    %c0_85 = arith.constant 0 : index
    %83 = vector.load %arg4[%c1_82, %c1_83, %c0_84, %c0_85] : memref<10x3x128x128xf32, #tpu.memory_space<vmem>>, vector<1x1x128x128xf32>
    %84 = vector.shape_cast %83 : vector<1x1x128x128xf32> to vector<128x128xf32>
    %cst_86 = arith.constant dense<0.000000e+00> : vector<34x128xf32>
    %85 = tpu.matmul %82, %84, %cst_86 {dimension_numbers = #tpu.dot_dimension_numbers<[1], [0], [0], [1], [0, 0, 1, 1], [], []>} : vector<34x128xf32>, vector<128x128xf32>, vector<34x128xf32> -> vector<34x128xf32>
    %86 = arith.addf %81, %85 : vector<34x128xf32>
    %c2_87 = arith.constant 2 : index
    %c0_88 = arith.constant 0 : index
    %87 = vector.load %arg14[%c2_87, %c0_88] : memref<36x128xf32, #tpu.memory_space<vmem>>, vector<34x128xf32>
    %c1_89 = arith.constant 1 : index
    %c2_90 = arith.constant 2 : index
    %c0_91 = arith.constant 0 : index
    %c0_92 = arith.constant 0 : index
    %88 = vector.load %arg4[%c1_89, %c2_90, %c0_91, %c0_92] : memref<10x3x128x128xf32, #tpu.memory_space<vmem>>, vector<1x1x128x128xf32>
    %89 = vector.shape_cast %88 : vector<1x1x128x128xf32> to vector<128x128xf32>
    %cst_93 = arith.constant dense<0.000000e+00> : vector<34x128xf32>
    %90 = tpu.matmul %87, %89, %cst_93 {dimension_numbers = #tpu.dot_dimension_numbers<[1], [0], [0], [1], [0, 0, 1, 1], [], []>} : vector<34x128xf32>, vector<128x128xf32>, vector<34x128xf32> -> vector<34x128xf32>
    %91 = arith.addf %86, %90 : vector<34x128xf32>
    %cst_94 = arith.constant 1.000000e-01 : f32
    %92 = vector.broadcast %cst_94 : f32 to vector<34x128xf32>
    %93 = arith.mulf %92, %91 : vector<34x128xf32>
    %94 = arith.addf %58, %93 : vector<34x128xf32>
    %cst_95 = arith.constant 0.000000e+00 : f32
    %95 = vector.broadcast %cst_95 : f32 to vector<34x128xf32>
    %96 = arith.select %11, %94, %95 : vector<34x128xi1>, vector<34x128xf32>
    %c1_96 = arith.constant 1 : index
    %c0_97 = arith.constant 0 : index
    %97 = vector.load %arg14[%c1_96, %c0_97] : memref<36x128xf32, #tpu.memory_space<vmem>>, vector<34x128xf32>
    tpu.vector_store %arg14[%c1_96, %c0_97], %96 {strides = array<i32>} : memref<36x128xf32, #tpu.memory_space<vmem>>, vector<34x128xf32>,
    %c1_98 = arith.constant 1 : index
    %c0_99 = arith.constant 0 : index
    %98 = vector.load %arg14[%c1_98, %c0_99] : memref<36x128xf32, #tpu.memory_space<vmem>>, vector<34x128xf32>
    %c0_100 = arith.constant 0 : index
    %c0_101 = arith.constant 0 : index
    %99 = vector.load %arg14[%c0_100, %c0_101] : memref<36x128xf32, #tpu.memory_space<vmem>>, vector<34x128xf32>
    %c2_102 = arith.constant 2 : index
    %c0_103 = arith.constant 0 : index
    %c0_104 = arith.constant 0 : index
    %c0_105 = arith.constant 0 : index
    %100 = vector.load %arg4[%c2_102, %c0_103, %c0_104, %c0_105] : memref<10x3x128x128xf32, #tpu.memory_space<vmem>>, vector<1x1x128x128xf32>
    %101 = vector.shape_cast %100 : vector<1x1x128x128xf32> to vector<128x128xf32>
    %cst_106 = arith.constant dense<0.000000e+00> : vector<34x128xf32>
    %102 = tpu.matmul %99, %101, %cst_106 {dimension_numbers = #tpu.dot_dimension_numbers<[1], [0], [0], [1], [0, 0, 1, 1], [], []>} : vector<34x128xf32>, vector<128x128xf32>, vector<34x128xf32> -> vector<34x128xf32>
    %c1_107 = arith.constant 1 : index
    %c0_108 = arith.constant 0 : index
    %103 = vector.load %arg14[%c1_107, %c0_108] : memref<36x128xf32, #tpu.memory_space<vmem>>, vector<34x128xf32>
    %c2_109 = arith.constant 2 : index
    %c1_110 = arith.constant 1 : index
    %c0_111 = arith.constant 0 : index
    %c0_112 = arith.constant 0 : index
    %104 = vector.load %arg4[%c2_109, %c1_110, %c0_111, %c0_112] : memref<10x3x128x128xf32, #tpu.memory_space<vmem>>, vector<1x1x128x128xf32>
    %105 = vector.shape_cast %104 : vector<1x1x128x128xf32> to vector<128x128xf32>
    %cst_113 = arith.constant dense<0.000000e+00> : vector<34x128xf32>
    %106 = tpu.matmul %103, %105, %cst_113 {dimension_numbers = #tpu.dot_dimension_numbers<[1], [0], [0], [1], [0, 0, 1, 1], [], []>} : vector<34x128xf32>, vector<128x128xf32>, vector<34x128xf32> -> vector<34x128xf32>
    %107 = arith.addf %102, %106 : vector<34x128xf32>
    %c2_114 = arith.constant 2 : index
    %c0_115 = arith.constant 0 : index
    %108 = vector.load %arg14[%c2_114, %c0_115] : memref<36x128xf32, #tpu.memory_space<vmem>>, vector<34x128xf32>
    %c2_116 = arith.constant 2 : index
    %c2_117 = arith.constant 2 : index
    %c0_118 = arith.constant 0 : index
    %c0_119 = arith.constant 0 : index
    %109 = vector.load %arg4[%c2_116, %c2_117, %c0_118, %c0_119] : memref<10x3x128x128xf32, #tpu.memory_space<vmem>>, vector<1x1x128x128xf32>
    %110 = vector.shape_cast %109 : vector<1x1x128x128xf32> to vector<128x128xf32>
    %cst_120 = arith.constant dense<0.000000e+00> : vector<34x128xf32>
    %111 = tpu.matmul %108, %110, %cst_120 {dimension_numbers = #tpu.dot_dimension_numbers<[1], [0], [0], [1], [0, 0, 1, 1], [], []>} : vector<34x128xf32>, vector<128x128xf32>, vector<34x128xf32> -> vector<34x128xf32>
    %112 = arith.addf %107, %111 : vector<34x128xf32>
    %cst_121 = arith.constant 0.000000e+00 : f32
    %113 = vector.broadcast %cst_121 : f32 to vector<34x128xf32>
    %114 = arith.maximumf %112, %113 : vector<34x128xf32>
    %cst_122 = arith.constant 0.000000e+00 : f32
    %115 = vector.broadcast %cst_122 : f32 to vector<34x128xf32>
    %116 = arith.select %11, %114, %115 : vector<34x128xi1>, vector<34x128xf32>
    %c1_123 = arith.constant 1 : index
    %c0_124 = arith.constant 0 : index
    %117 = vector.load %arg14[%c1_123, %c0_124] : memref<36x128xf32, #tpu.memory_space<vmem>>, vector<34x128xf32>
    tpu.vector_store %arg14[%c1_123, %c0_124], %116 {strides = array<i32>} : memref<36x128xf32, #tpu.memory_space<vmem>>, vector<34x128xf32>,
    %c0_125 = arith.constant 0 : index
    %c0_126 = arith.constant 0 : index
    %118 = vector.load %arg14[%c0_125, %c0_126] : memref<36x128xf32, #tpu.memory_space<vmem>>, vector<34x128xf32>
    %c3 = arith.constant 3 : index
    %c0_127 = arith.constant 0 : index
    %c0_128 = arith.constant 0 : index
    %c0_129 = arith.constant 0 : index
    %119 = vector.load %arg4[%c3, %c0_127, %c0_128, %c0_129] : memref<10x3x128x128xf32, #tpu.memory_space<vmem>>, vector<1x1x128x128xf32>
    %120 = vector.shape_cast %119 : vector<1x1x128x128xf32> to vector<128x128xf32>
    %cst_130 = arith.constant dense<0.000000e+00> : vector<34x128xf32>
    %121 = tpu.matmul %118, %120, %cst_130 {dimension_numbers = #tpu.dot_dimension_numbers<[1], [0], [0], [1], [0, 0, 1, 1], [], []>} : vector<34x128xf32>, vector<128x128xf32>, vector<34x128xf32> -> vector<34x128xf32>
    %c1_131 = arith.constant 1 : index
    %c0_132 = arith.constant 0 : index
    %122 = vector.load %arg14[%c1_131, %c0_132] : memref<36x128xf32, #tpu.memory_space<vmem>>, vector<34x128xf32>
    %c3_133 = arith.constant 3 : index
    %c1_134 = arith.constant 1 : index
    %c0_135 = arith.constant 0 : index
    %c0_136 = arith.constant 0 : index
    %123 = vector.load %arg4[%c3_133, %c1_134, %c0_135, %c0_136] : memref<10x3x128x128xf32, #tpu.memory_space<vmem>>, vector<1x1x128x128xf32>
    %124 = vector.shape_cast %123 : vector<1x1x128x128xf32> to vector<128x128xf32>
    %cst_137 = arith.constant dense<0.000000e+00> : vector<34x128xf32>
    %125 = tpu.matmul %122, %124, %cst_137 {dimension_numbers = #tpu.dot_dimension_numbers<[1], [0], [0], [1], [0, 0, 1, 1], [], []>} : vector<34x128xf32>, vector<128x128xf32>, vector<34x128xf32> -> vector<34x128xf32>
    %126 = arith.addf %121, %125 : vector<34x128xf32>
    %c2_138 = arith.constant 2 : index
    %c0_139 = arith.constant 0 : index
    %127 = vector.load %arg14[%c2_138, %c0_139] : memref<36x128xf32, #tpu.memory_space<vmem>>, vector<34x128xf32>
    %c3_140 = arith.constant 3 : index
    %c2_141 = arith.constant 2 : index
    %c0_142 = arith.constant 0 : index
    %c0_143 = arith.constant 0 : index
    %128 = vector.load %arg4[%c3_140, %c2_141, %c0_142, %c0_143] : memref<10x3x128x128xf32, #tpu.memory_space<vmem>>, vector<1x1x128x128xf32>
    %129 = vector.shape_cast %128 : vector<1x1x128x128xf32> to vector<128x128xf32>
    %cst_144 = arith.constant dense<0.000000e+00> : vector<34x128xf32>
    %130 = tpu.matmul %127, %129, %cst_144 {dimension_numbers = #tpu.dot_dimension_numbers<[1], [0], [0], [1], [0, 0, 1, 1], [], []>} : vector<34x128xf32>, vector<128x128xf32>, vector<34x128xf32> -> vector<34x128xf32>
    %131 = arith.addf %126, %130 : vector<34x128xf32>
    %cst_145 = arith.constant 1.000000e-01 : f32
    %132 = vector.broadcast %cst_145 : f32 to vector<34x128xf32>
    %133 = arith.mulf %132, %131 : vector<34x128xf32>
    %134 = arith.addf %98, %133 : vector<34x128xf32>
    %cst_146 = arith.constant 0.000000e+00 : f32
    %135 = vector.broadcast %cst_146 : f32 to vector<34x128xf32>
    %136 = arith.select %11, %134, %135 : vector<34x128xi1>, vector<34x128xf32>
    %c1_147 = arith.constant 1 : index
    %c0_148 = arith.constant 0 : index
    %137 = vector.load %arg14[%c1_147, %c0_148] : memref<36x128xf32, #tpu.memory_space<vmem>>, vector<34x128xf32>
    tpu.vector_store %arg14[%c1_147, %c0_148], %136 {strides = array<i32>} : memref<36x128xf32, #tpu.memory_space<vmem>>, vector<34x128xf32>,
    %c0_149 = arith.constant 0 : index
    %c0_150 = arith.constant 0 : index
    %138 = vector.load %arg14[%c0_149, %c0_150] : memref<36x128xf32, #tpu.memory_space<vmem>>, vector<34x128xf32>
    %c4 = arith.constant 4 : index
    %c0_151 = arith.constant 0 : index
    %c0_152 = arith.constant 0 : index
    %c0_153 = arith.constant 0 : index
    %139 = vector.load %arg4[%c4, %c0_151, %c0_152, %c0_153] : memref<10x3x128x128xf32, #tpu.memory_space<vmem>>, vector<1x1x128x128xf32>
    %140 = vector.shape_cast %139 : vector<1x1x128x128xf32> to vector<128x128xf32>
    %cst_154 = arith.constant dense<0.000000e+00> : vector<34x128xf32>
    %141 = tpu.matmul %138, %140, %cst_154 {dimension_numbers = #tpu.dot_dimension_numbers<[1], [0], [0], [1], [0, 0, 1, 1], [], []>} : vector<34x128xf32>, vector<128x128xf32>, vector<34x128xf32> -> vector<34x128xf32>
    %c1_155 = arith.constant 1 : index
    %c0_156 = arith.constant 0 : index
    %142 = vector.load %arg14[%c1_155, %c0_156] : memref<36x128xf32, #tpu.memory_space<vmem>>, vector<34x128xf32>
    %c4_157 = arith.constant 4 : index
    %c1_158 = arith.constant 1 : index
    %c0_159 = arith.constant 0 : index
    %c0_160 = arith.constant 0 : index
    %143 = vector.load %arg4[%c4_157, %c1_158, %c0_159, %c0_160] : memref<10x3x128x128xf32, #tpu.memory_space<vmem>>, vector<1x1x128x128xf32>
    %144 = vector.shape_cast %143 : vector<1x1x128x128xf32> to vector<128x128xf32>
    %cst_161 = arith.constant dense<0.000000e+00> : vector<34x128xf32>
    %145 = tpu.matmul %142, %144, %cst_161 {dimension_numbers = #tpu.dot_dimension_numbers<[1], [0], [0], [1], [0, 0, 1, 1], [], []>} : vector<34x128xf32>, vector<128x128xf32>, vector<34x128xf32> -> vector<34x128xf32>
    %146 = arith.addf %141, %145 : vector<34x128xf32>
    %c2_162 = arith.constant 2 : index
    %c0_163 = arith.constant 0 : index
    %147 = vector.load %arg14[%c2_162, %c0_163] : memref<36x128xf32, #tpu.memory_space<vmem>>, vector<34x128xf32>
    %c4_164 = arith.constant 4 : index
    %c2_165 = arith.constant 2 : index
    %c0_166 = arith.constant 0 : index
    %c0_167 = arith.constant 0 : index
    %148 = vector.load %arg4[%c4_164, %c2_165, %c0_166, %c0_167] : memref<10x3x128x128xf32, #tpu.memory_space<vmem>>, vector<1x1x128x128xf32>
    %149 = vector.shape_cast %148 : vector<1x1x128x128xf32> to vector<128x128xf32>
    %cst_168 = arith.constant dense<0.000000e+00> : vector<34x128xf32>
    %150 = tpu.matmul %147, %149, %cst_168 {dimension_numbers = #tpu.dot_dimension_numbers<[1], [0], [0], [1], [0, 0, 1, 1], [], []>} : vector<34x128xf32>, vector<128x128xf32>, vector<34x128xf32> -> vector<34x128xf32>
    %151 = arith.addf %146, %150 : vector<34x128xf32>
    %cst_169 = arith.constant 0.000000e+00 : f32
    %152 = vector.broadcast %cst_169 : f32 to vector<34x128xf32>
    %153 = arith.select %11, %151, %152 : vector<34x128xi1>, vector<34x128xf32>
    %c1_170 = arith.constant 1 : index
    %c0_171 = arith.constant 0 : index
    %154 = vector.load %arg14[%c1_170, %c0_171] : memref<36x128xf32, #tpu.memory_space<vmem>>, vector<34x128xf32>
    tpu.vector_store %arg14[%c1_170, %c0_171], %153 {strides = array<i32>} : memref<36x128xf32, #tpu.memory_space<vmem>>, vector<34x128xf32>,
    %c1_172 = arith.constant 1 : index
    %c0_173 = arith.constant 0 : index
    %155 = vector.load %arg14[%c1_172, %c0_173] : memref<36x128xf32, #tpu.memory_space<vmem>>, vector<16x128xf32>
    %156 = vector.extract_strided_slice %155 {offsets = [0, 0], sizes = [1, 128], strides = [1, 1]} : vector<16x128xf32> to vector<1x128xf32>
    %157 = vector.extract_strided_slice %155 {offsets = [1, 0], sizes = [1, 128], strides = [1, 1]} : vector<16x128xf32> to vector<1x128xf32>
    %158 = vector.extract_strided_slice %155 {offsets = [2, 0], sizes = [1, 128], strides = [1, 1]} : vector<16x128xf32> to vector<1x128xf32>
    %159 = vector.extract_strided_slice %155 {offsets = [3, 0], sizes = [1, 128], strides = [1, 1]} : vector<16x128xf32> to vector<1x128xf32>
    %160 = vector.extract_strided_slice %155 {offsets = [4, 0], sizes = [1, 128], strides = [1, 1]} : vector<16x128xf32> to vector<1x128xf32>
    %161 = vector.extract_strided_slice %155 {offsets = [5, 0], sizes = [1, 128], strides = [1, 1]} : vector<16x128xf32> to vector<1x128xf32>
    %162 = vector.extract_strided_slice %155 {offsets = [6, 0], sizes = [1, 128], strides = [1, 1]} : vector<16x128xf32> to vector<1x128xf32>
    %163 = vector.extract_strided_slice %155 {offsets = [7, 0], sizes = [1, 128], strides = [1, 1]} : vector<16x128xf32> to vector<1x128xf32>
    %164 = vector.extract_strided_slice %155 {offsets = [8, 0], sizes = [1, 128], strides = [1, 1]} : vector<16x128xf32> to vector<1x128xf32>
    %165 = vector.extract_strided_slice %155 {offsets = [9, 0], sizes = [1, 128], strides = [1, 1]} : vector<16x128xf32> to vector<1x128xf32>
    %166 = vector.extract_strided_slice %155 {offsets = [10, 0], sizes = [1, 128], strides = [1, 1]} : vector<16x128xf32> to vector<1x128xf32>
    %167 = vector.extract_strided_slice %155 {offsets = [11, 0], sizes = [1, 128], strides = [1, 1]} : vector<16x128xf32> to vector<1x128xf32>
    %168 = vector.extract_strided_slice %155 {offsets = [12, 0], sizes = [1, 128], strides = [1, 1]} : vector<16x128xf32> to vector<1x128xf32>
    %169 = vector.extract_strided_slice %155 {offsets = [13, 0], sizes = [1, 128], strides = [1, 1]} : vector<16x128xf32> to vector<1x128xf32>
    %170 = vector.extract_strided_slice %155 {offsets = [14, 0], sizes = [1, 128], strides = [1, 1]} : vector<16x128xf32> to vector<1x128xf32>
    %171 = vector.extract_strided_slice %155 {offsets = [15, 0], sizes = [1, 128], strides = [1, 1]} : vector<16x128xf32> to vector<1x128xf32>
    %172 = tpu.concatenate %156, %157, %158, %159, %160, %161, %162, %163, %164, %165, %166, %167, %168, %169, %170, %171 in 1 : vector<1x128xf32>, vector<1x128xf32>, vector<1x128xf32>, vector<1x128xf32>, vector<1x128xf32>, vector<1x128xf32>, vector<1x128xf32>, vector<1x128xf32>, vector<1x128xf32>, vector<1x128xf32>, vector<1x128xf32>, vector<1x128xf32>, vector<1x128xf32>, vector<1x128xf32>, vector<1x128xf32>, vector<1x128xf32> -> vector<1x2048xf32>
    %c19_174 = arith.constant 19 : index
    %c0_175 = arith.constant 0 : index
    %173 = vector.load %arg14[%c19_174, %c0_175] : memref<36x128xf32, #tpu.memory_space<vmem>>, vector<16x128xf32>
    %174 = vector.extract_strided_slice %173 {offsets = [0, 0], sizes = [1, 128], strides = [1, 1]} : vector<16x128xf32> to vector<1x128xf32>
    %175 = vector.extract_strided_slice %173 {offsets = [1, 0], sizes = [1, 128], strides = [1, 1]} : vector<16x128xf32> to vector<1x128xf32>
    %176 = vector.extract_strided_slice %173 {offsets = [2, 0], sizes = [1, 128], strides = [1, 1]} : vector<16x128xf32> to vector<1x128xf32>
    %177 = vector.extract_strided_slice %173 {offsets = [3, 0], sizes = [1, 128], strides = [1, 1]} : vector<16x128xf32> to vector<1x128xf32>
    %178 = vector.extract_strided_slice %173 {offsets = [4, 0], sizes = [1, 128], strides = [1, 1]} : vector<16x128xf32> to vector<1x128xf32>
    %179 = vector.extract_strided_slice %173 {offsets = [5, 0], sizes = [1, 128], strides = [1, 1]} : vector<16x128xf32> to vector<1x128xf32>
    %180 = vector.extract_strided_slice %173 {offsets = [6, 0], sizes = [1, 128], strides = [1, 1]} : vector<16x128xf32> to vector<1x128xf32>
    %181 = vector.extract_strided_slice %173 {offsets = [7, 0], sizes = [1, 128], strides = [1, 1]} : vector<16x128xf32> to vector<1x128xf32>
    %182 = vector.extract_strided_slice %173 {offsets = [8, 0], sizes = [1, 128], strides = [1, 1]} : vector<16x128xf32> to vector<1x128xf32>
    %183 = vector.extract_strided_slice %173 {offsets = [9, 0], sizes = [1, 128], strides = [1, 1]} : vector<16x128xf32> to vector<1x128xf32>
    %184 = vector.extract_strided_slice %173 {offsets = [10, 0], sizes = [1, 128], strides = [1, 1]} : vector<16x128xf32> to vector<1x128xf32>
    %185 = vector.extract_strided_slice %173 {offsets = [11, 0], sizes = [1, 128], strides = [1, 1]} : vector<16x128xf32> to vector<1x128xf32>
    %186 = vector.extract_strided_slice %173 {offsets = [12, 0], sizes = [1, 128], strides = [1, 1]} : vector<16x128xf32> to vector<1x128xf32>
    %187 = vector.extract_strided_slice %173 {offsets = [13, 0], sizes = [1, 128], strides = [1, 1]} : vector<16x128xf32> to vector<1x128xf32>
    %188 = vector.extract_strided_slice %173 {offsets = [14, 0], sizes = [1, 128], strides = [1, 1]} : vector<16x128xf32> to vector<1x128xf32>
    %189 = vector.extract_strided_slice %173 {offsets = [15, 0], sizes = [1, 128], strides = [1, 1]} : vector<16x128xf32> to vector<1x128xf32>
    %190 = tpu.concatenate %174, %175, %176, %177, %178, %179, %180, %181, %182, %183, %184, %185, %186, %187, %188, %189 in 1 : vector<1x128xf32>, vector<1x128xf32>, vector<1x128xf32>, vector<1x128xf32>, vector<1x128xf32>, vector<1x128xf32>, vector<1x128xf32>, vector<1x128xf32>, vector<1x128xf32>, vector<1x128xf32>, vector<1x128xf32>, vector<1x128xf32>, vector<1x128xf32>, vector<1x128xf32>, vector<1x128xf32>, vector<1x128xf32> -> vector<1x2048xf32>
    %191 = tpu.concatenate %172, %190 in 0 : vector<1x2048xf32>, vector<1x2048xf32> -> vector<2x2048xf32>
    %c0_176 = arith.constant 0 : index
    %c0_177 = arith.constant 0 : index
    %192 = vector.load %arg7[%c0_176, %c0_177] : memref<2048x32xf32, #tpu.memory_space<vmem>>, vector<2048x32xf32>
    %cst_178 = arith.constant dense<0.000000e+00> : vector<2x32xf32>
    %193 = tpu.matmul %191, %192, %cst_178 {dimension_numbers = #tpu.dot_dimension_numbers<[1], [0], [0], [1], [0, 0, 1, 1], [], []>} : vector<2x2048xf32>, vector<2048x32xf32>, vector<2x32xf32> -> vector<2x32xf32>
    %c0_179 = arith.constant 0 : index
    %c0_180 = arith.constant 0 : index
    %194 = vector.load %arg8[%c0_179, %c0_180] : memref<1x32xf32, #tpu.memory_space<vmem>>, vector<1x32xf32>
    %195 = vector.broadcast %194 : vector<1x32xf32> to vector<2x32xf32>
    %196 = arith.addf %193, %195 : vector<2x32xf32>
    %197 = vector.extract_strided_slice %196 {offsets = [0, 0], sizes = [2, 16], strides = [1, 1]} : vector<2x32xf32> to vector<2x16xf32>
    %198 = vector.extract_strided_slice %196 {offsets = [0, 16], sizes = [2, 16], strides = [1, 1]} : vector<2x32xf32> to vector<2x16xf32>
    %199 = math.exp %198 : vector<2x16xf32>
    %c0_181 = arith.constant 0 : index
    %c0_182 = arith.constant 0 : index
    %200 = vector.load %arg2[%c0_181, %c0_182] : memref<2x16xf32, #tpu.memory_space<vmem>>, vector<2x16xf32>
    %201 = arith.mulf %199, %200 : vector<2x16xf32>
    %202 = arith.addf %197, %201 : vector<2x16xf32>
    %203 = tpu.concatenate %197, %199 in 1 : vector<2x16xf32>, vector<2x16xf32> -> vector<2x32xf32>
    %c0_183 = arith.constant 0 : index
    %c0_184 = arith.constant 0 : index
    %204 = vector.load %arg12[%c0_183, %c0_184] : memref<2x32xf32, #tpu.memory_space<vmem>>, vector<2x32xf32>
    tpu.vector_store %arg12[%c0_183, %c0_184], %203 {strides = array<i32>} : memref<2x32xf32, #tpu.memory_space<vmem>>, vector<2x32xf32>,
    %c0_185 = arith.constant 0 : index
    %c0_186 = arith.constant 0 : index
    %205 = vector.load %arg9[%c0_185, %c0_186] : memref<16x2048xf32, #tpu.memory_space<vmem>>, vector<16x2048xf32>
    %cst_187 = arith.constant dense<0.000000e+00> : vector<2x2048xf32>
    %206 = tpu.matmul %202, %205, %cst_187 {dimension_numbers = #tpu.dot_dimension_numbers<[1], [0], [0], [1], [0, 0, 1, 1], [], []>} : vector<2x16xf32>, vector<16x2048xf32>, vector<2x2048xf32> -> vector<2x2048xf32>
    %c0_188 = arith.constant 0 : index
    %c0_189 = arith.constant 0 : index
    %207 = vector.load %arg10[%c0_188, %c0_189] : memref<1x2048xf32, #tpu.memory_space<vmem>>, vector<1x2048xf32>
    %208 = vector.broadcast %207 : vector<1x2048xf32> to vector<2x2048xf32>
    %209 = arith.addf %206, %208 : vector<2x2048xf32>
    %210 = vector.extract_strided_slice %209 {offsets = [0, 0], sizes = [1, 128], strides = [1, 1]} : vector<2x2048xf32> to vector<1x128xf32>
    %211 = vector.extract_strided_slice %209 {offsets = [0, 128], sizes = [1, 128], strides = [1, 1]} : vector<2x2048xf32> to vector<1x128xf32>
    %212 = vector.extract_strided_slice %209 {offsets = [0, 256], sizes = [1, 128], strides = [1, 1]} : vector<2x2048xf32> to vector<1x128xf32>
    %213 = vector.extract_strided_slice %209 {offsets = [0, 384], sizes = [1, 128], strides = [1, 1]} : vector<2x2048xf32> to vector<1x128xf32>
    %214 = vector.extract_strided_slice %209 {offsets = [0, 512], sizes = [1, 128], strides = [1, 1]} : vector<2x2048xf32> to vector<1x128xf32>
    %215 = vector.extract_strided_slice %209 {offsets = [0, 640], sizes = [1, 128], strides = [1, 1]} : vector<2x2048xf32> to vector<1x128xf32>
    %216 = vector.extract_strided_slice %209 {offsets = [0, 768], sizes = [1, 128], strides = [1, 1]} : vector<2x2048xf32> to vector<1x128xf32>
    %217 = vector.extract_strided_slice %209 {offsets = [0, 896], sizes = [1, 128], strides = [1, 1]} : vector<2x2048xf32> to vector<1x128xf32>
    %218 = vector.extract_strided_slice %209 {offsets = [0, 1024], sizes = [1, 128], strides = [1, 1]} : vector<2x2048xf32> to vector<1x128xf32>
    %219 = vector.extract_strided_slice %209 {offsets = [0, 1152], sizes = [1, 128], strides = [1, 1]} : vector<2x2048xf32> to vector<1x128xf32>
    %220 = vector.extract_strided_slice %209 {offsets = [0, 1280], sizes = [1, 128], strides = [1, 1]} : vector<2x2048xf32> to vector<1x128xf32>
    %221 = vector.extract_strided_slice %209 {offsets = [0, 1408], sizes = [1, 128], strides = [1, 1]} : vector<2x2048xf32> to vector<1x128xf32>
    %222 = vector.extract_strided_slice %209 {offsets = [0, 1536], sizes = [1, 128], strides = [1, 1]} : vector<2x2048xf32> to vector<1x128xf32>
    %223 = vector.extract_strided_slice %209 {offsets = [0, 1664], sizes = [1, 128], strides = [1, 1]} : vector<2x2048xf32> to vector<1x128xf32>
    %224 = vector.extract_strided_slice %209 {offsets = [0, 1792], sizes = [1, 128], strides = [1, 1]} : vector<2x2048xf32> to vector<1x128xf32>
    %225 = vector.extract_strided_slice %209 {offsets = [0, 1920], sizes = [1, 128], strides = [1, 1]} : vector<2x2048xf32> to vector<1x128xf32>
    %226 = tpu.concatenate %210, %211, %212, %213, %214, %215, %216, %217, %218, %219, %220, %221, %222, %223, %224, %225 in 0 : vector<1x128xf32>, vector<1x128xf32>, vector<1x128xf32>, vector<1x128xf32>, vector<1x128xf32>, vector<1x128xf32>, vector<1x128xf32>, vector<1x128xf32>, vector<1x128xf32>, vector<1x128xf32>, vector<1x128xf32>, vector<1x128xf32>, vector<1x128xf32>, vector<1x128xf32>, vector<1x128xf32>, vector<1x128xf32> -> vector<16x128xf32>
    %c1_190 = arith.constant 1 : index
    %c0_191 = arith.constant 0 : index
    %227 = vector.load %arg14[%c1_190, %c0_191] : memref<36x128xf32, #tpu.memory_space<vmem>>, vector<16x128xf32>
    tpu.vector_store %arg14[%c1_190, %c0_191], %226 {strides = array<i32>} : memref<36x128xf32, #tpu.memory_space<vmem>>, vector<16x128xf32>,
    %228 = vector.extract_strided_slice %209 {offsets = [1, 0], sizes = [1, 128], strides = [1, 1]} : vector<2x2048xf32> to vector<1x128xf32>
    %229 = vector.extract_strided_slice %209 {offsets = [1, 128], sizes = [1, 128], strides = [1, 1]} : vector<2x2048xf32> to vector<1x128xf32>
    %230 = vector.extract_strided_slice %209 {offsets = [1, 256], sizes = [1, 128], strides = [1, 1]} : vector<2x2048xf32> to vector<1x128xf32>
    %231 = vector.extract_strided_slice %209 {offsets = [1, 384], sizes = [1, 128], strides = [1, 1]} : vector<2x2048xf32> to vector<1x128xf32>
    %232 = vector.extract_strided_slice %209 {offsets = [1, 512], sizes = [1, 128], strides = [1, 1]} : vector<2x2048xf32> to vector<1x128xf32>
    %233 = vector.extract_strided_slice %209 {offsets = [1, 640], sizes = [1, 128], strides = [1, 1]} : vector<2x2048xf32> to vector<1x128xf32>
    %234 = vector.extract_strided_slice %209 {offsets = [1, 768], sizes = [1, 128], strides = [1, 1]} : vector<2x2048xf32> to vector<1x128xf32>
    %235 = vector.extract_strided_slice %209 {offsets = [1, 896], sizes = [1, 128], strides = [1, 1]} : vector<2x2048xf32> to vector<1x128xf32>
    %236 = vector.extract_strided_slice %209 {offsets = [1, 1024], sizes = [1, 128], strides = [1, 1]} : vector<2x2048xf32> to vector<1x128xf32>
    %237 = vector.extract_strided_slice %209 {offsets = [1, 1152], sizes = [1, 128], strides = [1, 1]} : vector<2x2048xf32> to vector<1x128xf32>
    %238 = vector.extract_strided_slice %209 {offsets = [1, 1280], sizes = [1, 128], strides = [1, 1]} : vector<2x2048xf32> to vector<1x128xf32>
    %239 = vector.extract_strided_slice %209 {offsets = [1, 1408], sizes = [1, 128], strides = [1, 1]} : vector<2x2048xf32> to vector<1x128xf32>
    %240 = vector.extract_strided_slice %209 {offsets = [1, 1536], sizes = [1, 128], strides = [1, 1]} : vector<2x2048xf32> to vector<1x128xf32>
    %241 = vector.extract_strided_slice %209 {offsets = [1, 1664], sizes = [1, 128], strides = [1, 1]} : vector<2x2048xf32> to vector<1x128xf32>
    %242 = vector.extract_strided_slice %209 {offsets = [1, 1792], sizes = [1, 128], strides = [1, 1]} : vector<2x2048xf32> to vector<1x128xf32>
    %243 = vector.extract_strided_slice %209 {offsets = [1, 1920], sizes = [1, 128], strides = [1, 1]} : vector<2x2048xf32> to vector<1x128xf32>
    %244 = tpu.concatenate %228, %229, %230, %231, %232, %233, %234, %235, %236, %237, %238, %239, %240, %241, %242, %243 in 0 : vector<1x128xf32>, vector<1x128xf32>, vector<1x128xf32>, vector<1x128xf32>, vector<1x128xf32>, vector<1x128xf32>, vector<1x128xf32>, vector<1x128xf32>, vector<1x128xf32>, vector<1x128xf32>, vector<1x128xf32>, vector<1x128xf32>, vector<1x128xf32>, vector<1x128xf32>, vector<1x128xf32>, vector<1x128xf32> -> vector<16x128xf32>
    %c19_192 = arith.constant 19 : index
    %c0_193 = arith.constant 0 : index
    %245 = vector.load %arg14[%c19_192, %c0_193] : memref<36x128xf32, #tpu.memory_space<vmem>>, vector<16x128xf32>
    tpu.vector_store %arg14[%c19_192, %c0_193], %244 {strides = array<i32>} : memref<36x128xf32, #tpu.memory_space<vmem>>, vector<16x128xf32>,
    %c1_194 = arith.constant 1 : index
    %c0_195 = arith.constant 0 : index
    %246 = vector.load %arg14[%c1_194, %c0_195] : memref<36x128xf32, #tpu.memory_space<vmem>>, vector<34x128xf32>
    %c0_196 = arith.constant 0 : index
    %c0_197 = arith.constant 0 : index
    %247 = vector.load %arg14[%c0_196, %c0_197] : memref<36x128xf32, #tpu.memory_space<vmem>>, vector<34x128xf32>
    %c5 = arith.constant 5 : index
    %c0_198 = arith.constant 0 : index
    %c0_199 = arith.constant 0 : index
    %c0_200 = arith.constant 0 : index
    %248 = vector.load %arg4[%c5, %c0_198, %c0_199, %c0_200] : memref<10x3x128x128xf32, #tpu.memory_space<vmem>>, vector<1x1x128x128xf32>
    %249 = vector.shape_cast %248 : vector<1x1x128x128xf32> to vector<128x128xf32>
    %cst_201 = arith.constant dense<0.000000e+00> : vector<34x128xf32>
    %250 = tpu.matmul %247, %249, %cst_201 {dimension_numbers = #tpu.dot_dimension_numbers<[1], [0], [0], [1], [0, 0, 1, 1], [], []>} : vector<34x128xf32>, vector<128x128xf32>, vector<34x128xf32> -> vector<34x128xf32>
    %c1_202 = arith.constant 1 : index
    %c0_203 = arith.constant 0 : index
    %251 = vector.load %arg14[%c1_202, %c0_203] : memref<36x128xf32, #tpu.memory_space<vmem>>, vector<34x128xf32>
    %c5_204 = arith.constant 5 : index
    %c1_205 = arith.constant 1 : index
    %c0_206 = arith.constant 0 : index
    %c0_207 = arith.constant 0 : index
    %252 = vector.load %arg4[%c5_204, %c1_205, %c0_206, %c0_207] : memref<10x3x128x128xf32, #tpu.memory_space<vmem>>, vector<1x1x128x128xf32>
    %253 = vector.shape_cast %252 : vector<1x1x128x128xf32> to vector<128x128xf32>
    %cst_208 = arith.constant dense<0.000000e+00> : vector<34x128xf32>
    %254 = tpu.matmul %251, %253, %cst_208 {dimension_numbers = #tpu.dot_dimension_numbers<[1], [0], [0], [1], [0, 0, 1, 1], [], []>} : vector<34x128xf32>, vector<128x128xf32>, vector<34x128xf32> -> vector<34x128xf32>
    %255 = arith.addf %250, %254 : vector<34x128xf32>
    %c2_209 = arith.constant 2 : index
    %c0_210 = arith.constant 0 : index
    %256 = vector.load %arg14[%c2_209, %c0_210] : memref<36x128xf32, #tpu.memory_space<vmem>>, vector<34x128xf32>
    %c5_211 = arith.constant 5 : index
    %c2_212 = arith.constant 2 : index
    %c0_213 = arith.constant 0 : index
    %c0_214 = arith.constant 0 : index
    %257 = vector.load %arg4[%c5_211, %c2_212, %c0_213, %c0_214] : memref<10x3x128x128xf32, #tpu.memory_space<vmem>>, vector<1x1x128x128xf32>
    %258 = vector.shape_cast %257 : vector<1x1x128x128xf32> to vector<128x128xf32>
    %cst_215 = arith.constant dense<0.000000e+00> : vector<34x128xf32>
    %259 = tpu.matmul %256, %258, %cst_215 {dimension_numbers = #tpu.dot_dimension_numbers<[1], [0], [0], [1], [0, 0, 1, 1], [], []>} : vector<34x128xf32>, vector<128x128xf32>, vector<34x128xf32> -> vector<34x128xf32>
    %260 = arith.addf %255, %259 : vector<34x128xf32>
    %cst_216 = arith.constant 0.000000e+00 : f32
    %261 = vector.broadcast %cst_216 : f32 to vector<34x128xf32>
    %262 = arith.maximumf %260, %261 : vector<34x128xf32>
    %cst_217 = arith.constant 0.000000e+00 : f32
    %263 = vector.broadcast %cst_217 : f32 to vector<34x128xf32>
    %264 = arith.select %11, %262, %263 : vector<34x128xi1>, vector<34x128xf32>
    %c1_218 = arith.constant 1 : index
    %c0_219 = arith.constant 0 : index
    %265 = vector.load %arg14[%c1_218, %c0_219] : memref<36x128xf32, #tpu.memory_space<vmem>>, vector<34x128xf32>
    tpu.vector_store %arg14[%c1_218, %c0_219], %264 {strides = array<i32>} : memref<36x128xf32, #tpu.memory_space<vmem>>, vector<34x128xf32>,
    %c0_220 = arith.constant 0 : index
    %c0_221 = arith.constant 0 : index
    %266 = vector.load %arg14[%c0_220, %c0_221] : memref<36x128xf32, #tpu.memory_space<vmem>>, vector<34x128xf32>
    %c6 = arith.constant 6 : index
    %c0_222 = arith.constant 0 : index
    %c0_223 = arith.constant 0 : index
    %c0_224 = arith.constant 0 : index
    %267 = vector.load %arg4[%c6, %c0_222, %c0_223, %c0_224] : memref<10x3x128x128xf32, #tpu.memory_space<vmem>>, vector<1x1x128x128xf32>
    %268 = vector.shape_cast %267 : vector<1x1x128x128xf32> to vector<128x128xf32>
    %cst_225 = arith.constant dense<0.000000e+00> : vector<34x128xf32>
    %269 = tpu.matmul %266, %268, %cst_225 {dimension_numbers = #tpu.dot_dimension_numbers<[1], [0], [0], [1], [0, 0, 1, 1], [], []>} : vector<34x128xf32>, vector<128x128xf32>, vector<34x128xf32> -> vector<34x128xf32>
    %c1_226 = arith.constant 1 : index
    %c0_227 = arith.constant 0 : index
    %270 = vector.load %arg14[%c1_226, %c0_227] : memref<36x128xf32, #tpu.memory_space<vmem>>, vector<34x128xf32>
    %c6_228 = arith.constant 6 : index
    %c1_229 = arith.constant 1 : index
    %c0_230 = arith.constant 0 : index
    %c0_231 = arith.constant 0 : index
    %271 = vector.load %arg4[%c6_228, %c1_229, %c0_230, %c0_231] : memref<10x3x128x128xf32, #tpu.memory_space<vmem>>, vector<1x1x128x128xf32>
    %272 = vector.shape_cast %271 : vector<1x1x128x128xf32> to vector<128x128xf32>
    %cst_232 = arith.constant dense<0.000000e+00> : vector<34x128xf32>
    %273 = tpu.matmul %270, %272, %cst_232 {dimension_numbers = #tpu.dot_dimension_numbers<[1], [0], [0], [1], [0, 0, 1, 1], [], []>} : vector<34x128xf32>, vector<128x128xf32>, vector<34x128xf32> -> vector<34x128xf32>
    %274 = arith.addf %269, %273 : vector<34x128xf32>
    %c2_233 = arith.constant 2 : index
    %c0_234 = arith.constant 0 : index
    %275 = vector.load %arg14[%c2_233, %c0_234] : memref<36x128xf32, #tpu.memory_space<vmem>>, vector<34x128xf32>
    %c6_235 = arith.constant 6 : index
    %c2_236 = arith.constant 2 : index
    %c0_237 = arith.constant 0 : index
    %c0_238 = arith.constant 0 : index
    %276 = vector.load %arg4[%c6_235, %c2_236, %c0_237, %c0_238] : memref<10x3x128x128xf32, #tpu.memory_space<vmem>>, vector<1x1x128x128xf32>
    %277 = vector.shape_cast %276 : vector<1x1x128x128xf32> to vector<128x128xf32>
    %cst_239 = arith.constant dense<0.000000e+00> : vector<34x128xf32>
    %278 = tpu.matmul %275, %277, %cst_239 {dimension_numbers = #tpu.dot_dimension_numbers<[1], [0], [0], [1], [0, 0, 1, 1], [], []>} : vector<34x128xf32>, vector<128x128xf32>, vector<34x128xf32> -> vector<34x128xf32>
    %279 = arith.addf %274, %278 : vector<34x128xf32>
    %cst_240 = arith.constant 1.000000e-01 : f32
    %280 = vector.broadcast %cst_240 : f32 to vector<34x128xf32>
    %281 = arith.mulf %280, %279 : vector<34x128xf32>
    %282 = arith.addf %246, %281 : vector<34x128xf32>
    %cst_241 = arith.constant 0.000000e+00 : f32
    %283 = vector.broadcast %cst_241 : f32 to vector<34x128xf32>
    %284 = arith.select %11, %282, %283 : vector<34x128xi1>, vector<34x128xf32>
    %c1_242 = arith.constant 1 : index
    %c0_243 = arith.constant 0 : index
    %285 = vector.load %arg14[%c1_242, %c0_243] : memref<36x128xf32, #tpu.memory_space<vmem>>, vector<34x128xf32>
    tpu.vector_store %arg14[%c1_242, %c0_243], %284 {strides = array<i32>} : memref<36x128xf32, #tpu.memory_space<vmem>>, vector<34x128xf32>,
    %c1_244 = arith.constant 1 : index
    %c0_245 = arith.constant 0 : index
    %286 = vector.load %arg14[%c1_244, %c0_245] : memref<36x128xf32, #tpu.memory_space<vmem>>, vector<34x128xf32>
    %c0_246 = arith.constant 0 : index
    %c0_247 = arith.constant 0 : index
    %287 = vector.load %arg14[%c0_246, %c0_247] : memref<36x128xf32, #tpu.memory_space<vmem>>, vector<34x128xf32>
    %c7 = arith.constant 7 : index
    %c0_248 = arith.constant 0 : index
    %c0_249 = arith.constant 0 : index
    %c0_250 = arith.constant 0 : index
    %288 = vector.load %arg4[%c7, %c0_248, %c0_249, %c0_250] : memref<10x3x128x128xf32, #tpu.memory_space<vmem>>, vector<1x1x128x128xf32>
    %289 = vector.shape_cast %288 : vector<1x1x128x128xf32> to vector<128x128xf32>
    %cst_251 = arith.constant dense<0.000000e+00> : vector<34x128xf32>
    %290 = tpu.matmul %287, %289, %cst_251 {dimension_numbers = #tpu.dot_dimension_numbers<[1], [0], [0], [1], [0, 0, 1, 1], [], []>} : vector<34x128xf32>, vector<128x128xf32>, vector<34x128xf32> -> vector<34x128xf32>
    %c1_252 = arith.constant 1 : index
    %c0_253 = arith.constant 0 : index
    %291 = vector.load %arg14[%c1_252, %c0_253] : memref<36x128xf32, #tpu.memory_space<vmem>>, vector<34x128xf32>
    %c7_254 = arith.constant 7 : index
    %c1_255 = arith.constant 1 : index
    %c0_256 = arith.constant 0 : index
    %c0_257 = arith.constant 0 : index
    %292 = vector.load %arg4[%c7_254, %c1_255, %c0_256, %c0_257] : memref<10x3x128x128xf32, #tpu.memory_space<vmem>>, vector<1x1x128x128xf32>
    %293 = vector.shape_cast %292 : vector<1x1x128x128xf32> to vector<128x128xf32>
    %cst_258 = arith.constant dense<0.000000e+00> : vector<34x128xf32>
    %294 = tpu.matmul %291, %293, %cst_258 {dimension_numbers = #tpu.dot_dimension_numbers<[1], [0], [0], [1], [0, 0, 1, 1], [], []>} : vector<34x128xf32>, vector<128x128xf32>, vector<34x128xf32> -> vector<34x128xf32>
    %295 = arith.addf %290, %294 : vector<34x128xf32>
    %c2_259 = arith.constant 2 : index
    %c0_260 = arith.constant 0 : index
    %296 = vector.load %arg14[%c2_259, %c0_260] : memref<36x128xf32, #tpu.memory_space<vmem>>, vector<34x128xf32>
    %c7_261 = arith.constant 7 : index
    %c2_262 = arith.constant 2 : index
    %c0_263 = arith.constant 0 : index
    %c0_264 = arith.constant 0 : index
    %297 = vector.load %arg4[%c7_261, %c2_262, %c0_263, %c0_264] : memref<10x3x128x128xf32, #tpu.memory_space<vmem>>, vector<1x1x128x128xf32>
    %298 = vector.shape_cast %297 : vector<1x1x128x128xf32> to vector<128x128xf32>
    %cst_265 = arith.constant dense<0.000000e+00> : vector<34x128xf32>
    %299 = tpu.matmul %296, %298, %cst_265 {dimension_numbers = #tpu.dot_dimension_numbers<[1], [0], [0], [1], [0, 0, 1, 1], [], []>} : vector<34x128xf32>, vector<128x128xf32>, vector<34x128xf32> -> vector<34x128xf32>
    %300 = arith.addf %295, %299 : vector<34x128xf32>
    %cst_266 = arith.constant 0.000000e+00 : f32
    %301 = vector.broadcast %cst_266 : f32 to vector<34x128xf32>
    %302 = arith.maximumf %300, %301 : vector<34x128xf32>
    %cst_267 = arith.constant 0.000000e+00 : f32
    %303 = vector.broadcast %cst_267 : f32 to vector<34x128xf32>
    %304 = arith.select %11, %302, %303 : vector<34x128xi1>, vector<34x128xf32>
    %c1_268 = arith.constant 1 : index
    %c0_269 = arith.constant 0 : index
    %305 = vector.load %arg14[%c1_268, %c0_269] : memref<36x128xf32, #tpu.memory_space<vmem>>, vector<34x128xf32>
    tpu.vector_store %arg14[%c1_268, %c0_269], %304 {strides = array<i32>} : memref<36x128xf32, #tpu.memory_space<vmem>>, vector<34x128xf32>,
    %c0_270 = arith.constant 0 : index
    %c0_271 = arith.constant 0 : index
    %306 = vector.load %arg14[%c0_270, %c0_271] : memref<36x128xf32, #tpu.memory_space<vmem>>, vector<34x128xf32>
    %c8 = arith.constant 8 : index
    %c0_272 = arith.constant 0 : index
    %c0_273 = arith.constant 0 : index
    %c0_274 = arith.constant 0 : index
    %307 = vector.load %arg4[%c8, %c0_272, %c0_273, %c0_274] : memref<10x3x128x128xf32, #tpu.memory_space<vmem>>, vector<1x1x128x128xf32>
    %308 = vector.shape_cast %307 : vector<1x1x128x128xf32> to vector<128x128xf32>
    %cst_275 = arith.constant dense<0.000000e+00> : vector<34x128xf32>
    %309 = tpu.matmul %306, %308, %cst_275 {dimension_numbers = #tpu.dot_dimension_numbers<[1], [0], [0], [1], [0, 0, 1, 1], [], []>} : vector<34x128xf32>, vector<128x128xf32>, vector<34x128xf32> -> vector<34x128xf32>
    %c1_276 = arith.constant 1 : index
    %c0_277 = arith.constant 0 : index
    %310 = vector.load %arg14[%c1_276, %c0_277] : memref<36x128xf32, #tpu.memory_space<vmem>>, vector<34x128xf32>
    %c8_278 = arith.constant 8 : index
    %c1_279 = arith.constant 1 : index
    %c0_280 = arith.constant 0 : index
    %c0_281 = arith.constant 0 : index
    %311 = vector.load %arg4[%c8_278, %c1_279, %c0_280, %c0_281] : memref<10x3x128x128xf32, #tpu.memory_space<vmem>>, vector<1x1x128x128xf32>
    %312 = vector.shape_cast %311 : vector<1x1x128x128xf32> to vector<128x128xf32>
    %cst_282 = arith.constant dense<0.000000e+00> : vector<34x128xf32>
    %313 = tpu.matmul %310, %312, %cst_282 {dimension_numbers = #tpu.dot_dimension_numbers<[1], [0], [0], [1], [0, 0, 1, 1], [], []>} : vector<34x128xf32>, vector<128x128xf32>, vector<34x128xf32> -> vector<34x128xf32>
    %314 = arith.addf %309, %313 : vector<34x128xf32>
    %c2_283 = arith.constant 2 : index
    %c0_284 = arith.constant 0 : index
    %315 = vector.load %arg14[%c2_283, %c0_284] : memref<36x128xf32, #tpu.memory_space<vmem>>, vector<34x128xf32>
    %c8_285 = arith.constant 8 : index
    %c2_286 = arith.constant 2 : index
    %c0_287 = arith.constant 0 : index
    %c0_288 = arith.constant 0 : index
    %316 = vector.load %arg4[%c8_285, %c2_286, %c0_287, %c0_288] : memref<10x3x128x128xf32, #tpu.memory_space<vmem>>, vector<1x1x128x128xf32>
    %317 = vector.shape_cast %316 : vector<1x1x128x128xf32> to vector<128x128xf32>
    %cst_289 = arith.constant dense<0.000000e+00> : vector<34x128xf32>
    %318 = tpu.matmul %315, %317, %cst_289 {dimension_numbers = #tpu.dot_dimension_numbers<[1], [0], [0], [1], [0, 0, 1, 1], [], []>} : vector<34x128xf32>, vector<128x128xf32>, vector<34x128xf32> -> vector<34x128xf32>
    %319 = arith.addf %314, %318 : vector<34x128xf32>
    %cst_290 = arith.constant 1.000000e-01 : f32
    %320 = vector.broadcast %cst_290 : f32 to vector<34x128xf32>
    %321 = arith.mulf %320, %319 : vector<34x128xf32>
    %322 = arith.addf %286, %321 : vector<34x128xf32>
    %cst_291 = arith.constant 0.000000e+00 : f32
    %323 = vector.broadcast %cst_291 : f32 to vector<34x128xf32>
    %324 = arith.select %11, %322, %323 : vector<34x128xi1>, vector<34x128xf32>
    %c1_292 = arith.constant 1 : index
    %c0_293 = arith.constant 0 : index
    %325 = vector.load %arg14[%c1_292, %c0_293] : memref<36x128xf32, #tpu.memory_space<vmem>>, vector<34x128xf32>
    tpu.vector_store %arg14[%c1_292, %c0_293], %324 {strides = array<i32>} : memref<36x128xf32, #tpu.memory_space<vmem>>, vector<34x128xf32>,
    %c0_294 = arith.constant 0 : index
    %c0_295 = arith.constant 0 : index
    %326 = vector.load %arg14[%c0_294, %c0_295] : memref<36x128xf32, #tpu.memory_space<vmem>>, vector<34x128xf32>
    %c9 = arith.constant 9 : index
    %c0_296 = arith.constant 0 : index
    %c0_297 = arith.constant 0 : index
    %c0_298 = arith.constant 0 : index
    %327 = vector.load %arg4[%c9, %c0_296, %c0_297, %c0_298] : memref<10x3x128x128xf32, #tpu.memory_space<vmem>>, vector<1x1x128x128xf32>
    %328 = vector.shape_cast %327 : vector<1x1x128x128xf32> to vector<128x128xf32>
    %cst_299 = arith.constant dense<0.000000e+00> : vector<34x128xf32>
    %329 = tpu.matmul %326, %328, %cst_299 {dimension_numbers = #tpu.dot_dimension_numbers<[1], [0], [0], [1], [0, 0, 1, 1], [], []>} : vector<34x128xf32>, vector<128x128xf32>, vector<34x128xf32> -> vector<34x128xf32>
    %c1_300 = arith.constant 1 : index
    %c0_301 = arith.constant 0 : index
    %330 = vector.load %arg14[%c1_300, %c0_301] : memref<36x128xf32, #tpu.memory_space<vmem>>, vector<34x128xf32>
    %c9_302 = arith.constant 9 : index
    %c1_303 = arith.constant 1 : index
    %c0_304 = arith.constant 0 : index
    %c0_305 = arith.constant 0 : index
    %331 = vector.load %arg4[%c9_302, %c1_303, %c0_304, %c0_305] : memref<10x3x128x128xf32, #tpu.memory_space<vmem>>, vector<1x1x128x128xf32>
    %332 = vector.shape_cast %331 : vector<1x1x128x128xf32> to vector<128x128xf32>
    %cst_306 = arith.constant dense<0.000000e+00> : vector<34x128xf32>
    %333 = tpu.matmul %330, %332, %cst_306 {dimension_numbers = #tpu.dot_dimension_numbers<[1], [0], [0], [1], [0, 0, 1, 1], [], []>} : vector<34x128xf32>, vector<128x128xf32>, vector<34x128xf32> -> vector<34x128xf32>
    %334 = arith.addf %329, %333 : vector<34x128xf32>
    %c2_307 = arith.constant 2 : index
    %c0_308 = arith.constant 0 : index
    %335 = vector.load %arg14[%c2_307, %c0_308] : memref<36x128xf32, #tpu.memory_space<vmem>>, vector<34x128xf32>
    %c9_309 = arith.constant 9 : index
    %c2_310 = arith.constant 2 : index
    %c0_311 = arith.constant 0 : index
    %c0_312 = arith.constant 0 : index
    %336 = vector.load %arg4[%c9_309, %c2_310, %c0_311, %c0_312] : memref<10x3x128x128xf32, #tpu.memory_space<vmem>>, vector<1x1x128x128xf32>
    %337 = vector.shape_cast %336 : vector<1x1x128x128xf32> to vector<128x128xf32>
    %cst_313 = arith.constant dense<0.000000e+00> : vector<34x128xf32>
    %338 = tpu.matmul %335, %337, %cst_313 {dimension_numbers = #tpu.dot_dimension_numbers<[1], [0], [0], [1], [0, 0, 1, 1], [], []>} : vector<34x128xf32>, vector<128x128xf32>, vector<34x128xf32> -> vector<34x128xf32>
    %339 = arith.addf %334, %338 : vector<34x128xf32>
    %cst_314 = arith.constant 0.000000e+00 : f32
    %340 = vector.broadcast %cst_314 : f32 to vector<34x128xf32>
    %341 = arith.select %11, %339, %340 : vector<34x128xi1>, vector<34x128xf32>
    %c1_315 = arith.constant 1 : index
    %c0_316 = arith.constant 0 : index
    %342 = vector.load %arg14[%c1_315, %c0_316] : memref<36x128xf32, #tpu.memory_space<vmem>>, vector<34x128xf32>
    tpu.vector_store %arg14[%c1_315, %c0_316], %341 {strides = array<i32>} : memref<36x128xf32, #tpu.memory_space<vmem>>, vector<34x128xf32>,
    %c0_317 = arith.constant 0 : index
    %c0_318 = arith.constant 0 : index
    %343 = vector.load %arg14[%c0_317, %c0_318] : memref<36x128xf32, #tpu.memory_space<vmem>>, vector<34x128xf32>
    %c0_319 = arith.constant 0 : index
    %c0_320 = arith.constant 0 : index
    %c0_321 = arith.constant 0 : index
    %344 = vector.load %arg5[%c0_319, %c0_320, %c0_321] : memref<3x128x64xf32, #tpu.memory_space<vmem>>, vector<1x128x64xf32>
    %345 = vector.shape_cast %344 : vector<1x128x64xf32> to vector<128x64xf32>
    %cst_322 = arith.constant dense<0.000000e+00> : vector<34x64xf32>
    %346 = tpu.matmul %343, %345, %cst_322 {dimension_numbers = #tpu.dot_dimension_numbers<[1], [0], [0], [1], [0, 0, 1, 1], [], []>} : vector<34x128xf32>, vector<128x64xf32>, vector<34x64xf32> -> vector<34x64xf32>
    %c1_323 = arith.constant 1 : index
    %c0_324 = arith.constant 0 : index
    %347 = vector.load %arg14[%c1_323, %c0_324] : memref<36x128xf32, #tpu.memory_space<vmem>>, vector<34x128xf32>
    %c1_325 = arith.constant 1 : index
    %c0_326 = arith.constant 0 : index
    %c0_327 = arith.constant 0 : index
    %348 = vector.load %arg5[%c1_325, %c0_326, %c0_327] : memref<3x128x64xf32, #tpu.memory_space<vmem>>, vector<1x128x64xf32>
    %349 = vector.shape_cast %348 : vector<1x128x64xf32> to vector<128x64xf32>
    %cst_328 = arith.constant dense<0.000000e+00> : vector<34x64xf32>
    %350 = tpu.matmul %347, %349, %cst_328 {dimension_numbers = #tpu.dot_dimension_numbers<[1], [0], [0], [1], [0, 0, 1, 1], [], []>} : vector<34x128xf32>, vector<128x64xf32>, vector<34x64xf32> -> vector<34x64xf32>
    %351 = arith.addf %346, %350 : vector<34x64xf32>
    %c2_329 = arith.constant 2 : index
    %c0_330 = arith.constant 0 : index
    %352 = vector.load %arg14[%c2_329, %c0_330] : memref<36x128xf32, #tpu.memory_space<vmem>>, vector<34x128xf32>
    %c2_331 = arith.constant 2 : index
    %c0_332 = arith.constant 0 : index
    %c0_333 = arith.constant 0 : index
    %353 = vector.load %arg5[%c2_331, %c0_332, %c0_333] : memref<3x128x64xf32, #tpu.memory_space<vmem>>, vector<1x128x64xf32>
    %354 = vector.shape_cast %353 : vector<1x128x64xf32> to vector<128x64xf32>
    %cst_334 = arith.constant dense<0.000000e+00> : vector<34x64xf32>
    %355 = tpu.matmul %352, %354, %cst_334 {dimension_numbers = #tpu.dot_dimension_numbers<[1], [0], [0], [1], [0, 0, 1, 1], [], []>} : vector<34x128xf32>, vector<128x64xf32>, vector<34x64xf32> -> vector<34x64xf32>
    %356 = arith.addf %351, %355 : vector<34x64xf32>
    %cst_335 = arith.constant 0.000000e+00 : f32
    %357 = vector.broadcast %cst_335 : f32 to vector<34x64xf32>
    %358 = arith.select %23, %356, %357 : vector<34x64xi1>, vector<34x64xf32>
    %c1_336 = arith.constant 1 : index
    %c0_337 = arith.constant 0 : index
    %359 = vector.load %arg15[%c1_336, %c0_337] : memref<36x64xf32, #tpu.memory_space<vmem>>, vector<34x64xf32>
    tpu.vector_store %arg15[%c1_336, %c0_337], %358 {strides = array<i32>} : memref<36x64xf32, #tpu.memory_space<vmem>>, vector<34x64xf32>,
    %c0_338 = arith.constant 0 : index
    %c0_339 = arith.constant 0 : index
    %360 = vector.load %arg15[%c0_338, %c0_339] : memref<36x64xf32, #tpu.memory_space<vmem>>, vector<34x64xf32>
    %c0_340 = arith.constant 0 : index
    %c0_341 = arith.constant 0 : index
    %c0_342 = arith.constant 0 : index
    %361 = vector.load %arg6[%c0_340, %c0_341, %c0_342] : memref<3x64x64xf32, #tpu.memory_space<vmem>>, vector<1x64x64xf32>
    %362 = vector.shape_cast %361 : vector<1x64x64xf32> to vector<64x64xf32>
    %cst_343 = arith.constant dense<0.000000e+00> : vector<34x64xf32>
    %363 = tpu.matmul %360, %362, %cst_343 {dimension_numbers = #tpu.dot_dimension_numbers<[1], [0], [0], [1], [0, 0, 1, 1], [], []>} : vector<34x64xf32>, vector<64x64xf32>, vector<34x64xf32> -> vector<34x64xf32>
    %c1_344 = arith.constant 1 : index
    %c0_345 = arith.constant 0 : index
    %364 = vector.load %arg15[%c1_344, %c0_345] : memref<36x64xf32, #tpu.memory_space<vmem>>, vector<34x64xf32>
    %c1_346 = arith.constant 1 : index
    %c0_347 = arith.constant 0 : index
    %c0_348 = arith.constant 0 : index
    %365 = vector.load %arg6[%c1_346, %c0_347, %c0_348] : memref<3x64x64xf32, #tpu.memory_space<vmem>>, vector<1x64x64xf32>
    %366 = vector.shape_cast %365 : vector<1x64x64xf32> to vector<64x64xf32>
    %cst_349 = arith.constant dense<0.000000e+00> : vector<34x64xf32>
    %367 = tpu.matmul %364, %366, %cst_349 {dimension_numbers = #tpu.dot_dimension_numbers<[1], [0], [0], [1], [0, 0, 1, 1], [], []>} : vector<34x64xf32>, vector<64x64xf32>, vector<34x64xf32> -> vector<34x64xf32>
    %368 = arith.addf %363, %367 : vector<34x64xf32>
    %c2_350 = arith.constant 2 : index
    %c0_351 = arith.constant 0 : index
    %369 = vector.load %arg15[%c2_350, %c0_351] : memref<36x64xf32, #tpu.memory_space<vmem>>, vector<34x64xf32>
    %c2_352 = arith.constant 2 : index
    %c0_353 = arith.constant 0 : index
    %c0_354 = arith.constant 0 : index
    %370 = vector.load %arg6[%c2_352, %c0_353, %c0_354] : memref<3x64x64xf32, #tpu.memory_space<vmem>>, vector<1x64x64xf32>
    %371 = vector.shape_cast %370 : vector<1x64x64xf32> to vector<64x64xf32>
    %cst_355 = arith.constant dense<0.000000e+00> : vector<34x64xf32>
    %372 = tpu.matmul %369, %371, %cst_355 {dimension_numbers = #tpu.dot_dimension_numbers<[1], [0], [0], [1], [0, 0, 1, 1], [], []>} : vector<34x64xf32>, vector<64x64xf32>, vector<34x64xf32> -> vector<34x64xf32>
    %373 = arith.addf %368, %372 : vector<34x64xf32>
    %374 = vector.extract_strided_slice %373 {offsets = [0, 0], sizes = [16, 64], strides = [1, 1]} : vector<34x64xf32> to vector<16x64xf32>
    %c0_356 = arith.constant 0 : index
    %c0_357 = arith.constant 0 : index
    %c0_358 = arith.constant 0 : index
    %375 = vector.load %arg11[%c0_356, %c0_357, %c0_358] : memref<2x16x64xf32, #tpu.memory_space<vmem>>, vector<1x16x64xf32>
    %376 = vector.shape_cast %375 : vector<1x16x64xf32> to vector<16x64xf32>
    %377 = vector.shape_cast %374 : vector<16x64xf32> to vector<1x16x64xf32>
    tpu.vector_store %arg11[%c0_356, %c0_357, %c0_358], %377 {strides = array<i32>} : memref<2x16x64xf32, #tpu.memory_space<vmem>>, vector<1x16x64xf32>,
    %378 = vector.extract_strided_slice %373 {offsets = [18, 0], sizes = [16, 64], strides = [1, 1]} : vector<34x64xf32> to vector<16x64xf32>
    %c1_359 = arith.constant 1 : index
    %c0_360 = arith.constant 0 : index
    %c0_361 = arith.constant 0 : index
    %379 = vector.load %arg11[%c1_359, %c0_360, %c0_361] : memref<2x16x64xf32, #tpu.memory_space<vmem>>, vector<1x16x64xf32>
    %380 = vector.shape_cast %379 : vector<1x16x64xf32> to vector<16x64xf32>
    %381 = vector.shape_cast %378 : vector<16x64xf32> to vector<1x16x64xf32>
    tpu.vector_store %arg11[%c1_359, %c0_360, %c0_361], %381 {strides = array<i32>} : memref<2x16x64xf32, #tpu.memory_space<vmem>>, vector<1x16x64xf32>,
    return
  }
  func.func @transform_0(%arg0: i32) -> (i32, i32, i32) {
    %c0_i32 = arith.constant 0 : i32
    %c0_i32_0 = arith.constant 0 : i32
    %c0_i32_1 = arith.constant 0 : i32
    %c0_i32_2 = arith.constant 0 : i32
    return %c0_i32, %c0_i32_0, %c0_i32_1 : i32, i32, i32
  }
  func.func @transform_1(%arg0: i32) -> (i32, i32) {
    %c0_i32 = arith.constant 0 : i32
    %c0_i32_0 = arith.constant 0 : i32
    %c0_i32_1 = arith.constant 0 : i32
    return %c0_i32, %c0_i32_0 : i32, i32
  }
  func.func @transform_2(%arg0: i32) -> (i32, i32, i32) {
    %c0_i32 = arith.constant 0 : i32
    %c0_i32_0 = arith.constant 0 : i32
    %c0_i32_1 = arith.constant 0 : i32
    %c0_i32_2 = arith.constant 0 : i32
    return %c0_i32, %c0_i32_0, %c0_i32_1 : i32, i32, i32
  }
  func.func @transform_3(%arg0: i32) -> (i32, i32, i32, i32) {
    %c0_i32 = arith.constant 0 : i32
    %c0_i32_0 = arith.constant 0 : i32
    %c0_i32_1 = arith.constant 0 : i32
    %c0_i32_2 = arith.constant 0 : i32
    %c0_i32_3 = arith.constant 0 : i32
    return %c0_i32, %c0_i32_0, %c0_i32_1, %c0_i32_2 : i32, i32, i32, i32
  }
  func.func @transform_4(%arg0: i32) -> (i32, i32, i32) {
    %c0_i32 = arith.constant 0 : i32
    %c0_i32_0 = arith.constant 0 : i32
    %c0_i32_1 = arith.constant 0 : i32
    %c0_i32_2 = arith.constant 0 : i32
    return %c0_i32, %c0_i32_0, %c0_i32_1 : i32, i32, i32
  }
  func.func @transform_5(%arg0: i32) -> (i32, i32, i32) {
    %c0_i32 = arith.constant 0 : i32
    %c0_i32_0 = arith.constant 0 : i32
    %c0_i32_1 = arith.constant 0 : i32
    %c0_i32_2 = arith.constant 0 : i32
    return %c0_i32, %c0_i32_0, %c0_i32_1 : i32, i32, i32
  }
  func.func @transform_6(%arg0: i32) -> (i32, i32) {
    %c0_i32 = arith.constant 0 : i32
    %c0_i32_0 = arith.constant 0 : i32
    %c0_i32_1 = arith.constant 0 : i32
    return %c0_i32, %c0_i32_0 : i32, i32
  }
  func.func @transform_7(%arg0: i32) -> (i32, i32) {
    %c0_i32 = arith.constant 0 : i32
    %c0_i32_0 = arith.constant 0 : i32
    %c0_i32_1 = arith.constant 0 : i32
    return %c0_i32, %c0_i32_0 : i32, i32
  }
  func.func @transform_8(%arg0: i32) -> (i32, i32) {
    %c0_i32 = arith.constant 0 : i32
    %c0_i32_0 = arith.constant 0 : i32
    %c0_i32_1 = arith.constant 0 : i32
    return %c0_i32, %c0_i32_0 : i32, i32
  }
  func.func @transform_9(%arg0: i32) -> (i32, i32) {
    %c0_i32 = arith.constant 0 : i32
    %c0_i32_0 = arith.constant 0 : i32
    %c0_i32_1 = arith.constant 0 : i32
    return %c0_i32, %c0_i32_0 : i32, i32
  }
  func.func @transform_10(%arg0: i32) -> (i32, i32, i32) {
    %c0_i32 = arith.constant 0 : i32
    %c0_i32_0 = arith.constant 0 : i32
    %c0_i32_1 = arith.constant 0 : i32
    %c0_i32_2 = arith.constant 0 : i32
    return %c0_i32, %c0_i32_0, %c0_i32_1 : i32, i32, i32
  }
  func.func @transform_11(%arg0: i32) -> (i32, i32) {
    %c0_i32 = arith.constant 0 : i32
    %c0_i32_0 = arith.constant 0 : i32
    %c0_i32_1 = arith.constant 0 : i32
    return %c0_i32, %c0_i32_0 : i32, i32
  }
}

</mosaic_0001>

<bundles_post_ra>
// kernel: hicvae_forward.1
= control target key start
LH: loop header
LB: loop body
LE: loop exit
PB: predicated region body
PF: predicated region fallthrough
CT: control target
= control target key end

     0   :  { %17 = vsyncpa [#allocation6], 0  ;;  %s13164_s0 = inlined_call_operand.hbm [shape: f32[2,16,16], index: 0, kind: input, shape index: {}]   ;;  %s13165_s1 = inlined_call_operand.hbm [shape: f32[2,16], index: 1, kind: input, shape index: {}]   ;;  %s13166_s2 = inlined_call_operand.hbm [shape: f32[3,16,128], index: 2, kind: input, shape index: {}]   ;;  %s13167_s3 = inlined_call_operand.hbm [shape: f32[10,3,128,128], index: 3, kind: input, shape index: {}]   ;;  %s13168_s4 = inlined_call_operand.vmem [shape: f32[3,128,64], index: 4, kind: input, shape index: {}]   ;;  %s13169_s5 = inlined_call_operand.hbm [shape: f32[3,64,64], index: 5, kind: input, shape index: {}]   ;;  %s13170_s6 = inlined_call_operand.vmem [shape: f32[2048,32], index: 6, kind: input, shape index: {}]   ;;  %s13171_s7 = inlined_call_operand.hbm [shape: f32[1,32], index: 7, kind: input, shape index: {}]   ;;  %s13172_s8 = inlined_call_operand.hbm [shape: f32[16,2048], index: 8, kind: input, shape index: {}]   ;;  %s13173_s9 = inlined_call_operand.hbm [shape: f32[1,2048], index: 9, kind: input, shape index: {}]   ;;  %s13174_s10 = inlined_call_operand.vmem [shape: f32[2,16,64], index: 10, kind: output, shape index: {0}]   ;;  %s13175_s11 = inlined_call_operand.vmem [shape: f32[2,32], index: 11, kind: output, shape index: {1}]  }
   0x1   :  { %18 = vsyncpa [#allocation8], 0 }
   0x2   :  { %19 = vsyncpa [#allocation11], 0 }
   0x3   :  { %20 = vsyncpa [#allocation14], 0 }
   0x4   :  { %21 = vsyncpa [#allocation17], 0  ;;  %s11004_s17 = smov [#allocation7]   ;;  %s10818_s21 = scalar_lea.hbm %s13165_s1, 32 }
   0x5   :  { %s40_s18 = sshll.u32 %s11004_s17, 4  ;;  %p10819_p0 = scmp.ne.s32.totalorder %s13165_s1, %s10818_s21  ;;  %s41_s18 = int_to_ptr.vmem [resolvable:$true] %s40_s18 }
   0x6   :  { %p10822_p1 = scmp.lt.u32.totalorder %s10818_s21, %s13165_s1 }
   0x8   :  { %p10824_p2 = pnand %p10822_p1, %p10819_p0 }
   0xa   :  { %10827 = shalt.err (!%p10824_p2)
}
   0xb   :  { %s10828_s26 = scalar_lea.vmem %s41_s18, 32  ;;  %p10833_p4 = scmp.lt.s32.totalorder %s41_s18, %s41_s18 }
   0xc   :  { %p10829_p3 = scmp.ne.s32.totalorder %s41_s18, %s10828_s26  ;;  %p10834_p5 = scmp.lt.s32.totalorder %s10828_s26, %s10828_s26 }
   0xe   :  { %p10835_p6 = por %p10834_p5, %p10833_p4 }
  0x10   :  { %p10836_p7 = pnand %p10835_p6, %p10829_p3 }
  0x12   :  { %10839 = shalt.err (!%p10836_p7)
}
  0x13   :  { %43 = dma.hbm_to_vmem [thread:$0]  %s13165_s1, 32, %s41_s18, [#allocation8]  }
  0x14   :  { %s11005_s29 = smov [#allocation10]   ;;  %s11006_s12 = smov [#allocation13]  }
  0x15   :  { %s61_s30 = sshll.u32 %s11005_s29, 4  ;;  %s90_s13 = sshll.u32 %s11006_s12, 4  ;;  %s62_s30 = int_to_ptr.vmem [resolvable:$true] %s61_s30  ;;  %s91_s13 = int_to_ptr.vmem [resolvable:$true] %s90_s13 }
  0x16   :  { %s10840_s16 = scalar_lea.hbm %s13167_s3, 61440 }
  0x17   :  { %p10841_p8 = scmp.ne.s32.totalorder %s13167_s3, %s10840_s16  ;;  %p10844_p9 = scmp.lt.u32.totalorder %s10840_s16, %s13167_s3 }
  0x19   :  { %p10846_p10 = pnand %p10844_p9, %p10841_p8 }
  0x1b   :  { %10849 = shalt.err (!%p10846_p10)
}
  0x1c   :  { %s10850_s1 = scalar_lea.vmem %s62_s30, 61440  ;;  %p10855_p12 = scmp.lt.s32.totalorder %s62_s30, %s62_s30 }
  0x1d   :  { %p10851_p11 = scmp.ne.s32.totalorder %s62_s30, %s10850_s1  ;;  %p10856_p13 = scmp.lt.s32.totalorder %s10850_s1, %s10850_s1 }
  0x1f   :  { %p10857_p0 = por %p10856_p13, %p10855_p12 }
  0x21   :  { %p10858_p1 = pnand %p10857_p0, %p10851_p11 }
  0x23   :  { %10861 = shalt.err (!%p10858_p1)
}
  0x24   :  { %s11007_s18 = smov 128   ;;  %s11008_s22 = smov 8  }
  0x25   :  { %67 = dma.hbm_to_vmem [thread:$0]  %s13167_s3, 61440, %s62_s30, [#allocation11], %s11007_s18, %s11007_s18, %s11008_s22  }
  0x26   :  { %s10862_s27 = scalar_lea.hbm %s13171_s7, 16 }
  0x27   :  { %p10863_p2 = scmp.ne.s32.totalorder %s13171_s7, %s10862_s27  ;;  %p10866_p3 = scmp.lt.u32.totalorder %s10862_s27, %s13171_s7 }
  0x29   :  { %p10868_p4 = pnand %p10866_p3, %p10863_p2 }
  0x2b   :  { %10871 = shalt.err (!%p10868_p4)
}
  0x2c   :  { %s10872_s15 = scalar_lea.vmem %s91_s13, 16  ;;  %s10876_s16 = scalar_lea.vmem %s91_s13, 32 }
  0x2d   :  { %p10873_p5 = scmp.ne.s32.totalorder %s91_s13, %s10872_s15  ;;  %p10877_p6 = scmp.lt.s32.totalorder %s91_s13, %s91_s13 }
  0x2e   :  { %p10878_p7 = scmp.lt.s32.totalorder %s10876_s16, %s10872_s15 }
  0x30   :  { %p10879_p8 = por %p10878_p7, %p10877_p6 }
  0x32   :  { %p10880_p9 = pnand %p10879_p8, %p10873_p5 }
  0x34   :  { %10883 = shalt.err (!%p10880_p9)
}
  0x35   :  { %93 = dma.hbm_to_vmem [thread:$0]  %s13171_s7, 16, %s91_s13, [#allocation14]  }
  0x36   :  { %s11009_s17 = smov [#allocation5]   ;;  %s11010_s20 = smov [#allocation9]  }
  0x37   :  { %s27_s19 = sshll.u32 %s11009_s17, 4  ;;  %s49_s21 = sshll.u32 %s11010_s20, 4  ;;  %s28_s19 = int_to_ptr.vmem [resolvable:$true] %s27_s19  ;;  %s50_s21 = int_to_ptr.vmem [resolvable:$true] %s49_s21 }
  0x38   :  { %s10884_s24 = scalar_lea.hbm %s13164_s0, 512 }
  0x39   :  { %p10885_p10 = scmp.ne.s32.totalorder %s13164_s0, %s10884_s24  ;;  %p10888_p11 = scmp.lt.u32.totalorder %s10884_s24, %s13164_s0 }
  0x3b   :  { %p10890_p12 = pnand %p10888_p11, %p10885_p10 }
  0x3d   :  { %10893 = shalt.err (!%p10890_p12)
}
  0x3e   :  { %s10894_s7 = scalar_lea.vmem %s28_s19, 512  ;;  %p10899_p0 = scmp.lt.s32.totalorder %s28_s19, %s28_s19 }
  0x3f   :  { %p10895_p13 = scmp.ne.s32.totalorder %s28_s19, %s10894_s7  ;;  %p10900_p1 = scmp.lt.s32.totalorder %s10894_s7, %s10894_s7 }
  0x41   :  { %p10901_p2 = por %p10900_p1, %p10899_p0 }
  0x43   :  { %p10902_p3 = pnand %p10901_p2, %p10895_p13 }
  0x45   :  { %10905 = shalt.err (!%p10902_p3)
}
  0x46   :  { %33 = dma.hbm_to_vmem [thread:$0]  %s13164_s0, 512, %s28_s19, [#allocation6], %s11007_s18, %s11007_s18, %s11008_s22  }
  0x47   :  { %s10906_s15 = scalar_lea.hbm %s13166_s2, 768 }
  0x48   :  { %p10907_p4 = scmp.ne.s32.totalorder %s13166_s2, %s10906_s15  ;;  %p10910_p5 = scmp.lt.u32.totalorder %s10906_s15, %s13166_s2 }
  0x4a   :  { %p10912_p6 = pnand %p10910_p5, %p10907_p4 }
  0x4c   :  { %10915 = shalt.err (!%p10912_p6)
}
  0x4d   :  { %s10916_s20 = scalar_lea.vmem %s50_s21, 768  ;;  %p10921_p8 = scmp.lt.s32.totalorder %s50_s21, %s50_s21 }
  0x4e   :  { %p10917_p7 = scmp.ne.s32.totalorder %s50_s21, %s10916_s20  ;;  %p10922_p9 = scmp.lt.s32.totalorder %s10916_s20, %s10916_s20 }
  0x50   :  { %p10923_p10 = por %p10922_p9, %p10921_p8 }
  0x52   :  { %p10924_p11 = pnand %p10923_p10, %p10917_p7 }
  0x54   :  { %10927 = shalt.err (!%p10924_p11)
}
  0x55   :  { %55 = dma.hbm_to_vmem [thread:$0]  %s13166_s2, 768, %s50_s21, [#allocation8], %s11007_s18, %s11007_s18, %s11008_s22  }
  0x56   :  { %s11011_s1 = smov [#allocation12]   ;;  %s11012_s24 = smov [#allocation15]  }
  0x57   :  { %s75_s23 = sshll.u32 %s11011_s1, 4  ;;  %s99_s25 = sshll.u32 %s11012_s24, 4  ;;  %s76_s23 = int_to_ptr.vmem [resolvable:$true] %s75_s23  ;;  %s100_s25 = int_to_ptr.vmem [resolvable:$true] %s99_s25 }
  0x58   :  { %s10928_s28 = scalar_lea.hbm %s13169_s5, 3072 }
  0x59   :  { %p10929_p12 = scmp.ne.s32.totalorder %s13169_s5, %s10928_s28  ;;  %p10932_p13 = scmp.lt.u32.totalorder %s10928_s28, %s13169_s5 }
  0x5b   :  { %p10934_p0 = pnand %p10932_p13, %p10929_p12 }
  0x5d   :  { %10937 = shalt.err (!%p10934_p0)
}
  0x5e   :  { %s10938_s2 = scalar_lea.vmem %s76_s23, 3072  ;;  %p10943_p2 = scmp.lt.s32.totalorder %s76_s23, %s76_s23 }
  0x5f   :  { %p10939_p1 = scmp.ne.s32.totalorder %s76_s23, %s10938_s2  ;;  %p10944_p3 = scmp.lt.s32.totalorder %s10938_s2, %s10938_s2 }
  0x61   :  { %p10945_p4 = por %p10944_p3, %p10943_p2 }
  0x63   :  { %p10946_p5 = pnand %p10945_p4, %p10939_p1 }
  0x65   :  { %10949 = shalt.err (!%p10946_p5)
}
  0x66   :  { %81 = dma.hbm_to_vmem [thread:$0]  %s13169_s5, 3072, %s76_s23, [#allocation11], %s11007_s18, %s11007_s18, %s11008_s22  }
  0x67   :  { %s10950_s3 = scalar_lea.hbm %s13172_s8, 4096 }
  0x68   :  { %p10951_p6 = scmp.ne.s32.totalorder %s13172_s8, %s10950_s3  ;;  %p10954_p7 = scmp.lt.u32.totalorder %s10950_s3, %s13172_s8 }
  0x6a   :  { %p10956_p8 = pnand %p10954_p7, %p10951_p6 }
  0x6c   :  { %10959 = shalt.err (!%p10956_p8)
}
  0x6d   :  { %s10960_s19 = scalar_lea.vmem %s100_s25, 4096  ;;  %p10965_p10 = scmp.lt.s32.totalorder %s100_s25, %s100_s25 }
  0x6e   :  { %p10961_p9 = scmp.ne.s32.totalorder %s100_s25, %s10960_s19  ;;  %p10966_p11 = scmp.lt.s32.totalorder %s10960_s19, %s10960_s19 }
  0x70   :  { %p10967_p12 = por %p10966_p11, %p10965_p10 }
  0x72   :  { %p10968_p13 = pnand %p10967_p12, %p10961_p9 }
  0x74   :  { %10971 = shalt.err (!%p10968_p13)
}
  0x75   :  { %s11013_s5 = smov 2048   ;;  %s11014_s23 = smov [#allocation16]  }
  0x76   :  { %105 = dma.hbm_to_vmem [thread:$0]  %s13172_s8, 4096, %s100_s25, [#allocation14], %s11013_s5, %s11013_s5, %s11007_s18  }
  0x77   :  { %s112_s24 = sshll.u32 %s11014_s23, 4  ;;  %s10972_s28 = scalar_lea.hbm %s13173_s9, 256  ;;  %s113_s24 = int_to_ptr.vmem [resolvable:$true] %s112_s24 }
  0x78   :  { %p10973_p0 = scmp.ne.s32.totalorder %s13173_s9, %s10972_s28  ;;  %p10976_p1 = scmp.lt.u32.totalorder %s10972_s28, %s13173_s9 }
  0x7a   :  { %p10978_p2 = pnand %p10976_p1, %p10973_p0 }
  0x7c   :  { %10981 = shalt.err (!%p10978_p2)
}
  0x7d   :  { %s10982_s2 = scalar_lea.vmem %s113_s24, 256  ;;  %p10987_p4 = scmp.lt.s32.totalorder %s113_s24, %s113_s24 }
  0x7e   :  { %p10983_p3 = scmp.ne.s32.totalorder %s113_s24, %s10982_s2  ;;  %p10988_p5 = scmp.lt.s32.totalorder %s10982_s2, %s10982_s2 }
  0x80   :  { %p10989_p6 = por %p10988_p5, %p10987_p4 }
  0x82   :  { %p10990_p7 = pnand %p10989_p6, %p10983_p3 }
  0x84   :  { %10993 = shalt.err (!%p10990_p7)
}
  0x85   :  { %115 = dma.hbm_to_vmem [thread:$0]  %s13173_s9, 256, %s113_s24, [#allocation17]  }
  0x86   :  { %10994 = dma.done.wait [#allocation6], 512  }
  0x87   :  { %10995 = vsyncadd [#allocation6], 4294966784 }
  0x88   :  { %10996 = dma.done.wait [#allocation8], 800  }
  0x89   :  { %10997 = vsyncadd [#allocation8], 4294966496 }
  0x8a   :  { %10998 = dma.done.wait [#allocation11], 64512  }
  0x8b   :  { %10999 = vsyncadd [#allocation11], 4294902784 }
  0x8c   :  { %11000 = dma.done.wait [#allocation14], 4112  }
  0x8d   :  { %11001 = vsyncadd [#allocation14], 4294963184 }
  0x8e   :  { %11002 = dma.done.wait [#allocation17], 256  }
  0x8f   :  { %11003 = vsyncadd [#allocation17], 4294967040  ;;  %vm186_vm0 = vcmask 122880   ;;  %v11015_v0 = vmov 0.0|0.0   ;;  %vm11016_vm1 = vmmov 0   ;;  %v11017_v1 = vmov 0.0  }
  0x90   :  { %9412 = vmatprep.subr.bf16.mxu0 %v11015_v0  ;;  %7731 = vmatprep.mubr.msk.f32.mxu0 %vm11016_vm1, %v11017_v1  ;;  %181 = vst [vmem:[#allocation3] sm:$0x1] %v11017_v1  ;;  %182 = vst [vmem:[#allocation3 + $0x23] sm:$0x1] %v11017_v1  ;;  %vm193_vm2 = vcmask 130048   ;;  %v206_v2 = vld [vmem:[#allocation9] sm:$0xff] }
  0x91   :  { %187 = vst.msk [vmem:[#allocation2] sm:$0x1] %vm186_vm0, %v11017_v1  ;;  %188 = vst.msk [vmem:[#allocation2 + $0x11] sm:$0x1] %vm186_vm0, %v11017_v1  ;;  %9409 = vmatprep.subr.bf16.mxu1 %v11015_v0  ;;  %7712 = vmatprep.mubr.msk.f32.mxu1 %vm11016_vm1, %v11017_v1  ;;  %v207_v3 = vld [vmem:[#allocation9 + $0x8] sm:$0xff]  ;;  %v191_v4 = vld [vmem:[#allocation5] sm:$0xff] }
  0x92   :  { %189 = vst.msk [vmem:[#allocation2 + $0x12] sm:$0x1] %vm186_vm0, %v11017_v1  ;;  %190 = vst.msk [vmem:[#allocation2 + $0x23] sm:$0x1] %vm186_vm0, %v11017_v1  ;;  %v9413_v5 = vpack.c.bf16 %v207_v3, %v206_v2  ;;  %v192_v6 = vld [vmem:[#allocation5 + $0x8] sm:$0xff]  ;;  %v197_v7 = vld [vmem:[#allocation5 + $0x10] sm:$0xff] }
  0x93   :  { %194 = vst.msk [vmem:[#allocation2 + $0x1] sm:$0xff] %vm193_vm2, %v191_v4  ;;  %195 = vst.msk [vmem:[#allocation2 + $0x9] sm:$0xff] %vm193_vm2, %v192_v6  ;;  %v198_v8 = vld [vmem:[#allocation5 + $0x18] sm:$0xff]  ;;  %v432_v10 = vld [vmem:[#allocation9 + $0x20] sm:$0xff]  ;;  %vm2418_vm5 = vcmask 1040384   ;;  %s11018_s7 = smov 16  }
  0x94   :  { %v214_v9 = vld [vmem:[#allocation9 + $0x10] sm:$0xff]  ;;  %9414 = vmatpush3.bf16.msra.mxu0 %v9413_v5  ;;  %v433_v11 = vld [vmem:[#allocation9 + $0x28] sm:$0xff]  ;;  %199 = vst.msk [vmem:[#allocation2 + $0x13] sm:$0xff] %vm193_vm2, %v197_v7  ;;  %200 = vst.msk [vmem:[#allocation2 + $0x1b] sm:$0xff] %vm193_vm2, %v198_v8  ;;  %vm3272_vm6 = vcmask 254976   ;;  %s11019_s25 = smov 112  }
  0x95   :  { %v215_v12 = vld [vmem:[#allocation9 + $0x18] sm:$0xff]  ;;  %9415 = vmatprep.subr.bf16.mxu0 %v11015_v0  ;;  %v564_v14 = vld [vmem:[#allocation10] sm:$0xff]  ;;  %v9416_v16 = vpack.c.bf16 %v433_v11, %v432_v10  ;;  %v566_v20 = vld [vmem:[#allocation10 + $0x10] sm:$0xff]  ;;  %vm4004_vm7 = vcmask 1041408   ;;  %vm4006_vm8 = vcmask 1042432   ;;  %vm4008_vm9 = vcmask 1043456  }
  0x96   :  { %v9410_v13 = vpack.c.bf16 %v215_v12, %v214_v9  ;;  %v565_v15 = vld [vmem:[#allocation10 + $0x8] sm:$0xff]  ;;  %v567_v21 = vld [vmem:[#allocation10 + $0x18] sm:$0xff]  ;;  %v568_v25 = vld [vmem:[#allocation10 + $0x20] sm:$0xff]  ;;  %vm4010_vm10 = vcmask 1044480   ;;  %vm4012_vm11 = vcmask 1045504   ;;  %vm4014_vm12 = vcmask 1046528  }
  0x97   :  { %v9443_v19 = vpack.c.bf16 %v565_v15, %v564_v14  ;;  %v9446_v24 = vpack.c.bf16 %v567_v21, %v566_v20  ;;  %v569_v26 = vld [vmem:[#allocation10 + $0x28] sm:$0xff]  ;;  %v570_v30 = vld [vmem:[#allocation10 + $0x30] sm:$0xff]  ;;  %v571_v31 = vld [vmem:[#allocation10 + $0x38] sm:$0xff]  ;;  %vm183_vm13 = vcmask 516096   ;;  %vm6201_vm14 = vcmask 523264  }
  0x98   :  { %9411 = vmatpush3.bf16.msra.mxu1 %v9410_v13  ;;  %v9449_v29 = vpack.c.bf16 %v569_v26, %v568_v25  ;;  %v9452_v34 = vpack.c.bf16 %v571_v31, %v570_v30  ;;  %v572_v35 = vld [vmem:[#allocation10 + $0x40] sm:$0xff]  ;;  %v573_v36 = vld [vmem:[#allocation10 + $0x48] sm:$0xff]  ;;  %v583_v44 = vld [vmem:[#allocation10 + $0x90] sm:$0xff]  ;;  %184 = vst.msk [vmem:[#allocation4] sm:$0x1] %vm183_vm13, %v11017_v1  ;;  %vm6206_vm15 = vcmask 517120  }
  0x99   :  { %9442 = vmatprep.subr.bf16.mxu1 %v11015_v0  ;;  %v581_v39 = vld [vmem:[#allocation10 + $0x80] sm:$0xff]  ;;  %v582_v40 = vld [vmem:[#allocation10 + $0x88] sm:$0xff]  ;;  %v9455_v41 = vpack.c.bf16 %v573_v36, %v572_v35  ;;  %v584_v45 = vld [vmem:[#allocation10 + $0x98] sm:$0xff]  ;;  %185 = vst.msk [vmem:[#allocation4 + $0x23] sm:$0x1] %vm183_vm13, %v11017_v1  ;;  %vm6572_vm0 = vcmask 523266  }
  0x9a   :  { %v201_v17 = vld [vmem:[#allocation2] sm:$0xff]  ;;  %v202_v22 = vld [vmem:[#allocation2 + $0x8] sm:$0xff]  ;;  %v9419_v43 = vpack.c.bf16 %v582_v40, %v581_v39  ;;  %v9422_v47 = vpack.c.bf16 %v584_v45, %v583_v44  ;;  %v586_v49 = vld [vmem:[#allocation10 + $0xa8] sm:$0xff] }
  0x9b   :  { %v208_v18 = vld [vmem:[#allocation2 + $0x1] sm:$0xff]  ;;  %7732 = vmatmul.mubr.msk.f32.vlgmr.msra.gmra.mrb[0].mxu0 %vm193_vm2, %v201_v17  ;;  %v209_v23 = vld [vmem:[#allocation2 + $0x9] sm:$0xff]  ;;  %v210_v28 = vld [vmem:[#allocation2 + $0x11] sm:$0xff] }
  0x9c   :  { %7713 = vmatmul.mubr.msk.f32.vlgmr.msra.gmra.mrb[0].mxu1 %vm193_vm2, %v208_v18  ;;  %9417 = vmatpush3.bf16.msra.mxu0 %v9416_v16  ;;  %v203_v27 = vld [vmem:[#allocation2 + $0x10] sm:$0xff]  ;;  %v204_v32 = vld [vmem:[#allocation2 + $0x18] sm:$0xff]  ;;  %v205_v37 = vld [vmem:[#allocation2 + $0x20] sm:$0x3] }
  0x9d   :  { %7734 = vmatprep.mubr.msk.f32.mxu0 %vm11016_vm1, %v11017_v1  ;;  %7715 = vmatprep.mubr.msk.f32.mxu1 %vm11016_vm1, %v11017_v1  ;;  %v211_v33 = vld [vmem:[#allocation2 + $0x19] sm:$0xff]  ;;  %v212_v38 = vld [vmem:[#allocation2 + $0x21] sm:$0x3]  ;;  %v427_v46 = vld [vmem:[#allocation2 + $0xa] sm:$0xff] }
  0x9e   :  { %9418 = vmatprep.subr.bf16.mxu0 %v11015_v0  ;;  %9444 = vmatpush3.bf16.msra.mxu1 %v9443_v19  ;;  %v426_v42 = vld [vmem:[#allocation2 + $0x2] sm:$0xff]  ;;  %v585_v48 = vld [vmem:[#allocation10 + $0xa0] sm:$0xff]  ;;  %v428_v50 = vld [vmem:[#allocation2 + $0x12] sm:$0xff] }
  0x9f   :  { %7735 = vmatmul.mubr.msk.f32.gmra.mrb[2].mxu0 %vm193_vm2, %v202_v22  ;;  %9445 = vmatprep.subr.bf16.mxu1 %v11015_v0  ;;  %v9425_v51 = vpack.c.bf16 %v586_v49, %v585_v48  ;;  %v587_v52 = vld [vmem:[#allocation10 + $0xb0] sm:$0xff]  ;;  %v588_v53 = vld [vmem:[#allocation10 + $0xb8] sm:$0xff]  ;;  %v589_v56 = vld [vmem:[#allocation10 + $0xc0] sm:$0xff] }
  0xa0   :  { %7716 = vmatmul.mubr.msk.f32.gmra.mrb[2].mxu1 %vm193_vm2, %v209_v23  ;;  %7737 = vmatprep.mubr.msk.f32.mxu0 %vm11016_vm1, %v11017_v1  ;;  %v429_v54 = vld [vmem:[#allocation2 + $0x1a] sm:$0xff]  ;;  %v9428_v55 = vpack.c.bf16 %v588_v53, %v587_v52  ;;  %v590_v57 = vld [vmem:[#allocation10 + $0xc8] sm:$0xff]  ;;  %v430_v58 = vld [vmem:[#allocation2 + $0x22] sm:$0x3] }
  0xa1   :  { %7718 = vmatprep.mubr.msk.f32.mxu1 %vm11016_vm1, %v11017_v1  ;;  %v9431_v59 = vpack.c.bf16 %v590_v57, %v589_v56  ;;  %v574_v60 = vld [vmem:[#allocation10 + $0x50] sm:$0xff]  ;;  %v575_v61 = vld [vmem:[#allocation10 + $0x58] sm:$0xff]  ;;  %v593_v4 = vld [vmem:[#allocation10 + $0xe0] sm:$0xff] }
  0xa2   :  { %9447 = vmatpush3.bf16.msra.mxu1 %v9446_v24  ;;  %v9458_v62 = vpack.c.bf16 %v575_v61, %v574_v60  ;;  %v591_v63 = vld [vmem:[#allocation10 + $0xd0] sm:$0xff]  ;;  %v592_v2 = vld [vmem:[#allocation10 + $0xd8] sm:$0xff]  ;;  %v594_v5 = vld [vmem:[#allocation10 + $0xe8] sm:$0xff]  ;;  %v140_v24 = vlaneseq }
  0xa3   :  { %7738 = vmatmul.mubr.msk.f32.gmra.mrb[4].mxu0 %vm193_vm2, %v203_v27  ;;  %9448 = vmatprep.subr.bf16.mxu1 %v11015_v0  ;;  %v9434_v3 = vpack.c.bf16 %v592_v2, %v591_v63  ;;  %v9437_v6 = vpack.c.bf16 %v594_v5, %v593_v4  ;;  %v595_v7 = vld [vmem:[#allocation10 + $0xf0] sm:$0xff]  ;;  %v596_v8 = vld [vmem:[#allocation10 + $0xf8] sm:$0xff]  ;;  %v576_v10 = vld [vmem:[#allocation10 + $0x60] sm:$0xff] }
  0xa4   :  { %7719 = vmatmul.mubr.msk.f32.gmra.mrb[4].mxu1 %vm193_vm2, %v210_v28  ;;  %7740 = vmatprep.mubr.msk.f32.mxu0 %vm11016_vm1, %v11017_v1  ;;  %v9440_v9 = vpack.c.bf16 %v596_v8, %v595_v7  ;;  %v577_v11 = vld [vmem:[#allocation10 + $0x68] sm:$0xff]  ;;  %v578_v13 = vld [vmem:[#allocation10 + $0x70] sm:$0xff]  ;;  %v579_v14 = vld [vmem:[#allocation10 + $0x78] sm:$0xff]  ;;  %v11269_v28 = vshrl.u32 %v140_v24, 7 }
  0xa5   :  { %7721 = vmatprep.mubr.msk.f32.mxu1 %vm11016_vm1, %v11017_v1  ;;  %v9461_v12 = vpack.c.bf16 %v577_v11, %v576_v10  ;;  %v9464_v15 = vpack.c.bf16 %v579_v14, %v578_v13  ;;  %v783_v35 = vld [vmem:[#allocation10 + $0x100] sm:$0xff]  ;;  %v784_v36 = vld [vmem:[#allocation10 + $0x108] sm:$0xff]  ;;  %v789_v57 = vld [vmem:[#allocation10 + $0x130] sm:$0xff] }
  0xa6   :  { %9450 = vmatpush3.bf16.msra.mxu1 %v9449_v29  ;;  %v792_v63 = vld [vmem:[#allocation10 + $0x148] sm:$0xff]  ;;  %v793_v4 = vld [vmem:[#allocation10 + $0x150] sm:$0xff]  ;;  %v794_v5 = vld [vmem:[#allocation10 + $0x158] sm:$0xff] }
  0xa7   :  { %7741 = vmatmul.mubr.msk.f32.gmra.mrb[6].mxu0 %vm193_vm2, %v204_v32  ;;  %9451 = vmatprep.subr.bf16.mxu1 %v11015_v0  ;;  %v11276_v32 = vadd.s32 16, %v11269_v28  ;;  %v9482_v8 = vpack.c.bf16 %v794_v5, %v793_v4  ;;  %v796_v10 = vld [vmem:[#allocation10 + $0x168] sm:$0xff]  ;;  %v798_v13 = vld [vmem:[#allocation10 + $0x178] sm:$0xff] }
  0xa8   :  { %7722 = vmatmul.mubr.msk.f32.gmra.mrb[6].mxu1 %vm193_vm2, %v211_v33  ;;  %7743 = vmatprep.mubr.msk.f32.mxu0 %vm11016_vm1, %v11017_v1  ;;  %v940_v24 = vld [vmem:[#allocation10 + $0x218] sm:$0xff] }
  0xa9   :  { %7724 = vmatprep.mubr.msk.f32.mxu1 %vm11016_vm1, %v11017_v1  ;;  %vm163_vm3 = vcmp.ge.s32.totalorder %v11276_v32, 18 }
  0xaa   :  { %9453 = vmatpush3.bf16.msra.mxu1 %v9452_v34 }
  0xab   :  { %7744 = vmatmul.mubr.msk.f32.gmra.mrb[8].mxu0 %vm193_vm2, %v205_v37  ;;  %9454 = vmatprep.subr.bf16.mxu1 %v11015_v0 }
  0xac   :  { %7725 = vmatmul.mubr.msk.f32.gmra.mrb[8].mxu1 %vm193_vm2, %v212_v38  ;;  %7750 = vmatprep.mubr.msk.f32.mxu0 %vm11016_vm1, %v11017_v1  ;;  %v9467_v38 = vpack.c.bf16 %v784_v36, %v783_v35  ;;  %v945_v36 = vld [vmem:[#allocation10 + $0x240] sm:$0xff] }
  0xad   :  { %7844 = vmatprep.mubr.msk.f32.mxu1 %vm11016_vm1, %v11017_v1 }
  0xae   :  { %9456 = vmatpush3.bf16.msra.mxu1 %v9455_v41  ;;  %v785_v41 = vld [vmem:[#allocation10 + $0x110] sm:$0xff] }
  0xaf   :  { %7751 = vmatmul.mubr.msk.f32.vlgmr.msra.gmra.mrb[0].mxu0 %vm193_vm2, %v426_v42  ;;  %9457 = vmatprep.subr.bf16.mxu1 %v11015_v0  ;;  %v786_v42 = vld [vmem:[#allocation10 + $0x118] sm:$0xff] }
  0xb0   :  { %7753 = vmatprep.mubr.msk.f32.mxu0 %vm11016_vm1, %v11017_v1  ;;  %9420 = vmatpush3.bf16.msra.mxu0 %v9419_v43 }
  0xb1   :  { %9421 = vmatprep.subr.bf16.mxu0 %v11015_v0 }
  0xb2   :  { %9459 = vmatpush3.bf16.msra.mxu1 %v9458_v62  ;;  %v791_v62 = vld [vmem:[#allocation10 + $0x140] sm:$0xff] }
  0xb3   :  { %7754 = vmatmul.mubr.msk.f32.gmra.mrb[2].mxu0 %vm193_vm2, %v427_v46  ;;  %9460 = vmatprep.subr.bf16.mxu1 %v11015_v0  ;;  %v9470_v46 = vpack.c.bf16 %v786_v42, %v785_v41  ;;  %v949_v42 = vld [vmem:[#allocation10 + $0x260] sm:$0xff] }
  0xb4   :  { %7756 = vmatprep.mubr.msk.f32.mxu0 %vm11016_vm1, %v11017_v1  ;;  %9423 = vmatpush3.bf16.msra.mxu0 %v9422_v47  ;;  %v11295_v47 = vadd.s32 32, %v11269_v28 }
  0xb5   :  { %9424 = vmatprep.subr.bf16.mxu0 %v11015_v0 }
  0xb6   :  { %9462 = vmatpush3.bf16.msra.mxu1 %v9461_v12  ;;  %vm170_vm4 = vcmp.lt.s32.totalorder %v11295_v47, 34  ;;  %v797_v12 = vld [vmem:[#allocation10 + $0x170] sm:$0xff] }
  0xb7   :  { %7757 = vmatmul.mubr.msk.f32.gmra.mrb[4].mxu0 %vm193_vm2, %v428_v50  ;;  %9463 = vmatprep.subr.bf16.mxu1 %v11015_v0  ;;  %v787_v50 = vld [vmem:[#allocation10 + $0x120] sm:$0xff]  ;;  %v9488_v14 = vpack.c.bf16 %v798_v13, %v797_v12 }
  0xb8   :  { %7759 = vmatprep.mubr.msk.f32.mxu0 %vm11016_vm1, %v11017_v1  ;;  %9426 = vmatpush3.bf16.msra.mxu0 %v9425_v51  ;;  %v788_v51 = vld [vmem:[#allocation10 + $0x128] sm:$0xff] }
  0xb9   :  { %9427 = vmatprep.subr.bf16.mxu0 %v11015_v0 }
  0xba   :  { %9465 = vmatpush3.bf16.msra.mxu1 %v9464_v15 }
  0xbb   :  { %7760 = vmatmul.mubr.msk.f32.gmra.mrb[6].mxu0 %vm193_vm2, %v429_v54  ;;  %9466 = vmatprep.subr.bf16.mxu1 %v11015_v0  ;;  %v9473_v54 = vpack.c.bf16 %v788_v51, %v787_v50  ;;  %v1298_v51 = vld [vmem:[#allocation10 + $0x380] sm:$0xff] }
  0xbc   :  { %7762 = vmatprep.mubr.msk.f32.mxu0 %vm11016_vm1, %v11017_v1  ;;  %9429 = vmatpush3.bf16.msra.mxu0 %v9428_v55 }
  0xbd   :  { %9430 = vmatprep.subr.bf16.mxu0 %v11015_v0 }
  0xbf   :  { %7763 = vmatmul.mubr.msk.f32.gmra.mrb[8].mxu0 %vm193_vm2, %v430_v58  ;;  %v790_v58 = vld [vmem:[#allocation10 + $0x138] sm:$0xff] }
  0xc0   :  { %9432 = vmatpush3.bf16.msra.mxu0 %v9431_v59  ;;  %7797 = vmatprep.mubr.msk.f32.mxu0 %vm11016_vm1, %v11017_v1  ;;  %v9476_v61 = vpack.c.bf16 %v790_v58, %v789_v57 }
  0xc1   :  { %9433 = vmatprep.subr.bf16.mxu0 %v11015_v0 }
  0xc4   :  { %9435 = vmatpush3.bf16.msra.mxu0 %v9434_v3  ;;  %v9479_v3 = vpack.c.bf16 %v792_v63, %v791_v62 }
  0xc5   :  { %9436 = vmatprep.subr.bf16.mxu0 %v11015_v0 }
  0xc8   :  { %9438 = vmatpush3.bf16.msra.mxu0 %v9437_v6 }
  0xc9   :  { %9439 = vmatprep.subr.bf16.mxu0 %v11015_v0 }
  0xcc   :  { %9441 = vmatpush3.bf16.msra.mxu0 %v9440_v9  ;;  %v795_v9 = vld [vmem:[#allocation10 + $0x160] sm:$0xff] }
  0xcd   :  { %9490 = vmatprep.subr.bf16.mxu0 %v11015_v0  ;;  %v9485_v11 = vpack.c.bf16 %v796_v10, %v795_v9 }
 0x16f   :  { %v297_v16 = vpop.f32.mrb[0].mxu1 }
 0x170   :  { %v7714_v17 = vpop.f32.mrb[1].mxu1 }
 0x173   :  { %v302_v18 = vpop.f32.mrb[2].mxu1 }
 0x174   :  { %v7717_v19 = vpop.f32.mrb[3].mxu1 }
 0x177   :  { %v307_v20 = vpop.f32.mrb[4].mxu1 }
 0x178   :  { %v7720_v21 = vpop.f32.mrb[5].mxu1 }
 0x179   :  { %v938_v21 = vld [vmem:[#allocation10 + $0x208] sm:$0xff] }
 0x17b   :  { %v312_v22 = vpop.f32.mrb[6].mxu1 }
 0x17c   :  { %v7723_v23 = vpop.f32.mrb[7].mxu1 }
 0x17d   :  { %v939_v23 = vld [vmem:[#allocation10 + $0x210] sm:$0xff] }
 0x17f   :  { %v317_v25 = vpop.f32.mrb[8].mxu1 }
 0x180   :  { %v7726_v26 = vpop.f32.mrb[9].mxu1 }
 0x181   :  { %v941_v26 = vld [vmem:[#allocation10 + $0x220] sm:$0xff] }
 0x182   :  { %v515_v27 = vpop.f32.mrb[0].mxu0 }
 0x183   :  { %v11271_v29 = vadd.f32 %v515_v27, %v297_v16  ;;  %v7752_v30 = vpop.f32.mrb[1].mxu0  ;;  %v942_v27 = vld [vmem:[#allocation10 + $0x228] sm:$0xff] }
 0x184   :  { %v9497_v30 = vpack.c.bf16 %v942_v27, %v941_v26 }
 0x185   :  { %549 = vst [vmem:[#allocation3 + $0x1] sm:$0xff] %v11271_v29  ;;  %7798 = vmatmul.mubr.f32.vlgmr.msra.gmra.mrb[10].mxu0 %v11271_v29 }
 0x186   :  { %v520_v31 = vpop.f32.mrb[2].mxu0  ;;  %7800 = vmatprep.mubr.msk.f32.mxu0 %vm11016_vm1, %v11017_v1 }
 0x187   :  { %v11280_v33 = vadd.f32 %v520_v31, %v302_v18  ;;  %v7755_v34 = vpop.f32.mrb[3].mxu0  ;;  %v943_v31 = vld [vmem:[#allocation10 + $0x230] sm:$0xff] }
 0x188   :  { %v944_v34 = vld [vmem:[#allocation10 + $0x238] sm:$0xff] }
 0x189   :  { %550 = vst [vmem:[#allocation3 + $0x9] sm:$0xff] %v11280_v33  ;;  %7801 = vmatmul.mubr.f32.gmra.mrb[12].mxu0 %v11280_v33  ;;  %v9500_v35 = vpack.c.bf16 %v944_v34, %v943_v31  ;;  %v919_v31 = vld [vmem:[#allocation10 + $0x1a0] sm:$0xff]  ;;  %v920_v34 = vld [vmem:[#allocation10 + $0x1a8] sm:$0xff] }
 0x18a   :  { %v525_v37 = vpop.f32.mrb[4].mxu0  ;;  %7803 = vmatprep.mubr.msk.f32.mxu0 %vm11016_vm1, %v11017_v1 }
 0x18b   :  { %v10544_v39 = vadd.f32 %v525_v37, %v307_v20  ;;  %v7758_v40 = vpop.f32.mrb[5].mxu0  ;;  %v937_v20 = vld [vmem:[#allocation10 + $0x200] sm:$0xff]  ;;  %v946_v37 = vld [vmem:[#allocation10 + $0x248] sm:$0xff] }
 0x18c   :  { %v559_v43 = vld [vmem:[#allocation3] sm:$0xff] }
 0x18d   :  { %v11289_v44 = vsel %vm163_vm3, %v10544_v39, 0.0  ;;  %7845 = vmatmul.mubr.f32.vlgmr.msra.gmra.mrb[10].mxu1 %v559_v43  ;;  %10808 = vmatmul.mubr.msk.f32.gmra.mrb[14].mxu0 %vm163_vm3, %v10544_v39  ;;  %v947_v39 = vld [vmem:[#allocation10 + $0x250] sm:$0xff]  ;;  %v948_v40 = vld [vmem:[#allocation10 + $0x258] sm:$0xff]  ;;  %v950_v43 = vld [vmem:[#allocation10 + $0x268] sm:$0xff] }
 0x18e   :  { %551 = vst [vmem:[#allocation3 + $0x11] sm:$0xff] %v11289_v44  ;;  %9468 = vmatpush3.bf16.msra.mxu1 %v9467_v38  ;;  %v530_v45 = vpop.f32.mrb[6].mxu0  ;;  %7847 = vmatprep.mubr.msk.f32.mxu1 %vm11016_vm1, %v11017_v1  ;;  %v9503_v38 = vpack.c.bf16 %v946_v37, %v945_v36  ;;  %v9506_v41 = vpack.c.bf16 %v948_v40, %v947_v39  ;;  %v921_v40 = vld [vmem:[#allocation10 + $0x1b0] sm:$0xff] }
 0x18f   :  { %v11297_v48 = vadd.f32 %v530_v45, %v312_v22  ;;  %v7761_v49 = vpop.f32.mrb[7].mxu0  ;;  %9469 = vmatprep.subr.bf16.mxu1 %v11015_v0  ;;  %7806 = vmatprep.mubr.msk.f32.mxu0 %vm11016_vm1, %v11017_v1  ;;  %v9491_v22 = vpack.c.bf16 %v938_v21, %v937_v20  ;;  %v9509_v45 = vpack.c.bf16 %v950_v43, %v949_v42 }
 0x190   :  { %v560_v52 = vld [vmem:[#allocation3 + $0x8] sm:$0xff]  ;;  %v952_v49 = vld [vmem:[#allocation10 + $0x278] sm:$0xff] }
 0x191   :  { %552 = vst [vmem:[#allocation3 + $0x19] sm:$0xff] %v11297_v48  ;;  %7848 = vmatmul.mubr.f32.gmra.mrb[12].mxu1 %v560_v52  ;;  %7807 = vmatmul.mubr.f32.gmra.mrb[16].mxu0 %v11297_v48  ;;  %v777_v15 = vld [vmem:[#allocation3 + $0x2] sm:$0xff]  ;;  %v1299_v52 = vld [vmem:[#allocation10 + $0x388] sm:$0xff] }
 0x192   :  { %9471 = vmatpush3.bf16.msra.mxu1 %v9470_v46  ;;  %v535_v53 = vpop.f32.mrb[8].mxu0  ;;  %7850 = vmatprep.mubr.msk.f32.mxu1 %vm11016_vm1, %v11017_v1  ;;  %v951_v46 = vld [vmem:[#allocation10 + $0x270] sm:$0xff] }
 0x193   :  { %v10546_v55 = vadd.f32 %v535_v53, %v317_v25  ;;  %v7764_v56 = vpop.f32.mrb[9].mxu0  ;;  %9472 = vmatprep.subr.bf16.mxu1 %v11015_v0  ;;  %7809 = vmatprep.mubr.msk.f32.mxu0 %vm11016_vm1, %v11017_v1  ;;  %v9494_v25 = vpack.c.bf16 %v940_v24, %v939_v23  ;;  %v9512_v50 = vpack.c.bf16 %v952_v49, %v951_v46  ;;  %v1300_v53 = vld [vmem:[#allocation10 + $0x390] sm:$0xff]  ;;  %v918_v23 = vld [vmem:[#allocation10 + $0x198] sm:$0xff] }
 0x194   :  { %9492 = vmatpush3.bf16.msra.mxu0 %v9491_v22  ;;  %v917_v22 = vld [vmem:[#allocation10 + $0x190] sm:$0xff] }
 0x195   :  { %v561_v59 = vld [vmem:[#allocation3 + $0x10] sm:$0xff]  ;;  %v548_v60 = vsel %vm170_vm4, %v10546_v55, 0.0  ;;  %9493 = vmatprep.subr.bf16.mxu0 %v11015_v0  ;;  %v1301_v55 = vld [vmem:[#allocation10 + $0x398] sm:$0xff]  ;;  %v9518_v27 = vpack.c.bf16 %v918_v23, %v917_v22  ;;  %v1147_v23 = vld [vmem:[#allocation10 + $0x2c0] sm:$0xff] }
 0x196   :  { %553 = vst [vmem:[#allocation3 + $0x21] sm:$0x3] %v548_v60  ;;  %9474 = vmatpush3.bf16.msra.mxu1 %v9473_v54  ;;  %v778_v16 = vld [vmem:[#allocation3 + $0xa] sm:$0xff]  ;;  %v9563_v54 = vpack.c.bf16 %v1299_v52, %v1298_v51  ;;  %v9566_v58 = vpack.c.bf16 %v1301_v55, %v1300_v53  ;;  %v923_v51 = vld [vmem:[#allocation10 + $0x1c0] sm:$0xff] }
 0x197   :  { %7851 = vmatmul.mubr.f32.gmra.mrb[14].mxu1 %v561_v59  ;;  %9475 = vmatprep.subr.bf16.mxu1 %v11015_v0  ;;  %v1302_v59 = vld [vmem:[#allocation10 + $0x3a0] sm:$0xff]  ;;  %v1303_v60 = vld [vmem:[#allocation10 + $0x3a8] sm:$0xff] }
 0x198   :  { %v562_v2 = vld [vmem:[#allocation3 + $0x18] sm:$0xff]  ;;  %7853 = vmatprep.mubr.msk.f32.mxu1 %vm11016_vm1, %v11017_v1  ;;  %9495 = vmatpush3.bf16.msra.mxu0 %v9494_v25  ;;  %v9569_v63 = vpack.c.bf16 %v1303_v60, %v1302_v59  ;;  %v924_v52 = vld [vmem:[#allocation10 + $0x1c8] sm:$0xff] }
 0x199   :  { %v779_v17 = vld [vmem:[#allocation3 + $0x12] sm:$0xff]  ;;  %9496 = vmatprep.subr.bf16.mxu0 %v11015_v0  ;;  %v926_v59 = vld [vmem:[#allocation10 + $0x1d8] sm:$0xff] }
 0x19a   :  { %9477 = vmatpush3.bf16.msra.mxu1 %v9476_v61 }
 0x19b   :  { %7854 = vmatmul.mubr.f32.gmra.mrb[16].mxu1 %v562_v2  ;;  %9478 = vmatprep.subr.bf16.mxu1 %v11015_v0  ;;  %v1304_v2 = vld [vmem:[#allocation10 + $0x3b0] sm:$0xff] }
 0x19c   :  { %7856 = vmatprep.mubr.msk.f32.mxu1 %vm11016_vm1, %v11017_v1  ;;  %9498 = vmatpush3.bf16.msra.mxu0 %v9497_v30 }
 0x19d   :  { %v11320_v6 = vld [vmem:[#allocation3 + $0x21] sm:$0x3]  ;;  %9499 = vmatprep.subr.bf16.mxu0 %v11015_v0 }
 0x19e   :  { %v563_v7 = vld [vmem:[#allocation3 + $0x20] sm:$0x3]  ;;  %9480 = vmatpush3.bf16.msra.mxu1 %v9479_v3  ;;  %7810 = vmatmul.mubr.f32.gmra.mrb[18].mxu0 %v11320_v6  ;;  %v781_v19 = vld [vmem:[#allocation3 + $0x22] sm:$0x3] }
 0x19f   :  { %7857 = vmatmul.mubr.f32.gmra.mrb[18].mxu1 %v563_v7  ;;  %9481 = vmatprep.subr.bf16.mxu1 %v11015_v0  ;;  %v780_v18 = vld [vmem:[#allocation3 + $0x1a] sm:$0xff]  ;;  %v1306_v7 = vld [vmem:[#allocation10 + $0x3c0] sm:$0xff] }
 0x1a0   :  { %7891 = vmatprep.mubr.msk.f32.mxu1 %vm11016_vm1, %v11017_v1  ;;  %7938 = vmatprep.mubr.msk.f32.mxu0 %vm11016_vm1, %v11017_v1  ;;  %v1305_v3 = vld [vmem:[#allocation10 + $0x3b8] sm:$0xff] }
 0x1a1   :  { %9501 = vmatpush3.bf16.msra.mxu0 %v9500_v35  ;;  %v9572_v4 = vpack.c.bf16 %v1305_v3, %v1304_v2  ;;  %v929_v3 = vld [vmem:[#allocation10 + $0x1f0] sm:$0xff] }
 0x1a2   :  { %9483 = vmatpush3.bf16.msra.mxu1 %v9482_v8  ;;  %9502 = vmatprep.subr.bf16.mxu0 %v11015_v0  ;;  %v1307_v8 = vld [vmem:[#allocation10 + $0x3c8] sm:$0xff] }
 0x1a3   :  { %9484 = vmatprep.subr.bf16.mxu1 %v11015_v0  ;;  %v9575_v10 = vpack.c.bf16 %v1307_v8, %v1306_v7  ;;  %v1139_v8 = vld [vmem:[#allocation10 + $0x280] sm:$0xff] }
 0x1a5   :  { %9504 = vmatpush3.bf16.msra.mxu0 %v9503_v38  ;;  %v9521_v38 = vpack.c.bf16 %v920_v34, %v919_v31 }
 0x1a6   :  { %9486 = vmatpush3.bf16.msra.mxu1 %v9485_v11  ;;  %9505 = vmatprep.subr.bf16.mxu0 %v11015_v0 }
 0x1a7   :  { %9487 = vmatprep.subr.bf16.mxu1 %v11015_v0 }
 0x1a9   :  { %9507 = vmatpush3.bf16.msra.mxu0 %v9506_v41  ;;  %v922_v41 = vld [vmem:[#allocation10 + $0x1b8] sm:$0xff] }
 0x1aa   :  { %9489 = vmatpush3.bf16.msra.mxu1 %v9488_v14  ;;  %9508 = vmatprep.subr.bf16.mxu0 %v11015_v0  ;;  %v9524_v49 = vpack.c.bf16 %v922_v41, %v921_v40 }
 0x1ab   :  { %9562 = vmatprep.subr.bf16.mxu1 %v11015_v0 }
 0x1ad   :  { %7892 = vmatmul.mubr.f32.vlgmr.msra.gmra.mrb[10].mxu1 %v777_v15  ;;  %9510 = vmatpush3.bf16.msra.mxu0 %v9509_v45  ;;  %v915_v15 = vld [vmem:[#allocation10 + $0x180] sm:$0xff] }
 0x1ae   :  { %7894 = vmatprep.mubr.msk.f32.mxu1 %vm11016_vm1, %v11017_v1  ;;  %9511 = vmatprep.subr.bf16.mxu0 %v11015_v0 }
 0x1af   :  { %9564 = vmatpush3.bf16.msra.mxu1 %v9563_v54 }
 0x1b0   :  { %9565 = vmatprep.subr.bf16.mxu1 %v11015_v0 }
 0x1b1   :  { %7895 = vmatmul.mubr.f32.gmra.mrb[12].mxu1 %v778_v16  ;;  %9513 = vmatpush3.bf16.msra.mxu0 %v9512_v50  ;;  %v916_v16 = vld [vmem:[#allocation10 + $0x188] sm:$0xff] }
 0x1b2   :  { %7897 = vmatprep.mubr.msk.f32.mxu1 %vm11016_vm1, %v11017_v1  ;;  %9514 = vmatprep.subr.bf16.mxu0 %v11015_v0  ;;  %v9515_v20 = vpack.c.bf16 %v916_v16, %v915_v15  ;;  %v1143_v15 = vld [vmem:[#allocation10 + $0x2a0] sm:$0xff]  ;;  %v1144_v16 = vld [vmem:[#allocation10 + $0x2a8] sm:$0xff] }
 0x1b3   :  { %9567 = vmatpush3.bf16.msra.mxu1 %v9566_v58  ;;  %v925_v58 = vld [vmem:[#allocation10 + $0x1d0] sm:$0xff] }
 0x1b4   :  { %9568 = vmatprep.subr.bf16.mxu1 %v11015_v0 }
 0x1b5   :  { %7898 = vmatmul.mubr.f32.gmra.mrb[14].mxu1 %v779_v17 }
 0x1b6   :  { %7900 = vmatprep.mubr.msk.f32.mxu1 %vm11016_vm1, %v11017_v1 }
 0x1b7   :  { %9570 = vmatpush3.bf16.msra.mxu1 %v9569_v63  ;;  %v928_v63 = vld [vmem:[#allocation10 + $0x1e8] sm:$0xff] }
 0x1b8   :  { %9571 = vmatprep.subr.bf16.mxu1 %v11015_v0 }
 0x1b9   :  { %7901 = vmatmul.mubr.f32.gmra.mrb[16].mxu1 %v780_v18 }
 0x1ba   :  { %7903 = vmatprep.mubr.msk.f32.mxu1 %vm11016_vm1, %v11017_v1 }
 0x1bb   :  { %9573 = vmatpush3.bf16.msra.mxu1 %v9572_v4  ;;  %v930_v4 = vld [vmem:[#allocation10 + $0x1f8] sm:$0xff] }
 0x1bc   :  { %9574 = vmatprep.subr.bf16.mxu1 %v11015_v0  ;;  %v9536_v7 = vpack.c.bf16 %v930_v4, %v929_v3  ;;  %v1659_v3 = vld [vmem:[#allocation10 + $0x528] sm:$0xff] }
 0x1bd   :  { %7904 = vmatmul.mubr.f32.gmra.mrb[18].mxu1 %v781_v19 }
 0x1be   :  { %8079 = vmatprep.mubr.msk.f32.mxu1 %vm11016_vm1, %v11017_v1 }
 0x1bf   :  { %9576 = vmatpush3.bf16.msra.mxu1 %v9575_v10 }
 0x1c0   :  { %9577 = vmatprep.subr.bf16.mxu1 %v11015_v0 }
 0x258   :  { %v663_v56 = vpop.f32.mrb[10].mxu0 }
 0x259   :  { %v7799_v57 = vpop.f32.mrb[11].mxu0 }
 0x25c   :  { %v668_v61 = vpop.f32.mrb[12].mxu0 }
 0x25d   :  { %v7802_v62 = vpop.f32.mrb[13].mxu0 }
 0x25e   :  { %v927_v62 = vld [vmem:[#allocation10 + $0x1e0] sm:$0xff] }
 0x25f   :  { %v9533_v2 = vpack.c.bf16 %v928_v63, %v927_v62  ;;  %v1657_v62 = vld [vmem:[#allocation10 + $0x518] sm:$0xff] }
 0x260   :  { %v673_v5 = vpop.f32.mrb[14].mxu0 }
 0x261   :  { %v7805_v9 = vpop.f32.mrb[15].mxu0 }
 0x262   :  { %v1140_v9 = vld [vmem:[#allocation10 + $0x288] sm:$0xff] }
 0x263   :  { %v9539_v10 = vpack.c.bf16 %v1140_v9, %v1139_v8  ;;  %v1662_v9 = vld [vmem:[#allocation10 + $0x540] sm:$0xff] }
 0x264   :  { %v678_v11 = vpop.f32.mrb[16].mxu0 }
 0x265   :  { %v7808_v12 = vpop.f32.mrb[17].mxu0 }
 0x266   :  { %v1142_v12 = vld [vmem:[#allocation10 + $0x298] sm:$0xff] }
 0x271   :  { %v683_v13 = vpop.f32.mrb[18].mxu0 }
 0x272   :  { %v7811_v14 = vpop.f32.mrb[19].mxu0 }
 0x280   :  { %v865_v17 = vpop.f32.mrb[10].mxu1 }
 0x281   :  { %v10547_v18 = vadd.f32 %v865_v17, %v663_v56  ;;  %v7893_v19 = vpop.f32.mrb[11].mxu1  ;;  %v9527_v56 = vpack.c.bf16 %v924_v52, %v923_v51  ;;  %v1310_v52 = vld [vmem:[#allocation10 + $0x3e0] sm:$0xff] }
 0x282   :  { %v1145_v19 = vld [vmem:[#allocation10 + $0x2b0] sm:$0xff] }
 0x283   :  { %v894_v21 = vmax.f32 %v10547_v18, 0.0  ;;  %v9545_v18 = vpack.c.bf16 %v1144_v16, %v1143_v15  ;;  %v1281_v15 = vld [vmem:[#allocation10 + $0x300] sm:$0xff]  ;;  %v1282_v16 = vld [vmem:[#allocation10 + $0x308] sm:$0xff] }
 0x284   :  { %v870_v24 = vpop.f32.mrb[12].mxu1 }
 0x285   :  { %904 = vst [vmem:[#allocation3 + $0x1] sm:$0xff] %v894_v21  ;;  %v10548_v25 = vadd.f32 %v870_v24, %v668_v61  ;;  %v7896_v26 = vpop.f32.mrb[13].mxu1  ;;  %7939 = vmatmul.mubr.f32.vlgmr.msra.gmra.mrb[20].mxu0 %v894_v21  ;;  %v9530_v61 = vpack.c.bf16 %v926_v59, %v925_v58  ;;  %v1148_v24 = vld [vmem:[#allocation10 + $0x2c8] sm:$0xff]  ;;  %v1654_v58 = vld [vmem:[#allocation10 + $0x500] sm:$0xff] }
 0x286   :  { %9516 = vmatpush3.bf16.msra.mxu0 %v9515_v20  ;;  %7941 = vmatprep.mubr.msk.f32.mxu0 %vm11016_vm1, %v11017_v1  ;;  %v1146_v20 = vld [vmem:[#allocation10 + $0x2b8] sm:$0xff]  ;;  %v9551_v26 = vpack.c.bf16 %v1148_v24, %v1147_v23  ;;  %v1655_v59 = vld [vmem:[#allocation10 + $0x508] sm:$0xff] }
 0x287   :  { %v895_v30 = vmax.f32 %v10548_v25, 0.0  ;;  %9517 = vmatprep.subr.bf16.mxu0 %v11015_v0  ;;  %v9548_v22 = vpack.c.bf16 %v1146_v20, %v1145_v19  ;;  %v9587_v20 = vpack.c.bf16 %v1282_v16, %v1281_v15  ;;  %v1284_v23 = vld [vmem:[#allocation10 + $0x318] sm:$0xff] }
 0x288   :  { %v875_v35 = vpop.f32.mrb[14].mxu1  ;;  %v1507_v15 = vld [vmem:[#allocation10 + $0x438] sm:$0xff] }
 0x289   :  { %905 = vst [vmem:[#allocation3 + $0x9] sm:$0xff] %v895_v30  ;;  %v10549_v36 = vadd.f32 %v875_v35, %v673_v5  ;;  %v7899_v37 = vpop.f32.mrb[15].mxu1  ;;  %7942 = vmatmul.mubr.f32.gmra.mrb[22].mxu0 %v895_v30  ;;  %v1150_v30 = vld [vmem:[#allocation10 + $0x2d8] sm:$0xff]  ;;  %v1151_v35 = vld [vmem:[#allocation10 + $0x2e0] sm:$0xff] }
 0x28a   :  { %9519 = vmatpush3.bf16.msra.mxu0 %v9518_v27  ;;  %7944 = vmatprep.mubr.msk.f32.mxu0 %vm11016_vm1, %v11017_v1  ;;  %v1149_v27 = vld [vmem:[#allocation10 + $0x2d0] sm:$0xff] }
 0x28b   :  { %v896_v39 = vmax.f32 %v10549_v36, 0.0  ;;  %9520 = vmatprep.subr.bf16.mxu0 %v11015_v0  ;;  %v9554_v34 = vpack.c.bf16 %v1150_v30, %v1149_v27  ;;  %v1152_v36 = vld [vmem:[#allocation10 + $0x2e8] sm:$0xff] }
 0x28c   :  { %v880_v42 = vpop.f32.mrb[16].mxu1  ;;  %v9557_v37 = vpack.c.bf16 %v1152_v36, %v1151_v35 }
 0x28d   :  { %v901_v43 = vsel %vm163_vm3, %v896_v39, 0.0  ;;  %v10550_v45 = vadd.f32 %v880_v42, %v678_v11  ;;  %v7902_v46 = vpop.f32.mrb[17].mxu1  ;;  %10809 = vmatmul.mubr.msk.f32.gmra.mrb[24].mxu0 %vm163_vm3, %v896_v39  ;;  %v1141_v11 = vld [vmem:[#allocation10 + $0x290] sm:$0xff]  ;;  %v1154_v39 = vld [vmem:[#allocation10 + $0x2f8] sm:$0xff] }
 0x28e   :  { %906 = vst [vmem:[#allocation3 + $0x11] sm:$0xff] %v901_v43  ;;  %9522 = vmatpush3.bf16.msra.mxu0 %v9521_v38  ;;  %7947 = vmatprep.mubr.msk.f32.mxu0 %vm11016_vm1, %v11017_v1  ;;  %v9542_v14 = vpack.c.bf16 %v1142_v12, %v1141_v11  ;;  %v1153_v38 = vld [vmem:[#allocation10 + $0x2f0] sm:$0xff] }
 0x28f   :  { %v897_v50 = vmax.f32 %v10550_v45, 0.0  ;;  %9523 = vmatprep.subr.bf16.mxu0 %v11015_v0  ;;  %v9560_v40 = vpack.c.bf16 %v1154_v39, %v1153_v38  ;;  %v1664_v12 = vld [vmem:[#allocation10 + $0x550] sm:$0xff]  ;;  %v1288_v39 = vld [vmem:[#allocation10 + $0x338] sm:$0xff] }
 0x290   :  { %v885_v53 = vpop.f32.mrb[18].mxu1  ;;  %v910_v17 = vld [vmem:[#allocation3 + $0x8] sm:$0xff] }
 0x291   :  { %907 = vst [vmem:[#allocation3 + $0x19] sm:$0xff] %v897_v50  ;;  %v10551_v54 = vadd.f32 %v885_v53, %v683_v13  ;;  %v7905_v55 = vpop.f32.mrb[19].mxu1  ;;  %7948 = vmatmul.mubr.f32.gmra.mrb[26].mxu0 %v897_v50  ;;  %v909_v13 = vld [vmem:[#allocation3] sm:$0xff]  ;;  %v1311_v53 = vld [vmem:[#allocation10 + $0x3e8] sm:$0xff] }
 0x292   :  { %9525 = vmatpush3.bf16.msra.mxu0 %v9524_v49  ;;  %7950 = vmatprep.mubr.msk.f32.mxu0 %vm11016_vm1, %v11017_v1  ;;  %v1133_v41 = vld [vmem:[#allocation3 + $0x2] sm:$0xff]  ;;  %v1308_v49 = vld [vmem:[#allocation10 + $0x3d0] sm:$0xff]  ;;  %v1309_v50 = vld [vmem:[#allocation10 + $0x3d8] sm:$0xff] }
 0x293   :  { %v898_v57 = vmax.f32 %v10551_v54, 0.0  ;;  %9526 = vmatprep.subr.bf16.mxu0 %v11015_v0  ;;  %v9578_v51 = vpack.c.bf16 %v1309_v50, %v1308_v49  ;;  %v9581_v54 = vpack.c.bf16 %v1311_v53, %v1310_v52  ;;  %v1312_v55 = vld [vmem:[#allocation10 + $0x3f0] sm:$0xff]  ;;  %v1290_v49 = vld [vmem:[#allocation10 + $0x348] sm:$0xff] }
 0x295   :  { %v903_v60 = vsel %vm170_vm4, %v898_v57, 0.0  ;;  %v911_v21 = vld [vmem:[#allocation3 + $0x10] sm:$0xff]  ;;  %9579 = vmatpush3.bf16.msra.mxu1 %v9578_v51 }
 0x296   :  { %908 = vst [vmem:[#allocation3 + $0x21] sm:$0x3] %v903_v60  ;;  %9528 = vmatpush3.bf16.msra.mxu0 %v9527_v56  ;;  %v1134_v42 = vld [vmem:[#allocation3 + $0xa] sm:$0xff]  ;;  %9580 = vmatprep.subr.bf16.mxu1 %v11015_v0  ;;  %v1313_v56 = vld [vmem:[#allocation10 + $0x3f8] sm:$0xff]  ;;  %v1656_v60 = vld [vmem:[#allocation10 + $0x510] sm:$0xff] }
 0x297   :  { %9529 = vmatprep.subr.bf16.mxu0 %v11015_v0  ;;  %v9584_v57 = vpack.c.bf16 %v1313_v56, %v1312_v55  ;;  %v9638_v63 = vpack.c.bf16 %v1657_v62, %v1656_v60  ;;  %v1292_v55 = vld [vmem:[#allocation10 + $0x358] sm:$0xff]  ;;  %v1295_v60 = vld [vmem:[#allocation10 + $0x370] sm:$0xff] }
 0x298   :  { %v912_v25 = vld [vmem:[#allocation3 + $0x18] sm:$0xff] }
 0x299   :  { %v1135_v43 = vld [vmem:[#allocation3 + $0x12] sm:$0xff]  ;;  %9582 = vmatpush3.bf16.msra.mxu1 %v9581_v54 }
 0x29a   :  { %9531 = vmatpush3.bf16.msra.mxu0 %v9530_v61  ;;  %9583 = vmatprep.subr.bf16.mxu1 %v11015_v0  ;;  %v9635_v61 = vpack.c.bf16 %v1655_v59, %v1654_v58  ;;  %v1291_v54 = vld [vmem:[#allocation10 + $0x350] sm:$0xff]  ;;  %v1293_v58 = vld [vmem:[#allocation10 + $0x360] sm:$0xff]  ;;  %v1294_v59 = vld [vmem:[#allocation10 + $0x368] sm:$0xff] }
 0x29b   :  { %9532 = vmatprep.subr.bf16.mxu0 %v11015_v0 }
 0x29d   :  { %v935_v5 = vld [vmem:[#allocation3 + $0x21] sm:$0x3]  ;;  %9585 = vmatpush3.bf16.msra.mxu1 %v9584_v57  ;;  %v9602_v57 = vpack.c.bf16 %v1292_v55, %v1291_v54 }
 0x29e   :  { %7951 = vmatmul.mubr.f32.gmra.mrb[28].mxu0 %v935_v5  ;;  %v913_v31 = vld [vmem:[#allocation3 + $0x20] sm:$0x3]  ;;  %v1137_v46 = vld [vmem:[#allocation3 + $0x22] sm:$0x3]  ;;  %9586 = vmatprep.subr.bf16.mxu1 %v11015_v0  ;;  %v1660_v5 = vld [vmem:[#allocation10 + $0x530] sm:$0xff] }
 0x29f   :  { %9534 = vmatpush3.bf16.msra.mxu0 %v9533_v2  ;;  %7985 = vmatprep.mubr.msk.f32.mxu0 %vm11016_vm1, %v11017_v1  ;;  %v1136_v45 = vld [vmem:[#allocation3 + $0x1a] sm:$0xff]  ;;  %v1658_v2 = vld [vmem:[#allocation10 + $0x520] sm:$0xff] }
 0x2a0   :  { %9535 = vmatprep.subr.bf16.mxu0 %v11015_v0  ;;  %v9641_v4 = vpack.c.bf16 %v1659_v3, %v1658_v2  ;;  %v1500_v2 = vld [vmem:[#allocation10 + $0x400] sm:$0xff]  ;;  %v1501_v3 = vld [vmem:[#allocation10 + $0x408] sm:$0xff]  ;;  %v2018_v54 = vld [vmem:[#allocation10 + $0x698] sm:$0xff] }
 0x2a3   :  { %9537 = vmatpush3.bf16.msra.mxu0 %v9536_v7  ;;  %v1661_v7 = vld [vmem:[#allocation10 + $0x538] sm:$0xff] }
 0x2a4   :  { %9538 = vmatprep.subr.bf16.mxu0 %v11015_v0  ;;  %v9644_v8 = vpack.c.bf16 %v1661_v7, %v1660_v5  ;;  %v1502_v5 = vld [vmem:[#allocation10 + $0x410] sm:$0xff]  ;;  %v1503_v7 = vld [vmem:[#allocation10 + $0x418] sm:$0xff] }
 0x2a6   :  { %7986 = vmatmul.mubr.f32.vlgmr.msra.gmra.mrb[20].mxu0 %v909_v13  ;;  %v1665_v13 = vld [vmem:[#allocation10 + $0x558] sm:$0xff] }
 0x2a7   :  { %9540 = vmatpush3.bf16.msra.mxu0 %v9539_v10  ;;  %7988 = vmatprep.mubr.msk.f32.mxu0 %vm11016_vm1, %v11017_v1  ;;  %v1663_v10 = vld [vmem:[#allocation10 + $0x548] sm:$0xff] }
 0x2a8   :  { %9541 = vmatprep.subr.bf16.mxu0 %v11015_v0  ;;  %v9647_v11 = vpack.c.bf16 %v1663_v10, %v1662_v9  ;;  %v9614_v9 = vpack.c.bf16 %v1503_v7, %v1502_v5  ;;  %v1504_v10 = vld [vmem:[#allocation10 + $0x420] sm:$0xff] }
 0x2aa   :  { %7989 = vmatmul.mubr.f32.gmra.mrb[22].mxu0 %v910_v17 }
 0x2ab   :  { %9543 = vmatpush3.bf16.msra.mxu0 %v9542_v14  ;;  %7991 = vmatprep.mubr.msk.f32.mxu0 %vm11016_vm1, %v11017_v1  ;;  %v9650_v14 = vpack.c.bf16 %v1665_v13, %v1664_v12 }
 0x2ac   :  { %9544 = vmatprep.subr.bf16.mxu0 %v11015_v0 }
 0x2ae   :  { %7992 = vmatmul.mubr.f32.gmra.mrb[24].mxu0 %v911_v21 }
 0x2af   :  { %9546 = vmatpush3.bf16.msra.mxu0 %v9545_v18  ;;  %7994 = vmatprep.mubr.msk.f32.mxu0 %vm11016_vm1, %v11017_v1 }
 0x2b0   :  { %9547 = vmatprep.subr.bf16.mxu0 %v11015_v0 }
 0x2b2   :  { %7995 = vmatmul.mubr.f32.gmra.mrb[26].mxu0 %v912_v25 }
 0x2b3   :  { %9549 = vmatpush3.bf16.msra.mxu0 %v9548_v22  ;;  %7997 = vmatprep.mubr.msk.f32.mxu0 %vm11016_vm1, %v11017_v1  ;;  %v1283_v22 = vld [vmem:[#allocation10 + $0x310] sm:$0xff] }
 0x2b4   :  { %9550 = vmatprep.subr.bf16.mxu0 %v11015_v0  ;;  %v9590_v27 = vpack.c.bf16 %v1284_v23, %v1283_v22  ;;  %v1510_v23 = vld [vmem:[#allocation10 + $0x450] sm:$0xff] }
 0x2b6   :  { %7998 = vmatmul.mubr.f32.gmra.mrb[28].mxu0 %v913_v31  ;;  %v1286_v31 = vld [vmem:[#allocation10 + $0x328] sm:$0xff] }
 0x2b7   :  { %9552 = vmatpush3.bf16.msra.mxu0 %v9551_v26  ;;  %8032 = vmatprep.mubr.msk.f32.mxu0 %vm11016_vm1, %v11017_v1 }
 0x2b8   :  { %9553 = vmatprep.subr.bf16.mxu0 %v11015_v0 }
 0x2bb   :  { %9555 = vmatpush3.bf16.msra.mxu0 %v9554_v34 }
 0x2bc   :  { %9556 = vmatprep.subr.bf16.mxu0 %v11015_v0 }
 0x2bf   :  { %9558 = vmatpush3.bf16.msra.mxu0 %v9557_v37 }
 0x2c0   :  { %9559 = vmatprep.subr.bf16.mxu0 %v11015_v0 }
 0x2c3   :  { %9561 = vmatpush3.bf16.msra.mxu0 %v9560_v40 }
 0x2c4   :  { %9634 = vmatprep.subr.bf16.mxu0 %v11015_v0 }
 0x2c6   :  { %8033 = vmatmul.mubr.f32.vlgmr.msra.gmra.mrb[20].mxu0 %v1133_v41 }
 0x2c7   :  { %8035 = vmatprep.mubr.msk.f32.mxu0 %vm11016_vm1, %v11017_v1  ;;  %9636 = vmatpush3.bf16.msra.mxu0 %v9635_v61  ;;  %v1296_v61 = vld [vmem:[#allocation10 + $0x378] sm:$0xff] }
 0x2c8   :  { %9637 = vmatprep.subr.bf16.mxu0 %v11015_v0 }
 0x2ca   :  { %8036 = vmatmul.mubr.f32.gmra.mrb[22].mxu0 %v1134_v42 }
 0x2cb   :  { %8038 = vmatprep.mubr.msk.f32.mxu0 %vm11016_vm1, %v11017_v1  ;;  %9639 = vmatpush3.bf16.msra.mxu0 %v9638_v63  ;;  %v9608_v63 = vpack.c.bf16 %v1296_v61, %v1295_v60  ;;  %v2023_v61 = vld [vmem:[#allocation10 + $0x6c0] sm:$0xff] }
 0x2cc   :  { %9640 = vmatprep.subr.bf16.mxu0 %v11015_v0 }
 0x2ce   :  { %8039 = vmatmul.mubr.f32.gmra.mrb[24].mxu0 %v1135_v43 }
 0x2cf   :  { %8041 = vmatprep.mubr.msk.f32.mxu0 %vm11016_vm1, %v11017_v1  ;;  %9642 = vmatpush3.bf16.msra.mxu0 %v9641_v4  ;;  %v9611_v4 = vpack.c.bf16 %v1501_v3, %v1500_v2  ;;  %v1632_v3 = vld [vmem:[#allocation10 + $0x480] sm:$0xff] }
 0x2d0   :  { %9643 = vmatprep.subr.bf16.mxu0 %v11015_v0 }
 0x2d2   :  { %8042 = vmatmul.mubr.f32.gmra.mrb[26].mxu0 %v1136_v45 }
 0x2d3   :  { %8044 = vmatprep.mubr.msk.f32.mxu0 %vm11016_vm1, %v11017_v1  ;;  %9645 = vmatpush3.bf16.msra.mxu0 %v9644_v8 }
 0x2d4   :  { %9646 = vmatprep.subr.bf16.mxu0 %v11015_v0 }
 0x2d6   :  { %8045 = vmatmul.mubr.f32.gmra.mrb[28].mxu0 %v1137_v46 }
 0x2d7   :  { %8220 = vmatprep.mubr.msk.f32.mxu0 %vm11016_vm1, %v11017_v1  ;;  %9648 = vmatpush3.bf16.msra.mxu0 %v9647_v11  ;;  %v1505_v11 = vld [vmem:[#allocation10 + $0x428] sm:$0xff] }
 0x2d8   :  { %9649 = vmatprep.subr.bf16.mxu0 %v11015_v0  ;;  %v9617_v13 = vpack.c.bf16 %v1505_v11, %v1504_v10  ;;  %v1634_v10 = vld [vmem:[#allocation10 + $0x490] sm:$0xff]  ;;  %v1635_v11 = vld [vmem:[#allocation10 + $0x498] sm:$0xff] }
 0x2db   :  { %9651 = vmatpush3.bf16.msra.mxu0 %v9650_v14  ;;  %v1506_v14 = vld [vmem:[#allocation10 + $0x430] sm:$0xff] }
 0x2dc   :  { %9652 = vmatprep.subr.bf16.mxu0 %v11015_v0 }
 0x399   :  { %v1221_v17 = vpop.f32.mrb[20].mxu0 }
 0x39a   :  { %v1250_v18 = vmul.f32 0.1, %v1221_v17  ;;  %v8034_v19 = vpop.f32.mrb[21].mxu0  ;;  %v9620_v17 = vpack.c.bf16 %v1507_v15, %v1506_v14 }
 0x39b   :  { %v1509_v19 = vld [vmem:[#allocation10 + $0x448] sm:$0xff] }
 0x39c   :  { %v11416_v21 = vadd.f32 %v11271_v29, %v1250_v18  ;;  %v1285_v29 = vld [vmem:[#allocation10 + $0x320] sm:$0xff] }
 0x39d   :  { %v1226_v24 = vpop.f32.mrb[22].mxu0  ;;  %v9593_v37 = vpack.c.bf16 %v1286_v31, %v1285_v29  ;;  %v1508_v18 = vld [vmem:[#allocation10 + $0x440] sm:$0xff]  ;;  %v1513_v29 = vld [vmem:[#allocation10 + $0x468] sm:$0xff] }
 0x39e   :  { %1265 = vst [vmem:[#allocation3 + $0x1] sm:$0xff] %v11416_v21  ;;  %v1251_v25 = vmul.f32 0.1, %v1226_v24  ;;  %v8037_v26 = vpop.f32.mrb[23].mxu0  ;;  %8080 = vmatmul.mubr.f32.vlgmr.msra.gmra.mrb[20].mxu1 %v11416_v21  ;;  %v9623_v22 = vpack.c.bf16 %v1509_v19, %v1508_v18  ;;  %v1511_v24 = vld [vmem:[#allocation10 + $0x458] sm:$0xff] }
 0x39f   :  { %9588 = vmatpush3.bf16.msra.mxu1 %v9587_v20  ;;  %8082 = vmatprep.mubr.msk.f32.mxu1 %vm11016_vm1, %v11017_v1  ;;  %v9626_v26 = vpack.c.bf16 %v1511_v24, %v1510_v23  ;;  %v1638_v23 = vld [vmem:[#allocation10 + $0x4b0] sm:$0xff]  ;;  %v1639_v24 = vld [vmem:[#allocation10 + $0x4b8] sm:$0xff] }
 0x3a0   :  { %v11423_v30 = vadd.f32 %v11280_v33, %v1251_v25  ;;  %9589 = vmatprep.subr.bf16.mxu1 %v11015_v0  ;;  %v1287_v33 = vld [vmem:[#allocation10 + $0x330] sm:$0xff] }
 0x3a1   :  { %v1231_v34 = vpop.f32.mrb[24].mxu0  ;;  %v9596_v45 = vpack.c.bf16 %v1288_v39, %v1287_v33 }
 0x3a2   :  { %1266 = vst [vmem:[#allocation3 + $0x9] sm:$0xff] %v11423_v30  ;;  %v1252_v35 = vmul.f32 0.1, %v1231_v34  ;;  %v8040_v36 = vpop.f32.mrb[25].mxu0  ;;  %8083 = vmatmul.mubr.f32.gmra.mrb[22].mxu1 %v11423_v30  ;;  %v1514_v34 = vld [vmem:[#allocation10 + $0x470] sm:$0xff] }
 0x3a3   :  { %9591 = vmatpush3.bf16.msra.mxu1 %v9590_v27  ;;  %8085 = vmatprep.mubr.msk.f32.mxu1 %vm11016_vm1, %v11017_v1  ;;  %v1512_v27 = vld [vmem:[#allocation10 + $0x460] sm:$0xff] }
 0x3a4   :  { %v1257_v38 = vadd.f32 %v1252_v35, %v11289_v44  ;;  %9592 = vmatprep.subr.bf16.mxu1 %v11015_v0  ;;  %v1289_v44 = vld [vmem:[#allocation10 + $0x340] sm:$0xff]  ;;  %v9629_v31 = vpack.c.bf16 %v1513_v29, %v1512_v27  ;;  %v1515_v35 = vld [vmem:[#allocation10 + $0x478] sm:$0xff]  ;;  %v9668_v27 = vpack.c.bf16 %v1639_v24, %v1638_v23 }
 0x3a5   :  { %v1236_v40 = vpop.f32.mrb[26].mxu0  ;;  %v9599_v53 = vpack.c.bf16 %v1290_v49, %v1289_v44  ;;  %v1275_v8 = vld [vmem:[#allocation3] sm:$0xff]  ;;  %v9632_v36 = vpack.c.bf16 %v1515_v35, %v1514_v34  ;;  %v1668_v44 = vld [vmem:[#allocation10 + $0x570] sm:$0xff]  ;;  %v1641_v35 = vld [vmem:[#allocation10 + $0x4c8] sm:$0xff] }
 0x3a6   :  { %v11434_v41 = vsel %vm163_vm3, %v1257_v38, 0.0  ;;  %v1253_v42 = vmul.f32 0.1, %v1236_v40  ;;  %v8043_v43 = vpop.f32.mrb[27].mxu0  ;;  %10810 = vmatmul.mubr.msk.f32.gmra.mrb[24].mxu1 %vm163_vm3, %v1257_v38  ;;  %v1669_v49 = vld [vmem:[#allocation10 + $0x578] sm:$0xff]  ;;  %v1640_v34 = vld [vmem:[#allocation10 + $0x4c0] sm:$0xff] }
 0x3a7   :  { %1267 = vst [vmem:[#allocation3 + $0x11] sm:$0xff] %v11434_v41  ;;  %9594 = vmatpush3.bf16.msra.mxu1 %v9593_v37  ;;  %8088 = vmatprep.mubr.msk.f32.mxu1 %vm11016_vm1, %v11017_v1  ;;  %v1667_v43 = vld [vmem:[#allocation10 + $0x568] sm:$0xff] }
 0x3a8   :  { %v11438_v46 = vadd.f32 %v11297_v48, %v1253_v42  ;;  %9595 = vmatprep.subr.bf16.mxu1 %v11015_v0  ;;  %v1666_v42 = vld [vmem:[#allocation10 + $0x560] sm:$0xff] }
 0x3a9   :  { %v1241_v50 = vpop.f32.mrb[28].mxu0  ;;  %v1276_v12 = vld [vmem:[#allocation3 + $0x8] sm:$0xff] }
 0x3aa   :  { %1268 = vst [vmem:[#allocation3 + $0x19] sm:$0xff] %v11438_v46  ;;  %v1254_v51 = vmul.f32 0.1, %v1241_v50  ;;  %v8046_v52 = vpop.f32.mrb[29].mxu0  ;;  %8089 = vmatmul.mubr.f32.gmra.mrb[26].mxu1 %v11438_v46  ;;  %v1494_v37 = vld [vmem:[#allocation3 + $0x2] sm:$0xff]  ;;  %v9656_v50 = vpack.c.bf16 %v1669_v49, %v1668_v44  ;;  %v1645_v44 = vld [vmem:[#allocation10 + $0x4e8] sm:$0xff] }
 0x3ab   :  { %9597 = vmatpush3.bf16.msra.mxu1 %v9596_v45  ;;  %8091 = vmatprep.mubr.msk.f32.mxu1 %vm11016_vm1, %v11017_v1  ;;  %v9653_v45 = vpack.c.bf16 %v1667_v43, %v1666_v42  ;;  %v2016_v52 = vld [vmem:[#allocation10 + $0x688] sm:$0xff] }
 0x3ac   :  { %v1259_v48 = vadd.f32 %v1254_v51, %v11320_v6  ;;  %9598 = vmatprep.subr.bf16.mxu1 %v11015_v0  ;;  %v9605_v6 = vpack.c.bf16 %v1294_v59, %v1293_v58  ;;  %v2015_v51 = vld [vmem:[#allocation10 + $0x680] sm:$0xff]  ;;  %v2021_v59 = vld [vmem:[#allocation10 + $0x6b0] sm:$0xff] }
 0x3ad   :  { %9654 = vmatpush3.bf16.msra.mxu0 %v9653_v45  ;;  %v1644_v45 = vld [vmem:[#allocation10 + $0x4e0] sm:$0xff] }
 0x3ae   :  { %v1264_v56 = vsel %vm170_vm4, %v1259_v48, 0.0  ;;  %v1277_v16 = vld [vmem:[#allocation3 + $0x10] sm:$0xff]  ;;  %9655 = vmatprep.subr.bf16.mxu0 %v11015_v0  ;;  %v9707_v48 = vpack.c.bf16 %v2016_v52, %v2015_v51  ;;  %v9677_v49 = vpack.c.bf16 %v1645_v44, %v1644_v45  ;;  %v1647_v51 = vld [vmem:[#allocation10 + $0x4f8] sm:$0xff] }
 0x3af   :  { %1269 = vst [vmem:[#allocation3 + $0x21] sm:$0x3] %v1264_v56  ;;  %9600 = vmatpush3.bf16.msra.mxu1 %v9599_v53  ;;  %v1495_v38 = vld [vmem:[#allocation3 + $0xa] sm:$0xff]  ;;  %v2017_v53 = vld [vmem:[#allocation10 + $0x690] sm:$0xff]  ;;  %v2019_v56 = vld [vmem:[#allocation10 + $0x6a0] sm:$0xff] }
 0x3b0   :  { %9601 = vmatprep.subr.bf16.mxu1 %v11015_v0  ;;  %v9710_v55 = vpack.c.bf16 %v2018_v54, %v2017_v53  ;;  %v1857_v54 = vld [vmem:[#allocation10 + $0x588] sm:$0xff]  ;;  %v2436_v45 = vld [vmem:[%s13170_s6 + $0x8] sm:$0xff] }
 0x3b1   :  { %v1278_v20 = vld [vmem:[#allocation3 + $0x18] sm:$0xff]  ;;  %9657 = vmatpush3.bf16.msra.mxu0 %v9656_v50 }
 0x3b2   :  { %v1496_v33 = vld [vmem:[#allocation3 + $0x12] sm:$0xff]  ;;  %9658 = vmatprep.subr.bf16.mxu0 %v11015_v0 }
 0x3b3   :  { %9603 = vmatpush3.bf16.msra.mxu1 %v9602_v57  ;;  %v2020_v57 = vld [vmem:[#allocation10 + $0x6a8] sm:$0xff]  ;;  %v1646_v50 = vld [vmem:[#allocation10 + $0x4f0] sm:$0xff] }
 0x3b4   :  { %9604 = vmatprep.subr.bf16.mxu1 %v11015_v0  ;;  %v9713_v58 = vpack.c.bf16 %v2020_v57, %v2019_v56  ;;  %v9680_v53 = vpack.c.bf16 %v1647_v51, %v1646_v50  ;;  %v1858_v56 = vld [vmem:[#allocation10 + $0x590] sm:$0xff]  ;;  %v1859_v57 = vld [vmem:[#allocation10 + $0x598] sm:$0xff]  ;;  %v2437_v51 = vld [vmem:[%s13170_s6 + $0x10] sm:$0xff] }
 0x3b5   :  { %v2454_v50 = vld [vmem:[%s13170_s6 + $0x98] sm:$0xff] }
 0x3b6   :  { %v11455_v62 = vld [vmem:[#allocation3 + $0x21] sm:$0x3] }
 0x3b7   :  { %8092 = vmatmul.mubr.f32.gmra.mrb[28].mxu1 %v11455_v62  ;;  %v1279_v25 = vld [vmem:[#allocation3 + $0x20] sm:$0x3]  ;;  %v1498_v40 = vld [vmem:[#allocation3 + $0x22] sm:$0x3] }
 0x3b8   :  { %9606 = vmatpush3.bf16.msra.mxu1 %v9605_v6  ;;  %8126 = vmatprep.mubr.msk.f32.mxu1 %vm11016_vm1, %v11017_v1  ;;  %v1497_v39 = vld [vmem:[#allocation3 + $0x1a] sm:$0xff] }
 0x3b9   :  { %9607 = vmatprep.subr.bf16.mxu1 %v11015_v0  ;;  %v2022_v6 = vld [vmem:[#allocation10 + $0x6b8] sm:$0xff] }
 0x3ba   :  { %v9716_v60 = vpack.c.bf16 %v2022_v6, %v2021_v59  ;;  %v9686_v59 = vpack.c.bf16 %v1859_v57, %v1858_v56  ;;  %v1860_v6 = vld [vmem:[#allocation10 + $0x5a0] sm:$0xff] }
 0x3bb   :  { %v1993_v57 = vld [vmem:[#allocation10 + $0x600] sm:$0xff] }
 0x3bc   :  { %9609 = vmatpush3.bf16.msra.mxu1 %v9608_v63  ;;  %v2024_v63 = vld [vmem:[#allocation10 + $0x6c8] sm:$0xff] }
 0x3bd   :  { %9610 = vmatprep.subr.bf16.mxu1 %v11015_v0  ;;  %v9719_v2 = vpack.c.bf16 %v2024_v63, %v2023_v61 }
 0x3bf   :  { %8127 = vmatmul.mubr.f32.vlgmr.msra.gmra.mrb[20].mxu1 %v1275_v8 }
 0x3c0   :  { %9612 = vmatpush3.bf16.msra.mxu1 %v9611_v4  ;;  %8129 = vmatprep.mubr.msk.f32.mxu1 %vm11016_vm1, %v11017_v1  ;;  %v1633_v4 = vld [vmem:[#allocation10 + $0x488] sm:$0xff] }
 0x3c1   :  { %9613 = vmatprep.subr.bf16.mxu1 %v11015_v0  ;;  %v9659_v7 = vpack.c.bf16 %v1633_v4, %v1632_v3  ;;  %v1863_v3 = vld [vmem:[#allocation10 + $0x5b8] sm:$0xff] }
 0x3c3   :  { %8130 = vmatmul.mubr.f32.gmra.mrb[22].mxu1 %v1276_v12 }
 0x3c4   :  { %9615 = vmatpush3.bf16.msra.mxu1 %v9614_v9  ;;  %8132 = vmatprep.mubr.msk.f32.mxu1 %vm11016_vm1, %v11017_v1 }
 0x3c5   :  { %9616 = vmatprep.subr.bf16.mxu1 %v11015_v0 }
 0x3c7   :  { %8133 = vmatmul.mubr.f32.gmra.mrb[24].mxu1 %v1277_v16  ;;  %v1636_v16 = vld [vmem:[#allocation10 + $0x4a0] sm:$0xff] }
 0x3c8   :  { %9618 = vmatpush3.bf16.msra.mxu1 %v9617_v13  ;;  %8135 = vmatprep.mubr.msk.f32.mxu1 %vm11016_vm1, %v11017_v1  ;;  %v9662_v13 = vpack.c.bf16 %v1635_v11, %v1634_v10  ;;  %v1866_v11 = vld [vmem:[#allocation10 + $0x5d0] sm:$0xff] }
 0x3c9   :  { %9619 = vmatprep.subr.bf16.mxu1 %v11015_v0 }
 0x3cb   :  { %8136 = vmatmul.mubr.f32.gmra.mrb[26].mxu1 %v1278_v20 }
 0x3cc   :  { %9621 = vmatpush3.bf16.msra.mxu1 %v9620_v17  ;;  %8138 = vmatprep.mubr.msk.f32.mxu1 %vm11016_vm1, %v11017_v1  ;;  %v1637_v17 = vld [vmem:[#allocation10 + $0x4a8] sm:$0xff] }
 0x3cd   :  { %9622 = vmatprep.subr.bf16.mxu1 %v11015_v0  ;;  %v9665_v19 = vpack.c.bf16 %v1637_v17, %v1636_v16  ;;  %v1869_v16 = vld [vmem:[#allocation10 + $0x5e8] sm:$0xff] }
 0x3cf   :  { %8139 = vmatmul.mubr.f32.gmra.mrb[28].mxu1 %v1279_v25 }
 0x3d0   :  { %9624 = vmatpush3.bf16.msra.mxu1 %v9623_v22  ;;  %8173 = vmatprep.mubr.msk.f32.mxu1 %vm11016_vm1, %v11017_v1 }
 0x3d1   :  { %9625 = vmatprep.subr.bf16.mxu1 %v11015_v0 }
 0x3d4   :  { %9627 = vmatpush3.bf16.msra.mxu1 %v9626_v26 }
 0x3d5   :  { %9628 = vmatprep.subr.bf16.mxu1 %v11015_v0 }
 0x3d8   :  { %9630 = vmatpush3.bf16.msra.mxu1 %v9629_v31 }
 0x3d9   :  { %9631 = vmatprep.subr.bf16.mxu1 %v11015_v0 }
 0x3dc   :  { %9633 = vmatpush3.bf16.msra.mxu1 %v9632_v36 }
 0x3dd   :  { %9706 = vmatprep.subr.bf16.mxu1 %v11015_v0 }
 0x3df   :  { %8174 = vmatmul.mubr.f32.vlgmr.msra.gmra.mrb[20].mxu1 %v1494_v37  ;;  %v9671_v37 = vpack.c.bf16 %v1641_v35, %v1640_v34  ;;  %v2027_v34 = vld [vmem:[#allocation10 + $0x6e0] sm:$0xff]  ;;  %v2028_v35 = vld [vmem:[#allocation10 + $0x6e8] sm:$0xff] }
 0x3e0   :  { %8176 = vmatprep.mubr.msk.f32.mxu1 %vm11016_vm1, %v11017_v1  ;;  %9708 = vmatpush3.bf16.msra.mxu1 %v9707_v48  ;;  %v1856_v48 = vld [vmem:[#allocation10 + $0x580] sm:$0xff] }
 0x3e1   :  { %9709 = vmatprep.subr.bf16.mxu1 %v11015_v0 }
 0x3e3   :  { %8177 = vmatmul.mubr.f32.gmra.mrb[22].mxu1 %v1495_v38 }
 0x3e4   :  { %8179 = vmatprep.mubr.msk.f32.mxu1 %vm11016_vm1, %v11017_v1  ;;  %9711 = vmatpush3.bf16.msra.mxu1 %v9710_v55  ;;  %v9683_v55 = vpack.c.bf16 %v1857_v54, %v1856_v48  ;;  %v2455_v54 = vld [vmem:[%s13170_s6 + $0xa0] sm:$0xff] }
 0x3e5   :  { %9712 = vmatprep.subr.bf16.mxu1 %v11015_v0 }
 0x3e7   :  { %8180 = vmatmul.mubr.f32.gmra.mrb[24].mxu1 %v1496_v33 }
 0x3e8   :  { %8182 = vmatprep.mubr.msk.f32.mxu1 %vm11016_vm1, %v11017_v1  ;;  %9714 = vmatpush3.bf16.msra.mxu1 %v9713_v58 }
 0x3e9   :  { %9715 = vmatprep.subr.bf16.mxu1 %v11015_v0 }
 0x3eb   :  { %8183 = vmatmul.mubr.f32.gmra.mrb[26].mxu1 %v1497_v39  ;;  %v1642_v39 = vld [vmem:[#allocation10 + $0x4d0] sm:$0xff] }
 0x3ec   :  { %8185 = vmatprep.mubr.msk.f32.mxu1 %vm11016_vm1, %v11017_v1  ;;  %9717 = vmatpush3.bf16.msra.mxu1 %v9716_v60  ;;  %v1861_v60 = vld [vmem:[#allocation10 + $0x5a8] sm:$0xff] }
 0x3ed   :  { %9718 = vmatprep.subr.bf16.mxu1 %v11015_v0  ;;  %v9689_v63 = vpack.c.bf16 %v1861_v60, %v1860_v6 }
 0x3ef   :  { %8186 = vmatmul.mubr.f32.gmra.mrb[28].mxu1 %v1498_v40  ;;  %v1643_v40 = vld [vmem:[#allocation10 + $0x4d8] sm:$0xff] }
 0x3f0   :  { %8361 = vmatprep.mubr.msk.f32.mxu1 %vm11016_vm1, %v11017_v1  ;;  %9720 = vmatpush3.bf16.msra.mxu1 %v9719_v2  ;;  %v9674_v43 = vpack.c.bf16 %v1643_v40, %v1642_v39  ;;  %v1862_v2 = vld [vmem:[#allocation10 + $0x5b0] sm:$0xff]  ;;  %v2452_v40 = vld [vmem:[%s13170_s6 + $0x88] sm:$0xff] }
 0x3f1   :  { %9721 = vmatprep.subr.bf16.mxu1 %v11015_v0  ;;  %v2451_v39 = vld [vmem:[%s13170_s6 + $0x80] sm:$0xff] }
 0x4b2   :  { %v1582_v5 = vpop.f32.mrb[20].mxu1 }
 0x4b3   :  { %v1611_v8 = vmax.f32 %v1582_v5, 0.0  ;;  %v8175_v9 = vpop.f32.mrb[21].mxu1  ;;  %v9692_v5 = vpack.c.bf16 %v1863_v3, %v1862_v2  ;;  %v1995_v2 = vld [vmem:[#allocation10 + $0x610] sm:$0xff]  ;;  %v1996_v3 = vld [vmem:[#allocation10 + $0x618] sm:$0xff] }
 0x4b5   :  { %1621 = vst [vmem:[#allocation3 + $0x1] sm:$0xff] %v1611_v8  ;;  %8221 = vmatmul.mubr.f32.vlgmr.msra.gmra.mrb[30].mxu0 %v1611_v8  ;;  %v1865_v8 = vld [vmem:[#allocation10 + $0x5c8] sm:$0xff] }
 0x4b6   :  { %v1587_v12 = vpop.f32.mrb[22].mxu1  ;;  %9660 = vmatpush3.bf16.msra.mxu0 %v9659_v7  ;;  %8223 = vmatprep.mubr.msk.f32.mxu0 %vm11016_vm1, %v11017_v1  ;;  %v1864_v7 = vld [vmem:[#allocation10 + $0x5c0] sm:$0xff] }
 0x4b7   :  { %v1612_v14 = vmax.f32 %v1587_v12, 0.0  ;;  %v8178_v15 = vpop.f32.mrb[23].mxu1  ;;  %9661 = vmatprep.subr.bf16.mxu0 %v11015_v0  ;;  %v9695_v10 = vpack.c.bf16 %v1865_v8, %v1864_v7  ;;  %v1867_v12 = vld [vmem:[#allocation10 + $0x5d8] sm:$0xff]  ;;  %v9734_v8 = vpack.c.bf16 %v1996_v3, %v1995_v2  ;;  %v2227_v2 = vld [vmem:[#allocation10 + $0x750] sm:$0xff] }
 0x4b8   :  { %v1868_v15 = vld [vmem:[#allocation10 + $0x5e0] sm:$0xff]  ;;  %v2228_v3 = vld [vmem:[#allocation10 + $0x758] sm:$0xff] }
 0x4b9   :  { %1622 = vst [vmem:[#allocation3 + $0x9] sm:$0xff] %v1612_v14  ;;  %8224 = vmatmul.mubr.f32.gmra.mrb[32].mxu0 %v1612_v14  ;;  %v9698_v14 = vpack.c.bf16 %v1867_v12, %v1866_v11  ;;  %v9701_v17 = vpack.c.bf16 %v1869_v16, %v1868_v15  ;;  %v1998_v11 = vld [vmem:[#allocation10 + $0x628] sm:$0xff]  ;;  %v1999_v16 = vld [vmem:[#allocation10 + $0x630] sm:$0xff] }
 0x4ba   :  { %v1592_v18 = vpop.f32.mrb[24].mxu1  ;;  %9663 = vmatpush3.bf16.msra.mxu0 %v9662_v13  ;;  %8226 = vmatprep.mubr.msk.f32.mxu0 %vm11016_vm1, %v11017_v1 }
 0x4bb   :  { %v1613_v20 = vmax.f32 %v1592_v18, 0.0  ;;  %v8181_v22 = vpop.f32.mrb[25].mxu1  ;;  %9664 = vmatprep.subr.bf16.mxu0 %v11015_v0  ;;  %v1870_v18 = vld [vmem:[#allocation10 + $0x5f0] sm:$0xff] }
 0x4bc   :  { %v1626_v58 = vld [vmem:[#allocation3] sm:$0xff] }
 0x4bd   :  { %v1618_v25 = vsel %vm163_vm3, %v1613_v20, 0.0  ;;  %10811 = vmatmul.mubr.msk.f32.gmra.mrb[34].mxu0 %vm163_vm3, %v1613_v20 }
 0x4be   :  { %1623 = vst [vmem:[#allocation3 + $0x11] sm:$0xff] %v1618_v25  ;;  %v1597_v26 = vpop.f32.mrb[26].mxu1  ;;  %9666 = vmatpush3.bf16.msra.mxu0 %v9665_v19  ;;  %8229 = vmatprep.mubr.msk.f32.mxu0 %vm11016_vm1, %v11017_v1  ;;  %v1871_v19 = vld [vmem:[#allocation10 + $0x5f8] sm:$0xff] }
 0x4bf   :  { %v1614_v29 = vmax.f32 %v1597_v26, 0.0  ;;  %v8184_v31 = vpop.f32.mrb[27].mxu1  ;;  %9667 = vmatprep.subr.bf16.mxu0 %v11015_v0  ;;  %v9704_v20 = vpack.c.bf16 %v1871_v19, %v1870_v18 }
 0x4c0   :  { %v1627_v61 = vld [vmem:[#allocation3 + $0x8] sm:$0xff] }
 0x4c1   :  { %1624 = vst [vmem:[#allocation3 + $0x19] sm:$0xff] %v1614_v29  ;;  %8230 = vmatmul.mubr.f32.gmra.mrb[36].mxu0 %v1614_v29  ;;  %v1850_v22 = vld [vmem:[#allocation3 + $0x2] sm:$0xff]  ;;  %v2026_v29 = vld [vmem:[#allocation10 + $0x6d8] sm:$0xff] }
 0x4c2   :  { %v1602_v36 = vpop.f32.mrb[28].mxu1  ;;  %9669 = vmatpush3.bf16.msra.mxu0 %v9668_v27  ;;  %8232 = vmatprep.mubr.msk.f32.mxu0 %vm11016_vm1, %v11017_v1  ;;  %v2025_v27 = vld [vmem:[#allocation10 + $0x6d0] sm:$0xff] }
 0x4c3   :  { %v1615_v38 = vmax.f32 %v1602_v36, 0.0  ;;  %v8187_v33 = vpop.f32.mrb[29].mxu1  ;;  %9670 = vmatprep.subr.bf16.mxu0 %v11015_v0  ;;  %v9722_v31 = vpack.c.bf16 %v2026_v29, %v2025_v27  ;;  %v9725_v36 = vpack.c.bf16 %v2028_v35, %v2027_v34  ;;  %v2004_v34 = vld [vmem:[#allocation10 + $0x658] sm:$0xff] }
 0x4c5   :  { %v1620_v42 = vsel %vm170_vm4, %v1615_v38, 0.0  ;;  %v1628_v4 = vld [vmem:[#allocation3 + $0x10] sm:$0xff]  ;;  %9723 = vmatpush3.bf16.msra.mxu1 %v9722_v31  ;;  %v2030_v38 = vld [vmem:[#allocation10 + $0x6f8] sm:$0xff] }
 0x4c6   :  { %1625 = vst [vmem:[#allocation3 + $0x21] sm:$0x3] %v1620_v42  ;;  %9672 = vmatpush3.bf16.msra.mxu0 %v9671_v37  ;;  %v1851_v23 = vld [vmem:[#allocation3 + $0xa] sm:$0xff]  ;;  %9724 = vmatprep.subr.bf16.mxu1 %v11015_v0  ;;  %v2029_v37 = vld [vmem:[#allocation10 + $0x6f0] sm:$0xff] }
 0x4c7   :  { %9673 = vmatprep.subr.bf16.mxu0 %v11015_v0  ;;  %v9728_v33 = vpack.c.bf16 %v2030_v38, %v2029_v37  ;;  %v2435_v42 = vld [vmem:[%s13170_s6] sm:$0xff]  ;;  %v2005_v37 = vld [vmem:[#allocation10 + $0x660] sm:$0xff]  ;;  %v2006_v38 = vld [vmem:[#allocation10 + $0x668] sm:$0xff] }
 0x4c8   :  { %v1629_v9 = vld [vmem:[#allocation3 + $0x18] sm:$0xff]  ;;  %v9780_v44 = vpack.c.bf16 %v2436_v45, %v2435_v42  ;;  %v2218_v45 = vld [vmem:[#allocation10 + $0x708] sm:$0xff] }
 0x4c9   :  { %v1852_v24 = vld [vmem:[#allocation3 + $0x12] sm:$0xff]  ;;  %9726 = vmatpush3.bf16.msra.mxu1 %v9725_v36 }
 0x4ca   :  { %9675 = vmatpush3.bf16.msra.mxu0 %v9674_v43  ;;  %9727 = vmatprep.subr.bf16.mxu1 %v11015_v0  ;;  %v9778_v43 = vpack.c.bf16 %v2452_v40, %v2451_v39  ;;  %v2008_v39 = vld [vmem:[#allocation10 + $0x678] sm:$0xff] }
 0x4cb   :  { %9676 = vmatprep.subr.bf16.mxu0 %v11015_v0 }
 0x4cd   :  { %v1652_v52 = vld [vmem:[#allocation3 + $0x21] sm:$0x3]  ;;  %9729 = vmatpush3.bf16.msra.mxu1 %v9728_v33  ;;  %v2007_v33 = vld [vmem:[#allocation10 + $0x670] sm:$0xff] }
 0x4ce   :  { %8233 = vmatmul.mubr.f32.gmra.mrb[38].mxu0 %v1652_v52  ;;  %v1630_v13 = vld [vmem:[#allocation3 + $0x20] sm:$0x3]  ;;  %v1854_v26 = vld [vmem:[#allocation3 + $0x22] sm:$0x3]  ;;  %9730 = vmatprep.subr.bf16.mxu1 %v11015_v0  ;;  %v2438_v52 = vld [vmem:[%s13170_s6 + $0x18] sm:$0xff]  ;;  %v9752_v42 = vpack.c.bf16 %v2008_v39, %v2007_v33 }
 0x4cf   :  { %9678 = vmatpush3.bf16.msra.mxu0 %v9677_v49  ;;  %8267 = vmatprep.mubr.msk.f32.mxu0 %vm11016_vm1, %v11017_v1  ;;  %v1853_v25 = vld [vmem:[#allocation3 + $0x1a] sm:$0xff]  ;;  %v2453_v49 = vld [vmem:[%s13170_s6 + $0x90] sm:$0xff]  ;;  %v9784_v48 = vpack.c.bf16 %v2438_v52, %v2437_v51  ;;  %v2458_v39 = vld [vmem:[%s13170_s6 + $0xb8] sm:$0xff] }
 0x4d0   :  { %9679 = vmatprep.subr.bf16.mxu0 %v11015_v0  ;;  %v2457_v33 = vld [vmem:[%s13170_s6 + $0xb0] sm:$0xff] }
 0x4d3   :  { %9681 = vmatpush3.bf16.msra.mxu0 %v9680_v53  ;;  %v9782_v53 = vpack.c.bf16 %v2454_v50, %v2453_v49  ;;  %v2219_v49 = vld [vmem:[#allocation10 + $0x710] sm:$0xff]  ;;  %v2220_v50 = vld [vmem:[#allocation10 + $0x718] sm:$0xff] }
 0x4d4   :  { %9682 = vmatprep.subr.bf16.mxu0 %v11015_v0  ;;  %v9758_v52 = vpack.c.bf16 %v2220_v50, %v2219_v49  ;;  %v2522_v49 = vld [vmem:[%s13170_s6 + $0x2b8] sm:$0xff]  ;;  %v2505_v50 = vld [vmem:[%s13170_s6 + $0x230] sm:$0xff] }
 0x4d6   :  { %8268 = vmatmul.mubr.f32.vlgmr.msra.gmra.mrb[30].mxu0 %v1626_v58  ;;  %v1994_v58 = vld [vmem:[#allocation10 + $0x608] sm:$0xff] }
 0x4d7   :  { %9684 = vmatpush3.bf16.msra.mxu0 %v9683_v55  ;;  %8270 = vmatprep.mubr.msk.f32.mxu0 %vm11016_vm1, %v11017_v1  ;;  %v2456_v55 = vld [vmem:[%s13170_s6 + $0xa8] sm:$0xff] }
 0x4d8   :  { %9685 = vmatprep.subr.bf16.mxu0 %v11015_v0  ;;  %v9786_v56 = vpack.c.bf16 %v2456_v55, %v2455_v54 }
 0x4da   :  { %8271 = vmatmul.mubr.f32.gmra.mrb[32].mxu0 %v1627_v61  ;;  %v9731_v61 = vpack.c.bf16 %v1994_v58, %v1993_v57  ;;  %v2224_v57 = vld [vmem:[#allocation10 + $0x738] sm:$0xff] }
 0x4db   :  { %9687 = vmatpush3.bf16.msra.mxu0 %v9686_v59  ;;  %8273 = vmatprep.mubr.msk.f32.mxu0 %vm11016_vm1, %v11017_v1 }
 0x4dc   :  { %9688 = vmatprep.subr.bf16.mxu0 %v11015_v0 }
 0x4de   :  { %8274 = vmatmul.mubr.f32.gmra.mrb[34].mxu0 %v1628_v4 }
 0x4df   :  { %9690 = vmatpush3.bf16.msra.mxu0 %v9689_v63  ;;  %8276 = vmatprep.mubr.msk.f32.mxu0 %vm11016_vm1, %v11017_v1 }
 0x4e0   :  { %9691 = vmatprep.subr.bf16.mxu0 %v11015_v0 }
 0x4e2   :  { %8277 = vmatmul.mubr.f32.gmra.mrb[36].mxu0 %v1629_v9 }
 0x4e3   :  { %9693 = vmatpush3.bf16.msra.mxu0 %v9692_v5  ;;  %8279 = vmatprep.mubr.msk.f32.mxu0 %vm11016_vm1, %v11017_v1 }
 0x4e4   :  { %9694 = vmatprep.subr.bf16.mxu0 %v11015_v0 }
 0x4e6   :  { %8280 = vmatmul.mubr.f32.gmra.mrb[38].mxu0 %v1630_v13 }
 0x4e7   :  { %9696 = vmatpush3.bf16.msra.mxu0 %v9695_v10  ;;  %8314 = vmatprep.mubr.msk.f32.mxu0 %vm11016_vm1, %v11017_v1  ;;  %v1997_v10 = vld [vmem:[#allocation10 + $0x620] sm:$0xff] }
 0x4e8   :  { %9697 = vmatprep.subr.bf16.mxu0 %v11015_v0 }
 0x4eb   :  { %9699 = vmatpush3.bf16.msra.mxu0 %v9698_v14  ;;  %v9737_v14 = vpack.c.bf16 %v1998_v11, %v1997_v10  ;;  %v2231_v10 = vld [vmem:[#allocation10 + $0x770] sm:$0xff]  ;;  %v2232_v11 = vld [vmem:[#allocation10 + $0x778] sm:$0xff] }
 0x4ec   :  { %9700 = vmatprep.subr.bf16.mxu0 %v11015_v0 }
 0x4ef   :  { %9702 = vmatpush3.bf16.msra.mxu0 %v9701_v17 }
 0x4f0   :  { %9703 = vmatprep.subr.bf16.mxu0 %v11015_v0 }
 0x4f3   :  { %9705 = vmatpush3.bf16.msra.mxu0 %v9704_v20 }
 0x4f4   :  { %9779 = vmatprep.subr.bf16.mxu0 %v9778_v43  ;;  %v2217_v43 = vld [vmem:[#allocation10 + $0x700] sm:$0xff] }
 0x4f6   :  { %8315 = vmatmul.mubr.f32.vlgmr.msra.gmra.mrb[30].mxu0 %v1850_v22 }
 0x4f7   :  { %8317 = vmatprep.mubr.msk.f32.mxu0 %vm11016_vm1, %v11017_v1  ;;  %9781 = vmatpush3.bf16.msra.mxu0 %v9780_v44  ;;  %v9755_v44 = vpack.c.bf16 %v2218_v45, %v2217_v43  ;;  %v2442_v43 = vld [vmem:[%s13170_s6 + $0x38] sm:$0xff]  ;;  %v2521_v45 = vld [vmem:[%s13170_s6 + $0x2b0] sm:$0xff] }
 0x4f8   :  { %9783 = vmatprep.subr.bf16.mxu0 %v9782_v53  ;;  %v2221_v53 = vld [vmem:[#allocation10 + $0x720] sm:$0xff] }
 0x4fa   :  { %8318 = vmatmul.mubr.f32.gmra.mrb[32].mxu0 %v1851_v23 }
 0x4fb   :  { %8320 = vmatprep.mubr.msk.f32.mxu0 %vm11016_vm1, %v11017_v1  ;;  %9785 = vmatpush3.bf16.msra.mxu0 %v9784_v48  ;;  %v2222_v48 = vld [vmem:[#allocation10 + $0x728] sm:$0xff] }
 0x4fc   :  { %9787 = vmatprep.subr.bf16.mxu0 %v9786_v56  ;;  %v9761_v55 = vpack.c.bf16 %v2222_v48, %v2221_v53  ;;  %v2223_v56 = vld [vmem:[#allocation10 + $0x730] sm:$0xff] }
 0x4fd   :  { %v2459_v48 = vld [vmem:[%s13170_s6 + $0xc0] sm:$0xff] }
 0x4fe   :  { %8321 = vmatmul.mubr.f32.gmra.mrb[34].mxu0 %v1852_v24  ;;  %v2002_v24 = vld [vmem:[#allocation10 + $0x648] sm:$0xff] }
 0x4ff   :  { %8323 = vmatprep.mubr.msk.f32.mxu0 %vm11016_vm1, %v11017_v1 }
 0x502   :  { %8324 = vmatmul.mubr.f32.gmra.mrb[36].mxu0 %v1853_v25 }
 0x503   :  { %8326 = vmatprep.mubr.msk.f32.mxu0 %vm11016_vm1, %v11017_v1 }
 0x506   :  { %8327 = vmatmul.mubr.f32.gmra.mrb[38].mxu0 %v1854_v26 }
 0x5c9   :  { %v1938_v59 = vpop.f32.mrb[30].mxu0 }
 0x5ca   :  { %v1967_v6 = vmul.f32 0.1, %v1938_v59  ;;  %v8316_v60 = vpop.f32.mrb[31].mxu0  ;;  %v9764_v59 = vpack.c.bf16 %v2224_v57, %v2223_v56  ;;  %v2443_v56 = vld [vmem:[%s13170_s6 + $0x40] sm:$0xff]  ;;  %v2444_v57 = vld [vmem:[%s13170_s6 + $0x48] sm:$0xff] }
 0x5cb   :  { %v2226_v60 = vld [vmem:[#allocation10 + $0x748] sm:$0xff] }
 0x5cc   :  { %v1972_v63 = vadd.f32 %v1967_v6, %v11416_v21  ;;  %v2225_v6 = vld [vmem:[#allocation10 + $0x740] sm:$0xff] }
 0x5cd   :  { %v1943_v4 = vpop.f32.mrb[32].mxu0 }
 0x5ce   :  { %1982 = vst [vmem:[#allocation3 + $0x1] sm:$0xff] %v1972_v63  ;;  %v1968_v5 = vmul.f32 0.1, %v1943_v4  ;;  %v8319_v7 = vpop.f32.mrb[33].mxu0  ;;  %8362 = vmatmul.mubr.f32.vlgmr.msra.gmra.mrb[30].mxu1 %v1972_v63  ;;  %v9767_v63 = vpack.c.bf16 %v2226_v60, %v2225_v6  ;;  %v2524_v6 = vld [vmem:[%s13170_s6 + $0x2c8] sm:$0xff]  ;;  %v2507_v60 = vld [vmem:[%s13170_s6 + $0x240] sm:$0xff] }
 0x5cf   :  { %9732 = vmatpush3.bf16.msra.mxu1 %v9731_v61  ;;  %8364 = vmatprep.mubr.msk.f32.mxu1 %vm11016_vm1, %v11017_v1  ;;  %v2229_v7 = vld [vmem:[#allocation10 + $0x760] sm:$0xff] }
 0x5d0   :  { %v1973_v9 = vadd.f32 %v1968_v5, %v11423_v30  ;;  %9733 = vmatprep.subr.bf16.mxu1 %v11015_v0  ;;  %v2000_v30 = vld [vmem:[#allocation10 + $0x638] sm:$0xff]  ;;  %v9770_v5 = vpack.c.bf16 %v2228_v3, %v2227_v2  ;;  %v2461_v3 = vld [vmem:[%s13170_s6 + $0xd0] sm:$0xff] }
 0x5d1   :  { %v1948_v12 = vpop.f32.mrb[34].mxu0  ;;  %v9740_v22 = vpack.c.bf16 %v2000_v30, %v1999_v16  ;;  %v2500_v16 = vld [vmem:[%s13170_s6 + $0x208] sm:$0xff]  ;;  %v2517_v30 = vld [vmem:[%s13170_s6 + $0x290] sm:$0xff] }
 0x5d2   :  { %1983 = vst [vmem:[#allocation3 + $0x9] sm:$0xff] %v1973_v9  ;;  %v1969_v21 = vmul.f32 0.1, %v1948_v12  ;;  %v8322_v13 = vpop.f32.mrb[35].mxu0  ;;  %8365 = vmatmul.mubr.f32.gmra.mrb[32].mxu1 %v1973_v9  ;;  %v2515_v12 = vld [vmem:[%s13170_s6 + $0x280] sm:$0xff] }
 0x5d3   :  { %9735 = vmatpush3.bf16.msra.mxu1 %v9734_v8  ;;  %8367 = vmatprep.mubr.msk.f32.mxu1 %vm11016_vm1, %v11017_v1  ;;  %v2230_v8 = vld [vmem:[#allocation10 + $0x768] sm:$0xff]  ;;  %v9776_v13 = vpack.c.bf16 %v2232_v11, %v2231_v10 }
 0x5d4   :  { %v1974_v15 = vadd.f32 %v1969_v21, %v11434_v41  ;;  %9736 = vmatprep.subr.bf16.mxu1 %v11015_v0  ;;  %v2001_v41 = vld [vmem:[#allocation10 + $0x640] sm:$0xff]  ;;  %v9773_v9 = vpack.c.bf16 %v2230_v8, %v2229_v7  ;;  %v2446_v8 = vld [vmem:[%s13170_s6 + $0x58] sm:$0xff] }
 0x5d5   :  { %v1953_v17 = vpop.f32.mrb[36].mxu0  ;;  %v9743_v29 = vpack.c.bf16 %v2002_v24, %v2001_v41  ;;  %v1987_v51 = vld [vmem:[#allocation3] sm:$0xff]  ;;  %v2445_v7 = vld [vmem:[%s13170_s6 + $0x50] sm:$0xff]  ;;  %v2526_v11 = vld [vmem:[%s13170_s6 + $0x2d8] sm:$0xff] }
 0x5d6   :  { %v1979_v18 = vsel %vm163_vm3, %v1974_v15, 0.0  ;;  %v1970_v19 = vmul.f32 0.1, %v1953_v17  ;;  %v8325_v20 = vpop.f32.mrb[37].mxu0  ;;  %10812 = vmatmul.mubr.msk.f32.gmra.mrb[34].mxu1 %vm163_vm3, %v1974_v15  ;;  %v2516_v21 = vld [vmem:[%s13170_s6 + $0x288] sm:$0xff]  ;;  %v2499_v15 = vld [vmem:[%s13170_s6 + $0x200] sm:$0xff]  ;;  %v9800_v10 = vpack.c.bf16 %v2446_v8, %v2445_v7 }
 0x5d7   :  { %1984 = vst [vmem:[#allocation3 + $0x11] sm:$0xff] %v1979_v18  ;;  %9738 = vmatpush3.bf16.msra.mxu1 %v9737_v14  ;;  %8370 = vmatprep.mubr.msk.f32.mxu1 %vm11016_vm1, %v11017_v1  ;;  %v9842_v14 = vpack.c.bf16 %v2516_v21, %v2515_v12  ;;  %v2518_v17 = vld [vmem:[%s13170_s6 + $0x298] sm:$0xff]  ;;  %v9844_v18 = vpack.c.bf16 %v2500_v16, %v2499_v15  ;;  %v2501_v20 = vld [vmem:[%s13170_s6 + $0x210] sm:$0xff]  ;;  %v2463_v15 = vld [vmem:[%s13170_s6 + $0xe0] sm:$0xff] }
 0x5d8   :  { %v1975_v23 = vadd.f32 %v1970_v19, %v11438_v46  ;;  %9739 = vmatprep.subr.bf16.mxu1 %v11015_v0  ;;  %v2003_v46 = vld [vmem:[#allocation10 + $0x650] sm:$0xff]  ;;  %v9846_v19 = vpack.c.bf16 %v2518_v17, %v2517_v30  ;;  %v2509_v12 = vld [vmem:[%s13170_s6 + $0x250] sm:$0xff]  ;;  %v2464_v16 = vld [vmem:[%s13170_s6 + $0xe8] sm:$0xff] }
 0x5d9   :  { %v1958_v25 = vpop.f32.mrb[38].mxu0  ;;  %v9746_v36 = vpack.c.bf16 %v2004_v34, %v2003_v46  ;;  %v1988_v54 = vld [vmem:[#allocation3 + $0x8] sm:$0xff]  ;;  %v2519_v46 = vld [vmem:[%s13170_s6 + $0x2a0] sm:$0xff]  ;;  %v2510_v21 = vld [vmem:[%s13170_s6 + $0x258] sm:$0xff]  ;;  %v9802_v30 = vpack.c.bf16 %v2464_v16, %v2463_v15 }
 0x5da   :  { %1985 = vst [vmem:[#allocation3 + $0x19] sm:$0xff] %v1975_v23  ;;  %v1971_v26 = vmul.f32 0.1, %v1958_v25  ;;  %v8328_v27 = vpop.f32.mrb[39].mxu0  ;;  %8371 = vmatmul.mubr.f32.gmra.mrb[36].mxu1 %v1975_v23  ;;  %v2211_v23 = vld [vmem:[#allocation3 + $0x2] sm:$0xff]  ;;  %v2447_v17 = vld [vmem:[%s13170_s6 + $0x60] sm:$0xff] }
 0x5db   :  { %9741 = vmatpush3.bf16.msra.mxu1 %v9740_v22  ;;  %8373 = vmatprep.mubr.msk.f32.mxu1 %vm11016_vm1, %v11017_v1  ;;  %v2502_v22 = vld [vmem:[%s13170_s6 + $0x218] sm:$0xff]  ;;  %v2563_v8 = vld [vmem:[%s13170_s6 + $0x400] sm:$0xff] }
 0x5dc   :  { %v1976_v31 = vadd.f32 %v1971_v26, %v11455_v62  ;;  %9742 = vmatprep.subr.bf16.mxu1 %v11015_v0  ;;  %v9749_v62 = vpack.c.bf16 %v2006_v38, %v2005_v37  ;;  %v9848_v41 = vpack.c.bf16 %v2502_v22, %v2501_v20  ;;  %v2504_v37 = vld [vmem:[%s13170_s6 + $0x228] sm:$0xff] }
 0x5dd   :  { %v2528_v22 = vld [vmem:[%s13170_s6 + $0x2e8] sm:$0xff] }
 0x5de   :  { %v1981_v35 = vsel %vm170_vm4, %v1976_v31, 0.0  ;;  %v1989_v58 = vld [vmem:[#allocation3 + $0x10] sm:$0xff]  ;;  %v2440_v31 = vld [vmem:[%s13170_s6 + $0x28] sm:$0xff] }
 0x5df   :  { %1986 = vst [vmem:[#allocation3 + $0x21] sm:$0x3] %v1981_v35  ;;  %9744 = vmatpush3.bf16.msra.mxu1 %v9743_v29  ;;  %v2212_v24 = vld [vmem:[#allocation3 + $0xa] sm:$0xff]  ;;  %v2439_v29 = vld [vmem:[%s13170_s6 + $0x20] sm:$0xff]  ;;  %v2520_v35 = vld [vmem:[%s13170_s6 + $0x2a8] sm:$0xff] }
 0x5e0   :  { %9745 = vmatprep.subr.bf16.mxu1 %v11015_v0  ;;  %v9788_v34 = vpack.c.bf16 %v2440_v31, %v2439_v29  ;;  %v9850_v38 = vpack.c.bf16 %v2520_v35, %v2519_v46  ;;  %v2449_v31 = vld [vmem:[%s13170_s6 + $0x70] sm:$0xff]  ;;  %v2450_v46 = vld [vmem:[%s13170_s6 + $0x78] sm:$0xff] }
 0x5e1   :  { %v1990_v61 = vld [vmem:[#allocation3 + $0x18] sm:$0xff]  ;;  %v9808_v35 = vpack.c.bf16 %v2450_v46, %v2449_v31  ;;  %v2566_v31 = vld [vmem:[%s13170_s6 + $0x418] sm:$0xff] }
 0x5e2   :  { %v2213_v25 = vld [vmem:[#allocation3 + $0x12] sm:$0xff]  ;;  %9789 = vmatpush3.bf16.msra.mxu0 %v9788_v34  ;;  %v2529_v34 = vld [vmem:[%s13170_s6 + $0x2f0] sm:$0xff] }
 0x5e3   :  { %9747 = vmatpush3.bf16.msra.mxu1 %v9746_v36  ;;  %v2503_v36 = vld [vmem:[%s13170_s6 + $0x220] sm:$0xff] }
 0x5e4   :  { %9748 = vmatprep.subr.bf16.mxu1 %v11015_v0 }
 0x5e6   :  { %v2013_v40 = vld [vmem:[#allocation3 + $0x21] sm:$0x3] }
 0x5e7   :  { %8374 = vmatmul.mubr.f32.gmra.mrb[38].mxu1 %v2013_v40  ;;  %v1991_v4 = vld [vmem:[#allocation3 + $0x20] sm:$0x3]  ;;  %v2215_v27 = vld [vmem:[#allocation3 + $0x22] sm:$0x3]  ;;  %v9790_v40 = vpack.c.bf16 %v2458_v39, %v2457_v33  ;;  %v2483_v39 = vld [vmem:[%s13170_s6 + $0x180] sm:$0xff] }
 0x5e8   :  { %9750 = vmatpush3.bf16.msra.mxu1 %v9749_v62  ;;  %8408 = vmatprep.mubr.msk.f32.mxu1 %vm11016_vm1, %v11017_v1  ;;  %v2214_v26 = vld [vmem:[#allocation3 + $0x1a] sm:$0xff]  ;;  %v9852_v62 = vpack.c.bf16 %v2504_v37, %v2503_v36  ;;  %v2530_v36 = vld [vmem:[%s13170_s6 + $0x2f8] sm:$0xff]  ;;  %v2513_v37 = vld [vmem:[%s13170_s6 + $0x270] sm:$0xff] }
 0x5e9   :  { %9751 = vmatprep.subr.bf16.mxu1 %v11015_v0  ;;  %9791 = vmatprep.subr.bf16.mxu0 %v9790_v40  ;;  %v2484_v40 = vld [vmem:[%s13170_s6 + $0x188] sm:$0xff] }
 0x5ec   :  { %9753 = vmatpush3.bf16.msra.mxu1 %v9752_v42  ;;  %v2441_v42 = vld [vmem:[%s13170_s6 + $0x30] sm:$0xff] }
 0x5ed   :  { %9754 = vmatprep.subr.bf16.mxu1 %v11015_v0 }
 0x5ef   :  { %8409 = vmatmul.mubr.f32.vlgmr.msra.gmra.mrb[30].mxu1 %v1987_v51  ;;  %v2506_v51 = vld [vmem:[%s13170_s6 + $0x238] sm:$0xff] }
 0x5f0   :  { %9756 = vmatpush3.bf16.msra.mxu1 %v9755_v44  ;;  %8411 = vmatprep.mubr.msk.f32.mxu1 %vm11016_vm1, %v11017_v1  ;;  %v9792_v44 = vpack.c.bf16 %v2442_v43, %v2441_v42  ;;  %v9856_v53 = vpack.c.bf16 %v2506_v51, %v2505_v50  ;;  %v9810_v42 = vpack.c.bf16 %v2484_v40, %v2483_v39  ;;  %v2579_v43 = vld [vmem:[%s13170_s6 + $0x480] sm:$0xff]  ;;  %v2489_v40 = vld [vmem:[%s13170_s6 + $0x1b0] sm:$0xff] }
 0x5f1   :  { %9757 = vmatprep.subr.bf16.mxu1 %v11015_v0 }
 0x5f2   :  { %9793 = vmatpush3.bf16.msra.mxu0 %v9792_v44 }
 0x5f3   :  { %8412 = vmatmul.mubr.f32.gmra.mrb[32].mxu1 %v1988_v54  ;;  %v2460_v54 = vld [vmem:[%s13170_s6 + $0xc8] sm:$0xff] }
 0x5f4   :  { %9759 = vmatpush3.bf16.msra.mxu1 %v9758_v52  ;;  %8414 = vmatprep.mubr.msk.f32.mxu1 %vm11016_vm1, %v11017_v1  ;;  %v9854_v52 = vpack.c.bf16 %v2522_v49, %v2521_v45  ;;  %v2580_v45 = vld [vmem:[%s13170_s6 + $0x488] sm:$0xff] }
 0x5f5   :  { %9760 = vmatprep.subr.bf16.mxu1 %v11015_v0  ;;  %v9906_v44 = vpack.c.bf16 %v2580_v45, %v2579_v43  ;;  %v2567_v45 = vld [vmem:[%s13170_s6 + $0x420] sm:$0xff] }
 0x5f7   :  { %8415 = vmatmul.mubr.f32.gmra.mrb[34].mxu1 %v1989_v58  ;;  %v2523_v58 = vld [vmem:[%s13170_s6 + $0x2c0] sm:$0xff] }
 0x5f8   :  { %9762 = vmatpush3.bf16.msra.mxu1 %v9761_v55  ;;  %8417 = vmatprep.mubr.msk.f32.mxu1 %vm11016_vm1, %v11017_v1  ;;  %v9794_v55 = vpack.c.bf16 %v2460_v54, %v2459_v48 }
 0x5f9   :  { %9763 = vmatprep.subr.bf16.mxu1 %v11015_v0 }
 0x5fa   :  { %9795 = vmatprep.subr.bf16.mxu0 %v9794_v55 }
 0x5fb   :  { %8418 = vmatmul.mubr.f32.gmra.mrb[36].mxu1 %v1990_v61  ;;  %v2508_v61 = vld [vmem:[%s13170_s6 + $0x248] sm:$0xff] }
 0x5fc   :  { %9765 = vmatpush3.bf16.msra.mxu1 %v9764_v59  ;;  %8420 = vmatprep.mubr.msk.f32.mxu1 %vm11016_vm1, %v11017_v1  ;;  %v9796_v59 = vpack.c.bf16 %v2444_v57, %v2443_v56  ;;  %v9860_v2 = vpack.c.bf16 %v2508_v61, %v2507_v60  ;;  %v2468_v60 = vld [vmem:[%s13170_s6 + $0x108] sm:$0xff] }
 0x5fd   :  { %9766 = vmatprep.subr.bf16.mxu1 %v11015_v0 }
 0x5fe   :  { %9797 = vmatpush3.bf16.msra.mxu0 %v9796_v59 }
 0x5ff   :  { %8421 = vmatmul.mubr.f32.gmra.mrb[38].mxu1 %v1991_v4  ;;  %v2462_v4 = vld [vmem:[%s13170_s6 + $0xd8] sm:$0xff] }
 0x600   :  { %9768 = vmatpush3.bf16.msra.mxu1 %v9767_v63  ;;  %8455 = vmatprep.mubr.msk.f32.mxu1 %vm11016_vm1, %v11017_v1  ;;  %v9858_v63 = vpack.c.bf16 %v2524_v6, %v2523_v58  ;;  %v2467_v6 = vld [vmem:[%s13170_s6 + $0x100] sm:$0xff] }
 0x601   :  { %9769 = vmatprep.subr.bf16.mxu1 %v11015_v0 }
 0x604   :  { %9771 = vmatpush3.bf16.msra.mxu1 %v9770_v5  ;;  %v9798_v5 = vpack.c.bf16 %v2462_v4, %v2461_v3  ;;  %v9812_v4 = vpack.c.bf16 %v2468_v60, %v2467_v6  ;;  %v2569_v6 = vld [vmem:[%s13170_s6 + $0x430] sm:$0xff]  ;;  %v2570_v60 = vld [vmem:[%s13170_s6 + $0x438] sm:$0xff] }
 0x605   :  { %9772 = vmatprep.subr.bf16.mxu1 %v11015_v0 }
 0x606   :  { %9799 = vmatprep.subr.bf16.mxu0 %v9798_v5 }
 0x607   :  { %9801 = vmatpush3.bf16.msra.mxu0 %v9800_v10 }
 0x608   :  { %9774 = vmatpush3.bf16.msra.mxu1 %v9773_v9  ;;  %v2525_v9 = vld [vmem:[%s13170_s6 + $0x2d0] sm:$0xff]  ;;  %9803 = vmatprep.subr.bf16.mxu0 %v9802_v30 }
 0x609   :  { %9775 = vmatprep.subr.bf16.mxu1 %v11015_v0 }
 0x60c   :  { %9777 = vmatpush3.bf16.msra.mxu1 %v9776_v13  ;;  %v9862_v13 = vpack.c.bf16 %v2526_v11, %v2525_v9  ;;  %v2564_v9 = vld [vmem:[%s13170_s6 + $0x408] sm:$0xff] }
 0x60d   :  { %9843 = vmatprep.subr.bf16.mxu1 %v9842_v14  ;;  %v9864_v14 = vpack.c.bf16 %v2510_v21, %v2509_v12 }
 0x60f   :  { %8456 = vmatmul.mubr.f32.vlgmr.msra.gmra.mrb[30].mxu1 %v2211_v23  ;;  %v2511_v23 = vld [vmem:[%s13170_s6 + $0x260] sm:$0xff] }
 0x610   :  { %8458 = vmatprep.mubr.msk.f32.mxu1 %vm11016_vm1, %v11017_v1  ;;  %9845 = vmatpush3.bf16.msra.mxu1 %v9844_v18  ;;  %v2448_v18 = vld [vmem:[%s13170_s6 + $0x68] sm:$0xff] }
 0x611   :  { %9847 = vmatprep.subr.bf16.mxu1 %v9846_v19  ;;  %v2527_v19 = vld [vmem:[%s13170_s6 + $0x2e0] sm:$0xff]  ;;  %v9804_v20 = vpack.c.bf16 %v2448_v18, %v2447_v17  ;;  %v2469_v17 = vld [vmem:[%s13170_s6 + $0x110] sm:$0xff]  ;;  %v2470_v18 = vld [vmem:[%s13170_s6 + $0x118] sm:$0xff] }
 0x613   :  { %8459 = vmatmul.mubr.f32.gmra.mrb[32].mxu1 %v2212_v24  ;;  %v9866_v24 = vpack.c.bf16 %v2528_v22, %v2527_v19  ;;  %9805 = vmatpush3.bf16.msra.mxu0 %v9804_v20 }
 0x614   :  { %8461 = vmatprep.mubr.msk.f32.mxu1 %vm11016_vm1, %v11017_v1  ;;  %9849 = vmatpush3.bf16.msra.mxu1 %v9848_v41  ;;  %v2512_v41 = vld [vmem:[%s13170_s6 + $0x268] sm:$0xff] }
 0x615   :  { %9851 = vmatprep.subr.bf16.mxu1 %v9850_v38  ;;  %v2514_v38 = vld [vmem:[%s13170_s6 + $0x278] sm:$0xff] }
 0x616   :  { %v9872_v33 = vpack.c.bf16 %v2514_v38, %v2513_v37 }
 0x617   :  { %8462 = vmatmul.mubr.f32.gmra.mrb[34].mxu1 %v2213_v25  ;;  %v9868_v25 = vpack.c.bf16 %v2512_v41, %v2511_v23  ;;  %v9908_v23 = vpack.c.bf16 %v2564_v9, %v2563_v8  ;;  %v2487_v41 = vld [vmem:[%s13170_s6 + $0x1a0] sm:$0xff]  ;;  %v9920_v8 = vpack.c.bf16 %v2570_v60, %v2569_v6  ;;  %v2493_v9 = vld [vmem:[%s13170_s6 + $0x1d0] sm:$0xff]  ;;  %v2532_v60 = vld [vmem:[%s13170_s6 + $0x308] sm:$0xff] }
 0x618   :  { %8464 = vmatprep.mubr.msk.f32.mxu1 %vm11016_vm1, %v11017_v1  ;;  %9853 = vmatpush3.bf16.msra.mxu1 %v9852_v62  ;;  %v9870_v62 = vpack.c.bf16 %v2530_v36, %v2529_v34  ;;  %v9816_v34 = vpack.c.bf16 %v2470_v18, %v2469_v17  ;;  %v2584_v36 = vld [vmem:[%s13170_s6 + $0x4a8] sm:$0xff]  ;;  %v2477_v17 = vld [vmem:[%s13170_s6 + $0x150] sm:$0xff]  ;;  %v2478_v18 = vld [vmem:[%s13170_s6 + $0x158] sm:$0xff] }
 0x619   :  { %9855 = vmatprep.subr.bf16.mxu1 %v9854_v52  ;;  %v2531_v6 = vld [vmem:[%s13170_s6 + $0x300] sm:$0xff] }
 0x61b   :  { %8465 = vmatmul.mubr.f32.gmra.mrb[36].mxu1 %v2214_v26  ;;  %v2465_v26 = vld [vmem:[%s13170_s6 + $0xf0] sm:$0xff] }
 0x61c   :  { %8467 = vmatprep.mubr.msk.f32.mxu1 %vm11016_vm1, %v11017_v1  ;;  %9857 = vmatpush3.bf16.msra.mxu1 %v9856_v53 }
 0x61d   :  { %9859 = vmatprep.subr.bf16.mxu1 %v9858_v63  ;;  %v2485_v63 = vld [vmem:[%s13170_s6 + $0x190] sm:$0xff] }
 0x61f   :  { %8468 = vmatmul.mubr.f32.gmra.mrb[38].mxu1 %v2215_v27  ;;  %v2466_v27 = vld [vmem:[%s13170_s6 + $0xf8] sm:$0xff] }
 0x620   :  { %9861 = vmatpush3.bf16.msra.mxu1 %v9860_v2  ;;  %v9806_v29 = vpack.c.bf16 %v2466_v27, %v2465_v26  ;;  %v2486_v2 = vld [vmem:[%s13170_s6 + $0x198] sm:$0xff] }
 0x621   :  { %9863 = vmatprep.subr.bf16.mxu1 %v9862_v13  ;;  %v2581_v13 = vld [vmem:[%s13170_s6 + $0x490] sm:$0xff]  ;;  %v9814_v30 = vpack.c.bf16 %v2486_v2, %v2485_v63  ;;  %v2587_v63 = vld [vmem:[%s13170_s6 + $0x4c0] sm:$0xff]  ;;  %v2588_v2 = vld [vmem:[%s13170_s6 + $0x4c8] sm:$0xff] }
 0x622   :  { %9807 = vmatprep.subr.bf16.mxu0 %v9806_v29  ;;  %v2565_v29 = vld [vmem:[%s13170_s6 + $0x410] sm:$0xff] }
 0x623   :  { %9809 = vmatpush3.bf16.msra.mxu0 %v9808_v35  ;;  %v2583_v35 = vld [vmem:[%s13170_s6 + $0x4a0] sm:$0xff]  ;;  %v9912_v39 = vpack.c.bf16 %v2566_v31, %v2565_v29 }
 0x624   :  { %9865 = vmatpush3.bf16.msra.mxu1 %v9864_v14  ;;  %9811 = vmatprep.subr.bf16.mxu0 %v9810_v42  ;;  %v2582_v14 = vld [vmem:[%s13170_s6 + $0x498] sm:$0xff]  ;;  %v9914_v43 = vpack.c.bf16 %v2584_v36, %v2583_v35  ;;  %v2479_v31 = vld [vmem:[%s13170_s6 + $0x160] sm:$0xff]  ;;  %v2497_v36 = vld [vmem:[%s13170_s6 + $0x1f0] sm:$0xff] }
 0x625   :  { %9867 = vmatprep.subr.bf16.mxu1 %v9866_v24  ;;  %v2488_v24 = vld [vmem:[%s13170_s6 + $0x1a8] sm:$0xff]  ;;  %v9910_v27 = vpack.c.bf16 %v2582_v14, %v2581_v13  ;;  %v2490_v42 = vld [vmem:[%s13170_s6 + $0x1b8] sm:$0xff] }
 0x626   :  { %v9818_v38 = vpack.c.bf16 %v2488_v24, %v2487_v41  ;;  %v2572_v13 = vld [vmem:[%s13170_s6 + $0x448] sm:$0xff]  ;;  %v2573_v41 = vld [vmem:[%s13170_s6 + $0x450] sm:$0xff]  ;;  %v2574_v24 = vld [vmem:[%s13170_s6 + $0x458] sm:$0xff] }
 0x627   :  { %v9928_v35 = vpack.c.bf16 %v2574_v24, %v2573_v41 }
 0x628   :  { %9869 = vmatpush3.bf16.msra.mxu1 %v9868_v25 }
 0x629   :  { %9871 = vmatprep.subr.bf16.mxu1 %v9870_v62  ;;  %v2471_v62 = vld [vmem:[%s13170_s6 + $0x120] sm:$0xff] }
 0x62c   :  { %9873 = vmatpush3.bf16.msra.mxu1 %v9872_v33  ;;  %v2472_v33 = vld [vmem:[%s13170_s6 + $0x128] sm:$0xff] }
 0x62d   :  { %9907 = vmatprep.subr.bf16.mxu1 %v9906_v44  ;;  %v2568_v44 = vld [vmem:[%s13170_s6 + $0x428] sm:$0xff] }
 0x6e2   :  { %v11807_v49 = vpop.f32.mrb[30].mxu1 }
 0x6e3   :  { %v8457_v50 = vpop.f32.mrb[31].mxu1  ;;  %v2341_v61 = vrot.slane %v11807_v49, 1  ;;  %v2349_v5 = vrot.slane %v11807_v49, 5  ;;  %v2345_v7 = vrot.slane %v11807_v49, 3  ;;  %v2347_v15 = vrot.slane %v11807_v49, 4 }
 0x6e4   :  { %v9820_v50 = vpack.c.bf16 %v2472_v33, %v2471_v62  ;;  %v2575_v62 = vld [vmem:[%s13170_s6 + $0x460] sm:$0xff]  ;;  %v2576_v33 = vld [vmem:[%s13170_s6 + $0x468] sm:$0xff] }
 0x6e6   :  { %v11809_v51 = vpop.f32.mrb[32].mxu1 }
 0x6e7   :  { %v8460_v52 = vpop.f32.mrb[33].mxu1  ;;  %v2356_v26 = vrot.slane %v11809_v51, 1  ;;  %v2364_v41 = vrot.slane %v11809_v51, 5 }
 0x6e8   :  { %v2585_v52 = vld [vmem:[%s13170_s6 + $0x4b0] sm:$0xff] }
 0x6ea   :  { %v2309_v53 = vpop.f32.mrb[34].mxu1 }
 0x6eb   :  { %v2330_v48 = vsel %vm163_vm3, %v2309_v53, 0.0  ;;  %v8463_v54 = vpop.f32.mrb[35].mxu1  ;;  %v2586_v53 = vld [vmem:[%s13170_s6 + $0x4b8] sm:$0xff] }
 0x6ec   :  { %2335 = vst [vmem:[#allocation3 + $0x11] sm:$0xff] %v2330_v48  ;;  %v9822_v48 = vpack.c.bf16 %v2490_v42, %v2489_v40  ;;  %v2473_v54 = vld [vmem:[%s13170_s6 + $0x130] sm:$0xff]  ;;  %v2594_v42 = vld [vmem:[%s13170_s6 + $0x4f8] sm:$0xff] }
 0x6ed   :  { %v2593_v40 = vld [vmem:[%s13170_s6 + $0x4f0] sm:$0xff] }
 0x6ee   :  { %v2314_v55 = vpop.f32.mrb[36].mxu1 }
 0x6ef   :  { %2336 = vst [vmem:[#allocation3 + $0x19] sm:$0xff] %v2314_v55  ;;  %v8466_v56 = vpop.f32.mrb[37].mxu1  ;;  %v2474_v55 = vld [vmem:[%s13170_s6 + $0x138] sm:$0xff] }
 0x6f0   :  { %v9916_v56 = vpack.c.bf16 %v2568_v44, %v2567_v45  ;;  %v2481_v45 = vld [vmem:[%s13170_s6 + $0x170] sm:$0xff]  ;;  %v2482_v44 = vld [vmem:[%s13170_s6 + $0x178] sm:$0xff] }
 0x6f2   :  { %v2319_v57 = vpop.f32.mrb[38].mxu1 }
 0x6f3   :  { %v2332_v58 = vsel %vm170_vm4, %v2319_v57, 0.0  ;;  %v8469_v59 = vpop.f32.mrb[39].mxu1  ;;  %v2491_v57 = vld [vmem:[%s13170_s6 + $0x1c0] sm:$0xff] }
 0x6f4   :  { %2337 = vst [vmem:[#allocation3 + $0x21] sm:$0x3] %v2332_v58  ;;  %v2492_v58 = vld [vmem:[%s13170_s6 + $0x1c8] sm:$0xff]  ;;  %v9918_v59 = vpack.c.bf16 %v2586_v53, %v2585_v52  ;;  %v2547_v52 = vld [vmem:[%s13170_s6 + $0x380] sm:$0xff] }
 0x6f5   :  { %v2548_v53 = vld [vmem:[%s13170_s6 + $0x388] sm:$0xff] }
 0x6f6   :  { %v11828_v3 = vld [vmem:[#allocation3 + $0x13] sm:$0xff] }
 0x6f7   :  { %v2420_v10 = vsel %vm2418_vm5, %v2341_v61, %v11828_v3  ;;  %v2379_v11 = vrot.slane %v11828_v3, 7  ;;  %v6608_v12 = vrot.slane %v11828_v3, 12  ;;  %v6606_v21 = vrot.slane %v11828_v3, 10 }
 0x6f8   :  { %2762 = vmatprep.mubr.f32.mxu0 %v2420_v10  ;;  %v6607_v16 = vrot.slane %v11828_v3, 11  ;;  %v9824_v61 = vpack.c.bf16 %v2474_v55, %v2473_v54  ;;  %v2494_v10 = vld [vmem:[%s13170_s6 + $0x1d8] sm:$0xff]  ;;  %v2577_v54 = vld [vmem:[%s13170_s6 + $0x470] sm:$0xff] }
 0x6f9   :  { %v2419_v19 = vsel %vm2418_vm5, %v11807_v49, %v2379_v11  ;;  %v2424_v20 = vsel %vm2418_vm5, %v2349_v5, %v6608_v12  ;;  %v2422_v22 = vsel %vm2418_vm5, %v2345_v7, %v6606_v21  ;;  %v2475_v5 = vld [vmem:[%s13170_s6 + $0x140] sm:$0xff]  ;;  %v2476_v7 = vld [vmem:[%s13170_s6 + $0x148] sm:$0xff]  ;;  %v9922_v12 = vpack.c.bf16 %v2588_v2, %v2587_v63  ;;  %v2578_v55 = vld [vmem:[%s13170_s6 + $0x478] sm:$0xff] }
 0x6fa   :  { %2763 = vmatmul.mubr.f32.vlgmr.msra.gmra.mrb[40].mxu0 %v2419_v19  ;;  %2902 = vmatprep.mubr.f32.mxu1 %v2424_v20  ;;  %v2423_v25 = vsel %vm2418_vm5, %v2347_v15, %v6607_v16  ;;  %v2571_v21 = vld [vmem:[%s13170_s6 + $0x440] sm:$0xff]  ;;  %v9828_v14 = vpack.c.bf16 %v2476_v7, %v2475_v5  ;;  %v2589_v15 = vld [vmem:[%s13170_s6 + $0x4d0] sm:$0xff]  ;;  %v2590_v16 = vld [vmem:[%s13170_s6 + $0x4d8] sm:$0xff]  ;;  %v6605_v63 = vrot.slane %v11828_v3, 9  ;;  %v2394_v5 = vrot.slane %v2379_v11, 7 }
 0x6fb   :  { %9813 = vmatpush3.bf16.msra.mxu0 %v9812_v4  ;;  %2832 = vmatprep.mubr.f32.mxu0 %v2422_v22  ;;  %v11877_v46 = vld [vmem:[#allocation3 + $0x1b] sm:$0xff]  ;;  %v9826_v4 = vpack.c.bf16 %v2492_v58, %v2491_v57  ;;  %v9924_v19 = vpack.c.bf16 %v2572_v13, %v2571_v21  ;;  %v2549_v2 = vld [vmem:[%s13170_s6 + $0x390] sm:$0xff]  ;;  %v2646_v11 = vld [vmem:[%s13170_s6 + $0x698] sm:$0xff] }
 0x6fc   :  { %2903 = vmatmul.mubr.f32.vlgmr.msra.gmra.mrb[40].mxu1 %v2423_v25  ;;  %9815 = vmatprep.subr.bf16.mxu0 %v9814_v30  ;;  %v2428_v37 = vsel %vm2418_vm5, %v2356_v26, %v11877_v46  ;;  %v9830_v30 = vpack.c.bf16 %v2494_v10, %v2493_v9  ;;  %v2495_v20 = vld [vmem:[%s13170_s6 + $0x1e0] sm:$0xff]  ;;  %v2496_v22 = vld [vmem:[%s13170_s6 + $0x1e8] sm:$0xff]  ;;  %v9832_v25 = vpack.c.bf16 %v2478_v18, %v2477_v17  ;;  %v2343_v10 = vrot.slane %v11807_v49, 2  ;;  %v2645_v13 = vld [vmem:[%s13170_s6 + $0x690] sm:$0xff] }
 0x6fd   :  { %9909 = vmatpush3.bf16.msra.mxu1 %v9908_v23  ;;  %3042 = vmatprep.mubr.f32.mxu1 %v2428_v37  ;;  %v9926_v23 = vpack.c.bf16 %v2590_v16, %v2589_v15  ;;  %v2591_v26 = vld [vmem:[%s13170_s6 + $0x4e0] sm:$0xff]  ;;  %v9834_v29 = vpack.c.bf16 %v2496_v22, %v2495_v20  ;;  %v2498_v37 = vld [vmem:[%s13170_s6 + $0x1f8] sm:$0xff]  ;;  %v2644_v58 = vld [vmem:[%s13170_s6 + $0x688] sm:$0xff]  ;;  %v2387_v21 = vrot.slane %v11877_v46, 7  ;;  %v6614_v15 = vrot.slane %v11877_v46, 12 }
 0x6fe   :  { %9911 = vmatprep.subr.bf16.mxu1 %v9910_v27  ;;  %v2592_v27 = vld [vmem:[%s13170_s6 + $0x4e8] sm:$0xff]  ;;  %v2643_v57 = vld [vmem:[%s13170_s6 + $0x680] sm:$0xff]  ;;  %v2534_v17 = vld [vmem:[%s13170_s6 + $0x318] sm:$0xff]  ;;  %v2421_v18 = vsel %vm2418_vm5, %v2343_v10, %v6605_v63  ;;  %v9974_v24 = vpack.c.bf16 %v2646_v11, %v2645_v13 }
 0x6ff   :  { %9817 = vmatpush3.bf16.msra.mxu0 %v9816_v34  ;;  %v2480_v34 = vld [vmem:[%s13170_s6 + $0x168] sm:$0xff]  ;;  %v9970_v7 = vpack.c.bf16 %v2644_v58, %v2643_v57  ;;  %v2551_v20 = vld [vmem:[%s13170_s6 + $0x3a0] sm:$0xff]  ;;  %v2633_v58 = vld [vmem:[%s13170_s6 + $0x630] sm:$0xff] }
 0x700   :  { %9819 = vmatprep.subr.bf16.mxu0 %v9818_v38  ;;  %v9930_v38 = vpack.c.bf16 %v2592_v27, %v2591_v26  ;;  %v2628_v9 = vld [vmem:[%s13170_s6 + $0x608] sm:$0xff]  ;;  %v2630_v26 = vld [vmem:[%s13170_s6 + $0x618] sm:$0xff]  ;;  %v2427_v27 = vsel %vm2418_vm5, %v11809_v51, %v2387_v21  ;;  %v2635_v10 = vld [vmem:[%s13170_s6 + $0x640] sm:$0xff] }
 0x701   :  { %9913 = vmatpush3.bf16.msra.mxu1 %v9912_v39  ;;  %v9836_v39 = vpack.c.bf16 %v2480_v34, %v2479_v31  ;;  %v2552_v22 = vld [vmem:[%s13170_s6 + $0x3a8] sm:$0xff]  ;;  %v2647_v31 = vld [vmem:[%s13170_s6 + $0x6a0] sm:$0xff]  ;;  %v2653_v11 = vld [vmem:[%s13170_s6 + $0x6d0] sm:$0xff] }
 0x702   :  { %9915 = vmatprep.subr.bf16.mxu1 %v9914_v43  ;;  %v9838_v43 = vpack.c.bf16 %v2498_v37, %v2497_v36  ;;  %v2648_v34 = vld [vmem:[%s13170_s6 + $0x6a8] sm:$0xff]  ;;  %v9882_v36 = vpack.c.bf16 %v2552_v22, %v2551_v20  ;;  %v2535_v37 = vld [vmem:[%s13170_s6 + $0x320] sm:$0xff]  ;;  %v2637_v22 = vld [vmem:[%s13170_s6 + $0x650] sm:$0xff] }
 0x703   :  { %9821 = vmatpush3.bf16.msra.mxu0 %v9820_v50  ;;  %v9932_v50 = vpack.c.bf16 %v2576_v33, %v2575_v62  ;;  %v2553_v33 = vld [vmem:[%s13170_s6 + $0x3b0] sm:$0xff] }
 0x704   :  { %9823 = vmatprep.subr.bf16.mxu0 %v9822_v48  ;;  %v9934_v48 = vpack.c.bf16 %v2594_v42, %v2593_v40  ;;  %v9978_v40 = vpack.c.bf16 %v2648_v34, %v2647_v31  ;;  %v2631_v42 = vld [vmem:[%s13170_s6 + $0x620] sm:$0xff]  ;;  %v2561_v34 = vld [vmem:[%s13170_s6 + $0x3f0] sm:$0xff] }
 0x705   :  { %9917 = vmatpush3.bf16.msra.mxu1 %v9916_v56  ;;  %v9840_v56 = vpack.c.bf16 %v2482_v44, %v2481_v45  ;;  %v2649_v44 = vld [vmem:[%s13170_s6 + $0x6b0] sm:$0xff] }
 0x706   :  { %9919 = vmatprep.subr.bf16.mxu1 %v9918_v59  ;;  %v9874_v59 = vpack.c.bf16 %v2548_v53, %v2547_v52  ;;  %v2537_v53 = vld [vmem:[%s13170_s6 + $0x330] sm:$0xff] }
 0x707   :  { %9825 = vmatpush3.bf16.msra.mxu0 %v9824_v61  ;;  %v9936_v61 = vpack.c.bf16 %v2578_v55, %v2577_v54  ;;  %v2555_v55 = vld [vmem:[%s13170_s6 + $0x3c0] sm:$0xff] }
 0x708   :  { %9827 = vmatprep.subr.bf16.mxu0 %v9826_v4  ;;  %v2550_v4 = vld [vmem:[%s13170_s6 + $0x398] sm:$0xff] }
 0x709   :  { %9921 = vmatpush3.bf16.msra.mxu1 %v9920_v8  ;;  %v2627_v8 = vld [vmem:[%s13170_s6 + $0x600] sm:$0xff]  ;;  %v9878_v16 = vpack.c.bf16 %v2550_v4, %v2549_v2  ;;  %v2540_v4 = vld [vmem:[%s13170_s6 + $0x348] sm:$0xff] }
 0x70a   :  { %9923 = vmatprep.subr.bf16.mxu1 %v9922_v12  ;;  %v9876_v12 = vpack.c.bf16 %v2532_v60, %v2531_v6  ;;  %v2651_v60 = vld [vmem:[%s13170_s6 + $0x6c0] sm:$0xff] }
 0x70b   :  { %9829 = vmatpush3.bf16.msra.mxu0 %v9828_v14  ;;  %v2353_v14 = vrot.slane %v11807_v49, 7  ;;  %v2539_v2 = vld [vmem:[%s13170_s6 + $0x340] sm:$0xff] }
 0x70c   :  { %9831 = vmatprep.subr.bf16.mxu0 %v9830_v30  ;;  %v2533_v30 = vld [vmem:[%s13170_s6 + $0x310] sm:$0xff]  ;;  %v9892_v13 = vpack.c.bf16 %v2540_v4, %v2539_v2  ;;  %v6613_v4 = vrot.slane %v11877_v46, 11 }
 0x70d   :  { %9925 = vmatpush3.bf16.msra.mxu1 %v9924_v19  ;;  %v9972_v19 = vpack.c.bf16 %v2628_v9, %v2627_v8  ;;  %v2558_v8 = vld [vmem:[%s13170_s6 + $0x3d8] sm:$0xff] }
 0x70e   :  { %9927 = vmatprep.subr.bf16.mxu1 %v9926_v23  ;;  %v2426_v23 = vsel %vm2418_vm5, %v2353_v14, %v2394_v5  ;;  %v2654_v14 = vld [vmem:[%s13170_s6 + $0x6d8] sm:$0xff] }
 0x70f   :  { %9833 = vmatpush3.bf16.msra.mxu0 %v9832_v25  ;;  %v2629_v25 = vld [vmem:[%s13170_s6 + $0x610] sm:$0xff]  ;;  %v9990_v20 = vpack.c.bf16 %v2654_v14, %v2653_v11 }
 0x710   :  { %9835 = vmatprep.subr.bf16.mxu0 %v9834_v29  ;;  %v9880_v29 = vpack.c.bf16 %v2534_v17, %v2533_v30  ;;  %v9976_v62 = vpack.c.bf16 %v2630_v26, %v2629_v25  ;;  %v2542_v30 = vld [vmem:[%s13170_s6 + $0x358] sm:$0xff]  ;;  %v2656_v25 = vld [vmem:[%s13170_s6 + $0x6e8] sm:$0xff] }
 0x711   :  { %9929 = vmatpush3.bf16.msra.mxu1 %v9928_v35  ;;  %v2432_v35 = vsel %vm2418_vm5, %v2364_v41, %v6614_v15 }
 0x712   :  { %9931 = vmatprep.subr.bf16.mxu1 %v9930_v38  ;;  %v2536_v38 = vld [vmem:[%s13170_s6 + $0x328] sm:$0xff] }
 0x713   :  { %9837 = vmatpush3.bf16.msra.mxu0 %v9836_v39  ;;  %v2554_v39 = vld [vmem:[%s13170_s6 + $0x3b8] sm:$0xff]  ;;  %v9884_v45 = vpack.c.bf16 %v2536_v38, %v2535_v37  ;;  %v2639_v37 = vld [vmem:[%s13170_s6 + $0x660] sm:$0xff]  ;;  %v2640_v38 = vld [vmem:[%s13170_s6 + $0x668] sm:$0xff] }
 0x714   :  { %9839 = vmatprep.subr.bf16.mxu0 %v9838_v43  ;;  %v2632_v43 = vld [vmem:[%s13170_s6 + $0x628] sm:$0xff]  ;;  %v9886_v52 = vpack.c.bf16 %v2554_v39, %v2553_v33  ;;  %v2657_v33 = vld [vmem:[%s13170_s6 + $0x6f0] sm:$0xff]  ;;  %v2658_v39 = vld [vmem:[%s13170_s6 + $0x6f8] sm:$0xff] }
 0x715   :  { %9933 = vmatpush3.bf16.msra.mxu1 %v9932_v50  ;;  %v2650_v50 = vld [vmem:[%s13170_s6 + $0x6b8] sm:$0xff]  ;;  %v9980_v54 = vpack.c.bf16 %v2632_v43, %v2631_v42  ;;  %v2545_v42 = vld [vmem:[%s13170_s6 + $0x370] sm:$0xff] }
 0x716   :  { %9935 = vmatprep.subr.bf16.mxu1 %v9934_v48  ;;  %v2538_v48 = vld [vmem:[%s13170_s6 + $0x338] sm:$0xff]  ;;  %v9982_v57 = vpack.c.bf16 %v2650_v50, %v2649_v44  ;;  %v2611_v44 = vld [vmem:[%s13170_s6 + $0x580] sm:$0xff]  ;;  %v2612_v50 = vld [vmem:[%s13170_s6 + $0x588] sm:$0xff] }
 0x717   :  { %9841 = vmatpush3.bf16.msra.mxu0 %v9840_v56  ;;  %v2556_v56 = vld [vmem:[%s13170_s6 + $0x3c8] sm:$0xff]  ;;  %v9888_v6 = vpack.c.bf16 %v2538_v48, %v2537_v53  ;;  %v2546_v43 = vld [vmem:[%s13170_s6 + $0x378] sm:$0xff]  ;;  %v2641_v53 = vld [vmem:[%s13170_s6 + $0x670] sm:$0xff] }
 0x718   :  { %9875 = vmatprep.subr.bf16.mxu0 %v9874_v59  ;;  %v2634_v59 = vld [vmem:[%s13170_s6 + $0x638] sm:$0xff]  ;;  %v9890_v63 = vpack.c.bf16 %v2556_v56, %v2555_v55  ;;  %v9938_v55 = vpack.c.bf16 %v2612_v50, %v2611_v44  ;;  %v2595_v56 = vld [vmem:[%s13170_s6 + $0x500] sm:$0xff] }
 0x719   :  { %9937 = vmatpush3.bf16.msra.mxu1 %v9936_v61  ;;  %v2652_v61 = vld [vmem:[%s13170_s6 + $0x6c8] sm:$0xff]  ;;  %v9984_v5 = vpack.c.bf16 %v2634_v59, %v2633_v58  ;;  %v2642_v48 = vld [vmem:[%s13170_s6 + $0x678] sm:$0xff]  ;;  %v6609_v59 = vrot.slane %v11828_v3, 13  ;;  %v2360_v3 = vrot.slane %v11809_v51, 3 }
 0x71a   :  { %2833 = vmatmul.mubr.f32.vlgmr.msra.gmra.mrb[42].mxu0 %v2421_v18  ;;  %9971 = vmatprep.subr.bf16.mxu1 %v9970_v7  ;;  %v2557_v7 = vld [vmem:[%s13170_s6 + $0x3d0] sm:$0xff]  ;;  %v9986_v9 = vpack.c.bf16 %v2652_v61, %v2651_v60  ;;  %v2559_v18 = vld [vmem:[%s13170_s6 + $0x3e0] sm:$0xff]  ;;  %v10000_v58 = vpack.c.bf16 %v2642_v48, %v2641_v53  ;;  %v2614_v60 = vld [vmem:[%s13170_s6 + $0x598] sm:$0xff]  ;;  %v6612_v61 = vrot.slane %v11877_v46, 10 }
 0x71b   :  { %9877 = vmatpush3.bf16.msra.mxu0 %v9876_v12  ;;  %2972 = vmatprep.mubr.f32.mxu0 %v2426_v23  ;;  %v2636_v12 = vld [vmem:[%s13170_s6 + $0x648] sm:$0xff]  ;;  %v9894_v15 = vpack.c.bf16 %v2558_v8, %v2557_v7  ;;  %v2638_v23 = vld [vmem:[%s13170_s6 + $0x658] sm:$0xff]  ;;  %v2597_v7 = vld [vmem:[%s13170_s6 + $0x510] sm:$0xff] }
 0x71c   :  { %3043 = vmatmul.mubr.f32.vlgmr.msra.gmra.mrb[42].mxu1 %v2427_v27  ;;  %9879 = vmatprep.subr.bf16.mxu0 %v9878_v16  ;;  %v2541_v16 = vld [vmem:[%s13170_s6 + $0x350] sm:$0xff]  ;;  %v9988_v17 = vpack.c.bf16 %v2636_v12, %v2635_v10  ;;  %v2543_v27 = vld [vmem:[%s13170_s6 + $0x360] sm:$0xff]  ;;  %v9992_v31 = vpack.c.bf16 %v2638_v23, %v2637_v22  ;;  %v2598_v8 = vld [vmem:[%s13170_s6 + $0x518] sm:$0xff] }
 0x71d   :  { %9973 = vmatpush3.bf16.msra.mxu1 %v9972_v19  ;;  %3182 = vmatprep.mubr.f32.mxu1 %v2432_v35  ;;  %v2560_v19 = vld [vmem:[%s13170_s6 + $0x3e8] sm:$0xff]  ;;  %v9896_v41 = vpack.c.bf16 %v2542_v30, %v2541_v16  ;;  %v2562_v35 = vld [vmem:[%s13170_s6 + $0x3f8] sm:$0xff]  ;;  %v2615_v10 = vld [vmem:[%s13170_s6 + $0x5a0] sm:$0xff]  ;;  %v9944_v14 = vpack.c.bf16 %v2598_v8, %v2597_v7 }
 0x71e   :  { %9975 = vmatprep.subr.bf16.mxu1 %v9974_v24  ;;  %v2655_v24 = vld [vmem:[%s13170_s6 + $0x6e0] sm:$0xff]  ;;  %v9898_v26 = vpack.c.bf16 %v2560_v19, %v2559_v18  ;;  %v2616_v12 = vld [vmem:[%s13170_s6 + $0x5a8] sm:$0xff]  ;;  %v2618_v18 = vld [vmem:[%s13170_s6 + $0x5b8] sm:$0xff] }
 0x71f   :  { %9881 = vmatpush3.bf16.msra.mxu0 %v9880_v29  ;;  %v2544_v29 = vld [vmem:[%s13170_s6 + $0x368] sm:$0xff]  ;;  %v2599_v16 = vld [vmem:[%s13170_s6 + $0x520] sm:$0xff]  ;;  %v2601_v22 = vld [vmem:[%s13170_s6 + $0x530] sm:$0xff] }
 0x720   :  { %9883 = vmatprep.subr.bf16.mxu0 %v9882_v36  ;;  %v9994_v36 = vpack.c.bf16 %v2656_v25, %v2655_v24  ;;  %v2600_v30 = vld [vmem:[%s13170_s6 + $0x528] sm:$0xff]  ;;  %v2602_v23 = vld [vmem:[%s13170_s6 + $0x538] sm:$0xff]  ;;  %v2609_v53 = vld [vmem:[%s13170_s6 + $0x570] sm:$0xff] }
 0x721   :  { %9977 = vmatpush3.bf16.msra.mxu1 %v9976_v62  ;;  %v9900_v62 = vpack.c.bf16 %v2544_v29, %v2543_v27  ;;  %v9948_v19 = vpack.c.bf16 %v2600_v30, %v2599_v16  ;;  %v2620_v24 = vld [vmem:[%s13170_s6 + $0x5c8] sm:$0xff]  ;;  %v9952_v25 = vpack.c.bf16 %v2602_v23, %v2601_v22  ;;  %v2603_v27 = vld [vmem:[%s13170_s6 + $0x540] sm:$0xff]  ;;  %v2626_v44 = vld [vmem:[%s13170_s6 + $0x5f8] sm:$0xff] }
 0x722   :  { %9979 = vmatprep.subr.bf16.mxu1 %v9978_v40  ;;  %v9902_v40 = vpack.c.bf16 %v2562_v35, %v2561_v34  ;;  %v2604_v29 = vld [vmem:[%s13170_s6 + $0x548] sm:$0xff]  ;;  %v2622_v34 = vld [vmem:[%s13170_s6 + $0x5d8] sm:$0xff]  ;;  %v2661_v8 = vld [vmem:[%s13170_s6 + $0x710] sm:$0xff] }
 0x723   :  { %9885 = vmatpush3.bf16.msra.mxu0 %v9884_v45  ;;  %v9996_v45 = vpack.c.bf16 %v2640_v38, %v2639_v37  ;;  %v9956_v35 = vpack.c.bf16 %v2604_v29, %v2603_v27  ;;  %v2605_v37 = vld [vmem:[%s13170_s6 + $0x550] sm:$0xff]  ;;  %v2606_v38 = vld [vmem:[%s13170_s6 + $0x558] sm:$0xff]  ;;  %v2683_v22 = vld [vmem:[%s13170_s6 + $0x7c0] sm:$0xff] }
 0x724   :  { %9887 = vmatprep.subr.bf16.mxu0 %v9886_v52  ;;  %v9998_v52 = vpack.c.bf16 %v2658_v39, %v2657_v33  ;;  %v2624_v33 = vld [vmem:[%s13170_s6 + $0x5e8] sm:$0xff]  ;;  %v9960_v39 = vpack.c.bf16 %v2606_v38, %v2605_v37  ;;  %v2610_v48 = vld [vmem:[%s13170_s6 + $0x578] sm:$0xff]  ;;  %v2681_v16 = vld [vmem:[%s13170_s6 + $0x7b0] sm:$0xff] }
 0x725   :  { %9981 = vmatpush3.bf16.msra.mxu1 %v9980_v54  ;;  %v9904_v54 = vpack.c.bf16 %v2546_v43, %v2545_v42  ;;  %v2607_v42 = vld [vmem:[%s13170_s6 + $0x560] sm:$0xff]  ;;  %v2608_v43 = vld [vmem:[%s13170_s6 + $0x568] sm:$0xff]  ;;  %v2682_v30 = vld [vmem:[%s13170_s6 + $0x7b8] sm:$0xff] }
 0x726   :  { %9983 = vmatprep.subr.bf16.mxu1 %v9982_v57  ;;  %v2596_v57 = vld [vmem:[%s13170_s6 + $0x508] sm:$0xff]  ;;  %v9964_v50 = vpack.c.bf16 %v2608_v43, %v2607_v42  ;;  %v2685_v27 = vld [vmem:[%s13170_s6 + $0x7d0] sm:$0xff]  ;;  %v2686_v29 = vld [vmem:[%s13170_s6 + $0x7d8] sm:$0xff] }
 0x727   :  { %9889 = vmatpush3.bf16.msra.mxu0 %v9888_v6  ;;  %v2613_v6 = vld [vmem:[%s13170_s6 + $0x590] sm:$0xff]  ;;  %v9940_v2 = vpack.c.bf16 %v2596_v57, %v2595_v56  ;;  %v3260_v56 = vld [vmem:[#allocation7] sm:$0x3]  ;;  %v9968_v57 = vpack.c.bf16 %v2610_v48, %v2609_v53  ;;  %v2684_v23 = vld [vmem:[%s13170_s6 + $0x7c8] sm:$0xff]  ;;  %v6615_v48 = vrot.slane %v11877_v46, 13 }
 0x728   :  { %9891 = vmatprep.subr.bf16.mxu0 %v9890_v63  ;;  %v2351_v63 = vrot.slane %v11807_v49, 6  ;;  %v2362_v49 = vrot.slane %v11809_v51, 4  ;;  %3262 = vrot.lane.b32.xlu0 %v3260_v56, %s11018_s7  ;;  %v2687_v37 = vld [vmem:[%s13170_s6 + $0x7e0] sm:$0xff]  ;;  %v2688_v38 = vld [vmem:[%s13170_s6 + $0x7e8] sm:$0xff]  ;;  %v2689_v42 = vld [vmem:[%s13170_s6 + $0x7f0] sm:$0xff] }
 0x729   :  { %9985 = vmatpush3.bf16.msra.mxu1 %v9984_v5  ;;  %v9942_v5 = vpack.c.bf16 %v2614_v60, %v2613_v6  ;;  %v2660_v6 = vld [vmem:[%s13170_s6 + $0x708] sm:$0xff]  ;;  %v6611_v60 = vrot.slane %v11877_v46, 9  ;;  %v2690_v43 = vld [vmem:[%s13170_s6 + $0x7f8] sm:$0xff] }
 0x72a   :  { %9987 = vmatprep.subr.bf16.mxu1 %v9986_v9  ;;  %v2425_v9 = vsel %vm2418_vm5, %v2351_v63, %v6609_v59  ;;  %v2431_v11 = vsel %vm2418_vm5, %v2362_v49, %v6613_v4  ;;  %v2659_v59 = vld [vmem:[%s13170_s6 + $0x700] sm:$0xff]  ;;  %v2678_v63 = vld [vmem:[%s13170_s6 + $0x798] sm:$0xff]  ;;  %v2358_v4 = vrot.slane %v11809_v51, 2 }
 0x72b   :  { %9893 = vmatpush3.bf16.msra.mxu0 %v9892_v13  ;;  %v2430_v13 = vsel %vm2418_vm5, %v2360_v3, %v6612_v61  ;;  %v2677_v61 = vld [vmem:[%s13170_s6 + $0x790] sm:$0xff]  ;;  %v10004_v3 = vpack.c.bf16 %v2660_v6, %v2659_v59  ;;  %v3281_v46 = vld [vmem:[#allocation15 + $0x38] sm:$0xff] }
 0x72c   :  { %9895 = vmatprep.subr.bf16.mxu0 %v9894_v15  ;;  %v9946_v15 = vpack.c.bf16 %v2616_v12, %v2615_v10  ;;  %v10006_v7 = vpack.c.bf16 %v2678_v63, %v2677_v61  ;;  %v2429_v49 = vsel %vm2418_vm5, %v2358_v4, %v6611_v60  ;;  %v2680_v10 = vld [vmem:[%s13170_s6 + $0x7a8] sm:$0xff]  ;;  %v3275_v61 = vld [vmem:[#allocation15 + $0x8] sm:$0xff] }
 0x72d   :  { %9989 = vmatpush3.bf16.msra.mxu1 %v9988_v17  ;;  %v2617_v17 = vld [vmem:[%s13170_s6 + $0x5b0] sm:$0xff] }
 0x72e   :  { %9991 = vmatprep.subr.bf16.mxu1 %v9990_v20  ;;  %v9950_v20 = vpack.c.bf16 %v2618_v18, %v2617_v17  ;;  %v10014_v18 = vpack.c.bf16 %v2682_v30, %v2681_v16  ;;  %v3291_v63 = vld [vmem:[#allocation15 + $0x88] sm:$0xff] }
 0x72f   :  { %9897 = vmatpush3.bf16.msra.mxu0 %v9896_v41  ;;  %v2619_v41 = vld [vmem:[%s13170_s6 + $0x5c0] sm:$0xff]  ;;  %v10034_v4 = vpack.c.bf16 %v3291_v63, %v3275_v61 }
 0x730   :  { %9899 = vmatprep.subr.bf16.mxu0 %v9898_v26  ;;  %v9954_v26 = vpack.c.bf16 %v2620_v24, %v2619_v41  ;;  %v10018_v24 = vpack.c.bf16 %v2684_v23, %v2683_v22 }
 0x731   :  { %9993 = vmatpush3.bf16.msra.mxu1 %v9992_v31  ;;  %v2621_v31 = vld [vmem:[%s13170_s6 + $0x5d0] sm:$0xff] }
 0x732   :  { %9995 = vmatprep.subr.bf16.mxu1 %v9994_v36  ;;  %v9958_v36 = vpack.c.bf16 %v2622_v34, %v2621_v31  ;;  %v10022_v34 = vpack.c.bf16 %v2686_v29, %v2685_v27 }
 0x733   :  { %9901 = vmatpush3.bf16.msra.mxu0 %v9900_v62  ;;  %v2623_v62 = vld [vmem:[%s13170_s6 + $0x5e0] sm:$0xff] }
 0x734   :  { %9903 = vmatprep.subr.bf16.mxu0 %v9902_v40  ;;  %v9962_v40 = vpack.c.bf16 %v2624_v33, %v2623_v62  ;;  %v10026_v33 = vpack.c.bf16 %v2688_v38, %v2687_v37 }
 0x735   :  { %9997 = vmatpush3.bf16.msra.mxu1 %v9996_v45  ;;  %v2625_v45 = vld [vmem:[%s13170_s6 + $0x5f0] sm:$0xff] }
 0x736   :  { %9999 = vmatprep.subr.bf16.mxu1 %v9998_v52  ;;  %v9966_v52 = vpack.c.bf16 %v2626_v44, %v2625_v45  ;;  %v10030_v44 = vpack.c.bf16 %v2690_v43, %v2689_v42  ;;  %v3301_v43 = vld [vmem:[#allocation15 + $0xd8] sm:$0xff] }
 0x737   :  { %9905 = vmatpush3.bf16.msra.mxu0 %v9904_v54  ;;  %v2675_v54 = vld [vmem:[%s13170_s6 + $0x780] sm:$0xff] }
 0x738   :  { %9939 = vmatprep.subr.bf16.mxu0 %v9938_v55  ;;  %v2676_v55 = vld [vmem:[%s13170_s6 + $0x788] sm:$0xff] }
 0x739   :  { %10001 = vmatpush3.bf16.msra.mxu1 %v10000_v58  ;;  %v10002_v58 = vpack.c.bf16 %v2676_v55, %v2675_v54  ;;  %v2366_v54 = vrot.slane %v11809_v51, 6 }
 0x73a   :  { %2973 = vmatmul.mubr.f32.vlgmr.msra.gmra.mrb[44].mxu0 %v2425_v9  ;;  %v2662_v9 = vld [vmem:[%s13170_s6 + $0x718] sm:$0xff]  ;;  %10035 = vmatprep.subr.bf16.mxu1 %v10034_v4 }
 0x73b   :  { %9941 = vmatpush3.bf16.msra.mxu0 %v9940_v2  ;;  %3112 = vmatprep.mubr.f32.mxu0 %v2430_v13  ;;  %v2401_v2 = vrot.slane %v2387_v21, 7  ;;  %v2679_v21 = vld [vmem:[%s13170_s6 + $0x7a0] sm:$0xff]  ;;  %v10008_v13 = vpack.c.bf16 %v2662_v9, %v2661_v8  ;;  %v2433_v55 = vsel %vm2418_vm5, %v2366_v54, %v6615_v48 }
 0x73c   :  { %3183 = vmatmul.mubr.f32.vlgmr.msra.gmra.mrb[44].mxu1 %v2431_v11  ;;  %9943 = vmatprep.subr.bf16.mxu0 %v9942_v5  ;;  %v2368_v5 = vrot.slane %v11809_v51, 7  ;;  %v10010_v11 = vpack.c.bf16 %v2680_v10, %v2679_v21  ;;  %v3280_v8 = vld [vmem:[#allocation15 + $0x30] sm:$0xff]  ;;  %v6616_v21 = vld [vmem:[#allocation13] ss:$0 sm:$0xff] }
 0x73d   :  { %3457 = vmatprep.mubr.f32.mxu1 %v11017_v1  ;;  %v3296_v9 = vld [vmem:[#allocation15 + $0xb0] sm:$0xff] }
 0x73e   :  { %v2434_v12 = vsel %vm2418_vm5, %v2368_v5, %v2401_v2  ;;  %v3274_v2 = vld [vmem:[#allocation15] sm:$0xff]  ;;  %v3297_v5 = vld [vmem:[#allocation15 + $0xb8] sm:$0xff]  ;;  %v3276_v48 = vld [vmem:[#allocation15 + $0x10] sm:$0xff] }
 0x73f   :  { %9945 = vmatpush3.bf16.msra.mxu0 %v9944_v14  ;;  %v2663_v14 = vld [vmem:[%s13170_s6 + $0x720] sm:$0xff]  ;;  %v10046_v51 = vpack.c.bf16 %v3297_v5, %v3281_v46  ;;  %v3294_v46 = vld [vmem:[#allocation15 + $0xa0] sm:$0xff] }
 0x740   :  { %9947 = vmatprep.subr.bf16.mxu0 %v9946_v15  ;;  %v2664_v15 = vld [vmem:[%s13170_s6 + $0x728] sm:$0xff]  ;;  %v3292_v54 = vld [vmem:[#allocation15 + $0x90] sm:$0xff] }
 0x741   :  { %v10012_v17 = vpack.c.bf16 %v2664_v15, %v2663_v14  ;;  %v10040_v61 = vpack.c.bf16 %v3292_v54, %v3276_v48  ;;  %v3288_v5 = vld [vmem:[#allocation15 + $0x70] sm:$0xff] }
 0x742   :  { %v4458_v54 = vld [vmem:[#allocation10 + $0x998] sm:$0xff] }
 0x743   :  { %9949 = vmatpush3.bf16.msra.mxu0 %v9948_v19  ;;  %v2665_v19 = vld [vmem:[%s13170_s6 + $0x730] sm:$0xff] }
 0x744   :  { %9951 = vmatprep.subr.bf16.mxu0 %v9950_v20  ;;  %v2666_v20 = vld [vmem:[%s13170_s6 + $0x738] sm:$0xff] }
 0x745   :  { %v10016_v41 = vpack.c.bf16 %v2666_v20, %v2665_v19 }
 0x747   :  { %9953 = vmatpush3.bf16.msra.mxu0 %v9952_v25  ;;  %v2667_v25 = vld [vmem:[%s13170_s6 + $0x740] sm:$0xff] }
 0x748   :  { %9955 = vmatprep.subr.bf16.mxu0 %v9954_v26  ;;  %v2668_v26 = vld [vmem:[%s13170_s6 + $0x748] sm:$0xff] }
 0x749   :  { %v10020_v31 = vpack.c.bf16 %v2668_v26, %v2667_v25 }
 0x74b   :  { %9957 = vmatpush3.bf16.msra.mxu0 %v9956_v35  ;;  %v2669_v35 = vld [vmem:[%s13170_s6 + $0x750] sm:$0xff] }
 0x74c   :  { %9959 = vmatprep.subr.bf16.mxu0 %v9958_v36  ;;  %v2670_v36 = vld [vmem:[%s13170_s6 + $0x758] sm:$0xff] }
 0x74d   :  { %v10024_v62 = vpack.c.bf16 %v2670_v36, %v2669_v35 }
 0x74f   :  { %9961 = vmatpush3.bf16.msra.mxu0 %v9960_v39  ;;  %v2671_v39 = vld [vmem:[%s13170_s6 + $0x760] sm:$0xff] }
 0x750   :  { %9963 = vmatprep.subr.bf16.mxu0 %v9962_v40  ;;  %v2672_v40 = vld [vmem:[%s13170_s6 + $0x768] sm:$0xff] }
 0x751   :  { %v10028_v45 = vpack.c.bf16 %v2672_v40, %v2671_v39  ;;  %v3293_v39 = vld [vmem:[#allocation15 + $0x98] sm:$0xff] }
 0x752   :  { %v3285_v40 = vld [vmem:[#allocation15 + $0x58] sm:$0xff] }
 0x753   :  { %9965 = vmatpush3.bf16.msra.mxu0 %v9964_v50  ;;  %v2673_v50 = vld [vmem:[%s13170_s6 + $0x770] sm:$0xff] }
 0x754   :  { %9967 = vmatprep.subr.bf16.mxu0 %v9966_v52  ;;  %v2674_v52 = vld [vmem:[%s13170_s6 + $0x778] sm:$0xff] }
 0x755   :  { %v10032_v53 = vpack.c.bf16 %v2674_v52, %v2673_v50 }
 0x757   :  { %9969 = vmatpush3.bf16.msra.mxu0 %v9968_v57 }
 0x758   :  { %10003 = vmatprep.subr.bf16.mxu0 %v10002_v58 }
 0x75a   :  { %3113 = vmatmul.mubr.f32.vlgmr.msra.gmra.mrb[46].mxu0 %v2429_v49  ;;  %v10048_v49 = vpack.c.bf16 %v3296_v9, %v3280_v8  ;;  %v3283_v8 = vld [vmem:[#allocation15 + $0x48] sm:$0xff] }
 0x75b   :  { %10005 = vmatpush3.bf16.msra.mxu0 %v10004_v3  ;;  %3252 = vmatprep.mubr.f32.mxu0 %v2434_v12  ;;  %v3290_v3 = vld [vmem:[#allocation15 + $0x80] sm:$0xff]  ;;  %v3299_v9 = vld [vmem:[#allocation15 + $0xc8] sm:$0xff] }
 0x75c   :  { %10007 = vmatprep.subr.bf16.mxu0 %v10006_v7  ;;  %v10036_v7 = vpack.c.bf16 %v3290_v3, %v3274_v2  ;;  %v3278_v2 = vld [vmem:[#allocation15 + $0x20] sm:$0xff] }
 0x75e   :  { %10037 = vmatpush1.bf16.msra.mxu1 %v10036_v7  ;;  %v3304_v7 = vld [vmem:[#allocation15 + $0xf0] sm:$0xff] }
 0x75f   :  { %10009 = vmatpush3.bf16.msra.mxu0 %v10008_v13 }
 0x760   :  { %10011 = vmatprep.subr.bf16.mxu0 %v10010_v11 }
 0x763   :  { %10013 = vmatpush3.bf16.msra.mxu0 %v10012_v17 }
 0x764   :  { %10015 = vmatprep.subr.bf16.mxu0 %v10014_v18 }
 0x767   :  { %10017 = vmatpush3.bf16.msra.mxu0 %v10016_v41 }
 0x768   :  { %10019 = vmatprep.subr.bf16.mxu0 %v10018_v24 }
 0x76b   :  { %10021 = vmatpush3.bf16.msra.mxu0 %v10020_v31 }
 0x76c   :  { %10023 = vmatprep.subr.bf16.mxu0 %v10022_v34 }
 0x76f   :  { %10025 = vmatpush3.bf16.msra.mxu0 %v10024_v62 }
 0x770   :  { %10027 = vmatprep.subr.bf16.mxu0 %v10026_v33  ;;  %v3277_v33 = vld [vmem:[#allocation15 + $0x18] sm:$0xff] }
 0x771   :  { %v10038_v42 = vpack.c.bf16 %v3293_v39, %v3277_v33  ;;  %v4111_v39 = vld [vmem:[#allocation10 + $0x860] sm:$0xff] }
 0x773   :  { %10029 = vmatpush3.bf16.msra.mxu0 %v10028_v45  ;;  %v10054_v45 = vpack.c.bf16 %v3301_v43, %v3285_v40  ;;  %10039 = vmatprep.subr.bf16.mxu1 %v10038_v42  ;;  %v4112_v40 = vld [vmem:[#allocation10 + $0x868] sm:$0xff]  ;;  %v4113_v43 = vld [vmem:[#allocation10 + $0x870] sm:$0xff] }
 0x774   :  { %10031 = vmatprep.subr.bf16.mxu0 %v10030_v44  ;;  %v10085_v42 = vpack.c.bf16 %v4112_v40, %v4111_v39 }
 0x777   :  { %10033 = vmatpush3.bf16.msra.mxu0 %v10032_v53 }
 0x778   :  { %10047 = vmatprep.subr.bf16.mxu0 %v10046_v51 }
 0x77a   :  { %3253 = vmatmul.mubr.f32.vlgmr.msra.gmra.mrb[48].mxu0 %v2433_v55  ;;  %v3284_v55 = vld [vmem:[#allocation15 + $0x50] sm:$0xff] }
 0x77b   :  { %3670 = vmatprep.mubr.f32.mxu0 %v11017_v1  ;;  %10049 = vmatpush1.bf16.msra.mxu0 %v10048_v49  ;;  %v10044_v49 = vpack.c.bf16 %v3294_v46, %v3278_v2 }
 0x77c   :  { %10055 = vmatprep.subr.bf16.mxu0 %v10054_v45  ;;  %v4114_v45 = vld [vmem:[#allocation10 + $0x878] sm:$0xff] }
 0x79a   :  { %v3263_v44 = vpop.permute.xlu0 %3262 }
 0x7cd   :  { %v7043_v56 = vpop.f32.mrb[40].mxu0 }
 0x7ce   :  { %v7044_v57 = vpop.f32.mrb[41].mxu0 }
 0x7cf   :  { %v7045_v58 = vadd.f32 %v7044_v57, %v7043_v56  ;;  %v7113_v59 = vpop.f32.mrb[40].mxu1  ;;  %v3300_v56 = vld [vmem:[#allocation15 + $0xd0] sm:$0xff]  ;;  %v3279_v57 = vld [vmem:[#allocation15 + $0x28] sm:$0xff] }
 0x7d0   :  { %v7114_v6 = vpop.f32.mrb[41].mxu1  ;;  %v10056_v63 = vpack.c.bf16 %v3300_v56, %v3284_v55  ;;  %v4459_v56 = vld [vmem:[#allocation10 + $0x9a0] sm:$0xff] }
 0x7d1   :  { %v7115_v60 = vadd.f32 %v7114_v6, %v7113_v59  ;;  %v2765_v13 = vadd.f32 %v7045_v58, %v6616_v21  ;;  %v3295_v58 = vld [vmem:[#allocation15 + $0xa8] sm:$0xff]  ;;  %v3289_v59 = vld [vmem:[#allocation15 + $0x78] sm:$0xff]  ;;  %v10064_v21 = vpack.c.bf16 %v3304_v7, %v3288_v5  ;;  %v3312_v5 = vsub.s32 0, %v11269_v28  ;;  %v3306_v7 = vld [vmem:[#allocation16] sm:$0xff] }
 0x7d2   :  { %v3305_v6 = vld [vmem:[#allocation15 + $0xf8] sm:$0xff]  ;;  %v10042_v3 = vpack.c.bf16 %v3295_v58, %v3279_v57  ;;  %v4460_v57 = vld [vmem:[#allocation10 + $0x9a8] sm:$0xff] }
 0x7d3   :  { %v10062_v51 = vpack.c.bf16 %v3305_v6, %v3289_v59  ;;  %v10145_v58 = vpack.c.bf16 %v4460_v57, %v4459_v56  ;;  %v4461_v59 = vld [vmem:[#allocation10 + $0x9b0] sm:$0xff]  ;;  %v4462_v6 = vld [vmem:[#allocation10 + $0x9b8] sm:$0xff] }
 0x7ed   :  { %v7078_v10 = vpop.f32.mrb[42].mxu0 }
 0x7ee   :  { %v7079_v12 = vpop.f32.mrb[43].mxu0 }
 0x7ef   :  { %v7080_v11 = vadd.f32 %v7079_v12, %v7078_v10  ;;  %v7183_v14 = vpop.f32.mrb[42].mxu1  ;;  %v3282_v10 = vld [vmem:[#allocation15 + $0x40] sm:$0xff] }
 0x7f0   :  { %v7184_v15 = vpop.f32.mrb[43].mxu1  ;;  %v3298_v12 = vld [vmem:[#allocation15 + $0xc0] sm:$0xff] }
 0x7f1   :  { %v2835_v16 = vadd.f32 %v7080_v11, %v2765_v13  ;;  %v7185_v30 = vadd.f32 %v7184_v15, %v7183_v14  ;;  %v10050_v13 = vpack.c.bf16 %v3299_v9, %v3283_v8  ;;  %v3287_v11 = vld [vmem:[#allocation15 + $0x68] sm:$0xff]  ;;  %v10052_v15 = vpack.c.bf16 %v3298_v12, %v3282_v10 }
 0x7f2   :  { %v3303_v14 = vld [vmem:[#allocation15 + $0xe8] sm:$0xff]  ;;  %v3336_v8 = vsub.s32 6, %v11269_v28  ;;  %v3340_v9 = vsub.s32 7, %v11269_v28  ;;  %v3324_v10 = vsub.s32 3, %v11269_v28 }
 0x7f3   :  { %v2905_v17 = vadd.f32 %v7115_v60, %v2835_v16  ;;  %v10058_v16 = vpack.c.bf16 %v3303_v14, %v3287_v11  ;;  %v3328_v11 = vsub.s32 4, %v11269_v28  ;;  %v3332_v14 = vsub.s32 5, %v11269_v28 }
 0x80d   :  { %v7148_v18 = vpop.f32.mrb[44].mxu0 }
 0x80e   :  { %v7149_v19 = vpop.f32.mrb[45].mxu0 }
 0x80f   :  { %v7150_v20 = vadd.f32 %v7149_v19, %v7148_v18  ;;  %v7253_v22 = vpop.f32.mrb[44].mxu1  ;;  %v4099_v19 = vld [vmem:[#allocation10 + $0x800] sm:$0xff] }
 0x810   :  { %v7254_v23 = vpop.f32.mrb[45].mxu1 }
 0x811   :  { %v2975_v41 = vadd.f32 %v7150_v20, %v2905_v17  ;;  %v7255_v24 = vadd.f32 %v7254_v23, %v7253_v22  ;;  %v3302_v17 = vld [vmem:[#allocation15 + $0xe0] sm:$0xff]  ;;  %v4101_v23 = vld [vmem:[#allocation10 + $0x810] sm:$0xff] }
 0x812   :  { %v4100_v20 = vld [vmem:[#allocation10 + $0x808] sm:$0xff] }
 0x813   :  { %v3045_v25 = vadd.f32 %v7185_v30, %v2975_v41  ;;  %v3286_v30 = vld [vmem:[#allocation15 + $0x60] sm:$0xff]  ;;  %v10067_v22 = vpack.c.bf16 %v4100_v20, %v4099_v19  ;;  %v4102_v41 = vld [vmem:[#allocation10 + $0x818] sm:$0xff] }
 0x814   :  { %v10060_v18 = vpack.c.bf16 %v3302_v17, %v3286_v30  ;;  %v3341_v17 = vrot.slane %v3306_v7, %v3340_v9 }
 0x82d   :  { %v7218_v26 = vpop.f32.mrb[46].mxu0 }
 0x82e   :  { %v7219_v27 = vpop.f32.mrb[47].mxu0 }
 0x82f   :  { %v7220_v29 = vadd.f32 %v7219_v27, %v7218_v26  ;;  %v4104_v26 = vld [vmem:[#allocation10 + $0x828] sm:$0xff] }
 0x831   :  { %v3115_v31 = vadd.f32 %v7220_v29, %v3045_v25  ;;  %v4103_v25 = vld [vmem:[#allocation10 + $0x820] sm:$0xff]  ;;  %v4105_v29 = vld [vmem:[#allocation10 + $0x830] sm:$0xff] }
 0x832   :  { %v10073_v27 = vpack.c.bf16 %v4104_v26, %v4103_v25  ;;  %v3329_v26 = vrot.slane %v3306_v7, %v3328_v11 }
 0x833   :  { %v3185_v34 = vadd.f32 %v7255_v24, %v3115_v31  ;;  %v10070_v24 = vpack.c.bf16 %v4102_v41, %v4101_v23  ;;  %v4106_v31 = vld [vmem:[#allocation10 + $0x838] sm:$0xff]  ;;  %v3325_v41 = vrot.slane %v3306_v7, %v3324_v10 }
 0x84d   :  { %v7288_v35 = vpop.f32.mrb[48].mxu0 }
 0x84e   :  { %v7289_v36 = vpop.f32.mrb[49].mxu0 }
 0x84f   :  { %v7290_v37 = vadd.f32 %v7289_v36, %v7288_v35  ;;  %v4107_v35 = vld [vmem:[#allocation10 + $0x840] sm:$0xff]  ;;  %v4108_v36 = vld [vmem:[#allocation10 + $0x848] sm:$0xff] }
 0x851   :  { %v3255_v38 = vadd.f32 %v7290_v37, %v3185_v34  ;;  %v10076_v34 = vpack.c.bf16 %v4106_v31, %v4105_v29  ;;  %v10079_v37 = vpack.c.bf16 %v4108_v36, %v4107_v35 }
 0x853   :  { %v3258_v62 = vmul.f32 1.442695, %v3255_v38 }
 0x855   :  { %10806 = vpow2.f32 %v3258_v62  ;;  %v4110_v62 = vld [vmem:[#allocation10 + $0x858] sm:$0xff] }
 0x85f   :  { %v10807_v50 = vpop.eup %10806 }
 0x860   :  { %v3271_v52 = vsel %vm193_vm2, %v3255_v38, %v10807_v50  ;;  %v3265_v53 = vmul.f32 %v10807_v50, %v3263_v44  ;;  %v10088_v44 = vpack.c.bf16 %v4114_v45, %v4113_v43  ;;  %v4455_v50 = vld [vmem:[#allocation10 + $0x980] sm:$0xff] }
 0x861   :  { %3273 = vst.msk [vmem:[%s13175_s11] sm:$0x3] %vm3272_vm6, %v3271_v52  ;;  %v4456_v52 = vld [vmem:[#allocation10 + $0x988] sm:$0xff] }
 0x862   :  { %3267 = vrot.lane.b32.xlu0 %v3265_v53, %s11019_s25  ;;  %v4457_v53 = vld [vmem:[#allocation10 + $0x990] sm:$0xff]  ;;  %v10139_v48 = vpack.c.bf16 %v4456_v52, %v4455_v50 }
 0x863   :  { %v10142_v55 = vpack.c.bf16 %v4458_v54, %v4457_v53  ;;  %v12495_v52 = vld [vmem:[#allocation10 + $0x790] sm:$0xff]  ;;  %v12497_v53 = vld [vmem:[#allocation10 + $0x798] sm:$0xff] }
 0x8d4   :  { %v3268_v60 = vpop.permute.xlu0 %3267 }
 0x8d5   :  { %v3270_v4 = vadd.f32 %v3268_v60, %v3255_v38  ;;  %v4109_v38 = vld [vmem:[#allocation10 + $0x850] sm:$0xff]  ;;  %v10148_v60 = vpack.c.bf16 %v4462_v6, %v4461_v59 }
 0x8d6   :  { %v10082_v33 = vpack.c.bf16 %v4110_v62, %v4109_v38  ;;  %v12489_v38 = vld [vmem:[#allocation10 + $0x780] sm:$0xff]  ;;  %v12491_v62 = vld [vmem:[#allocation10 + $0x788] sm:$0xff] }
 0x8d7   :  { %6617 = vmatmul.mubr.msk.f32.vlgmr.msra.gmra.mrb[46].mxu1 %vm193_vm2, %v3270_v4  ;;  %6620 = vmatmul.mubr.msk.f32.vlgmr.msra.gmra.mrb[50].mxu0 %vm193_vm2, %v3270_v4  ;;  %v10091_v56 = vpack.c.bf16 %v12491_v62, %v12489_v38 }
 0x8d8   :  { %10041 = vmatpush1.bf16.msra.mxu1 %v10040_v61  ;;  %10057 = vmatpush1.bf16.msra.mxu0 %v10056_v63  ;;  %v4463_v61 = vld [vmem:[#allocation10 + $0x9c0] sm:$0xff]  ;;  %v4464_v63 = vld [vmem:[#allocation10 + $0x9c8] sm:$0xff] }
 0x8d9   :  { %3528 = vmatprep.mubr.f32.mxu1 %v11017_v1  ;;  %10043 = vmatprep.subr.bf16.mxu1 %v10042_v3  ;;  %v10151_v2 = vpack.c.bf16 %v4464_v63, %v4463_v61  ;;  %v4466_v3 = vld [vmem:[#allocation10 + $0x9d8] sm:$0xff] }
 0x8da   :  { %3812 = vmatprep.mubr.f32.mxu0 %v11017_v1  ;;  %10063 = vmatprep.subr.bf16.mxu0 %v10062_v51  ;;  %v3316_v51 = vsub.s32 1, %v11269_v28 }
 0x8db   :  { %6618 = vmatmul.mubr.msk.f32.vlgmr.msra.gmra.mrb[48].mxu1 %vm193_vm2, %v3270_v4  ;;  %6622 = vmatmul.mubr.msk.f32.vlgmr.msra.gmra.mrb[52].mxu0 %vm193_vm2, %v3270_v4 }
 0x8dc   :  { %10045 = vmatpush1.bf16.msra.mxu1 %v10044_v49  ;;  %10065 = vmatpush1.bf16.msra.mxu0 %v10064_v21  ;;  %v3320_v49 = vsub.s32 2, %v11269_v28  ;;  %v3313_v21 = vrot.slane %v3306_v7, %v3312_v5  ;;  %v3317_v12 = vrot.slane %v3306_v7, %v3316_v51  ;;  %v3333_v28 = vrot.slane %v3306_v7, %v3332_v14 }
 0x8dd   :  { %3599 = vmatprep.mubr.f32.mxu1 %v11017_v1  ;;  %3954 = vmatprep.mubr.f32.mxu0 %v11017_v1 }
 0x8de   :  { %10051 = vmatprep.subr.bf16.mxu1 %v10050_v13  ;;  %10138 = vmatprep.subr.bf16.mxu0 %v11015_v0  ;;  %v3307_v13 = vld [vmem:[#allocation16 + $0x8] sm:$0xff] }
 0x8df   :  { %6619 = vmatmul.mubr.msk.f32.vlgmr.msra.gmra.mrb[50].mxu1 %vm193_vm2, %v3270_v4  ;;  %6624 = vmatmul.mubr.msk.f32.vlgmr.msra.gmra.mrb[54].mxu0 %vm193_vm2, %v3270_v4  ;;  %v3353_v23 = vrot.slane %v3307_v13, %v3320_v49  ;;  %v12487_v36 = vrot.slane %v3307_v13, %v3340_v9  ;;  %v3349_v43 = vrot.slane %v3307_v13, %v3316_v51 }
 0x8e0   :  { %10053 = vmatpush1.bf16.msra.mxu1 %v10052_v15  ;;  %3741 = vmatprep.mubr.f32.mxu1 %v11017_v1  ;;  %v3361_v50 = vrot.slane %v3307_v13, %v3328_v11  ;;  %v3365_v61 = vrot.slane %v3307_v13, %v3332_v14 }
 0x8e1   :  { %10059 = vmatprep.subr.bf16.mxu1 %v10058_v16  ;;  %8643 = vmatprep.mubr.msk.f32.mxu0 %vm11016_vm1, %v11017_v1  ;;  %v3337_v16 = vrot.slane %v3306_v7, %v3336_v8 }
 0x8e2   :  { %10140 = vmatpush3.bf16.msra.mxu0 %v10139_v48 }
 0x8e3   :  { %6621 = vmatmul.mubr.msk.f32.vlgmr.msra.gmra.mrb[52].mxu1 %vm193_vm2, %v3270_v4  ;;  %10141 = vmatprep.subr.bf16.mxu0 %v11015_v0 }
 0x8e4   :  { %10061 = vmatpush1.bf16.msra.mxu1 %v10060_v18  ;;  %3883 = vmatprep.mubr.f32.mxu1 %v11017_v1  ;;  %v3321_v18 = vrot.slane %v3306_v7, %v3320_v49 }
 0x8e5   :  { %10066 = vmatprep.subr.bf16.mxu1 %v11015_v0 }
 0x8e6   :  { %10143 = vmatpush3.bf16.msra.mxu0 %v10142_v55 }
 0x8e7   :  { %6623 = vmatmul.mubr.msk.f32.vlgmr.msra.gmra.mrb[54].mxu1 %vm193_vm2, %v3270_v4  ;;  %10144 = vmatprep.subr.bf16.mxu0 %v11015_v0  ;;  %v4465_v4 = vld [vmem:[#allocation10 + $0x9d0] sm:$0xff] }
 0x8e8   :  { %10068 = vmatpush3.bf16.msra.mxu1 %v10067_v22  ;;  %8502 = vmatprep.mubr.msk.f32.mxu1 %vm11016_vm1, %v11017_v1  ;;  %v10154_v46 = vpack.c.bf16 %v4466_v3, %v4465_v4 }
 0x8e9   :  { %10069 = vmatprep.subr.bf16.mxu1 %v11015_v0 }
 0x8ea   :  { %10146 = vmatpush3.bf16.msra.mxu0 %v10145_v58 }
 0x8eb   :  { %10147 = vmatprep.subr.bf16.mxu0 %v11015_v0 }
 0x8ec   :  { %10071 = vmatpush3.bf16.msra.mxu1 %v10070_v24  ;;  %v3357_v24 = vrot.slane %v3307_v13, %v3324_v10 }
 0x8ed   :  { %10072 = vmatprep.subr.bf16.mxu1 %v11015_v0 }
 0x8ee   :  { %10149 = vmatpush3.bf16.msra.mxu0 %v10148_v60 }
 0x8ef   :  { %10150 = vmatprep.subr.bf16.mxu0 %v11015_v0 }
 0x8f0   :  { %10074 = vmatpush3.bf16.msra.mxu1 %v10073_v27  ;;  %v12485_v27 = vrot.slane %v3307_v13, %v3336_v8 }
 0x8f1   :  { %10075 = vmatprep.subr.bf16.mxu1 %v11015_v0 }
 0x8f2   :  { %10152 = vmatpush3.bf16.msra.mxu0 %v10151_v2 }
 0x8f3   :  { %10153 = vmatprep.subr.bf16.mxu0 %v11015_v0 }
 0x8f4   :  { %10077 = vmatpush3.bf16.msra.mxu1 %v10076_v34 }
 0x8f5   :  { %10078 = vmatprep.subr.bf16.mxu1 %v11015_v0 }
 0x8f6   :  { %10155 = vmatpush3.bf16.msra.mxu0 %v10154_v46 }
 0x8f7   :  { %10156 = vmatprep.subr.bf16.mxu0 %v11015_v0 }
 0x8f8   :  { %10080 = vmatpush3.bf16.msra.mxu1 %v10079_v37  ;;  %v3345_v37 = vrot.slane %v3307_v13, %v3312_v5  ;;  %v10094_v5 = vpack.c.bf16 %v12497_v53, %v12495_v52  ;;  %v4090_v53 = vld [vmem:[#allocation10 + $0x7c0] sm:$0xff] }
 0x8f9   :  { %10081 = vmatprep.subr.bf16.mxu1 %v11015_v0 }
 0x8fc   :  { %10083 = vmatpush3.bf16.msra.mxu1 %v10082_v33 }
 0x8fd   :  { %10084 = vmatprep.subr.bf16.mxu1 %v11015_v0 }
 0x900   :  { %10086 = vmatpush3.bf16.msra.mxu1 %v10085_v42 }
 0x901   :  { %10087 = vmatprep.subr.bf16.mxu1 %v11015_v0 }
 0x904   :  { %10089 = vmatpush3.bf16.msra.mxu1 %v10088_v44 }
 0x905   :  { %10090 = vmatprep.subr.bf16.mxu1 %v11015_v0 }
 0x9aa   :  { %v3459_v15 = vpop.f32.mrb[46].mxu1  ;;  %v3672_v30 = vpop.f32.mrb[50].mxu0 }
 0x9ab   :  { %v3460_v19 = vadd.f32 %v3459_v15, %v3313_v21  ;;  %v3461_v20 = vpop.f32.mrb[47].mxu1  ;;  %v3674_v22 = vpop.f32.mrb[51].mxu0  ;;  %v3673_v48 = vadd.f32 %v3672_v30, %v3337_v16 }
 0x9ac   :  { %v3462_v25 = vadd.f32 %v3461_v20, %v3317_v12  ;;  %v3675_v57 = vadd.f32 %v3674_v22, %v3341_v17 }
 0x9ad   :  { %v4026_v29 = vrot.slane %v3460_v19, 1  ;;  %v3977_v49 = vrot.slane %v3673_v48, 2  ;;  %v4036_v21 = vrot.slane %v3673_v48, 3 }
 0x9ae   :  { %v3962_v31 = vrot.slane %v3462_v25, 7  ;;  %v3530_v34 = vpop.f32.mrb[48].mxu1  ;;  %v3814_v35 = vpop.f32.mrb[52].mxu0  ;;  %v3980_v13 = vrot.slane %v3675_v57, 1  ;;  %v4038_v30 = vrot.slane %v3675_v57, 2 }
 0x9af   :  { %v4055_v33 = vsel %vm2418_vm5, %v4026_v29, %v3462_v25  ;;  %v3531_v39 = vadd.f32 %v3530_v34, %v3321_v18  ;;  %v3532_v40 = vpop.f32.mrb[49].mxu1  ;;  %v3816_v42 = vpop.f32.mrb[53].mxu0  ;;  %v3815_v7 = vadd.f32 %v3814_v35, %v3353_v23 }
 0x9b0   :  { %v4003_v45 = vsel %vm2418_vm5, %v3460_v19, %v3962_v31  ;;  %v3533_v44 = vadd.f32 %v3532_v40, %v3325_v41  ;;  %v3817_v11 = vadd.f32 %v3816_v42, %v3357_v24 }
 0x9b1   :  { %v3965_v54 = vrot.slane %v3531_v39, 6  ;;  %v4028_v55 = vrot.slane %v3531_v39, 7  ;;  %v3986_v22 = vrot.slane %v3815_v7, 6 }
 0x9b2   :  { %v3968_v58 = vrot.slane %v3533_v44, 5  ;;  %v4030_v59 = vrot.slane %v3533_v44, 6  ;;  %v3601_v6 = vpop.f32.mrb[50].mxu1  ;;  %v3956_v60 = vpop.f32.mrb[54].mxu0  ;;  %v4045_v31 = vrot.slane %v3817_v11, 6  ;;  %v3989_v44 = vrot.slane %v3817_v11, 5 }
 0x9b3   :  { %v4005_v63 = vsel %vm4004_vm7, %v4003_v45, %v3965_v54  ;;  %v4056_v2 = vsel %vm4004_vm7, %v4055_v33, %v4028_v55  ;;  %v3602_v4 = vadd.f32 %v3601_v6, %v3329_v26  ;;  %v3603_v3 = vpop.f32.mrb[51].mxu1  ;;  %v3958_v46 = vpop.f32.mrb[55].mxu0  ;;  %v4043_v26 = vrot.slane %v3815_v7, 7  ;;  %v4087_v45 = vld [vmem:[#allocation10 + $0x7a8] sm:$0xff]  ;;  %v4092_v11 = vld [vmem:[#allocation10 + $0x7d0] sm:$0xff] }
 0x9b4   :  { %v4007_v51 = vsel %vm4006_vm8, %v4005_v63, %v3968_v58  ;;  %v4057_v8 = vsel %vm4006_vm8, %v4056_v2, %v4030_v59  ;;  %v3604_v9 = vadd.f32 %v3603_v3, %v3333_v28  ;;  %v3957_v62 = vadd.f32 %v3956_v60, %v12485_v27 }
 0x9b5   :  { %v3971_v10 = vrot.slane %v3602_v4, 4  ;;  %v4032_v12 = vrot.slane %v3602_v4, 5  ;;  %v3959_v33 = vadd.f32 %v3958_v46, %v12487_v36 }
 0x9b6   :  { %v3974_v14 = vrot.slane %v3604_v9, 3  ;;  %v4034_v15 = vrot.slane %v3604_v9, 4  ;;  %v3743_v16 = vpop.f32.mrb[52].mxu1  ;;  %v3998_v63 = vrot.slane %v3957_v62, 2  ;;  %v4051_v2 = vrot.slane %v3957_v62, 3  ;;  %v4088_v9 = vld [vmem:[#allocation10 + $0x7b0] sm:$0xff] }
 0x9b7   :  { %v4009_v17 = vsel %vm4008_vm9, %v4007_v51, %v3971_v10  ;;  %v4058_v18 = vsel %vm4008_vm9, %v4057_v8, %v4032_v12  ;;  %v3744_v19 = vadd.f32 %v3743_v16, %v3345_v37  ;;  %v3745_v20 = vpop.f32.mrb[53].mxu1  ;;  %v4001_v4 = vrot.slane %v3959_v33, 1 }
 0x9b8   :  { %v4011_v23 = vsel %vm4010_vm10, %v4009_v17, %v3974_v14  ;;  %v4059_v41 = vsel %vm4010_vm10, %v4058_v18, %v4034_v15  ;;  %v3746_v25 = vadd.f32 %v3745_v20, %v3349_v43  ;;  %v4086_v43 = vld [vmem:[#allocation10 + $0x7a0] sm:$0xff]  ;;  %v4053_v3 = vrot.slane %v3959_v33, 2  ;;  %v4093_v14 = vld [vmem:[#allocation10 + $0x7d8] sm:$0xff]  ;;  %v4095_v17 = vld [vmem:[#allocation10 + $0x7e8] sm:$0xff] }
 0x9b9   :  { %v4013_v29 = vsel %vm4012_vm11, %v4011_v23, %v3977_v49  ;;  %v4060_v24 = vsel %vm4012_vm11, %v4059_v41, %v4036_v21  ;;  %v4041_v28 = vrot.slane %v3744_v19, 1  ;;  %v10097_v60 = vpack.c.bf16 %v4087_v45, %v4086_v43  ;;  %v4089_v49 = vld [vmem:[#allocation10 + $0x7b8] sm:$0xff]  ;;  %v4096_v20 = vld [vmem:[#allocation10 + $0x7f0] sm:$0xff]  ;;  %v4301_v41 = vld [vmem:[#allocation10 + $0x880] sm:$0xff] }
 0x9ba   :  { %v12514_v34 = vsel %vm4014_vm12, %v4013_v29, %v3980_v13  ;;  %v4061_v35 = vsel %vm4014_vm12, %v4060_v24, %v4038_v30  ;;  %v3983_v37 = vrot.slane %v3746_v25, 7  ;;  %v3885_v38 = vpop.f32.mrb[54].mxu1  ;;  %v10100_v52 = vpack.c.bf16 %v4089_v49, %v4088_v9  ;;  %v4094_v30 = vld [vmem:[#allocation10 + $0x7e0] sm:$0xff]  ;;  %v4303_v29 = vld [vmem:[#allocation10 + $0x890] sm:$0xff]  ;;  %v4304_v24 = vld [vmem:[#allocation10 + $0x898] sm:$0xff] }
 0x9bb   :  { %4023 = vst [vmem:[#allocation3 + $0x1] sm:$0xff] %v12514_v34  ;;  %4069 = vst [vmem:[#allocation3 + $0x13] sm:$0xff] %v4061_v35  ;;  %v4062_v39 = vsel %vm2418_vm5, %v4041_v28, %v3746_v25  ;;  %v3886_v40 = vadd.f32 %v3885_v38, %v3361_v50  ;;  %v3887_v42 = vpop.f32.mrb[55].mxu1  ;;  %8503 = vmatmul.mubr.f32.vlgmr.msra.gmra.mrb[56].mxu1 %v12514_v34  ;;  %v10106_v16 = vpack.c.bf16 %v4093_v14, %v4092_v11  ;;  %v4302_v25 = vld [vmem:[#allocation10 + $0x888] sm:$0xff]  ;;  %v4305_v35 = vld [vmem:[#allocation10 + $0x8a0] sm:$0xff] }
 0x9bc   :  { %v4016_v48 = vsel %vm2418_vm5, %v3744_v19, %v3983_v37  ;;  %v4063_v54 = vsel %vm4004_vm7, %v4062_v39, %v4043_v26  ;;  %v3888_v55 = vadd.f32 %v3887_v42, %v3365_v61  ;;  %10092 = vmatpush3.bf16.msra.mxu1 %v10091_v56  ;;  %8505 = vmatprep.mubr.msk.f32.mxu1 %vm11016_vm1, %v11017_v1  ;;  %v4306_v37 = vld [vmem:[#allocation10 + $0x8a8] sm:$0xff]  ;;  %v4307_v33 = vld [vmem:[#allocation10 + $0x8b0] sm:$0xff]  ;;  %v4308_v39 = vld [vmem:[#allocation10 + $0x8b8] sm:$0xff] }
 0x9bd   :  { %v4017_v27 = vsel %vm4004_vm7, %v4016_v48, %v3986_v22  ;;  %v3992_v36 = vrot.slane %v3886_v40, 4  ;;  %v4047_v57 = vrot.slane %v3886_v40, 5  ;;  %v4064_v50 = vsel %vm4006_vm8, %v4063_v54, %v4045_v31  ;;  %10093 = vmatprep.subr.bf16.mxu1 %v11015_v0  ;;  %v4097_v22 = vld [vmem:[#allocation10 + $0x7f8] sm:$0xff]  ;;  %v4309_v43 = vld [vmem:[#allocation10 + $0x8c0] sm:$0xff]  ;;  %v4310_v45 = vld [vmem:[#allocation10 + $0x8c8] sm:$0xff] }
 0x9be   :  { %v4018_v58 = vsel %vm4006_vm8, %v4017_v27, %v3989_v44  ;;  %v3995_v59 = vrot.slane %v3888_v55, 3  ;;  %v4049_v6 = vrot.slane %v3888_v55, 4  ;;  %v10109_v19 = vpack.c.bf16 %v4095_v17, %v4094_v30  ;;  %v4311_v54 = vld [vmem:[#allocation10 + $0x8d0] sm:$0xff]  ;;  %v4312_v55 = vld [vmem:[#allocation10 + $0x8d8] sm:$0xff]  ;;  %v4816_v49 = vld [vmem:[#allocation10 + $0xb00] sm:$0xff] }
 0x9bf   :  { %v4019_v56 = vsel %vm4008_vm9, %v4018_v58, %v3992_v36  ;;  %v4065_v61 = vsel %vm4008_vm9, %v4064_v50, %v4047_v57  ;;  %v10112_v23 = vpack.c.bf16 %v4097_v22, %v4096_v20  ;;  %v10115_v26 = vpack.c.bf16 %v4302_v25, %v4301_v41  ;;  %v4313_v57 = vld [vmem:[#allocation10 + $0x8e0] sm:$0xff]  ;;  %v4314_v50 = vld [vmem:[#allocation10 + $0x8e8] sm:$0xff]  ;;  %v4822_v30 = vld [vmem:[#allocation10 + $0xb30] sm:$0xff] }
 0x9c0   :  { %v4020_v46 = vsel %vm4010_vm10, %v4019_v56, %v3995_v59  ;;  %v4066_v7 = vsel %vm4010_vm10, %v4065_v61, %v4049_v6  ;;  %10095 = vmatpush3.bf16.msra.mxu1 %v10094_v5  ;;  %v4091_v5 = vld [vmem:[#allocation10 + $0x7c8] sm:$0xff]  ;;  %v10118_v31 = vpack.c.bf16 %v4304_v24, %v4303_v29  ;;  %v10121_v62 = vpack.c.bf16 %v4306_v37, %v4305_v35  ;;  %v4315_v59 = vld [vmem:[#allocation10 + $0x8f0] sm:$0xff]  ;;  %v4316_v6 = vld [vmem:[#allocation10 + $0x8f8] sm:$0xff] }
 0x9c1   :  { %v4021_v51 = vsel %vm4012_vm11, %v4020_v46, %v3998_v63  ;;  %v4067_v8 = vsel %vm4012_vm11, %v4066_v7, %v4051_v2  ;;  %10096 = vmatprep.subr.bf16.mxu1 %v11015_v0  ;;  %v10103_v13 = vpack.c.bf16 %v4091_v5, %v4090_v53  ;;  %v10124_v42 = vpack.c.bf16 %v4308_v39, %v4307_v33  ;;  %v4468_v46 = vld [vmem:[#allocation10 + $0x9e8] sm:$0xff]  ;;  %v4819_v5 = vld [vmem:[#allocation10 + $0xb18] sm:$0xff]  ;;  %v4820_v11 = vld [vmem:[#allocation10 + $0xb20] sm:$0xff] }
 0x9c2   :  { %v12541_v21 = vsel %vm4014_vm12, %v4021_v51, %v4001_v4  ;;  %v4068_v10 = vsel %vm4014_vm12, %v4067_v8, %v4053_v3  ;;  %v12549_v12 = vld [vmem:[#allocation3 + $0x11] sm:$0xff]  ;;  %v4076_v28 = vld [vmem:[#allocation3] sm:$0xff]  ;;  %v10127_v48 = vpack.c.bf16 %v4310_v45, %v4309_v43  ;;  %v10130_v36 = vpack.c.bf16 %v4312_v55, %v4311_v54 }
 0x9c3   :  { %4024 = vst [vmem:[#allocation3 + $0x9] sm:$0xff] %v12541_v21  ;;  %4070 = vst [vmem:[#allocation3 + $0x1b] sm:$0xff] %v4068_v10  ;;  %8506 = vmatmul.mubr.f32.gmra.mrb[58].mxu1 %v12541_v21  ;;  %v10133_v58 = vpack.c.bf16 %v4314_v50, %v4313_v57  ;;  %v4297_v56 = vld [vmem:[#allocation3 + $0x12] sm:$0xff]  ;;  %v4467_v3 = vld [vmem:[#allocation10 + $0x9e0] sm:$0xff] }
 0x9c4   :  { %10098 = vmatpush3.bf16.msra.mxu1 %v10097_v60  ;;  %8508 = vmatprep.mubr.msk.f32.mxu1 %vm11016_vm1, %v11017_v1  ;;  %v10136_v60 = vpack.c.bf16 %v4316_v6, %v4315_v59  ;;  %v10157_v7 = vpack.c.bf16 %v4468_v46, %v4467_v3  ;;  %v4469_v51 = vld [vmem:[#allocation10 + $0x9f0] sm:$0xff]  ;;  %v4470_v8 = vld [vmem:[#allocation10 + $0x9f8] sm:$0xff]  ;;  %v4817_v10 = vld [vmem:[#allocation10 + $0xb08] sm:$0xff] }
 0x9c5   :  { %10099 = vmatprep.subr.bf16.mxu1 %v11015_v0  ;;  %v10160_v9 = vpack.c.bf16 %v4470_v8, %v4469_v51  ;;  %v10211_v53 = vpack.c.bf16 %v4817_v10, %v4816_v49  ;;  %v4821_v14 = vld [vmem:[#allocation10 + $0xb28] sm:$0xff]  ;;  %v4823_v17 = vld [vmem:[#allocation10 + $0xb38] sm:$0xff]  ;;  %v4824_v20 = vld [vmem:[#allocation10 + $0xb40] sm:$0xff] }
 0x9c6   :  { %10158 = vmatpush3.bf16.msra.mxu0 %v10157_v7  ;;  %v4825_v22 = vld [vmem:[#allocation10 + $0xb48] sm:$0xff]  ;;  %v4433_v41 = vld [vmem:[#allocation10 + $0x900] sm:$0xff]  ;;  %v4436_v35 = vld [vmem:[#allocation10 + $0x918] sm:$0xff] }
 0x9c7   :  { %8509 = vmatmul.mubr.f32.gmra.mrb[60].mxu1 %v12549_v12  ;;  %10159 = vmatprep.subr.bf16.mxu0 %v11015_v0  ;;  %v4434_v25 = vld [vmem:[#allocation10 + $0x908] sm:$0xff]  ;;  %v4437_v39 = vld [vmem:[#allocation10 + $0x920] sm:$0xff]  ;;  %v4440_v54 = vld [vmem:[#allocation10 + $0x938] sm:$0xff] }
 0x9c8   :  { %10101 = vmatpush3.bf16.msra.mxu1 %v10100_v52  ;;  %8511 = vmatprep.mubr.msk.f32.mxu1 %vm11016_vm1, %v11017_v1  ;;  %v4818_v52 = vld [vmem:[#allocation10 + $0xb10] sm:$0xff]  ;;  %v10163_v29 = vpack.c.bf16 %v4434_v25, %v4433_v41  ;;  %v4442_v59 = vld [vmem:[#allocation10 + $0x948] sm:$0xff]  ;;  %v4445_v46 = vld [vmem:[#allocation10 + $0x960] sm:$0xff] }
 0x9c9   :  { %10102 = vmatprep.subr.bf16.mxu1 %v11015_v0  ;;  %v4446_v7 = vld [vmem:[#allocation10 + $0x968] sm:$0xff]  ;;  %v4447_v8 = vld [vmem:[#allocation10 + $0x970] sm:$0xff] }
 0x9ca   :  { %v12555_v15 = vld [vmem:[#allocation3 + $0x19] sm:$0xff]  ;;  %v12561_v18 = vld [vmem:[#allocation3 + $0x21] sm:$0x3]  ;;  %v4077_v38 = vld [vmem:[#allocation3 + $0x8] sm:$0xff]  ;;  %10161 = vmatpush3.bf16.msra.mxu0 %v10160_v9  ;;  %v10181_v51 = vpack.c.bf16 %v4446_v7, %v4445_v46 }
 0x9cb   :  { %8512 = vmatmul.mubr.f32.gmra.mrb[62].mxu1 %v12555_v15  ;;  %v4078_v40 = vld [vmem:[#allocation3 + $0x10] sm:$0xff]  ;;  %v4079_v44 = vld [vmem:[#allocation3 + $0x18] sm:$0xff]  ;;  %v4080_v27 = vld [vmem:[#allocation3 + $0x20] sm:$0x3]  ;;  %10162 = vmatprep.subr.bf16.mxu0 %v11015_v0 }
 0x9cc   :  { %10104 = vmatpush3.bf16.msra.mxu1 %v10103_v13  ;;  %8514 = vmatprep.mubr.msk.f32.mxu1 %vm11016_vm1, %v11017_v1  ;;  %v4295_v63 = vld [vmem:[#allocation3 + $0x2] sm:$0xff]  ;;  %v4296_v2 = vld [vmem:[#allocation3 + $0xa] sm:$0xff]  ;;  %v4298_v61 = vld [vmem:[#allocation3 + $0x1a] sm:$0xff]  ;;  %v10214_v13 = vpack.c.bf16 %v4819_v5, %v4818_v52 }
 0x9cd   :  { %10105 = vmatprep.subr.bf16.mxu1 %v11015_v0  ;;  %v4299_v4 = vld [vmem:[#allocation3 + $0x22] sm:$0x3]  ;;  %v4448_v9 = vld [vmem:[#allocation10 + $0x978] sm:$0xff] }
 0x9ce   :  { %v10184_v10 = vpack.c.bf16 %v4448_v9, %v4447_v8  ;;  %v4657_v52 = vld [vmem:[#allocation10 + $0xa00] sm:$0xff]  ;;  %v5178_v9 = vld [vmem:[#allocation10 + $0xcb0] sm:$0xff] }
 0x9cf   :  { %8515 = vmatmul.mubr.f32.gmra.mrb[64].mxu1 %v12561_v18  ;;  %v5176_v7 = vld [vmem:[#allocation10 + $0xca0] sm:$0xff] }
 0x9d0   :  { %10107 = vmatpush3.bf16.msra.mxu1 %v10106_v16  ;;  %8549 = vmatprep.mubr.msk.f32.mxu1 %vm11016_vm1, %v11017_v1  ;;  %v10217_v16 = vpack.c.bf16 %v4821_v14, %v4820_v11  ;;  %v4660_v11 = vld [vmem:[#allocation10 + $0xa18] sm:$0xff] }
 0x9d1   :  { %10108 = vmatprep.subr.bf16.mxu1 %v11015_v0 }
 0x9d4   :  { %10110 = vmatpush3.bf16.msra.mxu1 %v10109_v19  ;;  %v10220_v19 = vpack.c.bf16 %v4823_v17, %v4822_v30  ;;  %v4661_v30 = vld [vmem:[#allocation10 + $0xa20] sm:$0xff]  ;;  %v4662_v17 = vld [vmem:[#allocation10 + $0xa28] sm:$0xff] }
 0x9d5   :  { %10111 = vmatprep.subr.bf16.mxu1 %v11015_v0 }
 0x9d8   :  { %10113 = vmatpush3.bf16.msra.mxu1 %v10112_v23  ;;  %v10223_v23 = vpack.c.bf16 %v4825_v22, %v4824_v20  ;;  %v10193_v20 = vpack.c.bf16 %v4662_v17, %v4661_v30  ;;  %v4663_v22 = vld [vmem:[#allocation10 + $0xa30] sm:$0xff]  ;;  %v4800_v30 = vld [vmem:[#allocation10 + $0xa88] sm:$0xff] }
 0x9d9   :  { %10114 = vmatprep.subr.bf16.mxu1 %v11015_v0 }
 0x9db   :  { %8550 = vmatmul.mubr.f32.vlgmr.msra.gmra.mrb[56].mxu1 %v4076_v28 }
 0x9dc   :  { %10116 = vmatpush3.bf16.msra.mxu1 %v10115_v26  ;;  %8552 = vmatprep.mubr.msk.f32.mxu1 %vm11016_vm1, %v11017_v1 }
 0x9dd   :  { %10117 = vmatprep.subr.bf16.mxu1 %v11015_v0 }
 0x9df   :  { %8553 = vmatmul.mubr.f32.gmra.mrb[58].mxu1 %v4077_v38 }
 0x9e0   :  { %10119 = vmatpush3.bf16.msra.mxu1 %v10118_v31  ;;  %8555 = vmatprep.mubr.msk.f32.mxu1 %vm11016_vm1, %v11017_v1  ;;  %v4435_v31 = vld [vmem:[#allocation10 + $0x910] sm:$0xff] }
 0x9e1   :  { %10120 = vmatprep.subr.bf16.mxu1 %v11015_v0  ;;  %v10166_v38 = vpack.c.bf16 %v4436_v35, %v4435_v31  ;;  %v4667_v31 = vld [vmem:[#allocation10 + $0xa50] sm:$0xff]  ;;  %v4668_v35 = vld [vmem:[#allocation10 + $0xa58] sm:$0xff] }
 0x9e3   :  { %8556 = vmatmul.mubr.f32.gmra.mrb[60].mxu1 %v4078_v40  ;;  %v4438_v40 = vld [vmem:[#allocation10 + $0x928] sm:$0xff] }
 0x9e4   :  { %10122 = vmatpush3.bf16.msra.mxu1 %v10121_v62  ;;  %8558 = vmatprep.mubr.msk.f32.mxu1 %vm11016_vm1, %v11017_v1  ;;  %v10169_v43 = vpack.c.bf16 %v4438_v40, %v4437_v39  ;;  %v4671_v40 = vld [vmem:[#allocation10 + $0xa70] sm:$0xff] }
 0x9e5   :  { %10123 = vmatprep.subr.bf16.mxu1 %v11015_v0 }
 0x9e7   :  { %8559 = vmatmul.mubr.f32.gmra.mrb[62].mxu1 %v4079_v44 }
 0x9e8   :  { %10125 = vmatpush3.bf16.msra.mxu1 %v10124_v42  ;;  %8561 = vmatprep.mubr.msk.f32.mxu1 %vm11016_vm1, %v11017_v1 }
 0x9e9   :  { %10126 = vmatprep.subr.bf16.mxu1 %v11015_v0 }
 0x9eb   :  { %8562 = vmatmul.mubr.f32.gmra.mrb[64].mxu1 %v4080_v27 }
 0x9ec   :  { %10128 = vmatpush3.bf16.msra.mxu1 %v10127_v48  ;;  %8596 = vmatprep.mubr.msk.f32.mxu1 %vm11016_vm1, %v11017_v1  ;;  %v4439_v48 = vld [vmem:[#allocation10 + $0x930] sm:$0xff] }
 0x9ed   :  { %10129 = vmatprep.subr.bf16.mxu1 %v11015_v0 }
 0x9f0   :  { %10131 = vmatpush3.bf16.msra.mxu1 %v10130_v36  ;;  %v10172_v36 = vpack.c.bf16 %v4440_v54, %v4439_v48 }
 0x9f1   :  { %10132 = vmatprep.subr.bf16.mxu1 %v11015_v0 }
 0x9f4   :  { %10134 = vmatpush3.bf16.msra.mxu1 %v10133_v58  ;;  %v4441_v58 = vld [vmem:[#allocation10 + $0x940] sm:$0xff] }
 0x9f5   :  { %10135 = vmatprep.subr.bf16.mxu1 %v11015_v0 }
 0x9f8   :  { %10137 = vmatpush3.bf16.msra.mxu1 %v10136_v60  ;;  %v10175_v60 = vpack.c.bf16 %v4442_v59, %v4441_v58  ;;  %v4829_v58 = vld [vmem:[#allocation10 + $0xb68] sm:$0xff] }
 0x9f9   :  { %10210 = vmatprep.subr.bf16.mxu1 %v11015_v0 }
 0x9fb   :  { %8597 = vmatmul.mubr.f32.vlgmr.msra.gmra.mrb[56].mxu1 %v4295_v63 }
 0x9fc   :  { %8599 = vmatprep.mubr.msk.f32.mxu1 %vm11016_vm1, %v11017_v1  ;;  %10212 = vmatpush3.bf16.msra.mxu1 %v10211_v53  ;;  %v4658_v53 = vld [vmem:[#allocation10 + $0xa08] sm:$0xff] }
 0x9fd   :  { %10213 = vmatprep.subr.bf16.mxu1 %v11015_v0  ;;  %v10187_v5 = vpack.c.bf16 %v4658_v53, %v4657_v52  ;;  %v5180_v52 = vld [vmem:[#allocation10 + $0xcc0] sm:$0xff]  ;;  %v5181_v53 = vld [vmem:[#allocation10 + $0xcc8] sm:$0xff] }
 0x9ff   :  { %8600 = vmatmul.mubr.f32.gmra.mrb[58].mxu1 %v4296_v2 }
 0xa00   :  { %8602 = vmatprep.mubr.msk.f32.mxu1 %vm11016_vm1, %v11017_v1  ;;  %10215 = vmatpush3.bf16.msra.mxu1 %v10214_v13  ;;  %v4659_v13 = vld [vmem:[#allocation10 + $0xa10] sm:$0xff] }
 0xa01   :  { %10216 = vmatprep.subr.bf16.mxu1 %v11015_v0 }
 0xa03   :  { %8603 = vmatmul.mubr.f32.gmra.mrb[60].mxu1 %v4297_v56  ;;  %v4443_v56 = vld [vmem:[#allocation10 + $0x950] sm:$0xff] }
 0xa04   :  { %8605 = vmatprep.mubr.msk.f32.mxu1 %vm11016_vm1, %v11017_v1  ;;  %10218 = vmatpush3.bf16.msra.mxu1 %v10217_v16  ;;  %v10190_v16 = vpack.c.bf16 %v4660_v11, %v4659_v13  ;;  %v5182_v13 = vld [vmem:[#allocation10 + $0xcd0] sm:$0xff]  ;;  %v5183_v11 = vld [vmem:[#allocation10 + $0xcd8] sm:$0xff] }
 0xa05   :  { %10219 = vmatprep.subr.bf16.mxu1 %v11015_v0 }
 0xa07   :  { %8606 = vmatmul.mubr.f32.gmra.mrb[62].mxu1 %v4298_v61  ;;  %v4444_v61 = vld [vmem:[#allocation10 + $0x958] sm:$0xff] }
 0xa08   :  { %8608 = vmatprep.mubr.msk.f32.mxu1 %vm11016_vm1, %v11017_v1  ;;  %10221 = vmatpush3.bf16.msra.mxu1 %v10220_v19  ;;  %v10178_v3 = vpack.c.bf16 %v4444_v61, %v4443_v56  ;;  %v5173_v56 = vld [vmem:[#allocation10 + $0xc88] sm:$0xff]  ;;  %v5174_v61 = vld [vmem:[#allocation10 + $0xc90] sm:$0xff] }
 0xa09   :  { %10222 = vmatprep.subr.bf16.mxu1 %v11015_v0 }
 0xa0b   :  { %8609 = vmatmul.mubr.f32.gmra.mrb[64].mxu1 %v4299_v4 }
 0xa0c   :  { %8784 = vmatprep.mubr.msk.f32.mxu1 %vm11016_vm1, %v11017_v1  ;;  %10224 = vmatpush3.bf16.msra.mxu1 %v10223_v23  ;;  %v4664_v23 = vld [vmem:[#allocation10 + $0xa38] sm:$0xff] }
 0xa0d   :  { %10225 = vmatprep.subr.bf16.mxu1 %v11015_v0  ;;  %v10196_v25 = vpack.c.bf16 %v4664_v23, %v4663_v22 }
 0xace   :  { %v4383_v26 = vpop.f32.mrb[56].mxu1 }
 0xacf   :  { %v4412_v24 = vmax.f32 %v4383_v26, 0.0  ;;  %v8598_v28 = vpop.f32.mrb[57].mxu1  ;;  %v4665_v26 = vld [vmem:[#allocation10 + $0xa40] sm:$0xff] }
 0xad1   :  { %4422 = vst [vmem:[#allocation3 + $0x1] sm:$0xff] %v4412_v24  ;;  %8644 = vmatmul.mubr.f32.vlgmr.msra.gmra.mrb[56].mxu0 %v4412_v24 }
 0xad2   :  { %v4388_v37 = vpop.f32.mrb[58].mxu1  ;;  %10164 = vmatpush3.bf16.msra.mxu0 %v10163_v29  ;;  %8646 = vmatprep.mubr.msk.f32.mxu0 %vm11016_vm1, %v11017_v1  ;;  %v4666_v29 = vld [vmem:[#allocation10 + $0xa48] sm:$0xff] }
 0xad3   :  { %v4413_v62 = vmax.f32 %v4388_v37, 0.0  ;;  %v8601_v33 = vpop.f32.mrb[59].mxu1  ;;  %10165 = vmatprep.subr.bf16.mxu0 %v11015_v0  ;;  %v10199_v28 = vpack.c.bf16 %v4666_v29, %v4665_v26 }
 0xad4   :  { %v4670_v33 = vld [vmem:[#allocation10 + $0xa68] sm:$0xff] }
 0xad5   :  { %4423 = vst [vmem:[#allocation3 + $0x9] sm:$0xff] %v4413_v62  ;;  %8647 = vmatmul.mubr.f32.gmra.mrb[58].mxu0 %v4413_v62  ;;  %v4669_v62 = vld [vmem:[#allocation10 + $0xa60] sm:$0xff] }
 0xad6   :  { %v4393_v42 = vpop.f32.mrb[60].mxu1  ;;  %10167 = vmatpush3.bf16.msra.mxu0 %v10166_v38  ;;  %8649 = vmatprep.mubr.msk.f32.mxu0 %vm11016_vm1, %v11017_v1  ;;  %v10202_v38 = vpack.c.bf16 %v4668_v35, %v4667_v31  ;;  %v10205_v39 = vpack.c.bf16 %v4670_v33, %v4669_v62  ;;  %v4804_v35 = vld [vmem:[#allocation10 + $0xaa8] sm:$0xff] }
 0xad7   :  { %v4414_v45 = vmax.f32 %v4393_v42, 0.0  ;;  %v8604_v44 = vpop.f32.mrb[61].mxu1  ;;  %10168 = vmatprep.subr.bf16.mxu0 %v11015_v0  ;;  %v4672_v42 = vld [vmem:[#allocation10 + $0xa78] sm:$0xff] }
 0xad8   :  { %v4427_v14 = vld [vmem:[#allocation3] sm:$0xff] }
 0xad9   :  { %v4419_v55 = vsel %vm163_vm3, %v4414_v45, 0.0  ;;  %10813 = vmatmul.mubr.msk.f32.gmra.mrb[60].mxu0 %vm163_vm3, %v4414_v45 }
 0xada   :  { %4424 = vst [vmem:[#allocation3 + $0x11] sm:$0xff] %v4419_v55  ;;  %v4398_v27 = vpop.f32.mrb[62].mxu1  ;;  %10170 = vmatpush3.bf16.msra.mxu0 %v10169_v43  ;;  %8652 = vmatprep.mubr.msk.f32.mxu0 %vm11016_vm1, %v11017_v1  ;;  %v10208_v43 = vpack.c.bf16 %v4672_v42, %v4671_v40  ;;  %v4806_v40 = vld [vmem:[#allocation10 + $0xab8] sm:$0xff] }
 0xadb   :  { %v4415_v57 = vmax.f32 %v4398_v27, 0.0  ;;  %v8607_v50 = vpop.f32.mrb[63].mxu1  ;;  %10171 = vmatprep.subr.bf16.mxu0 %v11015_v0  ;;  %v4826_v27 = vld [vmem:[#allocation10 + $0xb50] sm:$0xff] }
 0xadc   :  { %v4428_v19 = vld [vmem:[#allocation3 + $0x8] sm:$0xff] }
 0xadd   :  { %4425 = vst [vmem:[#allocation3 + $0x19] sm:$0xff] %v4415_v57  ;;  %8653 = vmatmul.mubr.f32.gmra.mrb[62].mxu0 %v4415_v57  ;;  %v4651_v45 = vld [vmem:[#allocation3 + $0x2] sm:$0xff] }
 0xade   :  { %v4403_v6 = vpop.f32.mrb[64].mxu1  ;;  %10173 = vmatpush3.bf16.msra.mxu0 %v10172_v36  ;;  %8655 = vmatprep.mubr.msk.f32.mxu0 %vm11016_vm1, %v11017_v1  ;;  %v4827_v36 = vld [vmem:[#allocation10 + $0xb58] sm:$0xff]  ;;  %v4828_v50 = vld [vmem:[#allocation10 + $0xb60] sm:$0xff] }
 0xadf   :  { %v4416_v63 = vmax.f32 %v4403_v6, 0.0  ;;  %v8610_v2 = vpop.f32.mrb[65].mxu1  ;;  %10174 = vmatprep.subr.bf16.mxu0 %v11015_v0  ;;  %v10226_v57 = vpack.c.bf16 %v4827_v36, %v4826_v27  ;;  %v10229_v59 = vpack.c.bf16 %v4829_v58, %v4828_v50  ;;  %v4830_v6 = vld [vmem:[#allocation10 + $0xb70] sm:$0xff] }
 0xae0   :  { %v5172_v2 = vld [vmem:[#allocation10 + $0xc80] sm:$0xff]  ;;  %v4809_v58 = vld [vmem:[#allocation10 + $0xad0] sm:$0xff] }
 0xae1   :  { %v4421_v4 = vsel %vm170_vm4, %v4416_v63, 0.0  ;;  %v4429_v41 = vld [vmem:[#allocation3 + $0x10] sm:$0xff]  ;;  %10227 = vmatpush3.bf16.msra.mxu1 %v10226_v57 }
 0xae2   :  { %4426 = vst [vmem:[#allocation3 + $0x21] sm:$0x3] %v4421_v4  ;;  %10176 = vmatpush3.bf16.msra.mxu0 %v10175_v60  ;;  %v4652_v44 = vld [vmem:[#allocation3 + $0xa] sm:$0xff]  ;;  %10228 = vmatprep.subr.bf16.mxu1 %v11015_v0  ;;  %v4831_v60 = vld [vmem:[#allocation10 + $0xb78] sm:$0xff]  ;;  %v10283_v4 = vpack.c.bf16 %v5173_v56, %v5172_v2  ;;  %v4813_v56 = vld [vmem:[#allocation10 + $0xaf0] sm:$0xff] }
 0xae3   :  { %10177 = vmatprep.subr.bf16.mxu0 %v11015_v0  ;;  %v10232_v63 = vpack.c.bf16 %v4831_v60, %v4830_v6  ;;  %v4812_v2 = vld [vmem:[#allocation10 + $0xae8] sm:$0xff] }
 0xae4   :  { %v4430_v24 = vld [vmem:[#allocation3 + $0x18] sm:$0xff] }
 0xae5   :  { %v4653_v48 = vld [vmem:[#allocation3 + $0x12] sm:$0xff]  ;;  %10230 = vmatpush3.bf16.msra.mxu1 %v10229_v59  ;;  %v4810_v59 = vld [vmem:[#allocation10 + $0xad8] sm:$0xff] }
 0xae6   :  { %10179 = vmatpush3.bf16.msra.mxu0 %v10178_v3  ;;  %10231 = vmatprep.subr.bf16.mxu1 %v11015_v0  ;;  %v5175_v3 = vld [vmem:[#allocation10 + $0xc98] sm:$0xff]  ;;  %v10250_v60 = vpack.c.bf16 %v4810_v59, %v4809_v58  ;;  %v5537_v59 = vld [vmem:[#allocation10 + $0xe20] sm:$0xff] }
 0xae7   :  { %10180 = vmatprep.subr.bf16.mxu0 %v11015_v0  ;;  %v10286_v46 = vpack.c.bf16 %v5175_v3, %v5174_v61  ;;  %v4814_v61 = vld [vmem:[#allocation10 + $0xaf8] sm:$0xff] }
 0xae8   :  { %v10256_v3 = vpack.c.bf16 %v4814_v61, %v4813_v56  ;;  %v5541_v56 = vld [vmem:[#allocation10 + $0xe40] sm:$0xff]  ;;  %v5542_v61 = vld [vmem:[#allocation10 + $0xe48] sm:$0xff] }
 0xae9   :  { %v4453_v49 = vld [vmem:[#allocation3 + $0x21] sm:$0x3]  ;;  %10233 = vmatpush3.bf16.msra.mxu1 %v10232_v63 }
 0xaea   :  { %8656 = vmatmul.mubr.f32.gmra.mrb[64].mxu0 %v4453_v49  ;;  %v4431_v37 = vld [vmem:[#allocation3 + $0x20] sm:$0x3]  ;;  %v4655_v55 = vld [vmem:[#allocation3 + $0x22] sm:$0x3]  ;;  %10234 = vmatprep.subr.bf16.mxu1 %v11015_v0 }
 0xaeb   :  { %10182 = vmatpush3.bf16.msra.mxu0 %v10181_v51  ;;  %8690 = vmatprep.mubr.msk.f32.mxu0 %vm11016_vm1, %v11017_v1  ;;  %v4654_v54 = vld [vmem:[#allocation3 + $0x1a] sm:$0xff]  ;;  %v5177_v51 = vld [vmem:[#allocation10 + $0xca8] sm:$0xff]  ;;  %v4811_v63 = vld [vmem:[#allocation10 + $0xae0] sm:$0xff] }
 0xaec   :  { %10183 = vmatprep.subr.bf16.mxu0 %v11015_v0  ;;  %v10289_v8 = vpack.c.bf16 %v5177_v51, %v5176_v7  ;;  %v5179_v49 = vld [vmem:[#allocation10 + $0xcb8] sm:$0xff]  ;;  %v5019_v7 = vld [vmem:[#allocation10 + $0xb88] sm:$0xff] }
 0xaef   :  { %10185 = vmatpush3.bf16.msra.mxu0 %v10184_v10  ;;  %v10292_v10 = vpack.c.bf16 %v5179_v49, %v5178_v9  ;;  %v5021_v9 = vld [vmem:[#allocation10 + $0xb98] sm:$0xff] }
 0xaf0   :  { %10186 = vmatprep.subr.bf16.mxu0 %v11015_v0 }
 0xaf2   :  { %8691 = vmatmul.mubr.f32.vlgmr.msra.gmra.mrb[56].mxu0 %v4427_v14  ;;  %v10298_v14 = vpack.c.bf16 %v5183_v11, %v5182_v13  ;;  %v5024_v11 = vld [vmem:[#allocation10 + $0xbb0] sm:$0xff] }
 0xaf3   :  { %10188 = vmatpush3.bf16.msra.mxu0 %v10187_v5  ;;  %8693 = vmatprep.mubr.msk.f32.mxu0 %vm11016_vm1, %v11017_v1  ;;  %v10295_v5 = vpack.c.bf16 %v5181_v53, %v5180_v52  ;;  %v5022_v52 = vld [vmem:[#allocation10 + $0xba0] sm:$0xff]  ;;  %v5023_v53 = vld [vmem:[#allocation10 + $0xba8] sm:$0xff] }
 0xaf4   :  { %10189 = vmatprep.subr.bf16.mxu0 %v11015_v0  ;;  %v10265_v13 = vpack.c.bf16 %v5023_v53, %v5022_v52  ;;  %v5153_v52 = vld [vmem:[#allocation10 + $0xc18] sm:$0xff] }
 0xaf6   :  { %8694 = vmatmul.mubr.f32.gmra.mrb[58].mxu0 %v4428_v19 }
 0xaf7   :  { %10191 = vmatpush3.bf16.msra.mxu0 %v10190_v16  ;;  %8696 = vmatprep.mubr.msk.f32.mxu0 %vm11016_vm1, %v11017_v1  ;;  %v4799_v16 = vld [vmem:[#allocation10 + $0xa80] sm:$0xff] }
 0xaf8   :  { %10192 = vmatprep.subr.bf16.mxu0 %v11015_v0  ;;  %v10235_v22 = vpack.c.bf16 %v4800_v30, %v4799_v16 }
 0xafa   :  { %8697 = vmatmul.mubr.f32.gmra.mrb[60].mxu0 %v4429_v41  ;;  %v4801_v41 = vld [vmem:[#allocation10 + $0xa90] sm:$0xff] }
 0xafb   :  { %10194 = vmatpush3.bf16.msra.mxu0 %v10193_v20  ;;  %8699 = vmatprep.mubr.msk.f32.mxu0 %vm11016_vm1, %v11017_v1 }
 0xafc   :  { %10195 = vmatprep.subr.bf16.mxu0 %v11015_v0 }
 0xafe   :  { %8700 = vmatmul.mubr.f32.gmra.mrb[62].mxu0 %v4430_v24 }
 0xaff   :  { %10197 = vmatpush3.bf16.msra.mxu0 %v10196_v25  ;;  %8702 = vmatprep.mubr.msk.f32.mxu0 %vm11016_vm1, %v11017_v1  ;;  %v4802_v25 = vld [vmem:[#allocation10 + $0xa98] sm:$0xff] }
 0xb00   :  { %10198 = vmatprep.subr.bf16.mxu0 %v11015_v0 }
 0xb02   :  { %8703 = vmatmul.mubr.f32.gmra.mrb[64].mxu0 %v4431_v37 }
 0xb03   :  { %10200 = vmatpush3.bf16.msra.mxu0 %v10199_v28  ;;  %8737 = vmatprep.mubr.msk.f32.mxu0 %vm11016_vm1, %v11017_v1  ;;  %v10238_v28 = vpack.c.bf16 %v4802_v25, %v4801_v41  ;;  %v5028_v41 = vld [vmem:[#allocation10 + $0xbd0] sm:$0xff]  ;;  %v5029_v25 = vld [vmem:[#allocation10 + $0xbd8] sm:$0xff] }
 0xb04   :  { %10201 = vmatprep.subr.bf16.mxu0 %v11015_v0 }
 0xb07   :  { %10203 = vmatpush3.bf16.msra.mxu0 %v10202_v38 }
 0xb08   :  { %10204 = vmatprep.subr.bf16.mxu0 %v11015_v0 }
 0xb0b   :  { %10206 = vmatpush3.bf16.msra.mxu0 %v10205_v39 }
 0xb0c   :  { %10207 = vmatprep.subr.bf16.mxu0 %v11015_v0 }
 0xb0f   :  { %10209 = vmatpush3.bf16.msra.mxu0 %v10208_v43 }
 0xb10   :  { %10282 = vmatprep.subr.bf16.mxu0 %v11015_v0 }
 0xb12   :  { %8738 = vmatmul.mubr.f32.vlgmr.msra.gmra.mrb[56].mxu0 %v4651_v45 }
 0xb13   :  { %8740 = vmatprep.mubr.msk.f32.mxu0 %vm11016_vm1, %v11017_v1  ;;  %10284 = vmatpush3.bf16.msra.mxu0 %v10283_v4 }
 0xb14   :  { %10285 = vmatprep.subr.bf16.mxu0 %v11015_v0 }
 0xb16   :  { %8741 = vmatmul.mubr.f32.gmra.mrb[58].mxu0 %v4652_v44 }
 0xb17   :  { %8743 = vmatprep.mubr.msk.f32.mxu0 %vm11016_vm1, %v11017_v1  ;;  %10287 = vmatpush3.bf16.msra.mxu0 %v10286_v46  ;;  %v5018_v46 = vld [vmem:[#allocation10 + $0xb80] sm:$0xff] }
 0xb18   :  { %10288 = vmatprep.subr.bf16.mxu0 %v11015_v0  ;;  %v10259_v51 = vpack.c.bf16 %v5019_v7, %v5018_v46  ;;  %v5150_v46 = vld [vmem:[#allocation10 + $0xc00] sm:$0xff]  ;;  %v5151_v7 = vld [vmem:[#allocation10 + $0xc08] sm:$0xff] }
 0xb1a   :  { %8744 = vmatmul.mubr.f32.gmra.mrb[60].mxu0 %v4653_v48 }
 0xb1b   :  { %8746 = vmatprep.mubr.msk.f32.mxu0 %vm11016_vm1, %v11017_v1  ;;  %10290 = vmatpush3.bf16.msra.mxu0 %v10289_v8  ;;  %v5020_v8 = vld [vmem:[#allocation10 + $0xb90] sm:$0xff] }
 0xb1c   :  { %10291 = vmatprep.subr.bf16.mxu0 %v11015_v0 }
 0xb1e   :  { %8747 = vmatmul.mubr.f32.gmra.mrb[62].mxu0 %v4654_v54 }
 0xb1f   :  { %8749 = vmatprep.mubr.msk.f32.mxu0 %vm11016_vm1, %v11017_v1  ;;  %10293 = vmatpush3.bf16.msra.mxu0 %v10292_v10  ;;  %v10262_v10 = vpack.c.bf16 %v5021_v9, %v5020_v8  ;;  %v10307_v8 = vpack.c.bf16 %v5151_v7, %v5150_v46 }
 0xb20   :  { %10294 = vmatprep.subr.bf16.mxu0 %v11015_v0 }
 0xb22   :  { %8750 = vmatmul.mubr.f32.gmra.mrb[64].mxu0 %v4655_v55  ;;  %v4808_v55 = vld [vmem:[#allocation10 + $0xac8] sm:$0xff] }
 0xb23   :  { %8925 = vmatprep.mubr.msk.f32.mxu0 %vm11016_vm1, %v11017_v1  ;;  %10296 = vmatpush3.bf16.msra.mxu0 %v10295_v5 }
 0xb24   :  { %10297 = vmatprep.subr.bf16.mxu0 %v11015_v0 }
 0xb27   :  { %10299 = vmatpush3.bf16.msra.mxu0 %v10298_v14  ;;  %v5025_v14 = vld [vmem:[#allocation10 + $0xbb8] sm:$0xff] }
 0xb28   :  { %10300 = vmatprep.subr.bf16.mxu0 %v11015_v0  ;;  %v10268_v30 = vpack.c.bf16 %v5025_v14, %v5024_v11  ;;  %v5154_v14 = vld [vmem:[#allocation10 + $0xc20] sm:$0xff] }
 0xbe5   :  { %v4739_v17 = vpop.f32.mrb[56].mxu0 }
 0xbe6   :  { %v4768_v19 = vmul.f32 0.1, %v4739_v17  ;;  %v8739_v20 = vpop.f32.mrb[57].mxu0  ;;  %v5026_v17 = vld [vmem:[#allocation10 + $0xbc0] sm:$0xff] }
 0xbe8   :  { %v12666_v23 = vadd.f32 %v4768_v19, %v12514_v34  ;;  %v4803_v34 = vld [vmem:[#allocation10 + $0xaa0] sm:$0xff]  ;;  %v5027_v19 = vld [vmem:[#allocation10 + $0xbc8] sm:$0xff] }
 0xbe9   :  { %v4744_v26 = vpop.f32.mrb[58].mxu0  ;;  %v10241_v33 = vpack.c.bf16 %v4804_v35, %v4803_v34  ;;  %v5032_v35 = vld [vmem:[#allocation10 + $0xbf0] sm:$0xff] }
 0xbea   :  { %4783 = vst [vmem:[#allocation3 + $0x1] sm:$0xff] %v12666_v23  ;;  %v4769_v29 = vmul.f32 0.1, %v4744_v26  ;;  %v8742_v24 = vpop.f32.mrb[59].mxu0  ;;  %8785 = vmatmul.mubr.f32.vlgmr.msra.gmra.mrb[66].mxu1 %v12666_v23 }
 0xbeb   :  { %10236 = vmatpush3.bf16.msra.mxu1 %v10235_v22  ;;  %8787 = vmatprep.mubr.msk.f32.mxu1 %vm11016_vm1, %v11017_v1  ;;  %v10271_v22 = vpack.c.bf16 %v5027_v19, %v5026_v17  ;;  %v5030_v24 = vld [vmem:[#allocation10 + $0xbe0] sm:$0xff] }
 0xbec   :  { %v12673_v31 = vadd.f32 %v4769_v29, %v12541_v21  ;;  %10237 = vmatprep.subr.bf16.mxu1 %v11015_v0  ;;  %v4805_v21 = vld [vmem:[#allocation10 + $0xab0] sm:$0xff]  ;;  %v10274_v29 = vpack.c.bf16 %v5029_v25, %v5028_v41  ;;  %v5157_v41 = vld [vmem:[#allocation10 + $0xc38] sm:$0xff] }
 0xbed   :  { %v4749_v37 = vpop.f32.mrb[60].mxu0  ;;  %v10244_v48 = vpack.c.bf16 %v4806_v40, %v4805_v21 }
 0xbee   :  { %4784 = vst [vmem:[#allocation3 + $0x9] sm:$0xff] %v12673_v31  ;;  %v4770_v38 = vmul.f32 0.1, %v4749_v37  ;;  %v8745_v62 = vpop.f32.mrb[61].mxu0  ;;  %8788 = vmatmul.mubr.f32.gmra.mrb[68].mxu1 %v12673_v31  ;;  %v5033_v37 = vld [vmem:[#allocation10 + $0xbf8] sm:$0xff] }
 0xbef   :  { %10239 = vmatpush3.bf16.msra.mxu1 %v10238_v28  ;;  %8790 = vmatprep.mubr.msk.f32.mxu1 %vm11016_vm1, %v11017_v1  ;;  %v5031_v28 = vld [vmem:[#allocation10 + $0xbe8] sm:$0xff] }
 0xbf0   :  { %v4775_v39 = vadd.f32 %v4770_v38, %v12549_v12  ;;  %10240 = vmatprep.subr.bf16.mxu1 %v11015_v0  ;;  %v4807_v12 = vld [vmem:[#allocation10 + $0xac0] sm:$0xff]  ;;  %v10277_v34 = vpack.c.bf16 %v5031_v28, %v5030_v24  ;;  %v10280_v38 = vpack.c.bf16 %v5033_v37, %v5032_v35  ;;  %v5159_v35 = vld [vmem:[#allocation10 + $0xc48] sm:$0xff] }
 0xbf1   :  { %v4754_v42 = vpop.f32.mrb[62].mxu0  ;;  %v10247_v50 = vpack.c.bf16 %v4808_v55, %v4807_v12  ;;  %v4793_v49 = vld [vmem:[#allocation3] sm:$0xff] }
 0xbf2   :  { %v12684_v43 = vsel %vm163_vm3, %v4775_v39, 0.0  ;;  %v4771_v45 = vmul.f32 0.1, %v4754_v42  ;;  %v8748_v44 = vpop.f32.mrb[63].mxu0  ;;  %10814 = vmatmul.mubr.msk.f32.gmra.mrb[70].mxu1 %vm163_vm3, %v4775_v39  ;;  %v5184_v42 = vld [vmem:[#allocation10 + $0xce0] sm:$0xff]  ;;  %v5187_v12 = vld [vmem:[#allocation10 + $0xcf8] sm:$0xff] }
 0xbf3   :  { %4785 = vst [vmem:[#allocation3 + $0x11] sm:$0xff] %v12684_v43  ;;  %10242 = vmatpush3.bf16.msra.mxu1 %v10241_v33  ;;  %8793 = vmatprep.mubr.msk.f32.mxu1 %vm11016_vm1, %v11017_v1 }
 0xbf4   :  { %v12688_v54 = vadd.f32 %v4771_v45, %v12555_v15  ;;  %10243 = vmatprep.subr.bf16.mxu1 %v11015_v0  ;;  %v5185_v45 = vld [vmem:[#allocation10 + $0xce8] sm:$0xff] }
 0xbf5   :  { %v4759_v27 = vpop.f32.mrb[64].mxu0  ;;  %v4794_v5 = vld [vmem:[#allocation3 + $0x8] sm:$0xff]  ;;  %v10301_v44 = vpack.c.bf16 %v5185_v45, %v5184_v42 }
 0xbf6   :  { %4786 = vst [vmem:[#allocation3 + $0x19] sm:$0xff] %v12688_v54  ;;  %v4772_v36 = vmul.f32 0.1, %v4759_v27  ;;  %v8751_v57 = vpop.f32.mrb[65].mxu0  ;;  %8794 = vmatmul.mubr.f32.gmra.mrb[72].mxu1 %v12688_v54  ;;  %v5012_v62 = vld [vmem:[#allocation3 + $0x2] sm:$0xff] }
 0xbf7   :  { %10245 = vmatpush3.bf16.msra.mxu1 %v10244_v48  ;;  %8796 = vmatprep.mubr.msk.f32.mxu1 %vm11016_vm1, %v11017_v1  ;;  %v5186_v48 = vld [vmem:[#allocation10 + $0xcf0] sm:$0xff]  ;;  %v5533_v27 = vld [vmem:[#allocation10 + $0xe00] sm:$0xff] }
 0xbf8   :  { %v4777_v15 = vadd.f32 %v4772_v36, %v12561_v18  ;;  %10246 = vmatprep.subr.bf16.mxu1 %v11015_v0  ;;  %v10253_v18 = vpack.c.bf16 %v4812_v2, %v4811_v63  ;;  %10302 = vmatpush3.bf16.msra.mxu0 %v10301_v44  ;;  %v10304_v55 = vpack.c.bf16 %v5187_v12, %v5186_v48  ;;  %v5534_v36 = vld [vmem:[#allocation10 + $0xe08] sm:$0xff]  ;;  %v5535_v57 = vld [vmem:[#allocation10 + $0xe10] sm:$0xff]  ;;  %v5540_v2 = vld [vmem:[#allocation10 + $0xe38] sm:$0xff] }
 0xbf9   :  { %10303 = vmatprep.subr.bf16.mxu0 %v11015_v0  ;;  %v5539_v63 = vld [vmem:[#allocation10 + $0xe30] sm:$0xff]  ;;  %v5162_v45 = vld [vmem:[#allocation10 + $0xc60] sm:$0xff]  ;;  %v5163_v44 = vld [vmem:[#allocation10 + $0xc68] sm:$0xff] }
 0xbfa   :  { %v4782_v6 = vsel %vm170_vm4, %v4777_v15, 0.0  ;;  %v4795_v16 = vld [vmem:[#allocation3 + $0x10] sm:$0xff]  ;;  %v5536_v15 = vld [vmem:[#allocation10 + $0xe18] sm:$0xff]  ;;  %v10325_v48 = vpack.c.bf16 %v5163_v44, %v5162_v45 }
 0xbfb   :  { %4787 = vst [vmem:[#allocation3 + $0x21] sm:$0x3] %v4782_v6  ;;  %10248 = vmatpush3.bf16.msra.mxu1 %v10247_v50  ;;  %v5013_v33 = vld [vmem:[#allocation3 + $0xa] sm:$0xff]  ;;  %v10355_v50 = vpack.c.bf16 %v5534_v36, %v5533_v27  ;;  %v10358_v58 = vpack.c.bf16 %v5536_v15, %v5535_v57  ;;  %v5164_v12 = vld [vmem:[#allocation10 + $0xc70] sm:$0xff]  ;;  %v5374_v57 = vld [vmem:[#allocation10 + $0xd00] sm:$0xff] }
 0xbfc   :  { %10249 = vmatprep.subr.bf16.mxu1 %v11015_v0  ;;  %10305 = vmatpush3.bf16.msra.mxu0 %v10304_v55  ;;  %v5538_v6 = vld [vmem:[#allocation10 + $0xe28] sm:$0xff]  ;;  %v5165_v55 = vld [vmem:[#allocation10 + $0xc78] sm:$0xff] }
 0xbfd   :  { %v4796_v20 = vld [vmem:[#allocation3 + $0x18] sm:$0xff]  ;;  %10306 = vmatprep.subr.bf16.mxu0 %v11015_v0  ;;  %v10328_v36 = vpack.c.bf16 %v5165_v55, %v5164_v12  ;;  %v6631_v55 = vld [vmem:[%s13168_s4 + $0xb0] sm:$0xff] }
 0xbfe   :  { %v5014_v39 = vld [vmem:[#allocation3 + $0x12] sm:$0xff] }
 0xbff   :  { %10251 = vmatpush3.bf16.msra.mxu1 %v10250_v60  ;;  %v10361_v60 = vpack.c.bf16 %v5538_v6, %v5537_v59  ;;  %v5377_v59 = vld [vmem:[#allocation10 + $0xd18] sm:$0xff] }
 0xc00   :  { %10252 = vmatprep.subr.bf16.mxu1 %v11015_v0  ;;  %v6629_v44 = vld [vmem:[%s13168_s4 + $0xa0] sm:$0xff] }
 0xc02   :  { %v12705_v4 = vld [vmem:[#allocation3 + $0x21] sm:$0x3] }
 0xc03   :  { %8797 = vmatmul.mubr.f32.gmra.mrb[74].mxu1 %v12705_v4  ;;  %v4797_v26 = vld [vmem:[#allocation3 + $0x20] sm:$0x3]  ;;  %v5016_v40 = vld [vmem:[#allocation3 + $0x22] sm:$0x3] }
 0xc04   :  { %10254 = vmatpush3.bf16.msra.mxu1 %v10253_v18  ;;  %8831 = vmatprep.mubr.msk.f32.mxu1 %vm11016_vm1, %v11017_v1  ;;  %v5015_v21 = vld [vmem:[#allocation3 + $0x1a] sm:$0xff]  ;;  %v10364_v18 = vpack.c.bf16 %v5540_v2, %v5539_v63  ;;  %v5378_v63 = vld [vmem:[#allocation10 + $0xd20] sm:$0xff]  ;;  %v5379_v2 = vld [vmem:[#allocation10 + $0xd28] sm:$0xff] }
 0xc05   :  { %10255 = vmatprep.subr.bf16.mxu1 %v11015_v0 }
 0xc08   :  { %10257 = vmatpush3.bf16.msra.mxu1 %v10256_v3  ;;  %v10367_v3 = vpack.c.bf16 %v5542_v61, %v5541_v56  ;;  %v10337_v56 = vpack.c.bf16 %v5379_v2, %v5378_v63  ;;  %v5380_v61 = vld [vmem:[#allocation10 + $0xd30] sm:$0xff]  ;;  %v5512_v63 = vld [vmem:[#allocation10 + $0xd88] sm:$0xff] }
 0xc09   :  { %10258 = vmatprep.subr.bf16.mxu1 %v11015_v0 }
 0xc0b   :  { %8832 = vmatmul.mubr.f32.vlgmr.msra.gmra.mrb[66].mxu1 %v4793_v49 }
 0xc0c   :  { %10260 = vmatpush3.bf16.msra.mxu1 %v10259_v51  ;;  %8834 = vmatprep.mubr.msk.f32.mxu1 %vm11016_vm1, %v11017_v1 }
 0xc0d   :  { %10261 = vmatprep.subr.bf16.mxu1 %v11015_v0 }
 0xc0f   :  { %8835 = vmatmul.mubr.f32.gmra.mrb[68].mxu1 %v4794_v5 }
 0xc10   :  { %10263 = vmatpush3.bf16.msra.mxu1 %v10262_v10  ;;  %8837 = vmatprep.mubr.msk.f32.mxu1 %vm11016_vm1, %v11017_v1  ;;  %v5152_v10 = vld [vmem:[#allocation10 + $0xc10] sm:$0xff] }
 0xc11   :  { %10264 = vmatprep.subr.bf16.mxu1 %v11015_v0  ;;  %v10310_v5 = vpack.c.bf16 %v5153_v52, %v5152_v10  ;;  %v5384_v10 = vld [vmem:[#allocation10 + $0xd50] sm:$0xff]  ;;  %v5385_v52 = vld [vmem:[#allocation10 + $0xd58] sm:$0xff] }
 0xc13   :  { %8838 = vmatmul.mubr.f32.gmra.mrb[70].mxu1 %v4795_v16  ;;  %v5155_v16 = vld [vmem:[#allocation10 + $0xc28] sm:$0xff] }
 0xc14   :  { %10266 = vmatpush3.bf16.msra.mxu1 %v10265_v13  ;;  %8840 = vmatprep.mubr.msk.f32.mxu1 %vm11016_vm1, %v11017_v1  ;;  %v10313_v17 = vpack.c.bf16 %v5155_v16, %v5154_v14  ;;  %v5388_v16 = vld [vmem:[#allocation10 + $0xd70] sm:$0xff] }
 0xc15   :  { %10267 = vmatprep.subr.bf16.mxu1 %v11015_v0 }
 0xc17   :  { %8841 = vmatmul.mubr.f32.gmra.mrb[72].mxu1 %v4796_v20 }
 0xc18   :  { %10269 = vmatpush3.bf16.msra.mxu1 %v10268_v30  ;;  %8843 = vmatprep.mubr.msk.f32.mxu1 %vm11016_vm1, %v11017_v1 }
 0xc19   :  { %10270 = vmatprep.subr.bf16.mxu1 %v11015_v0 }
 0xc1b   :  { %8844 = vmatmul.mubr.f32.gmra.mrb[74].mxu1 %v4797_v26 }
 0xc1c   :  { %10272 = vmatpush3.bf16.msra.mxu1 %v10271_v22  ;;  %8878 = vmatprep.mubr.msk.f32.mxu1 %vm11016_vm1, %v11017_v1  ;;  %v5156_v22 = vld [vmem:[#allocation10 + $0xc30] sm:$0xff] }
 0xc1d   :  { %10273 = vmatprep.subr.bf16.mxu1 %v11015_v0 }
 0xc20   :  { %10275 = vmatpush3.bf16.msra.mxu1 %v10274_v29  ;;  %v10316_v29 = vpack.c.bf16 %v5157_v41, %v5156_v22 }
 0xc21   :  { %10276 = vmatprep.subr.bf16.mxu1 %v11015_v0 }
 0xc24   :  { %10278 = vmatpush3.bf16.msra.mxu1 %v10277_v34  ;;  %v5158_v34 = vld [vmem:[#allocation10 + $0xc40] sm:$0xff] }
 0xc25   :  { %10279 = vmatprep.subr.bf16.mxu1 %v11015_v0 }
 0xc28   :  { %10281 = vmatpush3.bf16.msra.mxu1 %v10280_v38  ;;  %v10319_v38 = vpack.c.bf16 %v5159_v35, %v5158_v34  ;;  %v5546_v34 = vld [vmem:[#allocation10 + $0xe68] sm:$0xff] }
 0xc29   :  { %10354 = vmatprep.subr.bf16.mxu1 %v11015_v0 }
 0xc2b   :  { %8879 = vmatmul.mubr.f32.vlgmr.msra.gmra.mrb[66].mxu1 %v5012_v62 }
 0xc2c   :  { %8881 = vmatprep.mubr.msk.f32.mxu1 %vm11016_vm1, %v11017_v1  ;;  %10356 = vmatpush3.bf16.msra.mxu1 %v10355_v50  ;;  %v5375_v50 = vld [vmem:[#allocation10 + $0xd08] sm:$0xff] }
 0xc2d   :  { %10357 = vmatprep.subr.bf16.mxu1 %v11015_v0  ;;  %v10331_v15 = vpack.c.bf16 %v5375_v50, %v5374_v57  ;;  %v6633_v57 = vld [vmem:[%s13168_s4 + $0xc0] sm:$0xff]  ;;  %v6634_v50 = vld [vmem:[%s13168_s4 + $0xc8] sm:$0xff] }
 0xc2f   :  { %8882 = vmatmul.mubr.f32.gmra.mrb[68].mxu1 %v5013_v33 }
 0xc30   :  { %8884 = vmatprep.mubr.msk.f32.mxu1 %vm11016_vm1, %v11017_v1  ;;  %10359 = vmatpush3.bf16.msra.mxu1 %v10358_v58  ;;  %v5376_v58 = vld [vmem:[#allocation10 + $0xd10] sm:$0xff] }
 0xc31   :  { %10360 = vmatprep.subr.bf16.mxu1 %v11015_v0 }
 0xc33   :  { %8885 = vmatmul.mubr.f32.gmra.mrb[70].mxu1 %v5014_v39  ;;  %v5160_v39 = vld [vmem:[#allocation10 + $0xc50] sm:$0xff] }
 0xc34   :  { %8887 = vmatprep.mubr.msk.f32.mxu1 %vm11016_vm1, %v11017_v1  ;;  %10362 = vmatpush3.bf16.msra.mxu1 %v10361_v60  ;;  %v10334_v60 = vpack.c.bf16 %v5377_v59, %v5376_v58  ;;  %v6635_v58 = vld [vmem:[%s13168_s4 + $0xd0] sm:$0xff]  ;;  %v6636_v59 = vld [vmem:[%s13168_s4 + $0xd8] sm:$0xff] }
 0xc35   :  { %10363 = vmatprep.subr.bf16.mxu1 %v11015_v0 }
 0xc37   :  { %8888 = vmatmul.mubr.f32.gmra.mrb[72].mxu1 %v5015_v21  ;;  %v5161_v21 = vld [vmem:[#allocation10 + $0xc58] sm:$0xff] }
 0xc38   :  { %8890 = vmatprep.mubr.msk.f32.mxu1 %vm11016_vm1, %v11017_v1  ;;  %10365 = vmatpush3.bf16.msra.mxu1 %v10364_v18  ;;  %v10322_v42 = vpack.c.bf16 %v5161_v21, %v5160_v39  ;;  %v6626_v39 = vld [vmem:[%s13168_s4 + $0x88] sm:$0xff]  ;;  %v6627_v21 = vld [vmem:[%s13168_s4 + $0x90] sm:$0xff] }
 0xc39   :  { %10366 = vmatprep.subr.bf16.mxu1 %v11015_v0 }
 0xc3b   :  { %8891 = vmatmul.mubr.f32.gmra.mrb[74].mxu1 %v5016_v40 }
 0xc3c   :  { %9066 = vmatprep.mubr.msk.f32.mxu1 %vm11016_vm1, %v11017_v1  ;;  %10368 = vmatpush3.bf16.msra.mxu1 %v10367_v3  ;;  %v5381_v3 = vld [vmem:[#allocation10 + $0xd38] sm:$0xff] }
 0xc3d   :  { %10369 = vmatprep.subr.bf16.mxu1 %v11015_v0  ;;  %v10340_v7 = vpack.c.bf16 %v5381_v3, %v5380_v61 }
 0xcfe   :  { %v5100_v51 = vpop.f32.mrb[66].mxu1 }
 0xcff   :  { %v5129_v9 = vmax.f32 %v5100_v51, 0.0  ;;  %v8880_v49 = vpop.f32.mrb[67].mxu1  ;;  %v5382_v51 = vld [vmem:[#allocation10 + $0xd40] sm:$0xff] }
 0xd01   :  { %5139 = vst [vmem:[#allocation3 + $0x1] sm:$0xff] %v5129_v9  ;;  %8926 = vmatmul.mubr.f32.vlgmr.msra.gmra.mrb[66].mxu0 %v5129_v9 }
 0xd02   :  { %v5105_v53 = vpop.f32.mrb[68].mxu1  ;;  %10308 = vmatpush3.bf16.msra.mxu0 %v10307_v8  ;;  %8928 = vmatprep.mubr.msk.f32.mxu0 %vm11016_vm1, %v11017_v1  ;;  %v5383_v8 = vld [vmem:[#allocation10 + $0xd48] sm:$0xff] }
 0xd03   :  { %v5130_v13 = vmax.f32 %v5105_v53, 0.0  ;;  %v8883_v11 = vpop.f32.mrb[69].mxu1  ;;  %10309 = vmatprep.subr.bf16.mxu0 %v11015_v0  ;;  %v10343_v49 = vpack.c.bf16 %v5383_v8, %v5382_v51 }
 0xd04   :  { %v5387_v11 = vld [vmem:[#allocation10 + $0xd68] sm:$0xff] }
 0xd05   :  { %5140 = vst [vmem:[#allocation3 + $0x9] sm:$0xff] %v5130_v13  ;;  %8929 = vmatmul.mubr.f32.gmra.mrb[68].mxu0 %v5130_v13  ;;  %v5386_v13 = vld [vmem:[#allocation10 + $0xd60] sm:$0xff] }
 0xd06   :  { %v5110_v30 = vpop.f32.mrb[70].mxu1  ;;  %10311 = vmatpush3.bf16.msra.mxu0 %v10310_v5  ;;  %8931 = vmatprep.mubr.msk.f32.mxu0 %vm11016_vm1, %v11017_v1  ;;  %v10346_v5 = vpack.c.bf16 %v5385_v52, %v5384_v10  ;;  %v10349_v14 = vpack.c.bf16 %v5387_v11, %v5386_v13  ;;  %v5515_v52 = vld [vmem:[#allocation10 + $0xda0] sm:$0xff] }
 0xd07   :  { %v5131_v19 = vmax.f32 %v5110_v30, 0.0  ;;  %v8886_v20 = vpop.f32.mrb[71].mxu1  ;;  %10312 = vmatprep.subr.bf16.mxu0 %v11015_v0  ;;  %v5389_v30 = vld [vmem:[#allocation10 + $0xd78] sm:$0xff] }
 0xd08   :  { %v5144_v6 = vld [vmem:[#allocation3] sm:$0xff] }
 0xd09   :  { %v5136_v25 = vsel %vm163_vm3, %v5131_v19, 0.0  ;;  %10815 = vmatmul.mubr.msk.f32.gmra.mrb[70].mxu0 %vm163_vm3, %v5131_v19 }
 0xd0a   :  { %5141 = vst [vmem:[#allocation3 + $0x11] sm:$0xff] %v5136_v25  ;;  %v5115_v26 = vpop.f32.mrb[72].mxu1  ;;  %10314 = vmatpush3.bf16.msra.mxu0 %v10313_v17  ;;  %8934 = vmatprep.mubr.msk.f32.mxu0 %vm11016_vm1, %v11017_v1  ;;  %v10352_v17 = vpack.c.bf16 %v5389_v30, %v5388_v16  ;;  %v5517_v16 = vld [vmem:[#allocation10 + $0xdb0] sm:$0xff] }
 0xd0b   :  { %v5132_v24 = vmax.f32 %v5115_v26, 0.0  ;;  %v8889_v28 = vpop.f32.mrb[73].mxu1  ;;  %10315 = vmatprep.subr.bf16.mxu0 %v11015_v0  ;;  %v5543_v26 = vld [vmem:[#allocation10 + $0xe50] sm:$0xff] }
 0xd0c   :  { %v5145_v18 = vld [vmem:[#allocation3 + $0x8] sm:$0xff] }
 0xd0d   :  { %5142 = vst [vmem:[#allocation3 + $0x19] sm:$0xff] %v5132_v24  ;;  %8935 = vmatmul.mubr.f32.gmra.mrb[72].mxu0 %v5132_v24  ;;  %v5368_v19 = vld [vmem:[#allocation3 + $0x2] sm:$0xff] }
 0xd0e   :  { %v5120_v37 = vpop.f32.mrb[74].mxu1  ;;  %10317 = vmatpush3.bf16.msra.mxu0 %v10316_v29  ;;  %8937 = vmatprep.mubr.msk.f32.mxu0 %vm11016_vm1, %v11017_v1  ;;  %v5544_v29 = vld [vmem:[#allocation10 + $0xe58] sm:$0xff]  ;;  %v5545_v28 = vld [vmem:[#allocation10 + $0xe60] sm:$0xff] }
 0xd0f   :  { %v5133_v62 = vmax.f32 %v5120_v37, 0.0  ;;  %v8892_v33 = vpop.f32.mrb[75].mxu1  ;;  %10318 = vmatprep.subr.bf16.mxu0 %v11015_v0  ;;  %v10370_v24 = vpack.c.bf16 %v5544_v29, %v5543_v26  ;;  %v10373_v35 = vpack.c.bf16 %v5546_v34, %v5545_v28  ;;  %v5547_v37 = vld [vmem:[#allocation10 + $0xe70] sm:$0xff] }
 0xd10   :  { %v6625_v33 = vld [vmem:[%s13168_s4 + $0x80] sm:$0xff] }
 0xd11   :  { %v5138_v40 = vsel %vm170_vm4, %v5133_v62, 0.0  ;;  %v5146_v46 = vld [vmem:[#allocation3 + $0x10] sm:$0xff]  ;;  %10371 = vmatpush3.bf16.msra.mxu1 %v10370_v24 }
 0xd12   :  { %5143 = vst [vmem:[#allocation3 + $0x21] sm:$0x3] %v5138_v40  ;;  %10320 = vmatpush3.bf16.msra.mxu0 %v10319_v38  ;;  %v5369_v20 = vld [vmem:[#allocation3 + $0xa] sm:$0xff]  ;;  %10372 = vmatprep.subr.bf16.mxu1 %v11015_v0  ;;  %v5548_v38 = vld [vmem:[#allocation10 + $0xe78] sm:$0xff]  ;;  %v10427_v40 = vpack.c.bf16 %v6626_v39, %v6625_v33  ;;  %v5525_v39 = vld [vmem:[#allocation10 + $0xdf0] sm:$0xff] }
 0xd13   :  { %10321 = vmatprep.subr.bf16.mxu0 %v11015_v0  ;;  %v10376_v62 = vpack.c.bf16 %v5548_v38, %v5547_v37  ;;  %v5524_v33 = vld [vmem:[#allocation10 + $0xde8] sm:$0xff] }
 0xd14   :  { %v5147_v9 = vld [vmem:[#allocation3 + $0x18] sm:$0xff] }
 0xd15   :  { %v5370_v22 = vld [vmem:[#allocation3 + $0x12] sm:$0xff]  ;;  %10374 = vmatpush3.bf16.msra.mxu1 %v10373_v35  ;;  %v5522_v35 = vld [vmem:[#allocation10 + $0xdd8] sm:$0xff] }
 0xd16   :  { %10323 = vmatpush3.bf16.msra.mxu0 %v10322_v42  ;;  %10375 = vmatprep.subr.bf16.mxu1 %v11015_v0  ;;  %v6628_v42 = vld [vmem:[%s13168_s4 + $0x98] sm:$0xff] }
 0xd17   :  { %10324 = vmatprep.subr.bf16.mxu0 %v11015_v0  ;;  %v10430_v45 = vpack.c.bf16 %v6628_v42, %v6627_v21  ;;  %v5526_v21 = vld [vmem:[#allocation10 + $0xdf8] sm:$0xff] }
 0xd18   :  { %v10400_v42 = vpack.c.bf16 %v5526_v21, %v5525_v39 }
 0xd19   :  { %v5170_v27 = vld [vmem:[#allocation3 + $0x21] sm:$0x3]  ;;  %10377 = vmatpush3.bf16.msra.mxu1 %v10376_v62 }
 0xd1a   :  { %8938 = vmatmul.mubr.f32.gmra.mrb[74].mxu0 %v5170_v27  ;;  %v5148_v53 = vld [vmem:[#allocation3 + $0x20] sm:$0x3]  ;;  %v5372_v25 = vld [vmem:[#allocation3 + $0x22] sm:$0x3]  ;;  %10378 = vmatprep.subr.bf16.mxu1 %v11015_v0  ;;  %v6632_v27 = vld [vmem:[%s13168_s4 + $0xb8] sm:$0xff] }
 0xd1b   :  { %10326 = vmatpush3.bf16.msra.mxu0 %v10325_v48  ;;  %8972 = vmatprep.mubr.msk.f32.mxu0 %vm11016_vm1, %v11017_v1  ;;  %v5371_v41 = vld [vmem:[#allocation3 + $0x1a] sm:$0xff]  ;;  %v5523_v62 = vld [vmem:[#allocation10 + $0xde0] sm:$0xff] }
 0xd1c   :  { %10327 = vmatprep.subr.bf16.mxu0 %v11015_v0  ;;  %v6630_v48 = vld [vmem:[%s13168_s4 + $0xa8] sm:$0xff] }
 0xd1d   :  { %v10433_v12 = vpack.c.bf16 %v6630_v48, %v6629_v44  ;;  %v5736_v44 = vld [vmem:[#allocation10 + $0xe88] sm:$0xff] }
 0xd1f   :  { %10329 = vmatpush3.bf16.msra.mxu0 %v10328_v36  ;;  %v10436_v36 = vpack.c.bf16 %v6632_v27, %v6631_v55  ;;  %v5738_v55 = vld [vmem:[#allocation10 + $0xe98] sm:$0xff] }
 0xd20   :  { %10330 = vmatprep.subr.bf16.mxu0 %v11015_v0 }
 0xd22   :  { %8973 = vmatmul.mubr.f32.vlgmr.msra.gmra.mrb[66].mxu0 %v5144_v6  ;;  %v10442_v6 = vpack.c.bf16 %v6636_v59, %v6635_v58  ;;  %v5741_v59 = vld [vmem:[#allocation10 + $0xeb0] sm:$0xff] }
 0xd23   :  { %10332 = vmatpush3.bf16.msra.mxu0 %v10331_v15  ;;  %8975 = vmatprep.mubr.msk.f32.mxu0 %vm11016_vm1, %v11017_v1  ;;  %v10439_v15 = vpack.c.bf16 %v6634_v50, %v6633_v57  ;;  %v5739_v57 = vld [vmem:[#allocation10 + $0xea0] sm:$0xff]  ;;  %v5740_v50 = vld [vmem:[#allocation10 + $0xea8] sm:$0xff] }
 0xd24   :  { %10333 = vmatprep.subr.bf16.mxu0 %v11015_v0  ;;  %v10409_v58 = vpack.c.bf16 %v5740_v50, %v5739_v57 }
 0xd26   :  { %8976 = vmatmul.mubr.f32.gmra.mrb[68].mxu0 %v5145_v18 }
 0xd27   :  { %10335 = vmatpush3.bf16.msra.mxu0 %v10334_v60  ;;  %8978 = vmatprep.mubr.msk.f32.mxu0 %vm11016_vm1, %v11017_v1  ;;  %v5511_v60 = vld [vmem:[#allocation10 + $0xd80] sm:$0xff] }
 0xd28   :  { %10336 = vmatprep.subr.bf16.mxu0 %v11015_v0  ;;  %v10379_v61 = vpack.c.bf16 %v5512_v63, %v5511_v60 }
 0xd2a   :  { %8979 = vmatmul.mubr.f32.gmra.mrb[70].mxu0 %v5146_v46  ;;  %v5513_v46 = vld [vmem:[#allocation10 + $0xd90] sm:$0xff] }
 0xd2b   :  { %10338 = vmatpush3.bf16.msra.mxu0 %v10337_v56  ;;  %8981 = vmatprep.mubr.msk.f32.mxu0 %vm11016_vm1, %v11017_v1 }
 0xd2c   :  { %10339 = vmatprep.subr.bf16.mxu0 %v11015_v0 }
 0xd2e   :  { %8982 = vmatmul.mubr.f32.gmra.mrb[72].mxu0 %v5147_v9 }
 0xd2f   :  { %10341 = vmatpush3.bf16.msra.mxu0 %v10340_v7  ;;  %8984 = vmatprep.mubr.msk.f32.mxu0 %vm11016_vm1, %v11017_v1  ;;  %v5514_v7 = vld [vmem:[#allocation10 + $0xd98] sm:$0xff] }
 0xd30   :  { %10342 = vmatprep.subr.bf16.mxu0 %v11015_v0 }
 0xd32   :  { %8985 = vmatmul.mubr.f32.gmra.mrb[74].mxu0 %v5148_v53  ;;  %v5516_v53 = vld [vmem:[#allocation10 + $0xda8] sm:$0xff] }
 0xd33   :  { %10344 = vmatpush3.bf16.msra.mxu0 %v10343_v49  ;;  %9019 = vmatprep.mubr.msk.f32.mxu0 %vm11016_vm1, %v11017_v1  ;;  %v10382_v49 = vpack.c.bf16 %v5514_v7, %v5513_v46  ;;  %v10385_v11 = vpack.c.bf16 %v5516_v53, %v5515_v52  ;;  %v5746_v46 = vld [vmem:[#allocation10 + $0xed8] sm:$0xff] }
 0xd34   :  { %10345 = vmatprep.subr.bf16.mxu0 %v11015_v0  ;;  %v5750_v52 = vld [vmem:[#allocation10 + $0xef8] sm:$0xff] }
 0xd37   :  { %10347 = vmatpush3.bf16.msra.mxu0 %v10346_v5 }
 0xd38   :  { %10348 = vmatprep.subr.bf16.mxu0 %v11015_v0 }
 0xd3b   :  { %10350 = vmatpush3.bf16.msra.mxu0 %v10349_v14 }
 0xd3c   :  { %10351 = vmatprep.subr.bf16.mxu0 %v11015_v0 }
 0xd3f   :  { %10353 = vmatpush3.bf16.msra.mxu0 %v10352_v17 }
 0xd40   :  { %10426 = vmatprep.subr.bf16.mxu0 %v11015_v0 }
 0xd42   :  { %9020 = vmatmul.mubr.f32.vlgmr.msra.gmra.mrb[66].mxu0 %v5368_v19 }
 0xd43   :  { %9022 = vmatprep.mubr.msk.f32.mxu0 %vm11016_vm1, %v11017_v1  ;;  %10428 = vmatpush3.bf16.msra.mxu0 %v10427_v40 }
 0xd44   :  { %10429 = vmatprep.subr.bf16.mxu0 %v11015_v0 }
 0xd46   :  { %9023 = vmatmul.mubr.f32.gmra.mrb[68].mxu0 %v5369_v20 }
 0xd47   :  { %9025 = vmatprep.mubr.msk.f32.mxu0 %vm11016_vm1, %v11017_v1  ;;  %10431 = vmatpush3.bf16.msra.mxu0 %v10430_v45  ;;  %v5735_v45 = vld [vmem:[#allocation10 + $0xe80] sm:$0xff] }
 0xd48   :  { %10432 = vmatprep.subr.bf16.mxu0 %v11015_v0  ;;  %v10403_v48 = vpack.c.bf16 %v5736_v44, %v5735_v45  ;;  %v5868_v45 = vld [vmem:[%s13168_s4 + $0x38] sm:$0xff] }
 0xd4a   :  { %9026 = vmatmul.mubr.f32.gmra.mrb[70].mxu0 %v5370_v22 }
 0xd4b   :  { %9028 = vmatprep.mubr.msk.f32.mxu0 %vm11016_vm1, %v11017_v1  ;;  %10434 = vmatpush3.bf16.msra.mxu0 %v10433_v12  ;;  %v5737_v12 = vld [vmem:[#allocation10 + $0xe90] sm:$0xff] }
 0xd4c   :  { %10435 = vmatprep.subr.bf16.mxu0 %v11015_v0 }
 0xd4e   :  { %9029 = vmatmul.mubr.f32.gmra.mrb[72].mxu0 %v5371_v41 }
 0xd4f   :  { %9031 = vmatprep.mubr.msk.f32.mxu0 %vm11016_vm1, %v11017_v1  ;;  %10437 = vmatpush3.bf16.msra.mxu0 %v10436_v36  ;;  %v10406_v36 = vpack.c.bf16 %v5738_v55, %v5737_v12 }
 0xd50   :  { %10438 = vmatprep.subr.bf16.mxu0 %v11015_v0 }
 0xd52   :  { %9032 = vmatmul.mubr.f32.gmra.mrb[74].mxu0 %v5372_v25  ;;  %v5520_v25 = vld [vmem:[#allocation10 + $0xdc8] sm:$0xff] }
 0xd53   :  { %9207 = vmatprep.mubr.msk.f32.mxu0 %vm11016_vm1, %v11017_v1  ;;  %10440 = vmatpush3.bf16.msra.mxu0 %v10439_v15 }
 0xd54   :  { %10441 = vmatprep.subr.bf16.mxu0 %v11015_v0 }
 0xd57   :  { %10443 = vmatpush3.bf16.msra.mxu0 %v10442_v6  ;;  %v5742_v6 = vld [vmem:[#allocation10 + $0xeb8] sm:$0xff] }
 0xd58   :  { %10444 = vmatprep.subr.bf16.mxu0 %v11015_v0  ;;  %v10412_v63 = vpack.c.bf16 %v5742_v6, %v5741_v59  ;;  %v5872_v59 = vld [vmem:[%s13168_s4 + $0x58] sm:$0xff] }
 0xe15   :  { %v5456_v2 = vpop.f32.mrb[66].mxu0 }
 0xe16   :  { %v5485_v18 = vmul.f32 0.1, %v5456_v2  ;;  %v9021_v56 = vpop.f32.mrb[67].mxu0  ;;  %v5743_v2 = vld [vmem:[#allocation10 + $0xec0] sm:$0xff] }
 0xe18   :  { %v5490_v3 = vadd.f32 %v5485_v18, %v12666_v23  ;;  %v5744_v18 = vld [vmem:[#allocation10 + $0xec8] sm:$0xff] }
 0xe19   :  { %v5461_v51 = vpop.f32.mrb[68].mxu0 }
 0xe1a   :  { %5500 = vst [vmem:[#allocation3 + $0x1] sm:$0xff] %v5490_v3  ;;  %v5486_v8 = vmul.f32 0.1, %v5461_v51  ;;  %v9024_v9 = vpop.f32.mrb[69].mxu0  ;;  %9067 = vmatmul.mubr.f32.vlgmr.msra.gmra.mrb[76].mxu1 %v5490_v3  ;;  %v5745_v3 = vld [vmem:[#allocation10 + $0xed0] sm:$0xff] }
 0xe1b   :  { %10380 = vmatpush3.bf16.msra.mxu1 %v10379_v61  ;;  %9069 = vmatprep.mubr.msk.f32.mxu1 %vm11016_vm1, %v11017_v1  ;;  %v10415_v61 = vpack.c.bf16 %v5744_v18, %v5743_v2  ;;  %v10418_v51 = vpack.c.bf16 %v5746_v46, %v5745_v3  ;;  %v5748_v9 = vld [vmem:[#allocation10 + $0xee8] sm:$0xff]  ;;  %v5873_v18 = vld [vmem:[%s13168_s4 + $0x60] sm:$0xff] }
 0xe1c   :  { %v5491_v10 = vadd.f32 %v5486_v8, %v12673_v31  ;;  %10381 = vmatprep.subr.bf16.mxu1 %v11015_v0  ;;  %v5518_v31 = vld [vmem:[#allocation10 + $0xdb8] sm:$0xff]  ;;  %v5747_v8 = vld [vmem:[#allocation10 + $0xee0] sm:$0xff]  ;;  %v5876_v46 = vld [vmem:[%s13168_s4 + $0x78] sm:$0xff] }
 0xe1d   :  { %v5466_v5 = vpop.f32.mrb[70].mxu0  ;;  %v10388_v22 = vpack.c.bf16 %v5518_v31, %v5517_v16  ;;  %v6637_v16 = vld [vmem:[%s13168_s4 + $0xe0] sm:$0xff]  ;;  %v6638_v31 = vld [vmem:[%s13168_s4 + $0xe8] sm:$0xff]  ;;  %v5875_v3 = vld [vmem:[%s13168_s4 + $0x70] sm:$0xff] }
 0xe1e   :  { %5501 = vst [vmem:[#allocation3 + $0x9] sm:$0xff] %v5491_v10  ;;  %v5487_v23 = vmul.f32 0.1, %v5466_v5  ;;  %v9027_v13 = vpop.f32.mrb[71].mxu0  ;;  %9070 = vmatmul.mubr.f32.gmra.mrb[78].mxu1 %v5491_v10  ;;  %v5749_v10 = vld [vmem:[#allocation10 + $0xef0] sm:$0xff] }
 0xe1f   :  { %10383 = vmatpush3.bf16.msra.mxu1 %v10382_v49  ;;  %9072 = vmatprep.mubr.msk.f32.mxu1 %vm11016_vm1, %v11017_v1  ;;  %v10421_v49 = vpack.c.bf16 %v5748_v9, %v5747_v8  ;;  %v10424_v53 = vpack.c.bf16 %v5750_v52, %v5749_v10  ;;  %v6641_v8 = vld [vmem:[%s13168_s4 + $0x100] sm:$0xff]  ;;  %v6642_v9 = vld [vmem:[%s13168_s4 + $0x108] sm:$0xff]  ;;  %v6643_v10 = vld [vmem:[%s13168_s4 + $0x110] sm:$0xff] }
 0xe20   :  { %v5492_v14 = vadd.f32 %v5487_v23, %v12684_v43  ;;  %10384 = vmatprep.subr.bf16.mxu1 %v11015_v0  ;;  %v5519_v43 = vld [vmem:[#allocation10 + $0xdc0] sm:$0xff]  ;;  %v6644_v52 = vld [vmem:[%s13168_s4 + $0x118] sm:$0xff] }
 0xe21   :  { %v5471_v30 = vpop.f32.mrb[72].mxu0  ;;  %v10391_v28 = vpack.c.bf16 %v5520_v25, %v5519_v43  ;;  %v5505_v27 = vld [vmem:[#allocation3] sm:$0xff]  ;;  %v6229_v43 = vld [vmem:[#allocation12 + $0x50] sm:$0xff] }
 0xe22   :  { %v5497_v17 = vsel %vm163_vm3, %v5492_v14, 0.0  ;;  %v5488_v19 = vmul.f32 0.1, %v5471_v30  ;;  %v9030_v20 = vpop.f32.mrb[73].mxu0  ;;  %10816 = vmatmul.mubr.msk.f32.gmra.mrb[80].mxu1 %vm163_vm3, %v5492_v14  ;;  %v10445_v30 = vpack.c.bf16 %v6638_v31, %v6637_v16  ;;  %v6647_v16 = vld [vmem:[%s13168_s4 + $0x130] sm:$0xff]  ;;  %v6648_v31 = vld [vmem:[%s13168_s4 + $0x138] sm:$0xff] }
 0xe23   :  { %5502 = vst [vmem:[#allocation3 + $0x11] sm:$0xff] %v5497_v17  ;;  %10386 = vmatpush3.bf16.msra.mxu1 %v10385_v11  ;;  %9075 = vmatprep.mubr.msk.f32.mxu1 %vm11016_vm1, %v11017_v1  ;;  %v6639_v17 = vld [vmem:[%s13168_s4 + $0xf0] sm:$0xff] }
 0xe24   :  { %v5493_v41 = vadd.f32 %v5488_v19, %v12688_v54  ;;  %10387 = vmatprep.subr.bf16.mxu1 %v11015_v0  ;;  %v5521_v54 = vld [vmem:[#allocation10 + $0xdd0] sm:$0xff]  ;;  %10446 = vmatpush3.bf16.msra.mxu0 %v10445_v30 }
 0xe25   :  { %v5476_v26 = vpop.f32.mrb[74].mxu0  ;;  %v10394_v38 = vpack.c.bf16 %v5522_v35, %v5521_v54  ;;  %v5506_v15 = vld [vmem:[#allocation3 + $0x8] sm:$0xff]  ;;  %10447 = vmatprep.subr.bf16.mxu0 %v11015_v0  ;;  %v6640_v19 = vld [vmem:[%s13168_s4 + $0xf8] sm:$0xff] }
 0xe26   :  { %5503 = vst [vmem:[#allocation3 + $0x19] sm:$0xff] %v5493_v41  ;;  %v5489_v29 = vmul.f32 0.1, %v5476_v26  ;;  %v9033_v24 = vpop.f32.mrb[75].mxu0  ;;  %9076 = vmatmul.mubr.f32.gmra.mrb[82].mxu1 %v5493_v41  ;;  %v5729_v5 = vld [vmem:[#allocation3 + $0x2] sm:$0xff]  ;;  %v10448_v20 = vpack.c.bf16 %v6640_v19, %v6639_v17  ;;  %v6228_v41 = vld [vmem:[#allocation12 + $0x48] sm:$0xff]  ;;  %v10484_v17 = vpack.c.bf16 %v6648_v31, %v6647_v16 }
 0xe27   :  { %10389 = vmatpush3.bf16.msra.mxu1 %v10388_v22  ;;  %9078 = vmatprep.mubr.msk.f32.mxu1 %vm11016_vm1, %v11017_v1  ;;  %v6227_v22 = vld [vmem:[#allocation12 + $0x40] sm:$0xff]  ;;  %v6230_v26 = vld [vmem:[#allocation12 + $0x58] sm:$0xff]  ;;  %v5864_v35 = vld [vmem:[%s13168_s4 + $0x18] sm:$0xff] }
 0xe28   :  { %v5494_v34 = vadd.f32 %v5489_v29, %v12705_v4  ;;  %10390 = vmatprep.subr.bf16.mxu1 %v11015_v0  ;;  %v10397_v4 = vpack.c.bf16 %v5524_v33, %v5523_v62  ;;  %10449 = vmatpush3.bf16.msra.mxu0 %v10448_v20  ;;  %v10499_v25 = vpack.c.bf16 %v6228_v41, %v6227_v22  ;;  %v5861_v24 = vld [vmem:[%s13168_s4] sm:$0xff]  ;;  %v5863_v54 = vld [vmem:[%s13168_s4 + $0x10] sm:$0xff]  ;;  %v6650_v20 = vld [vmem:[%s13168_s4 + $0x148] sm:$0xff] }
 0xe29   :  { %10450 = vmatprep.subr.bf16.mxu0 %v11015_v0  ;;  %v10502_v29 = vpack.c.bf16 %v6230_v26, %v6229_v43  ;;  %v10454_v62 = vpack.c.bf16 %v5864_v35, %v5863_v54  ;;  %v5865_v33 = vld [vmem:[%s13168_s4 + $0x20] sm:$0xff]  ;;  %v6651_v43 = vld [vmem:[%s13168_s4 + $0x150] sm:$0xff]  ;;  %v6656_v35 = vld [vmem:[%s13168_s4 + $0x178] sm:$0xff] }
 0xe2a   :  { %v5499_v37 = vsel %vm170_vm4, %v5494_v34, 0.0  ;;  %v5507_v60 = vld [vmem:[#allocation3 + $0x10] sm:$0xff]  ;;  %v6649_v19 = vld [vmem:[%s13168_s4 + $0x140] sm:$0xff]  ;;  %v6655_v54 = vld [vmem:[%s13168_s4 + $0x170] sm:$0xff] }
 0xe2b   :  { %5504 = vst [vmem:[#allocation3 + $0x21] sm:$0x3] %v5499_v37  ;;  %10392 = vmatpush3.bf16.msra.mxu1 %v10391_v28  ;;  %v5730_v23 = vld [vmem:[#allocation3 + $0xa] sm:$0xff]  ;;  %v5862_v28 = vld [vmem:[%s13168_s4 + $0x8] sm:$0xff]  ;;  %v10487_v41 = vpack.c.bf16 %v6650_v20, %v6649_v19 }
 0xe2c   :  { %10393 = vmatprep.subr.bf16.mxu1 %v11015_v0  ;;  %v10451_v34 = vpack.c.bf16 %v5862_v28, %v5861_v24  ;;  %v6653_v24 = vld [vmem:[%s13168_s4 + $0x160] sm:$0xff]  ;;  %v6654_v28 = vld [vmem:[%s13168_s4 + $0x168] sm:$0xff] }
 0xe2d   :  { %v5508_v56 = vld [vmem:[#allocation3 + $0x18] sm:$0xff] }
 0xe2e   :  { %v5731_v13 = vld [vmem:[#allocation3 + $0x12] sm:$0xff] }
 0xe2f   :  { %10395 = vmatpush3.bf16.msra.mxu1 %v10394_v38 }
 0xe30   :  { %10396 = vmatprep.subr.bf16.mxu1 %v11015_v0 }
 0xe32   :  { %v5531_v40 = vld [vmem:[#allocation3 + $0x21] sm:$0x3] }
 0xe33   :  { %9079 = vmatmul.mubr.f32.gmra.mrb[84].mxu1 %v5531_v40  ;;  %v5509_v7 = vld [vmem:[#allocation3 + $0x20] sm:$0x3]  ;;  %v5733_v14 = vld [vmem:[#allocation3 + $0x22] sm:$0x3] }
 0xe34   :  { %10398 = vmatpush3.bf16.msra.mxu1 %v10397_v4  ;;  %9113 = vmatprep.mubr.msk.f32.mxu1 %vm11016_vm1, %v11017_v1  ;;  %v5732_v11 = vld [vmem:[#allocation3 + $0x1a] sm:$0xff] }
 0xe35   :  { %10399 = vmatprep.subr.bf16.mxu1 %v11015_v0  ;;  %v5866_v4 = vld [vmem:[%s13168_s4 + $0x28] sm:$0xff] }
 0xe36   :  { %v10457_v40 = vpack.c.bf16 %v5866_v4, %v5865_v33 }
 0xe38   :  { %10401 = vmatpush3.bf16.msra.mxu1 %v10400_v42  ;;  %v5867_v42 = vld [vmem:[%s13168_s4 + $0x30] sm:$0xff] }
 0xe39   :  { %10402 = vmatprep.subr.bf16.mxu1 %v11015_v0  ;;  %v10460_v55 = vpack.c.bf16 %v5868_v45, %v5867_v42  ;;  %v6231_v45 = vld [vmem:[#allocation12 + $0x60] sm:$0xff] }
 0xe3b   :  { %9114 = vmatmul.mubr.f32.vlgmr.msra.gmra.mrb[76].mxu1 %v5505_v27  ;;  %v5869_v27 = vld [vmem:[%s13168_s4 + $0x40] sm:$0xff] }
 0xe3c   :  { %10404 = vmatpush3.bf16.msra.mxu1 %v10403_v48  ;;  %9116 = vmatprep.mubr.msk.f32.mxu1 %vm11016_vm1, %v11017_v1 }
 0xe3d   :  { %10405 = vmatprep.subr.bf16.mxu1 %v11015_v0 }
 0xe3f   :  { %9117 = vmatmul.mubr.f32.gmra.mrb[78].mxu1 %v5506_v15 }
 0xe40   :  { %10407 = vmatpush3.bf16.msra.mxu1 %v10406_v36  ;;  %9119 = vmatprep.mubr.msk.f32.mxu1 %vm11016_vm1, %v11017_v1  ;;  %v5870_v36 = vld [vmem:[%s13168_s4 + $0x48] sm:$0xff] }
 0xe41   :  { %10408 = vmatprep.subr.bf16.mxu1 %v11015_v0  ;;  %v10463_v15 = vpack.c.bf16 %v5870_v36, %v5869_v27  ;;  %v6233_v36 = vld [vmem:[#allocation12 + $0x70] sm:$0xff] }
 0xe43   :  { %9120 = vmatmul.mubr.f32.gmra.mrb[80].mxu1 %v5507_v60 }
 0xe44   :  { %10410 = vmatpush3.bf16.msra.mxu1 %v10409_v58  ;;  %9122 = vmatprep.mubr.msk.f32.mxu1 %vm11016_vm1, %v11017_v1  ;;  %v5871_v58 = vld [vmem:[%s13168_s4 + $0x50] sm:$0xff] }
 0xe45   :  { %10411 = vmatprep.subr.bf16.mxu1 %v11015_v0  ;;  %v10466_v2 = vpack.c.bf16 %v5872_v59, %v5871_v58  ;;  %v6456_v58 = vld [vmem:[#allocation12 + $0xa8] sm:$0xff] }
 0xe47   :  { %9123 = vmatmul.mubr.f32.gmra.mrb[82].mxu1 %v5508_v56  ;;  %v5874_v56 = vld [vmem:[%s13168_s4 + $0x68] sm:$0xff] }
 0xe48   :  { %10413 = vmatpush3.bf16.msra.mxu1 %v10412_v63  ;;  %9125 = vmatprep.mubr.msk.f32.mxu1 %vm11016_vm1, %v11017_v1 }
 0xe49   :  { %10414 = vmatprep.subr.bf16.mxu1 %v11015_v0 }
 0xe4b   :  { %9126 = vmatmul.mubr.f32.gmra.mrb[84].mxu1 %v5509_v7 }
 0xe4c   :  { %10416 = vmatpush3.bf16.msra.mxu1 %v10415_v61  ;;  %9160 = vmatprep.mubr.msk.f32.mxu1 %vm11016_vm1, %v11017_v1  ;;  %v10469_v61 = vpack.c.bf16 %v5874_v56, %v5873_v18  ;;  %v6213_v56 = vld [vmem:[#allocation12] sm:$0xff] }
 0xe4d   :  { %10417 = vmatprep.subr.bf16.mxu1 %v11015_v0 }
 0xe50   :  { %10419 = vmatpush3.bf16.msra.mxu1 %v10418_v51  ;;  %v10472_v51 = vpack.c.bf16 %v5876_v46, %v5875_v3 }
 0xe51   :  { %10420 = vmatprep.subr.bf16.mxu1 %v11015_v0 }
 0xe54   :  { %10422 = vmatpush3.bf16.msra.mxu1 %v10421_v49  ;;  %v10475_v49 = vpack.c.bf16 %v6642_v9, %v6641_v8  ;;  %v6216_v8 = vld [vmem:[#allocation12 + $0x18] sm:$0xff] }
 0xe55   :  { %10423 = vmatprep.subr.bf16.mxu1 %v11015_v0 }
 0xe58   :  { %10425 = vmatpush3.bf16.msra.mxu1 %v10424_v53 }
 0xe59   :  { %10498 = vmatprep.subr.bf16.mxu1 %v11015_v0 }
 0xe5b   :  { %9161 = vmatmul.mubr.f32.vlgmr.msra.gmra.mrb[76].mxu1 %v5729_v5  ;;  %v10478_v5 = vpack.c.bf16 %v6644_v52, %v6643_v10 }
 0xe5c   :  { %9163 = vmatprep.mubr.msk.f32.mxu1 %vm11016_vm1, %v11017_v1  ;;  %10500 = vmatpush3.bf16.msra.mxu1 %v10499_v25  ;;  %v6652_v25 = vld [vmem:[%s13168_s4 + $0x158] sm:$0xff] }
 0xe5d   :  { %10501 = vmatprep.subr.bf16.mxu1 %v11015_v0 }
 0xe5f   :  { %9164 = vmatmul.mubr.f32.gmra.mrb[78].mxu1 %v5730_v23  ;;  %v6645_v23 = vld [vmem:[%s13168_s4 + $0x120] sm:$0xff] }
 0xe60   :  { %9166 = vmatprep.mubr.msk.f32.mxu1 %vm11016_vm1, %v11017_v1  ;;  %10503 = vmatpush3.bf16.msra.mxu1 %v10502_v29  ;;  %v10490_v29 = vpack.c.bf16 %v6652_v25, %v6651_v43 }
 0xe61   :  { %10504 = vmatprep.subr.bf16.mxu1 %v11015_v0 }
 0xe63   :  { %9167 = vmatmul.mubr.f32.gmra.mrb[80].mxu1 %v5731_v13  ;;  %v6646_v13 = vld [vmem:[%s13168_s4 + $0x128] sm:$0xff] }
 0xe64   :  { %9169 = vmatprep.mubr.msk.f32.mxu1 %vm11016_vm1, %v11017_v1 }
 0xe67   :  { %9170 = vmatmul.mubr.f32.gmra.mrb[82].mxu1 %v5732_v11 }
 0xe68   :  { %9172 = vmatprep.mubr.msk.f32.mxu1 %vm11016_vm1, %v11017_v1 }
 0xe6b   :  { %9173 = vmatmul.mubr.f32.gmra.mrb[84].mxu1 %v5733_v14  ;;  %v10481_v14 = vpack.c.bf16 %v6646_v13, %v6645_v23 }
 0xe6c   :  { %9332 = vmatprep.mubr.msk.f32.mxu1 %vm11016_vm1, %v11017_v1 }
 0xf2e   :  { %v5817_v37 = vpop.f32.mrb[76].mxu1 }
 0xf2f   :  { %5851 = vst [vmem:[#allocation3 + $0x1] sm:$0xff] %v5817_v37  ;;  %v9162_v38 = vpop.f32.mrb[77].mxu1  ;;  %9208 = vmatmul.mubr.f32.vlgmr.msra.gmra.mrb[76].mxu0 %v5817_v37  ;;  %v10496_v37 = vpack.c.bf16 %v6656_v35, %v6655_v54 }
 0xf30   :  { %10452 = vmatpush3.bf16.msra.mxu0 %v10451_v34  ;;  %9210 = vmatprep.mubr.msk.f32.mxu0 %vm11016_vm1, %v11017_v1  ;;  %v10493_v34 = vpack.c.bf16 %v6654_v28, %v6653_v24  ;;  %v6451_v38 = vld [vmem:[#allocation12 + $0x80] sm:$0xff] }
 0xf31   :  { %10453 = vmatprep.subr.bf16.mxu0 %v11015_v0 }
 0xf32   :  { %v5822_v39 = vpop.f32.mrb[78].mxu1 }
 0xf33   :  { %5852 = vst [vmem:[#allocation3 + $0x9] sm:$0xff] %v5822_v39  ;;  %v9165_v21 = vpop.f32.mrb[79].mxu1  ;;  %9211 = vmatmul.mubr.f32.gmra.mrb[78].mxu0 %v5822_v39 }
 0xf34   :  { %10455 = vmatpush3.bf16.msra.mxu0 %v10454_v62  ;;  %9213 = vmatprep.mubr.msk.f32.mxu0 %vm11016_vm1, %v11017_v1  ;;  %v6452_v62 = vld [vmem:[#allocation12 + $0x88] sm:$0xff] }
 0xf35   :  { %10456 = vmatprep.subr.bf16.mxu0 %v11015_v0  ;;  %v13054_v33 = vpack.c.bf16 %v6452_v62, %v6451_v38 }
 0xf36   :  { %v5827_v44 = vpop.f32.mrb[80].mxu1  ;;  %v5856_v53 = vld [vmem:[#allocation3] sm:$0xff] }
 0xf37   :  { %v5848_v48 = vsel %vm163_vm3, %v5827_v44, 0.0  ;;  %v9168_v12 = vpop.f32.mrb[81].mxu1  ;;  %10817 = vmatmul.mubr.msk.f32.gmra.mrb[80].mxu0 %vm163_vm3, %v5827_v44  ;;  %v6232_v44 = vld [vmem:[#allocation12 + $0x68] sm:$0xff] }
 0xf38   :  { %5853 = vst [vmem:[#allocation3 + $0x11] sm:$0xff] %v5848_v48  ;;  %10458 = vmatpush3.bf16.msra.mxu0 %v10457_v40  ;;  %9216 = vmatprep.mubr.msk.f32.mxu0 %vm11016_vm1, %v11017_v1  ;;  %v6453_v48 = vld [vmem:[#allocation12 + $0x90] sm:$0xff]  ;;  %v10505_v12 = vpack.c.bf16 %v6232_v44, %v6231_v45 }
 0xf39   :  { %10459 = vmatprep.subr.bf16.mxu0 %v11015_v0 }
 0xf3a   :  { %v5832_v57 = vpop.f32.mrb[82].mxu1  ;;  %v5857_v11 = vld [vmem:[#allocation3 + $0x8] sm:$0xff]  ;;  %10506 = vmatpush3.bf16.msra.mxu1 %v10505_v12 }
 0xf3b   :  { %5854 = vst [vmem:[#allocation3 + $0x19] sm:$0xff] %v5832_v57  ;;  %v9171_v50 = vpop.f32.mrb[83].mxu1  ;;  %9217 = vmatmul.mubr.f32.gmra.mrb[82].mxu0 %v5832_v57  ;;  %v6079_v4 = vld [vmem:[#allocation3 + $0x2] sm:$0xff]  ;;  %10507 = vmatprep.subr.bf16.mxu1 %v11015_v0  ;;  %v6234_v57 = vld [vmem:[#allocation12 + $0x78] sm:$0xff] }
 0xf3c   :  { %10461 = vmatpush3.bf16.msra.mxu0 %v10460_v55  ;;  %9219 = vmatprep.mubr.msk.f32.mxu0 %vm11016_vm1, %v11017_v1  ;;  %v6454_v55 = vld [vmem:[#allocation12 + $0x98] sm:$0xff]  ;;  %v6455_v50 = vld [vmem:[#allocation12 + $0xa0] sm:$0xff] }
 0xf3d   :  { %10462 = vmatprep.subr.bf16.mxu0 %v11015_v0  ;;  %v13069_v27 = vpack.c.bf16 %v6454_v55, %v6453_v48  ;;  %v13076_v59 = vpack.c.bf16 %v6456_v58, %v6455_v50 }
 0xf3e   :  { %v5837_v6 = vpop.f32.mrb[84].mxu1 }
 0xf3f   :  { %v5850_v60 = vsel %vm170_vm4, %v5837_v6, 0.0  ;;  %v9174_v63 = vpop.f32.mrb[85].mxu1  ;;  %v5858_v30 = vld [vmem:[#allocation3 + $0x10] sm:$0xff] }
 0xf40   :  { %5855 = vst [vmem:[#allocation3 + $0x21] sm:$0x3] %v5850_v60  ;;  %10464 = vmatpush3.bf16.msra.mxu0 %v10463_v15  ;;  %v6080_v39 = vld [vmem:[#allocation3 + $0xa] sm:$0xff]  ;;  %v10508_v15 = vpack.c.bf16 %v6234_v57, %v6233_v36  ;;  %v6457_v6 = vld [vmem:[#allocation12 + $0xb0] sm:$0xff]  ;;  %v6458_v60 = vld [vmem:[#allocation12 + $0xb8] sm:$0xff] }
 0xf41   :  { %10465 = vmatprep.subr.bf16.mxu0 %v11015_v0  ;;  %v13081_v63 = vpack.c.bf16 %v6458_v60, %v6457_v6 }
 0xf42   :  { %v5859_v22 = vld [vmem:[#allocation3 + $0x18] sm:$0xff]  ;;  %10509 = vmatpush3.bf16.msra.mxu1 %v10508_v15 }
 0xf43   :  { %v6081_v21 = vld [vmem:[#allocation3 + $0x12] sm:$0xff]  ;;  %10510 = vmatprep.subr.bf16.mxu1 %v11015_v0 }
 0xf44   :  { %10467 = vmatpush3.bf16.msra.mxu0 %v10466_v2 }
 0xf45   :  { %10468 = vmatprep.subr.bf16.mxu0 %v11015_v0 }
 0xf47   :  { %v5881_v7 = vld [vmem:[#allocation3 + $0x21] sm:$0x3] }
 0xf48   :  { %9220 = vmatmul.mubr.f32.gmra.mrb[84].mxu0 %v5881_v7  ;;  %v5860_v26 = vld [vmem:[#allocation3 + $0x20] sm:$0x3]  ;;  %v6083_v42 = vld [vmem:[#allocation3 + $0x22] sm:$0x3] }
 0xf49   :  { %10470 = vmatpush3.bf16.msra.mxu0 %v10469_v61  ;;  %9254 = vmatprep.mubr.msk.f32.mxu0 %vm11016_vm1, %v11017_v1  ;;  %v6082_v40 = vld [vmem:[#allocation3 + $0x1a] sm:$0xff]  ;;  %v6214_v61 = vld [vmem:[#allocation12 + $0x8] sm:$0xff] }
 0xf4a   :  { %10471 = vmatprep.subr.bf16.mxu0 %v11015_v0  ;;  %v10511_v7 = vpack.c.bf16 %v6214_v61, %v6213_v56 }
 0xf4d   :  { %10473 = vmatpush3.bf16.msra.mxu0 %v10472_v51  ;;  %v6215_v51 = vld [vmem:[#allocation12 + $0x10] sm:$0xff] }
 0xf4e   :  { %10474 = vmatprep.subr.bf16.mxu0 %v11015_v0 }
 0xf50   :  { %9255 = vmatmul.mubr.f32.vlgmr.msra.gmra.mrb[76].mxu0 %v5856_v53  ;;  %v10514_v53 = vpack.c.bf16 %v6216_v8, %v6215_v51 }
 0xf51   :  { %10476 = vmatpush3.bf16.msra.mxu0 %v10475_v49  ;;  %9257 = vmatprep.mubr.msk.f32.mxu0 %vm11016_vm1, %v11017_v1 }
 0xf52   :  { %10477 = vmatprep.subr.bf16.mxu0 %v11015_v0 }
 0xf54   :  { %9258 = vmatmul.mubr.f32.gmra.mrb[78].mxu0 %v5857_v11 }
 0xf55   :  { %10479 = vmatpush3.bf16.msra.mxu0 %v10478_v5  ;;  %9260 = vmatprep.mubr.msk.f32.mxu0 %vm11016_vm1, %v11017_v1  ;;  %v6217_v5 = vld [vmem:[#allocation12 + $0x20] sm:$0xff] }
 0xf56   :  { %10480 = vmatprep.subr.bf16.mxu0 %v11015_v0 }
 0xf58   :  { %9261 = vmatmul.mubr.f32.gmra.mrb[80].mxu0 %v5858_v30  ;;  %v6219_v30 = vld [vmem:[#allocation12 + $0x30] sm:$0xff] }
 0xf59   :  { %10482 = vmatpush3.bf16.msra.mxu0 %v10481_v14  ;;  %9263 = vmatprep.mubr.msk.f32.mxu0 %vm11016_vm1, %v11017_v1  ;;  %v6218_v14 = vld [vmem:[#allocation12 + $0x28] sm:$0xff] }
 0xf5a   :  { %10483 = vmatprep.subr.bf16.mxu0 %v11015_v0  ;;  %v10517_v16 = vpack.c.bf16 %v6218_v14, %v6217_v5 }
 0xf5c   :  { %9264 = vmatmul.mubr.f32.gmra.mrb[82].mxu0 %v5859_v22 }
 0xf5d   :  { %10485 = vmatpush3.bf16.msra.mxu0 %v10484_v17  ;;  %9266 = vmatprep.mubr.msk.f32.mxu0 %vm11016_vm1, %v11017_v1  ;;  %v6220_v17 = vld [vmem:[#allocation12 + $0x38] sm:$0xff] }
 0xf5e   :  { %10486 = vmatprep.subr.bf16.mxu0 %v11015_v0  ;;  %v10520_v43 = vpack.c.bf16 %v6220_v17, %v6219_v30 }
 0xf60   :  { %9267 = vmatmul.mubr.f32.gmra.mrb[84].mxu0 %v5860_v26 }
 0xf61   :  { %10488 = vmatpush3.bf16.msra.mxu0 %v10487_v41  ;;  %9301 = vmatprep.mubr.msk.f32.mxu0 %vm11016_vm1, %v11017_v1 }
 0xf62   :  { %10489 = vmatprep.subr.bf16.mxu0 %v11015_v0 }
 0xf65   :  { %10491 = vmatpush3.bf16.msra.mxu0 %v10490_v29 }
 0xf66   :  { %10492 = vmatprep.subr.bf16.mxu0 %v11015_v0 }
 0xf69   :  { %10494 = vmatpush3.bf16.msra.mxu0 %v10493_v34 }
 0xf6a   :  { %10495 = vmatprep.subr.bf16.mxu0 %v11015_v0 }
 0xf6d   :  { %10497 = vmatpush3.bf16.msra.mxu0 %v10496_v37 }
 0xf6e   :  { %10522 = vmatprep.subr.bf16.mxu0 %v11015_v0 }
 0xf70   :  { %9302 = vmatmul.mubr.f32.vlgmr.msra.gmra.mrb[76].mxu0 %v6079_v4 }
 0xf71   :  { %9304 = vmatprep.mubr.msk.f32.mxu0 %vm11016_vm1, %v11017_v1  ;;  %10524 = vmatpush3.bf16.msra.mxu0 %v13054_v33 }
 0xf72   :  { %10525 = vmatprep.subr.bf16.mxu0 %v11015_v0 }
 0xf74   :  { %9305 = vmatmul.mubr.f32.gmra.mrb[78].mxu0 %v6080_v39 }
 0xf75   :  { %9307 = vmatprep.mubr.msk.f32.mxu0 %vm11016_vm1, %v11017_v1  ;;  %10527 = vmatpush3.bf16.msra.mxu0 %v13069_v27 }
 0xf76   :  { %10528 = vmatprep.subr.bf16.mxu0 %v11015_v0 }
 0xf78   :  { %9308 = vmatmul.mubr.f32.gmra.mrb[80].mxu0 %v6081_v21 }
 0xf79   :  { %9310 = vmatprep.mubr.msk.f32.mxu0 %vm11016_vm1, %v11017_v1  ;;  %10530 = vmatpush3.bf16.msra.mxu0 %v13076_v59 }
 0xf7a   :  { %10531 = vmatprep.subr.bf16.mxu0 %v11015_v0 }
 0xf7c   :  { %9311 = vmatmul.mubr.f32.gmra.mrb[82].mxu0 %v6082_v40 }
 0xf7d   :  { %9313 = vmatprep.mubr.msk.f32.mxu0 %vm11016_vm1, %v11017_v1  ;;  %10533 = vmatpush3.bf16.msra.mxu0 %v13081_v63 }
 0xf80   :  { %9314 = vmatmul.mubr.f32.gmra.mrb[84].mxu0 %v6083_v42 }
 0xf81   :  { %9394 = vmatprep.mubr.msk.f32.mxu0 %vm11016_vm1, %v11017_v1 }
0x1043   :  { %v6167_v2 = vpop.f32.mrb[76].mxu0 }
0x1044   :  { %6202 = vst.msk [vmem:[#allocation4 + $0x1] sm:$0xff] %vm6201_vm14, %v6167_v2  ;;  %v9303_v18 = vpop.f32.mrb[77].mxu0 }
0x1047   :  { %v6172_v3 = vpop.f32.mrb[78].mxu0 }
0x1048   :  { %6203 = vst.msk [vmem:[#allocation4 + $0x9] sm:$0xff] %vm6201_vm14, %v6172_v3  ;;  %v9306_v46 = vpop.f32.mrb[79].mxu0 }
0x104b   :  { %v6177_v9 = vpop.f32.mrb[80].mxu0  ;;  %v6221_v49 = vld [vmem:[#allocation4 + $0x1] sm:$0xff] }
0x104c   :  { %v6198_v10 = vsel %vm163_vm3, %v6177_v9, 0.0  ;;  %v9309_v52 = vpop.f32.mrb[81].mxu0  ;;  %9333 = vmatmul.mubr.msk.f32.vlgmr.msra.gmra.mrb[86].mxu1 %vm6201_vm14, %v6221_v49  ;;  %v6208_v26 = vld [vmem:[#allocation4] sm:$0xff] }
0x104d   :  { %6204 = vst.msk [vmem:[#allocation4 + $0x11] sm:$0xff] %vm6201_vm14, %v6198_v10  ;;  %10512 = vmatpush3.bf16.msra.mxu1 %v10511_v7  ;;  %9335 = vmatprep.mubr.msk.f32.mxu1 %vm11016_vm1, %v11017_v1 }
0x104e   :  { %10513 = vmatprep.subr.bf16.mxu1 %v11015_v0 }
0x104f   :  { %v6182_v23 = vpop.f32.mrb[82].mxu0  ;;  %v6222_v13 = vld [vmem:[#allocation4 + $0x9] sm:$0xff] }
0x1050   :  { %v6445_v11 = vld [vmem:[#allocation4 + $0x2] sm:$0xff]  ;;  %6205 = vst.msk [vmem:[#allocation4 + $0x19] sm:$0xff] %vm6201_vm14, %v6182_v23  ;;  %v9312_v32 = vpop.f32.mrb[83].mxu0  ;;  %9336 = vmatmul.mubr.msk.f32.gmra.mrb[88].mxu1 %vm6201_vm14, %v6222_v13 }
0x1051   :  { %9395 = vmatmul.mubr.msk.f32.vlgmr.msra.gmra.mrb[86].mxu0 %vm6201_vm14, %v6445_v11  ;;  %10515 = vmatpush3.bf16.msra.mxu1 %v10514_v53  ;;  %v6209_v29 = vld [vmem:[#allocation4 + $0x8] sm:$0xff] }
0x1052   :  { %9338 = vmatprep.mubr.msk.f32.mxu1 %vm11016_vm1, %v11017_v1  ;;  %9397 = vmatprep.mubr.msk.f32.mxu0 %vm11016_vm1, %v11017_v1 }
0x1053   :  { %10516 = vmatprep.subr.bf16.mxu1 %v11015_v0  ;;  %v6187_v31 = vpop.f32.mrb[84].mxu0 }
0x1054   :  { %v6200_v19 = vsel %vm170_vm4, %v6187_v31, 0.0  ;;  %v9315_v20 = vpop.f32.mrb[85].mxu0  ;;  %v6223_v22 = vld [vmem:[#allocation4 + $0x11] sm:$0xff] }
0x1055   :  { %v6446_v41 = vld [vmem:[#allocation4 + $0xa] sm:$0xff]  ;;  %6207 = vst.msk [vmem:[#allocation4 + $0x21] sm:$0x3] %vm6206_vm15, %v6200_v19  ;;  %9339 = vmatmul.mubr.msk.f32.gmra.mrb[90].mxu1 %vm6201_vm14, %v6223_v22 }
0x1056   :  { %9398 = vmatmul.mubr.msk.f32.gmra.mrb[88].mxu0 %vm6201_vm14, %v6446_v41  ;;  %10518 = vmatpush3.bf16.msra.mxu1 %v10517_v16  ;;  %v6210_v24 = vld [vmem:[#allocation4 + $0x10] sm:$0xff] }
0x1057   :  { %9341 = vmatprep.mubr.msk.f32.mxu1 %vm11016_vm1, %v11017_v1  ;;  %v6224_v25 = vld [vmem:[#allocation4 + $0x19] sm:$0xff]  ;;  %10519 = vmatprep.subr.bf16.mxu1 %v11015_v0 }
0x1058   :  { %v6211_v28 = vld [vmem:[#allocation4 + $0x18] sm:$0xff] }
0x1059   :  { %9342 = vmatmul.mubr.msk.f32.gmra.mrb[92].mxu1 %vm6201_vm14, %v6224_v25  ;;  %v6447_v54 = vld [vmem:[#allocation4 + $0x12] sm:$0xff] }
0x105a   :  { %9344 = vmatprep.mubr.msk.f32.mxu1 %vm11016_vm1, %v11017_v1  ;;  %10521 = vmatpush3.bf16.msra.mxu1 %v10520_v43 }
0x105b   :  { %10534 = vmatprep.subr.bf16.mxu1 %v11015_v0 }
0x105c   :  { %v6225_v47 = vld [vmem:[#allocation4 + $0x21] sm:$0x3] }
0x105d   :  { %9345 = vmatmul.mubr.msk.f32.gmra.mrb[94].mxu1 %vm6201_vm14, %v6225_v47  ;;  %v6212_v34 = vld [vmem:[#allocation4 + $0x20] sm:$0x3]  ;;  %v6449_v35 = vld [vmem:[#allocation4 + $0x22] sm:$0x3] }
0x105e   :  { %9363 = vmatprep.mubr.msk.f32.mxu1 %vm11016_vm1, %v11017_v1 }
0x1061   :  { %9364 = vmatmul.mubr.msk.f32.vlgmr.msra.gmra.mrb[86].mxu1 %vm6201_vm14, %v6208_v26 }
0x1062   :  { %10538 = vmatpush3.bf16.msra.mxu1 %v13054_v33  ;;  %9366 = vmatprep.mubr.msk.f32.mxu1 %vm11016_vm1, %v11017_v1 }
0x1063   :  { %10535 = vmatprep.subr.bf16.mxu1 %v11015_v0 }
0x1065   :  { %9367 = vmatmul.mubr.msk.f32.gmra.mrb[88].mxu1 %vm6201_vm14, %v6209_v29 }
0x1066   :  { %10539 = vmatpush3.bf16.msra.mxu1 %v13069_v27  ;;  %9369 = vmatprep.mubr.msk.f32.mxu1 %vm11016_vm1, %v11017_v1 }
0x1067   :  { %10536 = vmatprep.subr.bf16.mxu1 %v11015_v0 }
0x1069   :  { %9370 = vmatmul.mubr.msk.f32.gmra.mrb[90].mxu1 %vm6201_vm14, %v6210_v24 }
0x106a   :  { %10540 = vmatpush3.bf16.msra.mxu1 %v13076_v59  ;;  %9372 = vmatprep.mubr.msk.f32.mxu1 %vm11016_vm1, %v11017_v1 }
0x106b   :  { %10537 = vmatprep.subr.bf16.mxu1 %v11015_v0  ;;  %v6448_v0 = vld [vmem:[#allocation4 + $0x1a] sm:$0xff] }
0x106d   :  { %9373 = vmatmul.mubr.msk.f32.gmra.mrb[92].mxu1 %vm6201_vm14, %v6211_v28 }
0x106e   :  { %9375 = vmatprep.mubr.msk.f32.mxu1 %vm11016_vm1, %v11017_v1  ;;  %10541 = vmatpush3.bf16.msra.mxu1 %v13081_v63 }
0x1071   :  { %9376 = vmatmul.mubr.msk.f32.gmra.mrb[94].mxu1 %vm6201_vm14, %v6212_v34 }
0x1072   :  { %9400 = vmatprep.mubr.msk.f32.mxu1 %vm11016_vm1, %v11017_v1 }
0x1075   :  { %9401 = vmatmul.mubr.msk.f32.vlgmr.msra.gmra.mrb[90].mxu1 %vm6201_vm14, %v6447_v54 }
0x1076   :  { %9403 = vmatprep.mubr.msk.f32.mxu1 %vm11016_vm1, %v11017_v1 }
0x1079   :  { %9404 = vmatmul.mubr.msk.f32.gmra.mrb[92].mxu1 %vm6201_vm14, %v6448_v0 }
0x107a   :  { %9406 = vmatprep.mubr.msk.f32.mxu1 %vm11016_vm1, %v11017_v1 }
0x107d   :  { %9407 = vmatmul.mubr.msk.f32.gmra.mrb[94].mxu1 %vm6201_vm14, %v6449_v35 }
0x1124   :  { %v6540_v37 = vpop.f32.mrb[86].mxu0 }
0x1125   :  { %v9396_v38 = vpop.f32.mrb[87].mxu0 }
0x1129   :  { %v6545_v62 = vpop.f32.mrb[88].mxu0 }
0x112a   :  { %v9399_v33 = vpop.f32.mrb[89].mxu0 }
0x1134   :  { %v6421_v4 = vpop.f32.mrb[86].mxu1 }
0x1135   :  { %v10552_v39 = vadd.f32 %v6540_v37, %v6421_v4  ;;  %v9365_v21 = vpop.f32.mrb[87].mxu1 }
0x1137   :  { %6569 = vst.msk [vmem:[%s13174_s10] sm:$0xff] %vm6201_vm14, %v10552_v39 }
0x1138   :  { %v6426_v40 = vpop.f32.mrb[88].mxu1 }
0x1139   :  { %v10553_v42 = vadd.f32 %v6545_v62, %v6426_v40  ;;  %v9368_v45 = vpop.f32.mrb[89].mxu1 }
0x113b   :  { %6570 = vst.msk [vmem:[%s13174_s10 + $0x8] sm:$0xff] %vm6201_vm14, %v10553_v42 }
0x1148   :  { %v6550_v1 = vpop.f32.mrb[90].mxu1 }
0x1149   :  { %6672 = vst.msk [vmem:[%s13174_s10 + $0xe] sm:$0xfc] %vm6572_vm0, %v6550_v1  ;;  %v9402_v44 = vpop.f32.mrb[91].mxu1 }
0x114c   :  { %v6555_v48 = vpop.f32.mrb[92].mxu1 }
0x114d   :  { %6673 = vst.msk [vmem:[%s13174_s10 + $0x16] sm:$0xff] %vm6201_vm14, %v6555_v48  ;;  %v9405_v12 = vpop.f32.mrb[93].mxu1 }
0x1150   :  { %v6560_v55 = vpop.f32.mrb[94].mxu1 }
0x1151   :  { %6674 = vst.msk [vmem:[%s13174_s10 + $0x1e] sm:$0x3] %vm6206_vm15, %v6560_v55  ;;  %v9408_v27 = vpop.f32.mrb[95].mxu1 }
0x1152   :  { %6584 = vsyncpa [#allocation6], 1 }
0x1153   :  { %6585 = vsyncpa [#allocation8], 1 }
0x1154   :  { %6586 = vsyncpa [#allocation11], 1 }
0x1155   :  { %6587 = vsyncpa [#allocation14], 1 }
0x1156   :  { %6588 = vsyncpa [#allocation17], 1 }

</bundles_post_ra>
